<compile_context>
chip_gen: v5e
topology: v5e:2x2
jax: 0.10.0
libtpu: 0.0.40
codegen_flags: <defaults>
</compile_context>

<pallas_src>
import functools

import jax
import jax.numpy as jnp
from jax import lax
from jax.experimental import pallas as pl
from jax.experimental.pallas import tpu as pltpu


# ---------------------------------------------------------------------------
# Fused GEMM kernel:  out = maybe_relu(A @ B + bias) [+ res]
# ---------------------------------------------------------------------------
def _gemm_kernel(*refs, relu, has_res):
    if has_res:
        a_ref, b_ref, bias_ref, res_ref, o_ref = refs
    else:
        a_ref, b_ref, bias_ref, o_ref = refs
    out = jnp.dot(a_ref[...], b_ref[...], preferred_element_type=jnp.float32)
    out = out + bias_ref[...]            # bias broadcasts ((M,1) or (1,N)), f32
    if relu:
        out = jnp.maximum(out, 0.0)
    if has_res:
        out = out + res_ref[...]         # fused residual / constant add, f32
    o_ref[...] = out.astype(o_ref.dtype)


def fused_gemm(a, b, bias, res=None, relu=False):
    """Single grid-free pallas_call; all operands are full-extent VMEM blocks."""
    m, k = a.shape
    k2, n = b.shape
    assert k == k2, (a.shape, b.shape)
    args = (a, b, bias) + ((res,) if res is not None else ())
    vmem = pl.BlockSpec(memory_space=pltpu.MemorySpace.VMEM)
    return pl.pallas_call(
        functools.partial(_gemm_kernel, relu=relu, has_res=res is not None),
        out_shape=jax.ShapeDtypeStruct((m, n), jnp.float32),
        in_specs=[vmem] * len(args),
        out_specs=vmem,
    )(*args)


# ---------------------------------------------------------------------------
# JAX glue: im2col in (K, Ho*Wo) layout (no transpose materialized), bf16 cast
# ---------------------------------------------------------------------------
def _im2col(x_sp, k):
    """x_sp: (C, H, W) -> patches (C*k*k, Ho*Wo) in bf16, channel-major rows."""
    C, H, W = x_sp.shape
    Ho, Wo = H - k + 1, W - k + 1
    x_sp = x_sp.astype(jnp.bfloat16)
    cols = [x_sp[:, i:i + Ho, j:j + Wo] for i in range(k) for j in range(k)]
    return jnp.stack(cols, axis=1).reshape(C * k * k, Ho * Wo)


# ---------------------------------------------------------------------------
# Parameters (weights reshaped / cast / constant-residuals folded ONCE at init)
# ---------------------------------------------------------------------------
def _conv_ref(x, w, b):
    y = lax.conv_general_dilated(x, w, (1, 1), "VALID",
                                 dimension_numbers=("NCHW", "OIHW", "NCHW"),
                                 precision=lax.Precision.HIGHEST)
    return y + b.reshape(1, -1, 1, 1)


def _make_conv(key, cin, cout, k):
    kw_, kb_ = jax.random.split(key)
    w = jax.random.normal(kw_, (cout, cin, k, k), jnp.float32)
    b = jax.random.normal(kb_, (cout,), jnp.float32)
    return {
        "w_full": w, "b_full": b, "k": k, "cin": cin, "cout": cout,
        "w": w.reshape(cout, cin * k * k).astype(jnp.bfloat16),   # GEMM A
        "bias": b.reshape(cout, 1),                               # f32 column bias
    }


def _make_linear(key, fin, fout):
    kw_, kb_ = jax.random.split(key)
    w = jax.random.normal(kw_, (fout, fin), jnp.float32)
    b = jax.random.normal(kb_, (1, fout), jnp.float32)            # (1, fout) as in spec
    return {"w_full": w, "b_full": b,
            "wT": w.T.astype(jnp.bfloat16),                       # (fin, fout) GEMM B
            "bias": b}


def init_params(key):
    keys = iter(jax.random.split(key, 32))
    p = {}
    p["concat_1_data"] = jax.random.normal(next(keys), (1, 1, 28, 28), jnp.float32)
    p["conv_1"] = _make_conv(next(keys), 3, 12, 3)
    add_1 = jax.random.normal(next(keys), (1, 12, 26, 26), jnp.float32)
    p["add_1_data"] = add_1
    p["add_1_res"] = add_1.reshape(12, 26 * 26)
    p["conv_2"] = _make_conv(next(keys), 12, 18, 1)
    p["conv_3"] = _make_conv(next(keys), 18, 12, 1)
    p["conv_4"] = _make_conv(next(keys), 6, 12, 1)
    p["conv_5"] = _make_conv(next(keys), 12, 18, 3)
    add_2 = jax.random.normal(next(keys), (1, 18, 24, 24), jnp.float32)
    p["add_2_data"] = add_2
    p["add_2_res"] = add_2.reshape(18, 24 * 24)
    p["conv_6"] = _make_conv(next(keys), 6, 18, 3)
    p["conv_7"] = _make_conv(next(keys), 36, 48, 1)
    add_3 = jax.random.normal(next(keys), (1, 36, 24, 24), jnp.float32)
    p["add_3_data"] = add_3
    p["conv_8"] = _make_conv(next(keys), 48, 24, 3)
    p["conv_9"] = _make_conv(next(keys), 36, 24, 3)
    p["conv_10"] = _make_conv(next(keys), 36, 24, 3)
    # conv_9 / conv_10 share input + geometry -> one batched GEMM.
    # torch computes conv_9(x + add_3); by linearity this equals
    # conv_9(x, bias=0) + [conv_9(add_3) incl. bias], the latter a constant.
    c9_const = _conv_ref(add_3, p["conv_9"]["w_full"],
                         p["conv_9"]["b_full"]).reshape(24, 22 * 22)
    p["conv_910"] = {
        "w": jnp.concatenate([p["conv_9"]["w"], p["conv_10"]["w"]], axis=0),   # (48,324) bf16
        "bias": jnp.concatenate([jnp.zeros((24, 1), jnp.float32),
                                 p["conv_10"]["bias"]], axis=0),               # (48,1)
        "res": jnp.concatenate([c9_const,
                                jnp.zeros((24, 22 * 22), jnp.float32)], axis=0),  # (48,484)
    }
    p["conv_11"] = _make_conv(next(keys), 72, 48, 5)
    mm = jax.random.normal(next(keys), (96, 48), jnp.float32)
    p["matmul_1_full"] = mm
    p["matmul_1"] = mm.astype(jnp.bfloat16)
    add_4 = jax.random.normal(next(keys), (1, 1, 324), jnp.float32)
    p["add_4_data"] = add_4
    p["add_4_res"] = add_4.reshape(1, 324)        # used as the matmul_1 "bias" slot
    p["linear"] = _make_linear(next(keys), 324, 48)
    p["add_5_data"] = jax.random.normal(next(keys), (1, 1, 324), jnp.float32)  # unused (matches spec)
    p["conv_12"] = _make_conv(next(keys), 96, 18, 3)
    p["linear_2"] = _make_linear(next(keys), 48, 10)
    return p


# ---------------------------------------------------------------------------
# Forward pass (mirrors SplittedModel.forward); activations kept as (C, H*W)
# ---------------------------------------------------------------------------
def forward(p, x):
    x = jnp.concatenate([p["concat_1_data"], x], axis=1)[0]           # (3,28,28)
    # conv_1 (3x3) + ReLU + add_1, all fused in one GEMM
    x = fused_gemm(p["conv_1"]["w"], _im2col(x, 3), p["conv_1"]["bias"],
                   res=p["add_1_res"], relu=True)                     # (12,676)
    # maxpool_1 has kernel_size=1 -> identity
    # conv_2 (1x1) + ReLU; conv_3 (1x1) with residual x fused
    x1 = fused_gemm(p["conv_2"]["w"], x.astype(jnp.bfloat16),
                    p["conv_2"]["bias"], relu=True)                   # (18,676)
    x = fused_gemm(p["conv_3"]["w"], x1.astype(jnp.bfloat16),
                   p["conv_3"]["bias"], res=x)                        # (12,676)
    # split(6, dim=1) -> row split in channel-major layout
    xa, xb = x[:6], x[6:]
    xa = fused_gemm(p["conv_4"]["w"], xa.astype(jnp.bfloat16),
                    p["conv_4"]["bias"], relu=True)                   # (12,676)
    xa = fused_gemm(p["conv_5"]["w"], _im2col(xa.reshape(12, 26, 26), 3),
                    p["conv_5"]["bias"], res=p["add_2_res"])          # (18,576)
    xb = fused_gemm(p["conv_6"]["w"], _im2col(xb.reshape(6, 26, 26), 3),
                    p["conv_6"]["bias"])                              # (18,576)
    x = jnp.concatenate([xa, xb], axis=0)                             # (36,576)
    x1 = fused_gemm(p["conv_7"]["w"], x.astype(jnp.bfloat16),
                    p["conv_7"]["bias"])                              # (48,576)
    x1 = fused_gemm(p["conv_8"]["w"], _im2col(x1.reshape(48, 24, 24), 3),
                    p["conv_8"]["bias"])                              # (24,484)
    # conv_9 (pre-add folded into constant residual) + conv_10, batched GEMM
    x23 = fused_gemm(p["conv_910"]["w"], _im2col(x.reshape(36, 24, 24), 3),
                     p["conv_910"]["bias"], res=p["conv_910"]["res"]) # (48,484)
    x = jnp.concatenate([x1, x23], axis=0)                            # (72,484)
    x = fused_gemm(p["conv_11"]["w"], _im2col(x.reshape(72, 22, 22), 5),
                   p["conv_11"]["bias"])                              # (48,324)
    # matmul_1 + add_4 fused (add_4 broadcasts over rows -> rides the bias slot)
    x = fused_gemm(p["matmul_1"], x.astype(jnp.bfloat16), p["add_4_res"])  # (96,324)
    # conv_12 on x viewed as (96,18,18)
    x2 = fused_gemm(p["conv_12"]["w"], _im2col(x.reshape(96, 18, 18), 3),
                    p["conv_12"]["bias"]).reshape(96, 48)             # (96,48)
    # linear(324->48) with (x_1 + x_2) fused
    x = fused_gemm(x.astype(jnp.bfloat16), p["linear"]["wT"],
                   p["linear"]["bias"], res=x2)                       # (96,48)
    # linear_2(48->10)
    x = fused_gemm(x.astype(jnp.bfloat16), p["linear_2"]["wT"],
                   p["linear_2"]["bias"])                             # (96,10)
    return x.reshape(1, 960)                                          # flatten(1,2)


# ---------------------------------------------------------------------------
# Pure-JAX f32 reference (correctness check only)
# ---------------------------------------------------------------------------
def forward_ref(p, x):
    relu = jax.nn.relu
    c = lambda t, l: _conv_ref(t, l["w_full"], l["b_full"])
    x = jnp.concatenate([p["concat_1_data"], x], axis=1)
    x = relu(c(x, p["conv_1"])) + p["add_1_data"]
    x_1 = relu(c(x, p["conv_2"]))
    x_1 = c(x_1, p["conv_3"])
    x = x + x_1
    x_1, x_2 = x[:, :6], x[:, 6:]
    x_1 = relu(c(x_1, p["conv_4"]))
    x_1 = c(x_1, p["conv_5"]) + p["add_2_data"]
    x_2 = c(x_2, p["conv_6"])
    x = jnp.concatenate([x_1, x_2], axis=1)
    x_1 = c(x, p["conv_7"])
    x_1 = c(x_1, p["conv_8"])
    x_2 = c(x + p["add_3_data"], p["conv_9"])
    x_3 = c(x, p["conv_10"])
    x = jnp.concatenate([x_1, x_2, x_3], axis=1)
    x = c(x, p["conv_11"]).reshape(1, 48, 324)
    x = jnp.einsum("mk,bkn->bmn", p["matmul_1_full"], x,
                   precision=lax.Precision.HIGHEST) + p["add_4_data"]
    x_1 = jnp.einsum("bmk,nk->bmn", x, p["linear"]["w_full"],
                     precision=lax.Precision.HIGHEST) + p["linear"]["b_full"]
    x_2 = c(x.reshape(1, 96, 18, 18), p["conv_12"]).reshape(1, 96, 48)
    x = x_1 + x_2
    x = jnp.einsum("bmk,nk->bmn", x, p["linear_2"]["w_full"],
                   precision=lax.Precision.HIGHEST) + p["linear_2"]["b_full"]
    return x.reshape(1, 96 * 10)


if __name__ == "__main__":
    key = jax.random.PRNGKey(0)
    k_params, k_x = jax.random.split(key)
    params = init_params(k_params)
    x = jax.random.normal(k_x, (1, 2, 28, 28), jnp.float32)   # SplittedModel.INPUT_SIZE

    fwd = jax.jit(lambda inp: forward(params, inp))
    y = fwd(x)
    jax.block_until_ready(y)

    y_ref = jax.jit(lambda inp: forward_ref(params, inp))(x)
    jax.block_until_ready(y_ref)

    assert y.shape == (1, 960)
    assert bool(jnp.isfinite(y).all())
    # bf16 GEMM inputs / f32 accumulation: gate on relative L2 error.
    rel_err = jnp.linalg.norm(y - y_ref) / jnp.linalg.norm(y_ref)
    assert float(rel_err) < 5e-2, f"relative L2 error {float(rel_err)}"

    print("KERNEL_OK")
</pallas_src>

<mosaic_0001>
module attributes {stable_mosaic.version = 11 : i64} {
  func.func @_gemm_kernel(%arg0: memref<12x27xbf16, #tpu.memory_space<vmem>>, %arg1: memref<27x676xbf16, #tpu.memory_space<vmem>>, %arg2: memref<12x1xf32, #tpu.memory_space<vmem>>, %arg3: memref<12x676xf32, #tpu.memory_space<vmem>>, %arg4: memref<12x676xf32, #tpu.memory_space<vmem>>) attributes {dimension_semantics = [], scalar_prefetch = 0 : i64, scratch_operands = 0 : i64, tpu.core_type = #tpu.core_type<tc>} {
    %c0 = arith.constant 0 : index
    %c0_0 = arith.constant 0 : index
    %0 = vector.load %arg0[%c0, %c0_0] : memref<12x27xbf16, #tpu.memory_space<vmem>>, vector<12x27xbf16>
    %c0_1 = arith.constant 0 : index
    %c0_2 = arith.constant 0 : index
    %1 = vector.load %arg1[%c0_1, %c0_2] : memref<27x676xbf16, #tpu.memory_space<vmem>>, vector<27x676xbf16>
    %cst = arith.constant dense<0.000000e+00> : vector<12x676xf32>
    %2 = tpu.matmul %0, %1, %cst {dimension_numbers = #tpu.dot_dimension_numbers<[1], [0], [0], [1], [0, 0, 1, 1], [], []>} : vector<12x27xbf16>, vector<27x676xbf16>, vector<12x676xf32> -> vector<12x676xf32>
    %c0_3 = arith.constant 0 : index
    %c0_4 = arith.constant 0 : index
    %3 = vector.load %arg2[%c0_3, %c0_4] : memref<12x1xf32, #tpu.memory_space<vmem>>, vector<12x1xf32>
    %4 = vector.broadcast %3 : vector<12x1xf32> to vector<12x676xf32>
    %5 = arith.addf %2, %4 : vector<12x676xf32>
    %cst_5 = arith.constant 0.000000e+00 : f32
    %6 = vector.broadcast %cst_5 : f32 to vector<12x676xf32>
    %7 = arith.maximumf %5, %6 : vector<12x676xf32>
    %c0_6 = arith.constant 0 : index
    %c0_7 = arith.constant 0 : index
    %8 = vector.load %arg3[%c0_6, %c0_7] : memref<12x676xf32, #tpu.memory_space<vmem>>, vector<12x676xf32>
    %9 = arith.addf %7, %8 : vector<12x676xf32>
    %c0_8 = arith.constant 0 : index
    %c0_9 = arith.constant 0 : index
    %10 = vector.load %arg4[%c0_8, %c0_9] : memref<12x676xf32, #tpu.memory_space<vmem>>, vector<12x676xf32>
    tpu.vector_store %arg4[%c0_8, %c0_9], %9 {strides = array<i32>} : memref<12x676xf32, #tpu.memory_space<vmem>>, vector<12x676xf32>,
    return
  }
}

module attributes {stable_mosaic.version = 11 : i64} {
  func.func @_gemm_kernel(%arg0: memref<18x12xbf16, #tpu.memory_space<vmem>>, %arg1: memref<12x676xbf16, #tpu.memory_space<vmem>>, %arg2: memref<18x1xf32, #tpu.memory_space<vmem>>, %arg3: memref<18x676xf32, #tpu.memory_space<vmem>>) attributes {dimension_semantics = [], scalar_prefetch = 0 : i64, scratch_operands = 0 : i64, tpu.core_type = #tpu.core_type<tc>} {
    %c0 = arith.constant 0 : index
    %c0_0 = arith.constant 0 : index
    %0 = vector.load %arg0[%c0, %c0_0] : memref<18x12xbf16, #tpu.memory_space<vmem>>, vector<18x12xbf16>
    %c0_1 = arith.constant 0 : index
    %c0_2 = arith.constant 0 : index
    %1 = vector.load %arg1[%c0_1, %c0_2] : memref<12x676xbf16, #tpu.memory_space<vmem>>, vector<12x676xbf16>
    %cst = arith.constant dense<0.000000e+00> : vector<18x676xf32>
    %2 = tpu.matmul %0, %1, %cst {dimension_numbers = #tpu.dot_dimension_numbers<[1], [0], [0], [1], [0, 0, 1, 1], [], []>} : vector<18x12xbf16>, vector<12x676xbf16>, vector<18x676xf32> -> vector<18x676xf32>
    %c0_3 = arith.constant 0 : index
    %c0_4 = arith.constant 0 : index
    %3 = vector.load %arg2[%c0_3, %c0_4] : memref<18x1xf32, #tpu.memory_space<vmem>>, vector<18x1xf32>
    %4 = vector.broadcast %3 : vector<18x1xf32> to vector<18x676xf32>
    %5 = arith.addf %2, %4 : vector<18x676xf32>
    %cst_5 = arith.constant 0.000000e+00 : f32
    %6 = vector.broadcast %cst_5 : f32 to vector<18x676xf32>
    %7 = arith.maximumf %5, %6 : vector<18x676xf32>
    %c0_6 = arith.constant 0 : index
    %c0_7 = arith.constant 0 : index
    %8 = vector.load %arg3[%c0_6, %c0_7] : memref<18x676xf32, #tpu.memory_space<vmem>>, vector<18x676xf32>
    tpu.vector_store %arg3[%c0_6, %c0_7], %7 {strides = array<i32>} : memref<18x676xf32, #tpu.memory_space<vmem>>, vector<18x676xf32>,
    return
  }
}

module attributes {stable_mosaic.version = 11 : i64} {
  func.func @_gemm_kernel(%arg0: memref<12x18xbf16, #tpu.memory_space<vmem>>, %arg1: memref<18x676xbf16, #tpu.memory_space<vmem>>, %arg2: memref<12x1xf32, #tpu.memory_space<vmem>>, %arg3: memref<12x676xf32, #tpu.memory_space<vmem>>, %arg4: memref<12x676xf32, #tpu.memory_space<vmem>>) attributes {dimension_semantics = [], scalar_prefetch = 0 : i64, scratch_operands = 0 : i64, tpu.core_type = #tpu.core_type<tc>} {
    %c0 = arith.constant 0 : index
    %c0_0 = arith.constant 0 : index
    %0 = vector.load %arg0[%c0, %c0_0] : memref<12x18xbf16, #tpu.memory_space<vmem>>, vector<12x18xbf16>
    %c0_1 = arith.constant 0 : index
    %c0_2 = arith.constant 0 : index
    %1 = vector.load %arg1[%c0_1, %c0_2] : memref<18x676xbf16, #tpu.memory_space<vmem>>, vector<18x676xbf16>
    %cst = arith.constant dense<0.000000e+00> : vector<12x676xf32>
    %2 = tpu.matmul %0, %1, %cst {dimension_numbers = #tpu.dot_dimension_numbers<[1], [0], [0], [1], [0, 0, 1, 1], [], []>} : vector<12x18xbf16>, vector<18x676xbf16>, vector<12x676xf32> -> vector<12x676xf32>
    %c0_3 = arith.constant 0 : index
    %c0_4 = arith.constant 0 : index
    %3 = vector.load %arg2[%c0_3, %c0_4] : memref<12x1xf32, #tpu.memory_space<vmem>>, vector<12x1xf32>
    %4 = vector.broadcast %3 : vector<12x1xf32> to vector<12x676xf32>
    %5 = arith.addf %2, %4 : vector<12x676xf32>
    %c0_5 = arith.constant 0 : index
    %c0_6 = arith.constant 0 : index
    %6 = vector.load %arg3[%c0_5, %c0_6] : memref<12x676xf32, #tpu.memory_space<vmem>>, vector<12x676xf32>
    %7 = arith.addf %5, %6 : vector<12x676xf32>
    %c0_7 = arith.constant 0 : index
    %c0_8 = arith.constant 0 : index
    %8 = vector.load %arg4[%c0_7, %c0_8] : memref<12x676xf32, #tpu.memory_space<vmem>>, vector<12x676xf32>
    tpu.vector_store %arg4[%c0_7, %c0_8], %7 {strides = array<i32>} : memref<12x676xf32, #tpu.memory_space<vmem>>, vector<12x676xf32>,
    return
  }
}

module attributes {stable_mosaic.version = 11 : i64} {
  func.func @_gemm_kernel(%arg0: memref<12x6xbf16, #tpu.memory_space<vmem>>, %arg1: memref<6x676xbf16, #tpu.memory_space<vmem>>, %arg2: memref<12x1xf32, #tpu.memory_space<vmem>>, %arg3: memref<12x676xf32, #tpu.memory_space<vmem>>) attributes {dimension_semantics = [], scalar_prefetch = 0 : i64, scratch_operands = 0 : i64, tpu.core_type = #tpu.core_type<tc>} {
    %c0 = arith.constant 0 : index
    %c0_0 = arith.constant 0 : index
    %0 = vector.load %arg0[%c0, %c0_0] : memref<12x6xbf16, #tpu.memory_space<vmem>>, vector<12x6xbf16>
    %c0_1 = arith.constant 0 : index
    %c0_2 = arith.constant 0 : index
    %1 = vector.load %arg1[%c0_1, %c0_2] : memref<6x676xbf16, #tpu.memory_space<vmem>>, vector<6x676xbf16>
    %cst = arith.constant dense<0.000000e+00> : vector<12x676xf32>
    %2 = tpu.matmul %0, %1, %cst {dimension_numbers = #tpu.dot_dimension_numbers<[1], [0], [0], [1], [0, 0, 1, 1], [], []>} : vector<12x6xbf16>, vector<6x676xbf16>, vector<12x676xf32> -> vector<12x676xf32>
    %c0_3 = arith.constant 0 : index
    %c0_4 = arith.constant 0 : index
    %3 = vector.load %arg2[%c0_3, %c0_4] : memref<12x1xf32, #tpu.memory_space<vmem>>, vector<12x1xf32>
    %4 = vector.broadcast %3 : vector<12x1xf32> to vector<12x676xf32>
    %5 = arith.addf %2, %4 : vector<12x676xf32>
    %cst_5 = arith.constant 0.000000e+00 : f32
    %6 = vector.broadcast %cst_5 : f32 to vector<12x676xf32>
    %7 = arith.maximumf %5, %6 : vector<12x676xf32>
    %c0_6 = arith.constant 0 : index
    %c0_7 = arith.constant 0 : index
    %8 = vector.load %arg3[%c0_6, %c0_7] : memref<12x676xf32, #tpu.memory_space<vmem>>, vector<12x676xf32>
    tpu.vector_store %arg3[%c0_6, %c0_7], %7 {strides = array<i32>} : memref<12x676xf32, #tpu.memory_space<vmem>>, vector<12x676xf32>,
    return
  }
}

module attributes {stable_mosaic.version = 11 : i64} {
  func.func @_gemm_kernel(%arg0: memref<18x54xbf16, #tpu.memory_space<vmem>>, %arg1: memref<54x576xbf16, #tpu.memory_space<vmem>>, %arg2: memref<18x1xf32, #tpu.memory_space<vmem>>, %arg3: memref<18x576xf32, #tpu.memory_space<vmem>>) attributes {dimension_semantics = [], scalar_prefetch = 0 : i64, scratch_operands = 0 : i64, tpu.core_type = #tpu.core_type<tc>} {
    %c0 = arith.constant 0 : index
    %c0_0 = arith.constant 0 : index
    %0 = vector.load %arg0[%c0, %c0_0] : memref<18x54xbf16, #tpu.memory_space<vmem>>, vector<18x54xbf16>
    %c0_1 = arith.constant 0 : index
    %c0_2 = arith.constant 0 : index
    %1 = vector.load %arg1[%c0_1, %c0_2] : memref<54x576xbf16, #tpu.memory_space<vmem>>, vector<54x576xbf16>
    %cst = arith.constant dense<0.000000e+00> : vector<18x576xf32>
    %2 = tpu.matmul %0, %1, %cst {dimension_numbers = #tpu.dot_dimension_numbers<[1], [0], [0], [1], [0, 0, 1, 1], [], []>} : vector<18x54xbf16>, vector<54x576xbf16>, vector<18x576xf32> -> vector<18x576xf32>
    %c0_3 = arith.constant 0 : index
    %c0_4 = arith.constant 0 : index
    %3 = vector.load %arg2[%c0_3, %c0_4] : memref<18x1xf32, #tpu.memory_space<vmem>>, vector<18x1xf32>
    %4 = vector.broadcast %3 : vector<18x1xf32> to vector<18x576xf32>
    %5 = arith.addf %2, %4 : vector<18x576xf32>
    %c0_5 = arith.constant 0 : index
    %c0_6 = arith.constant 0 : index
    %6 = vector.load %arg3[%c0_5, %c0_6] : memref<18x576xf32, #tpu.memory_space<vmem>>, vector<18x576xf32>
    tpu.vector_store %arg3[%c0_5, %c0_6], %5 {strides = array<i32>} : memref<18x576xf32, #tpu.memory_space<vmem>>, vector<18x576xf32>,
    return
  }
}

module attributes {stable_mosaic.version = 11 : i64} {
  func.func @_gemm_kernel(%arg0: memref<18x108xbf16, #tpu.memory_space<vmem>>, %arg1: memref<108x576xbf16, #tpu.memory_space<vmem>>, %arg2: memref<18x1xf32, #tpu.memory_space<vmem>>, %arg3: memref<18x576xf32, #tpu.memory_space<vmem>>, %arg4: memref<18x576xf32, #tpu.memory_space<vmem>>) attributes {dimension_semantics = [], scalar_prefetch = 0 : i64, scratch_operands = 0 : i64, tpu.core_type = #tpu.core_type<tc>} {
    %c0 = arith.constant 0 : index
    %c0_0 = arith.constant 0 : index
    %0 = vector.load %arg0[%c0, %c0_0] : memref<18x108xbf16, #tpu.memory_space<vmem>>, vector<18x108xbf16>
    %c0_1 = arith.constant 0 : index
    %c0_2 = arith.constant 0 : index
    %1 = vector.load %arg1[%c0_1, %c0_2] : memref<108x576xbf16, #tpu.memory_space<vmem>>, vector<108x576xbf16>
    %cst = arith.constant dense<0.000000e+00> : vector<18x576xf32>
    %2 = tpu.matmul %0, %1, %cst {dimension_numbers = #tpu.dot_dimension_numbers<[1], [0], [0], [1], [0, 0, 1, 1], [], []>} : vector<18x108xbf16>, vector<108x576xbf16>, vector<18x576xf32> -> vector<18x576xf32>
    %c0_3 = arith.constant 0 : index
    %c0_4 = arith.constant 0 : index
    %3 = vector.load %arg2[%c0_3, %c0_4] : memref<18x1xf32, #tpu.memory_space<vmem>>, vector<18x1xf32>
    %4 = vector.broadcast %3 : vector<18x1xf32> to vector<18x576xf32>
    %5 = arith.addf %2, %4 : vector<18x576xf32>
    %c0_5 = arith.constant 0 : index
    %c0_6 = arith.constant 0 : index
    %6 = vector.load %arg3[%c0_5, %c0_6] : memref<18x576xf32, #tpu.memory_space<vmem>>, vector<18x576xf32>
    %7 = arith.addf %5, %6 : vector<18x576xf32>
    %c0_7 = arith.constant 0 : index
    %c0_8 = arith.constant 0 : index
    %8 = vector.load %arg4[%c0_7, %c0_8] : memref<18x576xf32, #tpu.memory_space<vmem>>, vector<18x576xf32>
    tpu.vector_store %arg4[%c0_7, %c0_8], %7 {strides = array<i32>} : memref<18x576xf32, #tpu.memory_space<vmem>>, vector<18x576xf32>,
    return
  }
}

module attributes {stable_mosaic.version = 11 : i64} {
  func.func @_gemm_kernel(%arg0: memref<48x36xbf16, #tpu.memory_space<vmem>>, %arg1: memref<36x576xbf16, #tpu.memory_space<vmem>>, %arg2: memref<48x1xf32, #tpu.memory_space<vmem>>, %arg3: memref<48x576xf32, #tpu.memory_space<vmem>>) attributes {dimension_semantics = [], scalar_prefetch = 0 : i64, scratch_operands = 0 : i64, tpu.core_type = #tpu.core_type<tc>} {
    %c0 = arith.constant 0 : index
    %c0_0 = arith.constant 0 : index
    %0 = vector.load %arg0[%c0, %c0_0] : memref<48x36xbf16, #tpu.memory_space<vmem>>, vector<48x36xbf16>
    %c0_1 = arith.constant 0 : index
    %c0_2 = arith.constant 0 : index
    %1 = vector.load %arg1[%c0_1, %c0_2] : memref<36x576xbf16, #tpu.memory_space<vmem>>, vector<36x576xbf16>
    %cst = arith.constant dense<0.000000e+00> : vector<48x576xf32>
    %2 = tpu.matmul %0, %1, %cst {dimension_numbers = #tpu.dot_dimension_numbers<[1], [0], [0], [1], [0, 0, 1, 1], [], []>} : vector<48x36xbf16>, vector<36x576xbf16>, vector<48x576xf32> -> vector<48x576xf32>
    %c0_3 = arith.constant 0 : index
    %c0_4 = arith.constant 0 : index
    %3 = vector.load %arg2[%c0_3, %c0_4] : memref<48x1xf32, #tpu.memory_space<vmem>>, vector<48x1xf32>
    %4 = vector.broadcast %3 : vector<48x1xf32> to vector<48x576xf32>
    %5 = arith.addf %2, %4 : vector<48x576xf32>
    %c0_5 = arith.constant 0 : index
    %c0_6 = arith.constant 0 : index
    %6 = vector.load %arg3[%c0_5, %c0_6] : memref<48x576xf32, #tpu.memory_space<vmem>>, vector<48x576xf32>
    tpu.vector_store %arg3[%c0_5, %c0_6], %5 {strides = array<i32>} : memref<48x576xf32, #tpu.memory_space<vmem>>, vector<48x576xf32>,
    return
  }
}

module attributes {stable_mosaic.version = 11 : i64} {
  func.func @_gemm_kernel(%arg0: memref<24x432xbf16, #tpu.memory_space<vmem>>, %arg1: memref<432x484xbf16, #tpu.memory_space<vmem>>, %arg2: memref<24x1xf32, #tpu.memory_space<vmem>>, %arg3: memref<24x484xf32, #tpu.memory_space<vmem>>) attributes {dimension_semantics = [], scalar_prefetch = 0 : i64, scratch_operands = 0 : i64, tpu.core_type = #tpu.core_type<tc>} {
    %c0 = arith.constant 0 : index
    %c0_0 = arith.constant 0 : index
    %0 = vector.load %arg0[%c0, %c0_0] : memref<24x432xbf16, #tpu.memory_space<vmem>>, vector<24x432xbf16>
    %c0_1 = arith.constant 0 : index
    %c0_2 = arith.constant 0 : index
    %1 = vector.load %arg1[%c0_1, %c0_2] : memref<432x484xbf16, #tpu.memory_space<vmem>>, vector<432x484xbf16>
    %cst = arith.constant dense<0.000000e+00> : vector<24x484xf32>
    %2 = tpu.matmul %0, %1, %cst {dimension_numbers = #tpu.dot_dimension_numbers<[1], [0], [0], [1], [0, 0, 1, 1], [], []>} : vector<24x432xbf16>, vector<432x484xbf16>, vector<24x484xf32> -> vector<24x484xf32>
    %c0_3 = arith.constant 0 : index
    %c0_4 = arith.constant 0 : index
    %3 = vector.load %arg2[%c0_3, %c0_4] : memref<24x1xf32, #tpu.memory_space<vmem>>, vector<24x1xf32>
    %4 = vector.broadcast %3 : vector<24x1xf32> to vector<24x484xf32>
    %5 = arith.addf %2, %4 : vector<24x484xf32>
    %c0_5 = arith.constant 0 : index
    %c0_6 = arith.constant 0 : index
    %6 = vector.load %arg3[%c0_5, %c0_6] : memref<24x484xf32, #tpu.memory_space<vmem>>, vector<24x484xf32>
    tpu.vector_store %arg3[%c0_5, %c0_6], %5 {strides = array<i32>} : memref<24x484xf32, #tpu.memory_space<vmem>>, vector<24x484xf32>,
    return
  }
}

module attributes {stable_mosaic.version = 11 : i64} {
  func.func @_gemm_kernel(%arg0: memref<48x324xbf16, #tpu.memory_space<vmem>>, %arg1: memref<324x484xbf16, #tpu.memory_space<vmem>>, %arg2: memref<48x1xf32, #tpu.memory_space<vmem>>, %arg3: memref<48x484xf32, #tpu.memory_space<vmem>>, %arg4: memref<48x484xf32, #tpu.memory_space<vmem>>) attributes {dimension_semantics = [], scalar_prefetch = 0 : i64, scratch_operands = 0 : i64, tpu.core_type = #tpu.core_type<tc>} {
    %c0 = arith.constant 0 : index
    %c0_0 = arith.constant 0 : index
    %0 = vector.load %arg0[%c0, %c0_0] : memref<48x324xbf16, #tpu.memory_space<vmem>>, vector<48x324xbf16>
    %c0_1 = arith.constant 0 : index
    %c0_2 = arith.constant 0 : index
    %1 = vector.load %arg1[%c0_1, %c0_2] : memref<324x484xbf16, #tpu.memory_space<vmem>>, vector<324x484xbf16>
    %cst = arith.constant dense<0.000000e+00> : vector<48x484xf32>
    %2 = tpu.matmul %0, %1, %cst {dimension_numbers = #tpu.dot_dimension_numbers<[1], [0], [0], [1], [0, 0, 1, 1], [], []>} : vector<48x324xbf16>, vector<324x484xbf16>, vector<48x484xf32> -> vector<48x484xf32>
    %c0_3 = arith.constant 0 : index
    %c0_4 = arith.constant 0 : index
    %3 = vector.load %arg2[%c0_3, %c0_4] : memref<48x1xf32, #tpu.memory_space<vmem>>, vector<48x1xf32>
    %4 = vector.broadcast %3 : vector<48x1xf32> to vector<48x484xf32>
    %5 = arith.addf %2, %4 : vector<48x484xf32>
    %c0_5 = arith.constant 0 : index
    %c0_6 = arith.constant 0 : index
    %6 = vector.load %arg3[%c0_5, %c0_6] : memref<48x484xf32, #tpu.memory_space<vmem>>, vector<48x484xf32>
    %7 = arith.addf %5, %6 : vector<48x484xf32>
    %c0_7 = arith.constant 0 : index
    %c0_8 = arith.constant 0 : index
    %8 = vector.load %arg4[%c0_7, %c0_8] : memref<48x484xf32, #tpu.memory_space<vmem>>, vector<48x484xf32>
    tpu.vector_store %arg4[%c0_7, %c0_8], %7 {strides = array<i32>} : memref<48x484xf32, #tpu.memory_space<vmem>>, vector<48x484xf32>,
    return
  }
}

module attributes {stable_mosaic.version = 11 : i64} {
  func.func @_gemm_kernel(%arg0: memref<48x1800xbf16, #tpu.memory_space<vmem>>, %arg1: memref<1800x324xbf16, #tpu.memory_space<vmem>>, %arg2: memref<48x1xf32, #tpu.memory_space<vmem>>, %arg3: memref<48x324xf32, #tpu.memory_space<vmem>>) attributes {dimension_semantics = [], scalar_prefetch = 0 : i64, scratch_operands = 0 : i64, tpu.core_type = #tpu.core_type<tc>} {
    %c0 = arith.constant 0 : index
    %c0_0 = arith.constant 0 : index
    %0 = vector.load %arg0[%c0, %c0_0] : memref<48x1800xbf16, #tpu.memory_space<vmem>>, vector<48x1800xbf16>
    %c0_1 = arith.constant 0 : index
    %c0_2 = arith.constant 0 : index
    %1 = vector.load %arg1[%c0_1, %c0_2] : memref<1800x324xbf16, #tpu.memory_space<vmem>>, vector<1800x324xbf16>
    %cst = arith.constant dense<0.000000e+00> : vector<48x324xf32>
    %2 = tpu.matmul %0, %1, %cst {dimension_numbers = #tpu.dot_dimension_numbers<[1], [0], [0], [1], [0, 0, 1, 1], [], []>} : vector<48x1800xbf16>, vector<1800x324xbf16>, vector<48x324xf32> -> vector<48x324xf32>
    %c0_3 = arith.constant 0 : index
    %c0_4 = arith.constant 0 : index
    %3 = vector.load %arg2[%c0_3, %c0_4] : memref<48x1xf32, #tpu.memory_space<vmem>>, vector<48x1xf32>
    %4 = vector.broadcast %3 : vector<48x1xf32> to vector<48x324xf32>
    %5 = arith.addf %2, %4 : vector<48x324xf32>
    %c0_5 = arith.constant 0 : index
    %c0_6 = arith.constant 0 : index
    %6 = vector.load %arg3[%c0_5, %c0_6] : memref<48x324xf32, #tpu.memory_space<vmem>>, vector<48x324xf32>
    tpu.vector_store %arg3[%c0_5, %c0_6], %5 {strides = array<i32>} : memref<48x324xf32, #tpu.memory_space<vmem>>, vector<48x324xf32>,
    return
  }
}

module attributes {stable_mosaic.version = 11 : i64} {
  func.func @_gemm_kernel(%arg0: memref<96x48xbf16, #tpu.memory_space<vmem>>, %arg1: memref<48x324xbf16, #tpu.memory_space<vmem>>, %arg2: memref<1x324xf32, #tpu.memory_space<vmem>>, %arg3: memref<96x324xf32, #tpu.memory_space<vmem>>) attributes {dimension_semantics = [], scalar_prefetch = 0 : i64, scratch_operands = 0 : i64, tpu.core_type = #tpu.core_type<tc>} {
    %c0 = arith.constant 0 : index
    %c0_0 = arith.constant 0 : index
    %0 = vector.load %arg0[%c0, %c0_0] : memref<96x48xbf16, #tpu.memory_space<vmem>>, vector<96x48xbf16>
    %c0_1 = arith.constant 0 : index
    %c0_2 = arith.constant 0 : index
    %1 = vector.load %arg1[%c0_1, %c0_2] : memref<48x324xbf16, #tpu.memory_space<vmem>>, vector<48x324xbf16>
    %cst = arith.constant dense<0.000000e+00> : vector<96x324xf32>
    %2 = tpu.matmul %0, %1, %cst {dimension_numbers = #tpu.dot_dimension_numbers<[1], [0], [0], [1], [0, 0, 1, 1], [], []>} : vector<96x48xbf16>, vector<48x324xbf16>, vector<96x324xf32> -> vector<96x324xf32>
    %c0_3 = arith.constant 0 : index
    %c0_4 = arith.constant 0 : index
    %3 = vector.load %arg2[%c0_3, %c0_4] : memref<1x324xf32, #tpu.memory_space<vmem>>, vector<1x324xf32>
    %4 = vector.broadcast %3 : vector<1x324xf32> to vector<96x324xf32>
    %5 = arith.addf %2, %4 : vector<96x324xf32>
    %c0_5 = arith.constant 0 : index
    %c0_6 = arith.constant 0 : index
    %6 = vector.load %arg3[%c0_5, %c0_6] : memref<96x324xf32, #tpu.memory_space<vmem>>, vector<96x324xf32>
    tpu.vector_store %arg3[%c0_5, %c0_6], %5 {strides = array<i32>} : memref<96x324xf32, #tpu.memory_space<vmem>>, vector<96x324xf32>,
    return
  }
}

module attributes {stable_mosaic.version = 11 : i64} {
  func.func @_gemm_kernel(%arg0: memref<18x864xbf16, #tpu.memory_space<vmem>>, %arg1: memref<864x256xbf16, #tpu.memory_space<vmem>>, %arg2: memref<18x1xf32, #tpu.memory_space<vmem>>, %arg3: memref<18x256xf32, #tpu.memory_space<vmem>>) attributes {dimension_semantics = [], scalar_prefetch = 0 : i64, scratch_operands = 0 : i64, tpu.core_type = #tpu.core_type<tc>} {
    %c0 = arith.constant 0 : index
    %c0_0 = arith.constant 0 : index
    %0 = vector.load %arg0[%c0, %c0_0] : memref<18x864xbf16, #tpu.memory_space<vmem>>, vector<18x864xbf16>
    %c0_1 = arith.constant 0 : index
    %c0_2 = arith.constant 0 : index
    %1 = vector.load %arg1[%c0_1, %c0_2] : memref<864x256xbf16, #tpu.memory_space<vmem>>, vector<864x256xbf16>
    %cst = arith.constant dense<0.000000e+00> : vector<18x256xf32>
    %2 = tpu.matmul %0, %1, %cst {dimension_numbers = #tpu.dot_dimension_numbers<[1], [0], [0], [1], [0, 0, 1, 1], [], []>} : vector<18x864xbf16>, vector<864x256xbf16>, vector<18x256xf32> -> vector<18x256xf32>
    %c0_3 = arith.constant 0 : index
    %c0_4 = arith.constant 0 : index
    %3 = vector.load %arg2[%c0_3, %c0_4] : memref<18x1xf32, #tpu.memory_space<vmem>>, vector<18x1xf32>
    %4 = vector.broadcast %3 : vector<18x1xf32> to vector<18x256xf32>
    %5 = arith.addf %2, %4 : vector<18x256xf32>
    %c0_5 = arith.constant 0 : index
    %c0_6 = arith.constant 0 : index
    %6 = vector.load %arg3[%c0_5, %c0_6] : memref<18x256xf32, #tpu.memory_space<vmem>>, vector<18x256xf32>
    tpu.vector_store %arg3[%c0_5, %c0_6], %5 {strides = array<i32>} : memref<18x256xf32, #tpu.memory_space<vmem>>, vector<18x256xf32>,
    return
  }
}

module attributes {stable_mosaic.version = 11 : i64} {
  func.func @_gemm_kernel(%arg0: memref<96x324xbf16, #tpu.memory_space<vmem>>, %arg1: memref<324x48xbf16, #tpu.memory_space<vmem>>, %arg2: memref<1x48xf32, #tpu.memory_space<vmem>>, %arg3: memref<96x48xf32, #tpu.memory_space<vmem>>, %arg4: memref<96x48xf32, #tpu.memory_space<vmem>>) attributes {dimension_semantics = [], scalar_prefetch = 0 : i64, scratch_operands = 0 : i64, tpu.core_type = #tpu.core_type<tc>} {
    %c0 = arith.constant 0 : index
    %c0_0 = arith.constant 0 : index
    %0 = vector.load %arg0[%c0, %c0_0] : memref<96x324xbf16, #tpu.memory_space<vmem>>, vector<96x324xbf16>
    %c0_1 = arith.constant 0 : index
    %c0_2 = arith.constant 0 : index
    %1 = vector.load %arg1[%c0_1, %c0_2] : memref<324x48xbf16, #tpu.memory_space<vmem>>, vector<324x48xbf16>
    %cst = arith.constant dense<0.000000e+00> : vector<96x48xf32>
    %2 = tpu.matmul %0, %1, %cst {dimension_numbers = #tpu.dot_dimension_numbers<[1], [0], [0], [1], [0, 0, 1, 1], [], []>} : vector<96x324xbf16>, vector<324x48xbf16>, vector<96x48xf32> -> vector<96x48xf32>
    %c0_3 = arith.constant 0 : index
    %c0_4 = arith.constant 0 : index
    %3 = vector.load %arg2[%c0_3, %c0_4] : memref<1x48xf32, #tpu.memory_space<vmem>>, vector<1x48xf32>
    %4 = vector.broadcast %3 : vector<1x48xf32> to vector<96x48xf32>
    %5 = arith.addf %2, %4 : vector<96x48xf32>
    %c0_5 = arith.constant 0 : index
    %c0_6 = arith.constant 0 : index
    %6 = vector.load %arg3[%c0_5, %c0_6] : memref<96x48xf32, #tpu.memory_space<vmem>>, vector<96x48xf32>
    %7 = arith.addf %5, %6 : vector<96x48xf32>
    %c0_7 = arith.constant 0 : index
    %c0_8 = arith.constant 0 : index
    %8 = vector.load %arg4[%c0_7, %c0_8] : memref<96x48xf32, #tpu.memory_space<vmem>>, vector<96x48xf32>
    tpu.vector_store %arg4[%c0_7, %c0_8], %7 {strides = array<i32>} : memref<96x48xf32, #tpu.memory_space<vmem>>, vector<96x48xf32>,
    return
  }
}

module attributes {stable_mosaic.version = 11 : i64} {
  func.func @_gemm_kernel(%arg0: memref<96x48xbf16, #tpu.memory_space<vmem>>, %arg1: memref<48x10xbf16, #tpu.memory_space<vmem>>, %arg2: memref<1x10xf32, #tpu.memory_space<vmem>>, %arg3: memref<96x10xf32, #tpu.memory_space<vmem>>) attributes {dimension_semantics = [], scalar_prefetch = 0 : i64, scratch_operands = 0 : i64, tpu.core_type = #tpu.core_type<tc>} {
    %c0 = arith.constant 0 : index
    %c0_0 = arith.constant 0 : index
    %0 = vector.load %arg0[%c0, %c0_0] : memref<96x48xbf16, #tpu.memory_space<vmem>>, vector<96x48xbf16>
    %c0_1 = arith.constant 0 : index
    %c0_2 = arith.constant 0 : index
    %1 = vector.load %arg1[%c0_1, %c0_2] : memref<48x10xbf16, #tpu.memory_space<vmem>>, vector<48x10xbf16>
    %cst = arith.constant dense<0.000000e+00> : vector<96x10xf32>
    %2 = tpu.matmul %0, %1, %cst {dimension_numbers = #tpu.dot_dimension_numbers<[1], [0], [0], [1], [0, 0, 1, 1], [], []>} : vector<96x48xbf16>, vector<48x10xbf16>, vector<96x10xf32> -> vector<96x10xf32>
    %c0_3 = arith.constant 0 : index
    %c0_4 = arith.constant 0 : index
    %3 = vector.load %arg2[%c0_3, %c0_4] : memref<1x10xf32, #tpu.memory_space<vmem>>, vector<1x10xf32>
    %4 = vector.broadcast %3 : vector<1x10xf32> to vector<96x10xf32>
    %5 = arith.addf %2, %4 : vector<96x10xf32>
    %c0_5 = arith.constant 0 : index
    %c0_6 = arith.constant 0 : index
    %6 = vector.load %arg3[%c0_5, %c0_6] : memref<96x10xf32, #tpu.memory_space<vmem>>, vector<96x10xf32>
    tpu.vector_store %arg3[%c0_5, %c0_6], %5 {strides = array<i32>} : memref<96x10xf32, #tpu.memory_space<vmem>>, vector<96x10xf32>,
    return
  }
}

</mosaic_0001>

<bundles_post_ra>
// kernel: _lambda_.14
= control target key start
LH: loop header
LB: loop body
LE: loop exit
PB: predicated region body
PF: predicated region fallthrough
CT: control target
= control target key end

     0   :  { %9 = vsyncpa [#allocation3], 0  ;;  %s634_s0 = inlined_call_operand.hbm [shape: bf16[12,27], index: 0, kind: input, shape index: {}]   ;;  %s635_s1 = inlined_call_operand.vmem [shape: bf16[27,676], index: 1, kind: input, shape index: {}]   ;;  %s636_s2 = inlined_call_operand.hbm [shape: f32[12,1], index: 2, kind: input, shape index: {}]   ;;  %s637_s3 = inlined_call_operand.hbm [shape: f32[12,676], index: 3, kind: input, shape index: {}]   ;;  %s638_s4 = inlined_call_operand.vmem [shape: f32[12,676], index: 4, kind: output, shape index: {}]  }
   0x1   :  { %10 = vsyncpa [#allocation5], 0  ;;  %s30_s17 = sshll.u32 %s636_s2, 4  ;;  %s475_s18 = smov [#allocation4]   ;;  %s31_s17 = int_to_ptr.hbm [resolvable:$true] %s30_s17 }
   0x2   :  { %s32_s19 = sshll.u32 %s475_s18, 4  ;;  %s15_s22 = sshll.u32 %s634_s0, 4  ;;  %s33_s19 = int_to_ptr.vmem [resolvable:$true] %s32_s19  ;;  %s16_s22 = int_to_ptr.hbm [resolvable:$true] %s15_s22 }
   0x3   :  { %s476_s23 = smov 128   ;;  %s477_s24 = smov 8  }
   0x4   :  { %38 = dma.hbm_to_vmem [thread:$0]  %s31_s17, 256, %s33_s19, [#allocation5], %s476_s23, %s476_s23, %s477_s24  }
   0x5   :  { %s478_s25 = smov [#allocation2]   ;;  %s479_s27 = smov 64  }
   0x6   :  { %s17_s26 = sshll.u32 %s478_s25, 4  ;;  %s480_s28 = smov 4   ;;  %s18_s26 = int_to_ptr.vmem [resolvable:$true] %s17_s26 }
   0x7   :  { %23 = dma.hbm_to_vmem [thread:$0]  %s16_s22, 128, %s18_s26, [#allocation3], %s479_s27, %s479_s27, %s480_s28  }
   0x8   :  { %s43_s30 = sshll.u32 %s637_s3, 4  ;;  %s481_s5 = smov [#allocation6]   ;;  %s44_s30 = int_to_ptr.hbm [resolvable:$true] %s43_s30 }
   0x9   :  { %s45_s6 = sshll.u32 %s481_s5, 4  ;;  %s482_s7 = smov 768   ;;  %s46_s6 = int_to_ptr.vmem [resolvable:$true] %s45_s6 }
   0xa   :  { %s483_s0 = smov 48  }
   0xb   :  { %51 = dma.hbm_to_vmem [thread:$0]  %s44_s30, 1536, %s46_s6, [#allocation5], %s482_s7, %s482_s7, %s483_s0  }
   0xc   :  { %471 = dma.done.wait [#allocation3], 128  }
   0xd   :  { %472 = vsyncadd [#allocation3], 4294967168 }
   0xe   :  { %473 = dma.done.wait [#allocation5], 1792  }
   0xf   :  { %474 = vsyncadd [#allocation5], 4294965504  ;;  %vm154_vm0 = vcmask 1044480   ;;  %v484_v0 = vmov 0   ;;  %vm155_vm1 = vcmask 1045504   ;;  %v485_v1 = vmov 65535  }
  0x10   :  { %398 = vset.pattern.permute.xlu0 %v484_v0  ;;  %v156_v2 = vsel %vm154_vm0, 4294967295, %v485_v1  ;;  %v346_v4 = vld [vmem:[%s635_s1 + $0x30] sm:$0xf]  ;;  %v384_v5 = vld [vmem:[%s635_s1 + $0x44] sm:$0x30]  ;;  %vm150_vm2 = vcmask 220160  }
  0x11   :  { %v157_v3 = vsel %vm155_vm1, %v156_v2, 0  ;;  %v381_v6 = vld [vmem:[%s635_s1 + $0x34] sm:$0xf]  ;;  %v347_v7 = vor.u32 %v384_v5, %v346_v4  ;;  %v348_v8 = vld [vmem:[%s635_s1 + $0x48] sm:$0x30]  ;;  %v272_v55 = vld [vmem:[#allocation6] sm:$0xff] }
  0x12   :  { %v354_v9 = vld [vmem:[%s635_s1 + $0x38] sm:$0xf]  ;;  %v385_v10 = vld [vmem:[%s635_s1 + $0x4c] sm:$0x30]  ;;  %v351_v11 = vor.u32 %v381_v6, %v348_v8  ;;  %v382_v13 = vld [vmem:[%s635_s1 + $0x3c] sm:$0xf] }
  0x13   :  { %v355_v12 = vor.u32 %v385_v10, %v354_v9  ;;  %v356_v14 = vld [vmem:[%s635_s1 + $0x50] sm:$0x30]  ;;  %v322_v15 = vld [vmem:[%s635_s1] sm:$0xf]  ;;  %v159_v16 = vand.u32 %v347_v7, %v157_v3  ;;  %v378_v18 = vld [vmem:[%s635_s1 + $0x14] sm:$0xf0] }
  0x14   :  { %v359_v17 = vor.u32 %v382_v13, %v356_v14  ;;  %v375_v19 = vld [vmem:[%s635_s1 + $0x4] sm:$0xf]  ;;  %v324_v20 = vld [vmem:[%s635_s1 + $0x18] sm:$0xf0]  ;;  %v162_v21 = vand.u32 %v351_v11, %v157_v3  ;;  %v330_v23 = vld [vmem:[%s635_s1 + $0x8] sm:$0xf]  ;;  %v323_v27 = vor.u32 %v378_v18, %v322_v15 }
  0x15   :  { %v165_v22 = vand.u32 %v355_v12, %v157_v3  ;;  %v379_v24 = vld [vmem:[%s635_s1 + $0x1c] sm:$0xf0]  ;;  %v376_v25 = vld [vmem:[%s635_s1 + $0xc] sm:$0xf]  ;;  %182 = vmatpush.bf16.msra.mxu0 %v159_v16  ;;  %v332_v28 = vld [vmem:[%s635_s1 + $0x20] sm:$0xf0]  ;;  %v327_v31 = vor.u32 %v375_v19, %v324_v20 }
  0x16   :  { %v168_v26 = vand.u32 %v359_v17, %v157_v3  ;;  %v318_v29 = vld [vmem:[#allocation2] sm:$0xf]  ;;  %v374_v30 = vld [vmem:[#allocation2] sm:$0x30]  ;;  %196 = vmatpush.bf16.msra.mxu1 %v162_v21  ;;  %v331_v32 = vor.u32 %v379_v24, %v330_v23  ;;  %v386_v34 = vld [vmem:[%s635_s1 + $0x54] sm:$0x30]  ;;  %v335_v36 = vor.u32 %v376_v25, %v332_v28 }
  0x17   :  { %210 = vmatpush.bf16.msra.mxu2 %v165_v22  ;;  %v362_v33 = vld [vmem:[%s635_s1 + $0x40] sm:$0xf]  ;;  %v383_v35 = vld [vmem:[%s635_s1 + $0x44] sm:$0xf]  ;;  %v364_v38 = vld [vmem:[%s635_s1 + $0x58] sm:$0x30]  ;;  %v319_v39 = vor.u32 %v374_v30, %v318_v29 }
  0x18   :  { %224 = vmatpush.bf16.msra.mxu3 %v168_v26  ;;  %v363_v37 = vor.u32 %v386_v34, %v362_v33  ;;  %v367_v40 = vor.u32 %v383_v35, %v364_v38  ;;  %v338_v41 = vld [vmem:[%s635_s1 + $0x10] sm:$0xf]  ;;  %v380_v42 = vld [vmem:[%s635_s1 + $0x24] sm:$0xf0]  ;;  %v377_v45 = vld [vmem:[%s635_s1 + $0x14] sm:$0xf] }
  0x19   :  { %v79_v43 = vld [vmem:[#allocation4] sm:$0xff]  ;;  %183 = vmatpush.bf16.msra.mxu0 %v323_v27  ;;  %v339_v48 = vor.u32 %v380_v42, %v338_v41  ;;  %v80_v50 = vld [vmem:[#allocation4 + $0x8] sm:$0xf]  ;;  %v273_v58 = vld [vmem:[#allocation6 + $0x8] sm:$0xff]  ;;  %vm301_vm3 = vcmask 293888   ;;  %vm308_vm4 = vcmask 289792  }
  0x1a   :  { %v171_v44 = vand.u32 %v363_v37, %v157_v3  ;;  %v340_v46 = vld [vmem:[%s635_s1 + $0x28] sm:$0xf0]  ;;  %83 = vperm.xlu0 %398, %v79_v43   ;;  %197 = vmatpush.bf16.msra.mxu1 %v327_v31  ;;  %v174_v47 = vand.u32 %v367_v40, %v157_v3  ;;  %v278_v7 = vld [vmem:[#allocation6 + $0x30] sm:$0xf]  ;;  %v275_v10 = vld [vmem:[#allocation6 + $0x18] sm:$0xff] }
  0x1b   :  { %211 = vmatpush.bf16.msra.mxu2 %v331_v32  ;;  %v343_v49 = vor.u32 %v377_v45, %v340_v46  ;;  %v274_v5 = vld [vmem:[#allocation6 + $0x10] sm:$0xff]  ;;  %v279_v12 = vld [vmem:[#allocation6 + $0x38] sm:$0xf]  ;;  %v280_v23 = vld [vmem:[#allocation6 + $0x40] sm:$0xf] }
  0x1c   :  { %225 = vmatpush.bf16.msra.mxu3 %v335_v36  ;;  %368 = vmatmul.msk.bf16.vlgmr.msra.gmra.mxu0 %vm150_vm2, %v319_v39  ;;  %v281_v28 = vld [vmem:[#allocation6 + $0x48] sm:$0xf]  ;;  %v276_v29 = vld [vmem:[#allocation6 + $0x20] sm:$0xff]  ;;  %v282_v42 = vld [vmem:[#allocation6 + $0x50] sm:$0xf] }
  0x1d   :  { %238 = vmatpush.bf16.msrb.mxu0 %v171_v44  ;;  %369 = vmatmul.msk.bf16.vlgmr.msra.gmra.mxu1 %vm150_vm2, %v319_v39  ;;  %v277_v33 = vld [vmem:[#allocation6 + $0x28] sm:$0xff]  ;;  %v283_v45 = vld [vmem:[#allocation6 + $0x58] sm:$0xf] }
  0x1e   :  { %252 = vmatpush.bf16.msrb.mxu1 %v174_v47  ;;  %370 = vmatmul.msk.bf16.vlgmr.msra.gmra.mxu2 %vm150_vm2, %v319_v39 }
  0x1f   :  { %371 = vmatmul.msk.bf16.vlgmr.msra.gmra.mxu3 %vm150_vm2, %v319_v39 }
  0x21   :  { %239 = vmatpush.bf16.msrb.mxu0 %v339_v48 }
  0x22   :  { %253 = vmatpush.bf16.msrb.mxu1 %v343_v49  ;;  %88 = vperm.xlu0 %398, %v80_v50  }
  0x2c   :  { %372 = vmatmul.msk.bf16.vlgmr.msrb.gmra.mxu0 %vm150_vm2, %v319_v39 }
  0x2d   :  { %373 = vmatmul.msk.bf16.vlgmr.msrb.gmra.mxu1 %vm150_vm2, %v319_v39 }
  0x8c   :  { %v84_v51 = vpop.permute.xlu0 %83 }
  0x94   :  { %v89_v62 = vpop.permute.xlu0 %88 }
  0x99   :  { %v185_v52 = vpop.f32.mrf.mxu0 }
  0x9a   :  { %v186_v53 = vadd.f32 %v185_v52, %v84_v51  ;;  %v199_v54 = vpop.f32.mrf.mxu1 }
  0x9b   :  { %v200_v56 = vadd.f32 %v199_v54, %v84_v51 }
  0x9c   :  { %v260_v57 = vmax.f32 %v186_v53, 0.0 }
  0x9d   :  { %v261_v59 = vmax.f32 %v200_v56, 0.0 }
  0x9e   :  { %v284_v60 = vadd.f32 %v272_v55, %v260_v57 }
  0x9f   :  { %v285_v61 = vadd.f32 %v273_v58, %v261_v59 }
  0xa0   :  { %296 = vst [vmem:[%s638_s4] sm:$0xff] %v284_v60 }
  0xa1   :  { %v213_v63 = vpop.f32.mrf.mxu2  ;;  %297 = vst [vmem:[%s638_s4 + $0x8] sm:$0xff] %v285_v61  ;;  %v187_v0 = vpop.f32.mrf.mxu0 }
  0xa2   :  { %v214_v1 = vadd.f32 %v213_v63, %v84_v51  ;;  %v227_v2 = vpop.f32.mrf.mxu3  ;;  %v188_v3 = vadd.f32 %v187_v0, %v89_v62  ;;  %v201_v4 = vpop.f32.mrf.mxu1 }
  0xa3   :  { %v228_v6 = vadd.f32 %v227_v2, %v84_v51  ;;  %v202_v8 = vadd.f32 %v201_v4, %v89_v62 }
  0xa4   :  { %v262_v9 = vmax.f32 %v214_v1, 0.0  ;;  %v266_v11 = vmax.f32 %v188_v3, 0.0 }
  0xa5   :  { %v263_v13 = vmax.f32 %v228_v6, 0.0  ;;  %v267_v14 = vmax.f32 %v202_v8, 0.0 }
  0xa6   :  { %v286_v15 = vadd.f32 %v274_v5, %v262_v9  ;;  %v290_v16 = vadd.f32 %v278_v7, %v266_v11 }
  0xa7   :  { %v287_v17 = vadd.f32 %v275_v10, %v263_v13  ;;  %v291_v18 = vadd.f32 %v279_v12, %v267_v14 }
  0xa8   :  { %298 = vst [vmem:[%s638_s4 + $0x10] sm:$0xff] %v286_v15 }
  0xa9   :  { %303 = vst [vmem:[%s638_s4 + $0x30] sm:$0xf] %v290_v16  ;;  %v215_v19 = vpop.f32.mrf.mxu2  ;;  %v241_v22 = vpop.f32.mrf.mxu0 }
  0xaa   :  { %304 = vst [vmem:[%s638_s4 + $0x38] sm:$0xf] %v291_v18  ;;  %v216_v20 = vadd.f32 %v215_v19, %v89_v62  ;;  %v229_v21 = vpop.f32.mrf.mxu3  ;;  %v242_v25 = vadd.f32 %v241_v22, %v84_v51  ;;  %v255_v26 = vpop.f32.mrf.mxu1 }
  0xab   :  { %299 = vst [vmem:[%s638_s4 + $0x18] sm:$0xff] %v287_v17  ;;  %v230_v24 = vadd.f32 %v229_v21, %v89_v62  ;;  %v256_v30 = vadd.f32 %v255_v26, %v84_v51 }
  0xac   :  { %v268_v27 = vmax.f32 %v216_v20, 0.0  ;;  %v264_v32 = vmax.f32 %v242_v25, 0.0 }
  0xad   :  { %v269_v31 = vmax.f32 %v230_v24, 0.0  ;;  %v265_v35 = vmax.f32 %v256_v30, 0.0 }
  0xae   :  { %v292_v34 = vadd.f32 %v280_v23, %v268_v27  ;;  %v288_v37 = vadd.f32 %v276_v29, %v264_v32 }
  0xaf   :  { %v293_v36 = vadd.f32 %v281_v28, %v269_v31  ;;  %v289_v38 = vadd.f32 %v277_v33, %v265_v35 }
  0xb0   :  { %305 = vst [vmem:[%s638_s4 + $0x40] sm:$0xf] %v292_v34 }
  0xb1   :  { %306 = vst [vmem:[%s638_s4 + $0x48] sm:$0xf] %v293_v36  ;;  %v243_v39 = vpop.f32.mrf.mxu0 }
  0xb2   :  { %300 = vst [vmem:[%s638_s4 + $0x20] sm:$0xff] %v288_v37  ;;  %v244_v40 = vadd.f32 %v243_v39, %v89_v62  ;;  %v257_v41 = vpop.f32.mrf.mxu1 }
  0xb3   :  { %302 = vst.msk [vmem:[%s638_s4 + $0x28] sm:$0xff] %vm301_vm3, %v289_v38  ;;  %v258_v43 = vadd.f32 %v257_v41, %v89_v62 }
  0xb4   :  { %v270_v44 = vmax.f32 %v244_v40, 0.0 }
  0xb5   :  { %v271_v46 = vmax.f32 %v258_v43, 0.0 }
  0xb6   :  { %v294_v47 = vadd.f32 %v282_v42, %v270_v44 }
  0xb7   :  { %v295_v48 = vadd.f32 %v283_v45, %v271_v46 }
  0xb8   :  { %307 = vst [vmem:[%s638_s4 + $0x50] sm:$0xf] %v294_v47 }
  0xb9   :  { %309 = vst.msk [vmem:[%s638_s4 + $0x58] sm:$0xf] %vm308_vm4, %v295_v48 }
  0xba   :  { %314 = vsyncpa [#allocation3], 1 }
  0xbb   :  { %315 = vsyncpa [#allocation5], 1 }

// kernel: _lambda_.15
= control target key start
LH: loop header
LB: loop body
LE: loop exit
PB: predicated region body
PF: predicated region fallthrough
CT: control target
= control target key end

     0   :  { %8 = vsyncpa [#allocation3], 0  ;;  %s545_s0 = inlined_call_operand.hbm [shape: bf16[18,12], index: 0, kind: input, shape index: {}]   ;;  %s546_s1 = inlined_call_operand.vmem [shape: bf16[12,676], index: 1, kind: input, shape index: {}]   ;;  %s547_s2 = inlined_call_operand.hbm [shape: f32[18,1], index: 2, kind: input, shape index: {}]   ;;  %s548_s3 = inlined_call_operand.vmem [shape: f32[18,676], index: 3, kind: output, shape index: {}]  }
   0x1   :  { %s14_s14 = sshll.u32 %s545_s0, 4  ;;  %s15_s14 = int_to_ptr.hbm [resolvable:$true] %s14_s14 }
   0x2   :  { %9 = vsyncpa [#allocation5], 0  ;;  %s394_s15 = smov [#allocation2]   ;;  %s29_s19 = sshll.u32 %s547_s2, 4  ;;  %s30_s19 = int_to_ptr.hbm [resolvable:$true] %s29_s19 }
   0x3   :  { %s16_s16 = sshll.u32 %s394_s15, 4  ;;  %s395_s20 = smov 64   ;;  %s17_s16 = int_to_ptr.vmem [resolvable:$true] %s16_s16 }
   0x4   :  { %s396_s21 = smov 4   ;;  %s397_s22 = smov [#allocation4]  }
   0x5   :  { %22 = dma.hbm_to_vmem [thread:$0]  %s15_s14, 192, %s17_s16, [#allocation3], %s395_s20, %s395_s20, %s396_s21  }
   0x6   :  { %s31_s23 = sshll.u32 %s397_s22, 4  ;;  %s398_s24 = smov 128   ;;  %s32_s23 = int_to_ptr.vmem [resolvable:$true] %s31_s23 }
   0x7   :  { %s399_s25 = smov 8  }
   0x8   :  { %37 = dma.hbm_to_vmem [thread:$0]  %s30_s19, 384, %s32_s23, [#allocation5], %s398_s24, %s398_s24, %s399_s25  }
   0x9   :  { %390 = dma.done.wait [#allocation3], 192  }
   0xa   :  { %391 = vsyncadd [#allocation3], 4294967104 }
   0xb   :  { %392 = dma.done.wait [#allocation5], 384  }
   0xc   :  { %393 = vsyncadd [#allocation5], 4294966912  ;;  %v400_v0 = vmov 0   ;;  %vm113_vm0 = vcmask 1045504   ;;  %v290_v1 = vld [vmem:[%s546_s1] sm:$0xf] }
   0xd   :  { %340 = vset.pattern.permute.xlu0 %v400_v0  ;;  %341 = vset.pattern.permute.xlu1 %v400_v0  ;;  %v328_v2 = vld [vmem:[%s546_s1 + $0x14] sm:$0x30]  ;;  %v325_v3 = vld [vmem:[%s546_s1 + $0x4] sm:$0xf]  ;;  %v292_v5 = vld [vmem:[%s546_s1 + $0x18] sm:$0x30] }
   0xe   :  { %v291_v4 = vor.u32 %v328_v2, %v290_v1  ;;  %v324_v6 = vld [vmem:[#allocation2] sm:$0xff]  ;;  %v49_v7 = vld [vmem:[#allocation2 + $0x8] sm:$0x1]  ;;  %v295_v8 = vor.u32 %v325_v3, %v292_v5  ;;  %v326_v12 = vld [vmem:[%s546_s1 + $0xc] sm:$0xf]  ;;  %vm106_vm1 = vcmask 97280  }
   0xf   :  { %v79_v9 = vunpack.c.l.b16 %v49_v7  ;;  %v298_v10 = vld [vmem:[%s546_s1 + $0x8] sm:$0xf]  ;;  %v329_v11 = vld [vmem:[%s546_s1 + $0x1c] sm:$0x30]  ;;  %v300_v15 = vld [vmem:[%s546_s1 + $0x20] sm:$0x30] }
  0x10   :  { %v115_v13 = vsel %vm113_vm0, %v291_v4, 0  ;;  %v299_v14 = vor.u32 %v329_v11, %v298_v10  ;;  %v306_v16 = vld [vmem:[%s546_s1 + $0x10] sm:$0xf]  ;;  %v118_v18 = vsel %vm113_vm0, %v295_v8, 0  ;;  %v303_v20 = vor.u32 %v326_v12, %v300_v15  ;;  %v330_v21 = vld [vmem:[%s546_s1 + $0x24] sm:$0x30] }
  0x11   :  { %v56_v17 = vld [vmem:[#allocation4] sm:$0xff]  ;;  %139 = vmatpush.bf16.msra.mxu0 %v115_v13  ;;  %331 = vmatpush.bf16.msra.mxu2 %v115_v13  ;;  %v81_v19 = vpack.c.b16 %v79_v9, %v79_v9  ;;  %v327_v22 = vld [vmem:[%s546_s1 + $0x14] sm:$0xf]  ;;  %v307_v24 = vor.u32 %v330_v21, %v306_v16  ;;  %v58_v29 = vld [vmem:[#allocation4 + $0x10] sm:$0x3]  ;;  %vm263_vm2 = vcmask 293888  }
  0x12   :  { %157 = vmatpush.bf16.msra.mxu1 %v118_v18  ;;  %332 = vmatpush.bf16.msra.mxu3 %v118_v18  ;;  %v121_v23 = vsel %vm113_vm0, %v299_v14, 0  ;;  %v308_v25 = vld [vmem:[%s546_s1 + $0x28] sm:$0x30]  ;;  %v124_v26 = vsel %vm113_vm0, %v303_v20, 0  ;;  %v57_v31 = vld [vmem:[#allocation4 + $0x8] sm:$0xff]  ;;  %vm276_vm3 = vcmask 287744  }
  0x13   :  { %v311_v27 = vor.u32 %v327_v22, %v308_v25  ;;  %61 = vperm.xlu0 %340, %v56_v17   ;;  %v127_v28 = vsel %vm113_vm0, %v307_v24, 0  ;;  %71 = vperm.xlu1 %341, %v58_v29  }
  0x14   :  { %312 = vmatmul.msk.bf16.vlgmr.msra.gmra.mxu0 %vm106_vm1, %v324_v6  ;;  %313 = vmatmul.msk.bf16.vlgmr.msra.gmra.mxu2 %vm106_vm1, %v81_v19 }
  0x15   :  { %175 = vmatpush.bf16.msrb.mxu2 %v121_v23  ;;  %314 = vmatmul.msk.bf16.vlgmr.msra.gmra.mxu1 %vm106_vm1, %v324_v6  ;;  %v130_v30 = vsel %vm113_vm0, %v311_v27, 0 }
  0x16   :  { %315 = vmatmul.msk.bf16.vlgmr.msra.gmra.mxu3 %vm106_vm1, %v81_v19  ;;  %211 = vmatpush.bf16.msrb.mxu0 %v127_v28 }
  0x17   :  { %193 = vmatpush.bf16.msrb.mxu3 %v124_v26  ;;  %229 = vmatpush.bf16.msrb.mxu1 %v130_v30 }
  0x1b   :  { %66 = vperm.xlu0 %340, %v57_v31  }
  0x24   :  { %316 = vmatmul.msk.bf16.vlgmr.msrb.gmra.mxu2 %vm106_vm1, %v324_v6  ;;  %320 = vmatmul.msk.bf16.vlgmr.msrb.gmra.mxu0 %vm106_vm1, %v324_v6 }
  0x25   :  { %322 = vmatmul.msk.bf16.vlgmr.msrb.gmra.mxu1 %vm106_vm1, %v324_v6 }
  0x26   :  { %318 = vmatmul.msk.bf16.vlgmr.msrb.gmra.mxu3 %vm106_vm1, %v324_v6 }
  0x34   :  { %317 = vmatmul.msk.bf16.gmra.mxu2 %vm106_vm1, %v81_v19  ;;  %321 = vmatmul.msk.bf16.gmra.mxu0 %vm106_vm1, %v81_v19 }
  0x35   :  { %323 = vmatmul.msk.bf16.gmra.mxu1 %vm106_vm1, %v81_v19 }
  0x36   :  { %319 = vmatmul.msk.bf16.gmra.mxu3 %vm106_vm1, %v81_v19 }
  0x85   :  { %v62_v32 = vpop.permute.xlu0 %61  ;;  %v481_v39 = vpop.permute.xlu1 %71 }
  0x8d   :  { %v67_v41 = vpop.permute.xlu0 %66 }
  0x91   :  { %v141_v33 = vpop.f32.mrf.mxu0 }
  0x92   :  { %v142_v34 = vadd.f32 %v141_v33, %v62_v32  ;;  %v159_v35 = vpop.f32.mrf.mxu1 }
  0x93   :  { %v160_v36 = vadd.f32 %v159_v35, %v62_v32 }
  0x94   :  { %v240_v37 = vmax.f32 %v142_v34, 0.0 }
  0x95   :  { %v241_v38 = vmax.f32 %v160_v36, 0.0 }
  0x96   :  { %258 = vst [vmem:[%s548_s3] sm:$0xff] %v240_v37 }
  0x97   :  { %259 = vst [vmem:[%s548_s3 + $0x8] sm:$0xff] %v241_v38  ;;  %v146_v40 = vpop.f32.mrf.mxu2 }
  0x98   :  { %v147_v42 = vadd.f32 %v146_v40, %v481_v39 }
  0x99   :  { %v164_v43 = vpop.f32.mrf.mxu3  ;;  %v143_v45 = vpop.f32.mrf.mxu0 }
  0x9a   :  { %v165_v44 = vadd.f32 %v164_v43, %v481_v39  ;;  %v252_v46 = vmax.f32 %v147_v42, 0.0  ;;  %v144_v47 = vadd.f32 %v143_v45, %v67_v41  ;;  %v161_v48 = vpop.f32.mrf.mxu1 }
  0x9b   :  { %v162_v50 = vadd.f32 %v161_v48, %v67_v41 }
  0x9c   :  { %v253_v49 = vmax.f32 %v165_v44, 0.0  ;;  %271 = vst [vmem:[%s548_s3 + $0x60] sm:$0x3] %v252_v46  ;;  %v246_v51 = vmax.f32 %v144_v47, 0.0 }
  0x9d   :  { %v247_v52 = vmax.f32 %v162_v50, 0.0 }
  0x9e   :  { %272 = vst [vmem:[%s548_s3 + $0x68] sm:$0x3] %v253_v49 }
  0x9f   :  { %265 = vst [vmem:[%s548_s3 + $0x30] sm:$0xff] %v246_v51  ;;  %v148_v53 = vpop.f32.mrf.mxu2 }
  0xa0   :  { %266 = vst [vmem:[%s548_s3 + $0x38] sm:$0xff] %v247_v52 }
  0xa1   :  { %v166_v54 = vpop.f32.mrf.mxu3  ;;  %v213_v55 = vpop.f32.mrf.mxu0 }
  0xa2   :  { %v214_v56 = vadd.f32 %v213_v55, %v62_v32  ;;  %v231_v57 = vpop.f32.mrf.mxu1 }
  0xa3   :  { %v232_v58 = vadd.f32 %v231_v57, %v62_v32 }
  0xa4   :  { %v244_v59 = vmax.f32 %v214_v56, 0.0 }
  0xa5   :  { %v245_v60 = vmax.f32 %v232_v58, 0.0 }
  0xa6   :  { %262 = vst [vmem:[%s548_s3 + $0x20] sm:$0xff] %v244_v59 }
  0xa7   :  { %264 = vst.msk [vmem:[%s548_s3 + $0x28] sm:$0xff] %vm263_vm2, %v245_v60  ;;  %v177_v61 = vpop.f32.mrf.mxu2 }
  0xa8   :  { %v178_v62 = vadd.f32 %v177_v61, %v62_v32 }
  0xa9   :  { %v195_v63 = vpop.f32.mrf.mxu3  ;;  %v215_v1 = vpop.f32.mrf.mxu0 }
  0xaa   :  { %v196_v0 = vadd.f32 %v195_v63, %v62_v32  ;;  %v242_v2 = vmax.f32 %v178_v62, 0.0  ;;  %v216_v3 = vadd.f32 %v215_v1, %v67_v41  ;;  %v233_v4 = vpop.f32.mrf.mxu1 }
  0xab   :  { %v234_v6 = vadd.f32 %v233_v4, %v67_v41 }
  0xac   :  { %v243_v5 = vmax.f32 %v196_v0, 0.0  ;;  %260 = vst [vmem:[%s548_s3 + $0x10] sm:$0xff] %v242_v2  ;;  %v250_v7 = vmax.f32 %v216_v3, 0.0 }
  0xad   :  { %v251_v8 = vmax.f32 %v234_v6, 0.0 }
  0xae   :  { %261 = vst [vmem:[%s548_s3 + $0x18] sm:$0xff] %v243_v5 }
  0xaf   :  { %269 = vst [vmem:[%s548_s3 + $0x50] sm:$0xff] %v250_v7  ;;  %v179_v9 = vpop.f32.mrf.mxu2 }
  0xb0   :  { %270 = vst.msk [vmem:[%s548_s3 + $0x58] sm:$0xff] %vm263_vm2, %v251_v8  ;;  %v180_v10 = vadd.f32 %v179_v9, %v67_v41 }
  0xb1   :  { %v197_v11 = vpop.f32.mrf.mxu3  ;;  %v218_v13 = vpop.f32.mrf.mxu0 }
  0xb2   :  { %v198_v12 = vadd.f32 %v197_v11, %v67_v41  ;;  %v248_v14 = vmax.f32 %v180_v10, 0.0  ;;  %v219_v15 = vadd.f32 %v218_v13, %v481_v39  ;;  %v236_v16 = vpop.f32.mrf.mxu1 }
  0xb3   :  { %v237_v18 = vadd.f32 %v236_v16, %v481_v39 }
  0xb4   :  { %v249_v17 = vmax.f32 %v198_v12, 0.0  ;;  %267 = vst [vmem:[%s548_s3 + $0x40] sm:$0xff] %v248_v14  ;;  %v256_v19 = vmax.f32 %v219_v15, 0.0 }
  0xb5   :  { %v257_v20 = vmax.f32 %v237_v18, 0.0 }
  0xb6   :  { %268 = vst [vmem:[%s548_s3 + $0x48] sm:$0xff] %v249_v17 }
  0xb7   :  { %275 = vst [vmem:[%s548_s3 + $0x80] sm:$0x3] %v256_v19  ;;  %v182_v21 = vpop.f32.mrf.mxu2 }
  0xb8   :  { %277 = vst.msk [vmem:[%s548_s3 + $0x88] sm:$0x3] %vm276_vm3, %v257_v20  ;;  %v183_v22 = vadd.f32 %v182_v21, %v481_v39 }
  0xb9   :  { %v200_v23 = vpop.f32.mrf.mxu3  ;;  %v220_v25 = vpop.f32.mrf.mxu0 }
  0xba   :  { %v201_v24 = vadd.f32 %v200_v23, %v481_v39  ;;  %v254_v26 = vmax.f32 %v183_v22, 0.0  ;;  %v238_v27 = vpop.f32.mrf.mxu1 }
  0xbc   :  { %v255_v28 = vmax.f32 %v201_v24, 0.0  ;;  %273 = vst [vmem:[%s548_s3 + $0x70] sm:$0x3] %v254_v26 }
  0xbe   :  { %274 = vst [vmem:[%s548_s3 + $0x78] sm:$0x3] %v255_v28 }
  0xbf   :  { %v184_v29 = vpop.f32.mrf.mxu2 }
  0xc1   :  { %v202_v30 = vpop.f32.mrf.mxu3 }
  0xc2   :  { %282 = vsyncpa [#allocation3], 1 }
  0xc3   :  { %283 = vsyncpa [#allocation5], 1 }

// kernel: _lambda_.16
= control target key start
LH: loop header
LB: loop body
LE: loop exit
PB: predicated region body
PF: predicated region fallthrough
CT: control target
= control target key end

     0   :  { %9 = vsyncpa [#allocation3], 0  ;;  %s542_s0 = inlined_call_operand.hbm [shape: bf16[12,18], index: 0, kind: input, shape index: {}]   ;;  %s543_s1 = inlined_call_operand.vmem [shape: bf16[18,676], index: 1, kind: input, shape index: {}]   ;;  %s544_s2 = inlined_call_operand.hbm [shape: f32[12,1], index: 2, kind: input, shape index: {}]   ;;  %s545_s3 = inlined_call_operand.vmem [shape: f32[12,676], index: 3, kind: input, shape index: {}]   ;;  %s546_s4 = inlined_call_operand.vmem [shape: f32[12,676], index: 4, kind: output, shape index: {}]  }
   0x1   :  { %s15_s17 = sshll.u32 %s542_s0, 4  ;;  %s16_s17 = int_to_ptr.hbm [resolvable:$true] %s15_s17 }
   0x2   :  { %10 = vsyncpa [#allocation5], 0  ;;  %s375_s18 = smov [#allocation2]   ;;  %s30_s22 = sshll.u32 %s544_s2, 4  ;;  %s31_s22 = int_to_ptr.hbm [resolvable:$true] %s30_s22 }
   0x3   :  { %s17_s19 = sshll.u32 %s375_s18, 4  ;;  %s376_s23 = smov 64   ;;  %s18_s19 = int_to_ptr.vmem [resolvable:$true] %s17_s19 }
   0x4   :  { %s377_s24 = smov 4   ;;  %s378_s25 = smov [#allocation4]  }
   0x5   :  { %23 = dma.hbm_to_vmem [thread:$0]  %s16_s17, 128, %s18_s19, [#allocation3], %s376_s23, %s376_s23, %s377_s24  }
   0x6   :  { %s32_s26 = sshll.u32 %s378_s25, 4  ;;  %s379_s27 = smov 128   ;;  %s33_s26 = int_to_ptr.vmem [resolvable:$true] %s32_s26 }
   0x7   :  { %s380_s28 = smov 8  }
   0x8   :  { %38 = dma.hbm_to_vmem [thread:$0]  %s31_s22, 256, %s33_s26, [#allocation5], %s379_s27, %s379_s27, %s380_s28  }
   0x9   :  { %371 = dma.done.wait [#allocation3], 128  }
   0xa   :  { %372 = vsyncadd [#allocation3], 4294967168 }
   0xb   :  { %373 = dma.done.wait [#allocation5], 256  }
   0xc   :  { %374 = vsyncadd [#allocation5], 4294967040  ;;  %v381_v0 = vmov 0   ;;  %v58_v1 = vld [vmem:[%s543_s1 + $0x30] sm:$0x11]  ;;  %vm127_vm0 = vcmask 1040384  }
   0xd   :  { %322 = vset.pattern.permute.xlu0 %v381_v0  ;;  %v59_v2 = vld [vmem:[%s543_s1 + $0x38] sm:$0x11]  ;;  %v99_v3 = vunpack.c.l.b16 %v58_v1  ;;  %v100_v4 = vunpack.c.h.b16 %v58_v1  ;;  %v280_v7 = vld [vmem:[%s543_s1] sm:$0xf]  ;;  %v309_v9 = vld [vmem:[%s543_s1 + $0x4] sm:$0xf] }
   0xe   :  { %v101_v5 = vunpack.c.l.b16 %v59_v2  ;;  %v102_v6 = vunpack.c.h.b16 %v59_v2  ;;  %v312_v8 = vld [vmem:[%s543_s1 + $0x14] sm:$0xf0]  ;;  %v282_v14 = vld [vmem:[%s543_s1 + $0x18] sm:$0xf0]  ;;  %v288_v15 = vld [vmem:[%s543_s1 + $0x8] sm:$0xf] }
   0xf   :  { %v111_v10 = vpack.c.b16 %v99_v3, %v99_v3  ;;  %v112_v11 = vpack.c.b16 %v100_v4, %v100_v4  ;;  %v313_v16 = vld [vmem:[%s543_s1 + $0x1c] sm:$0xf0]  ;;  %v310_v17 = vld [vmem:[%s543_s1 + $0xc] sm:$0xf]  ;;  %v290_v18 = vld [vmem:[%s543_s1 + $0x20] sm:$0xf0]  ;;  %v281_v24 = vor.u32 %v312_v8, %v280_v7  ;;  %v285_v25 = vor.u32 %v309_v9, %v282_v14 }
  0x10   :  { %v113_v12 = vpack.c.b16 %v101_v5, %v101_v5  ;;  %v114_v13 = vpack.c.b16 %v102_v6, %v102_v6  ;;  %v60_v19 = vld [vmem:[%s543_s1 + $0x40] sm:$0x11]  ;;  %v61_v30 = vld [vmem:[#allocation4] sm:$0xff]  ;;  %v289_v31 = vor.u32 %v313_v16, %v288_v15  ;;  %v293_v32 = vor.u32 %v310_v17, %v290_v18  ;;  %v296_v35 = vld [vmem:[%s543_s1 + $0x10] sm:$0xf] }
  0x11   :  { %v129_v20 = vsel %vm127_vm0, %v111_v10, 0  ;;  %v132_v21 = vsel %vm127_vm0, %v112_v11, 0  ;;  %v276_v26 = vld [vmem:[#allocation2] sm:$0xf]  ;;  %v308_v27 = vld [vmem:[#allocation2] sm:$0x30]  ;;  %v103_v28 = vunpack.c.l.b16 %v60_v19  ;;  %v104_v29 = vunpack.c.h.b16 %v60_v19  ;;  %65 = vperm.xlu0 %322, %v61_v30  }
  0x12   :  { %v135_v22 = vsel %vm127_vm0, %v113_v12, 0  ;;  %v138_v23 = vsel %vm127_vm0, %v114_v13, 0  ;;  %152 = vmatpush.bf16.msra.mxu0 %v129_v20  ;;  %166 = vmatpush.bf16.msra.mxu1 %v132_v21  ;;  %v277_v36 = vor.u32 %v308_v27, %v276_v26  ;;  %v314_v37 = vld [vmem:[%s543_s1 + $0x24] sm:$0xf0]  ;;  %v311_v38 = vld [vmem:[%s543_s1 + $0x14] sm:$0xf] }
  0x13   :  { %180 = vmatpush.bf16.msra.mxu2 %v135_v22  ;;  %194 = vmatpush.bf16.msra.mxu3 %v138_v23  ;;  %v115_v33 = vpack.c.b16 %v103_v28, %v103_v28  ;;  %v116_v34 = vpack.c.b16 %v104_v29, %v104_v29  ;;  %v298_v39 = vld [vmem:[%s543_s1 + $0x28] sm:$0xf0]  ;;  %vm123_vm1 = vcmask 146432   ;;  %v297_v42 = vor.u32 %v314_v37, %v296_v35  ;;  %v62_v44 = vld [vmem:[#allocation4 + $0x8] sm:$0xf]  ;;  %v230_v47 = vld [vmem:[%s545_s3] sm:$0xff] }
  0x14   :  { %v301_v43 = vor.u32 %v311_v38, %v298_v39  ;;  %v231_v49 = vld [vmem:[%s545_s3 + $0x8] sm:$0xff]  ;;  %v232_v56 = vld [vmem:[%s545_s3 + $0x10] sm:$0xff]  ;;  %v237_v61 = vld [vmem:[%s545_s3 + $0x38] sm:$0xf]  ;;  %vm259_vm2 = vcmask 293888   ;;  %vm266_vm3 = vcmask 289792  }
  0x15   :  { %v141_v40 = vsel %vm127_vm0, %v115_v33, 0  ;;  %v144_v41 = vsel %vm127_vm0, %v116_v34, 0  ;;  %v236_v59 = vld [vmem:[%s545_s3 + $0x30] sm:$0xf]  ;;  %v233_v0 = vld [vmem:[%s545_s3 + $0x18] sm:$0xff]  ;;  %v234_v14 = vld [vmem:[%s545_s3 + $0x20] sm:$0xff] }
  0x16   :  { %153 = vmatpush.bf16.msra.mxu0 %v281_v24  ;;  %167 = vmatpush.bf16.msra.mxu1 %v285_v25  ;;  %v238_v8 = vld [vmem:[%s545_s3 + $0x40] sm:$0xf]  ;;  %v239_v10 = vld [vmem:[%s545_s3 + $0x48] sm:$0xf]  ;;  %v240_v24 = vld [vmem:[%s545_s3 + $0x50] sm:$0xf] }
  0x17   :  { %181 = vmatpush.bf16.msra.mxu2 %v289_v31  ;;  %195 = vmatpush.bf16.msra.mxu3 %v293_v32  ;;  %v235_v16 = vld [vmem:[%s545_s3 + $0x28] sm:$0xff]  ;;  %v241_v26 = vld [vmem:[%s545_s3 + $0x58] sm:$0xf] }
  0x19   :  { %302 = vmatmul.msk.bf16.vlgmr.msra.gmra.mxu0 %vm123_vm1, %v277_v36  ;;  %303 = vmatmul.msk.bf16.vlgmr.msra.gmra.mxu1 %vm123_vm1, %v277_v36 }
  0x1a   :  { %208 = vmatpush.bf16.msrb.mxu0 %v141_v40  ;;  %222 = vmatpush.bf16.msrb.mxu1 %v144_v41 }
  0x1b   :  { %304 = vmatmul.msk.bf16.vlgmr.msra.gmra.mxu2 %vm123_vm1, %v277_v36  ;;  %305 = vmatmul.msk.bf16.vlgmr.msra.gmra.mxu3 %vm123_vm1, %v277_v36 }
  0x1c   :  { %70 = vperm.xlu0 %322, %v62_v44  }
  0x1e   :  { %209 = vmatpush.bf16.msrb.mxu0 %v297_v42  ;;  %223 = vmatpush.bf16.msrb.mxu1 %v301_v43 }
  0x29   :  { %306 = vmatmul.msk.bf16.vlgmr.msrb.gmra.mxu0 %vm123_vm1, %v277_v36  ;;  %307 = vmatmul.msk.bf16.vlgmr.msrb.gmra.mxu1 %vm123_vm1, %v277_v36 }
  0x83   :  { %v66_v45 = vpop.permute.xlu0 %65 }
  0x8e   :  { %v71_v54 = vpop.permute.xlu0 %70 }
  0x96   :  { %v155_v46 = vpop.f32.mrf.mxu0  ;;  %v169_v48 = vpop.f32.mrf.mxu1 }
  0x97   :  { %v156_v50 = vadd.f32 %v155_v46, %v66_v45  ;;  %v170_v51 = vadd.f32 %v169_v48, %v66_v45 }
  0x99   :  { %v242_v52 = vadd.f32 %v230_v47, %v156_v50  ;;  %v243_v53 = vadd.f32 %v231_v49, %v170_v51 }
  0x9b   :  { %254 = vst [vmem:[%s546_s4] sm:$0xff] %v242_v52 }
  0x9c   :  { %255 = vst [vmem:[%s546_s4 + $0x8] sm:$0xff] %v243_v53 }
  0x9e   :  { %v183_v55 = vpop.f32.mrf.mxu2  ;;  %v197_v57 = vpop.f32.mrf.mxu3 }
  0x9f   :  { %v157_v58 = vpop.f32.mrf.mxu0  ;;  %v171_v60 = vpop.f32.mrf.mxu1  ;;  %v184_v62 = vadd.f32 %v183_v55, %v66_v45  ;;  %v198_v63 = vadd.f32 %v197_v57, %v66_v45 }
  0xa0   :  { %v158_v1 = vadd.f32 %v157_v58, %v71_v54  ;;  %v172_v2 = vadd.f32 %v171_v60, %v71_v54 }
  0xa1   :  { %v244_v3 = vadd.f32 %v232_v56, %v184_v62  ;;  %v245_v6 = vadd.f32 %v233_v0, %v198_v63 }
  0xa2   :  { %v248_v4 = vadd.f32 %v236_v59, %v158_v1  ;;  %v249_v5 = vadd.f32 %v237_v61, %v172_v2 }
  0xa3   :  { %256 = vst [vmem:[%s546_s4 + $0x10] sm:$0xff] %v244_v3 }
  0xa4   :  { %261 = vst [vmem:[%s546_s4 + $0x30] sm:$0xf] %v248_v4 }
  0xa5   :  { %262 = vst [vmem:[%s546_s4 + $0x38] sm:$0xf] %v249_v5 }
  0xa6   :  { %257 = vst [vmem:[%s546_s4 + $0x18] sm:$0xff] %v245_v6  ;;  %v185_v7 = vpop.f32.mrf.mxu2  ;;  %v199_v9 = vpop.f32.mrf.mxu3 }
  0xa7   :  { %v186_v11 = vadd.f32 %v185_v7, %v71_v54  ;;  %v200_v12 = vadd.f32 %v199_v9, %v71_v54  ;;  %v211_v13 = vpop.f32.mrf.mxu0  ;;  %v225_v15 = vpop.f32.mrf.mxu1 }
  0xa8   :  { %v212_v17 = vadd.f32 %v211_v13, %v66_v45  ;;  %v226_v18 = vadd.f32 %v225_v15, %v66_v45 }
  0xa9   :  { %v250_v19 = vadd.f32 %v238_v8, %v186_v11  ;;  %v251_v20 = vadd.f32 %v239_v10, %v200_v12 }
  0xaa   :  { %v246_v21 = vadd.f32 %v234_v14, %v212_v17  ;;  %v247_v22 = vadd.f32 %v235_v16, %v226_v18 }
  0xab   :  { %263 = vst [vmem:[%s546_s4 + $0x40] sm:$0xf] %v250_v19 }
  0xac   :  { %264 = vst [vmem:[%s546_s4 + $0x48] sm:$0xf] %v251_v20 }
  0xad   :  { %258 = vst [vmem:[%s546_s4 + $0x20] sm:$0xff] %v246_v21 }
  0xae   :  { %260 = vst.msk [vmem:[%s546_s4 + $0x28] sm:$0xff] %vm259_vm2, %v247_v22 }
  0xaf   :  { %v213_v23 = vpop.f32.mrf.mxu0  ;;  %v227_v25 = vpop.f32.mrf.mxu1 }
  0xb0   :  { %v214_v27 = vadd.f32 %v213_v23, %v71_v54  ;;  %v228_v28 = vadd.f32 %v227_v25, %v71_v54 }
  0xb2   :  { %v252_v29 = vadd.f32 %v240_v24, %v214_v27  ;;  %v253_v30 = vadd.f32 %v241_v26, %v228_v28 }
  0xb4   :  { %265 = vst [vmem:[%s546_s4 + $0x50] sm:$0xf] %v252_v29 }
  0xb5   :  { %267 = vst.msk [vmem:[%s546_s4 + $0x58] sm:$0xf] %vm266_vm3, %v253_v30 }
  0xb6   :  { %272 = vsyncpa [#allocation3], 1 }
  0xb7   :  { %273 = vsyncpa [#allocation5], 1 }

// kernel: _lambda_.17
= control target key start
LH: loop header
LB: loop body
LE: loop exit
PB: predicated region body
PF: predicated region fallthrough
CT: control target
= control target key end

     0   :  { %8 = vsyncpa [#allocation3], 0  ;;  %s378_s0 = inlined_call_operand.hbm [shape: bf16[12,6], index: 0, kind: input, shape index: {}]   ;;  %s379_s1 = inlined_call_operand.vmem [shape: bf16[6,676], index: 1, kind: input, shape index: {}]   ;;  %s380_s2 = inlined_call_operand.hbm [shape: f32[12,1], index: 2, kind: input, shape index: {}]   ;;  %s381_s3 = inlined_call_operand.vmem [shape: f32[12,676], index: 3, kind: output, shape index: {}]  }
   0x1   :  { %s14_s14 = sshll.u32 %s378_s0, 4  ;;  %s15_s14 = int_to_ptr.hbm [resolvable:$true] %s14_s14 }
   0x2   :  { %9 = vsyncpa [#allocation5], 0  ;;  %s294_s15 = smov [#allocation2]   ;;  %s29_s19 = sshll.u32 %s380_s2, 4  ;;  %s30_s19 = int_to_ptr.hbm [resolvable:$true] %s29_s19 }
   0x3   :  { %s16_s16 = sshll.u32 %s294_s15, 4  ;;  %s295_s20 = smov 64   ;;  %s17_s16 = int_to_ptr.vmem [resolvable:$true] %s16_s16 }
   0x4   :  { %s296_s21 = smov 4   ;;  %s297_s22 = smov [#allocation4]  }
   0x5   :  { %22 = dma.hbm_to_vmem [thread:$0]  %s15_s14, 128, %s17_s16, [#allocation3], %s295_s20, %s295_s20, %s296_s21  }
   0x6   :  { %s31_s23 = sshll.u32 %s297_s22, 4  ;;  %s298_s24 = smov 128   ;;  %s32_s23 = int_to_ptr.vmem [resolvable:$true] %s31_s23 }
   0x7   :  { %s299_s25 = smov 8  }
   0x8   :  { %37 = dma.hbm_to_vmem [thread:$0]  %s30_s19, 256, %s32_s23, [#allocation5], %s298_s24, %s298_s24, %s299_s25  }
   0x9   :  { %290 = dma.done.wait [#allocation3], 128  }
   0xa   :  { %291 = vsyncadd [#allocation3], 4294967168 }
   0xb   :  { %292 = dma.done.wait [#allocation5], 256  }
   0xc   :  { %293 = vsyncadd [#allocation5], 4294967040  ;;  %v300_v0 = vmov 0   ;;  %v49_v1 = vld [vmem:[%s379_s1] sm:$0x77]  ;;  %v52_v10 = vld [vmem:[#allocation4] sm:$0xff] }
   0xd   :  { %241 = vset.pattern.permute.xlu0 %v300_v0  ;;  %v50_v2 = vld [vmem:[%s379_s1 + $0x8] sm:$0x77]  ;;  %v225_v3 = vld [vmem:[#allocation2] sm:$0xf]  ;;  %v72_v4 = vunpack.c.l.b16 %v49_v1  ;;  %v73_v5 = vunpack.c.h.b16 %v49_v1  ;;  %v233_v8 = vld [vmem:[#allocation2] sm:$0x30] }
   0xe   :  { %v74_v6 = vunpack.c.l.b16 %v50_v2  ;;  %v75_v7 = vunpack.c.h.b16 %v50_v2  ;;  %v51_v9 = vld [vmem:[%s379_s1 + $0x10] sm:$0x77]  ;;  %vm88_vm0 = vcmask 1042432   ;;  %56 = vperm.xlu0 %241, %v52_v10   ;;  %v226_v17 = vor.u32 %v233_v8, %v225_v3 }
   0xf   :  { %v76_v11 = vunpack.c.l.b16 %v51_v9  ;;  %v77_v12 = vunpack.c.h.b16 %v51_v9  ;;  %v78_v13 = vpack.c.b16 %v72_v4, %v72_v4  ;;  %v79_v14 = vpack.c.b16 %v73_v5, %v73_v5  ;;  %v53_v26 = vld [vmem:[#allocation4 + $0x8] sm:$0xf] }
  0x10   :  { %v80_v15 = vpack.c.b16 %v74_v6, %v74_v6  ;;  %v81_v16 = vpack.c.b16 %v75_v7, %v75_v7  ;;  %vm84_vm1 = vcmask 48128   ;;  %vm208_vm2 = vcmask 293888  }
  0x11   :  { %v82_v18 = vpack.c.b16 %v76_v11, %v76_v11  ;;  %v83_v19 = vpack.c.b16 %v77_v12, %v77_v12  ;;  %v90_v20 = vsel %vm88_vm0, %v78_v13, 0  ;;  %v93_v21 = vsel %vm88_vm0, %v79_v14, 0 }
  0x12   :  { %v96_v22 = vsel %vm88_vm0, %v80_v15, 0  ;;  %v99_v23 = vsel %vm88_vm0, %v81_v16, 0  ;;  %114 = vmatpush.bf16.msra.mxu0 %v90_v20  ;;  %128 = vmatpush.bf16.msra.mxu1 %v93_v21  ;;  %vm215_vm3 = vcmask 289792  }
  0x13   :  { %v102_v24 = vsel %vm88_vm0, %v82_v18, 0  ;;  %v105_v25 = vsel %vm88_vm0, %v83_v19, 0  ;;  %142 = vmatpush.bf16.msra.mxu2 %v96_v22  ;;  %156 = vmatpush.bf16.msra.mxu3 %v99_v23 }
  0x15   :  { %227 = vmatmul.msk.bf16.vlgmr.msra.gmra.mxu0 %vm84_vm1, %v226_v17  ;;  %228 = vmatmul.msk.bf16.vlgmr.msra.gmra.mxu1 %vm84_vm1, %v226_v17 }
  0x16   :  { %170 = vmatpush.bf16.msrb.mxu0 %v102_v24  ;;  %184 = vmatpush.bf16.msrb.mxu1 %v105_v25 }
  0x17   :  { %229 = vmatmul.msk.bf16.vlgmr.msra.gmra.mxu2 %vm84_vm1, %v226_v17  ;;  %230 = vmatmul.msk.bf16.vlgmr.msra.gmra.mxu3 %vm84_vm1, %v226_v17 }
  0x18   :  { %61 = vperm.xlu0 %241, %v53_v26  }
  0x25   :  { %231 = vmatmul.msk.bf16.vlgmr.msrb.gmra.mxu0 %vm84_vm1, %v226_v17  ;;  %232 = vmatmul.msk.bf16.vlgmr.msrb.gmra.mxu1 %vm84_vm1, %v226_v17 }
  0x80   :  { %v57_v27 = vpop.permute.xlu0 %56 }
  0x8a   :  { %v62_v34 = vpop.permute.xlu0 %61 }
  0x92   :  { %v116_v28 = vpop.f32.mrf.mxu0  ;;  %v130_v29 = vpop.f32.mrf.mxu1 }
  0x93   :  { %v117_v30 = vadd.f32 %v116_v28, %v57_v27  ;;  %v131_v31 = vadd.f32 %v130_v29, %v57_v27 }
  0x95   :  { %v191_v32 = vmax.f32 %v117_v30, 0.0  ;;  %v192_v33 = vmax.f32 %v131_v31, 0.0 }
  0x97   :  { %203 = vst [vmem:[%s381_s3] sm:$0xff] %v191_v32 }
  0x98   :  { %204 = vst [vmem:[%s381_s3 + $0x8] sm:$0xff] %v192_v33 }
  0x9a   :  { %v144_v35 = vpop.f32.mrf.mxu2  ;;  %v158_v36 = vpop.f32.mrf.mxu3 }
  0x9b   :  { %v118_v37 = vpop.f32.mrf.mxu0  ;;  %v132_v38 = vpop.f32.mrf.mxu1  ;;  %v145_v39 = vadd.f32 %v144_v35, %v57_v27  ;;  %v159_v40 = vadd.f32 %v158_v36, %v57_v27 }
  0x9c   :  { %v119_v41 = vadd.f32 %v118_v37, %v62_v34  ;;  %v133_v42 = vadd.f32 %v132_v38, %v62_v34 }
  0x9d   :  { %v193_v43 = vmax.f32 %v145_v39, 0.0  ;;  %v194_v46 = vmax.f32 %v159_v40, 0.0 }
  0x9e   :  { %v197_v44 = vmax.f32 %v119_v41, 0.0  ;;  %v198_v45 = vmax.f32 %v133_v42, 0.0 }
  0x9f   :  { %205 = vst [vmem:[%s381_s3 + $0x10] sm:$0xff] %v193_v43 }
  0xa0   :  { %210 = vst [vmem:[%s381_s3 + $0x30] sm:$0xf] %v197_v44 }
  0xa1   :  { %211 = vst [vmem:[%s381_s3 + $0x38] sm:$0xf] %v198_v45 }
  0xa2   :  { %206 = vst [vmem:[%s381_s3 + $0x18] sm:$0xff] %v194_v46  ;;  %v146_v47 = vpop.f32.mrf.mxu2  ;;  %v160_v48 = vpop.f32.mrf.mxu3 }
  0xa3   :  { %v147_v49 = vadd.f32 %v146_v47, %v62_v34  ;;  %v161_v50 = vadd.f32 %v160_v48, %v62_v34  ;;  %v172_v51 = vpop.f32.mrf.mxu0  ;;  %v186_v52 = vpop.f32.mrf.mxu1 }
  0xa4   :  { %v173_v53 = vadd.f32 %v172_v51, %v57_v27  ;;  %v187_v54 = vadd.f32 %v186_v52, %v57_v27 }
  0xa5   :  { %v199_v55 = vmax.f32 %v147_v49, 0.0  ;;  %v200_v56 = vmax.f32 %v161_v50, 0.0 }
  0xa6   :  { %v195_v57 = vmax.f32 %v173_v53, 0.0  ;;  %v196_v58 = vmax.f32 %v187_v54, 0.0 }
  0xa7   :  { %212 = vst [vmem:[%s381_s3 + $0x40] sm:$0xf] %v199_v55 }
  0xa8   :  { %213 = vst [vmem:[%s381_s3 + $0x48] sm:$0xf] %v200_v56 }
  0xa9   :  { %207 = vst [vmem:[%s381_s3 + $0x20] sm:$0xff] %v195_v57 }
  0xaa   :  { %209 = vst.msk [vmem:[%s381_s3 + $0x28] sm:$0xff] %vm208_vm2, %v196_v58 }
  0xab   :  { %v174_v59 = vpop.f32.mrf.mxu0  ;;  %v188_v60 = vpop.f32.mrf.mxu1 }
  0xac   :  { %v175_v61 = vadd.f32 %v174_v59, %v62_v34  ;;  %v189_v62 = vadd.f32 %v188_v60, %v62_v34 }
  0xae   :  { %v201_v63 = vmax.f32 %v175_v61, 0.0  ;;  %v202_v0 = vmax.f32 %v189_v62, 0.0 }
  0xb0   :  { %214 = vst [vmem:[%s381_s3 + $0x50] sm:$0xf] %v201_v63 }
  0xb1   :  { %216 = vst.msk [vmem:[%s381_s3 + $0x58] sm:$0xf] %vm215_vm3, %v202_v0 }
  0xb2   :  { %221 = vsyncpa [#allocation3], 1 }
  0xb3   :  { %222 = vsyncpa [#allocation5], 1 }

// kernel: _lambda_.19
= control target key start
LH: loop header
LB: loop body
LE: loop exit
PB: predicated region body
PF: predicated region fallthrough
CT: control target
= control target key end

     0   :  { %v387_v2 = vmov 0   ;;  %vm163_vm0 = vcmask 1042432   ;;  %vm156_vm1 = vcmask 441344   ;;  %vm273_vm2 = vcmask 523264   ;;  %s582_s1 = inlined_call_operand.vmem [shape: bf16[54,576], index: 1, kind: input, shape index: {}]   ;;  %s583_s2 = inlined_call_operand.vmem [shape: f32[18,1], index: 2, kind: input, shape index: {}]   ;;  %s584_s0 = inlined_call_operand.vmem [shape: bf16[18,54], index: 0, kind: input, shape index: {}]   ;;  %s585_s3 = inlined_call_operand.vmem [shape: f32[18,576], index: 3, kind: output, shape index: {}]  }
   0x1   :  { %v36_v0 = vld [vmem:[%s582_s1 + $0x78] sm:$0x77]  ;;  %v37_v1 = vld [vmem:[%s582_s1 + $0x80] sm:$0x77]  ;;  %386 = vset.pattern.permute.xlu1 %v387_v2  ;;  %385 = vset.pattern.permute.xlu0 %v387_v2  ;;  %v336_v9 = vld [vmem:[%s582_s1 + $0x50] sm:$0xf] }
   0x2   :  { %v116_v3 = vunpack.c.l.b16 %v36_v0  ;;  %v118_v4 = vunpack.c.l.b16 %v37_v1  ;;  %v119_v5 = vunpack.c.h.b16 %v37_v1  ;;  %v377_v10 = vld [vmem:[%s582_s1 + $0x60] sm:$0xf0]  ;;  %v344_v11 = vld [vmem:[%s582_s1 + $0x58] sm:$0xf]  ;;  %v378_v12 = vld [vmem:[%s582_s1 + $0x68] sm:$0xf0]  ;;  %v117_v29 = vunpack.c.h.b16 %v36_v0 }
   0x3   :  { %v376_v13 = vld [vmem:[%s582_s1 + $0x5c] sm:$0xf]  ;;  %v346_v14 = vld [vmem:[%s582_s1 + $0x6c] sm:$0xf0]  ;;  %v337_v18 = vor.u32 %v377_v10, %v336_v9  ;;  %v316_v19 = vld [vmem:[%s582_s1 + $0x28] sm:$0xf]  ;;  %v345_v21 = vor.u32 %v378_v12, %v344_v11 }
   0x4   :  { %v136_v6 = vpack.c.b16 %v116_v3, %v116_v3  ;;  %v138_v7 = vpack.c.b16 %v118_v4, %v118_v4  ;;  %v139_v8 = vpack.c.b16 %v119_v5, %v119_v5  ;;  %v372_v20 = vld [vmem:[%s582_s1 + $0x38] sm:$0xf0]  ;;  %v349_v22 = vor.u32 %v376_v13, %v346_v14  ;;  %v324_v23 = vld [vmem:[%s582_s1 + $0x30] sm:$0xf]  ;;  %v373_v24 = vld [vmem:[%s582_s1 + $0x40] sm:$0xf0] }
   0x5   :  { %v39_v25 = vld [vmem:[%s583_s2] sm:$0xff]  ;;  %v371_v26 = vld [vmem:[%s582_s1 + $0x34] sm:$0xf]  ;;  %v326_v27 = vld [vmem:[%s582_s1 + $0x44] sm:$0xf0]  ;;  %v317_v31 = vor.u32 %v372_v20, %v316_v19  ;;  %v325_v34 = vor.u32 %v373_v24, %v324_v23  ;;  %v137_v43 = vpack.c.b16 %v117_v29, %v117_v29  ;;  %vm284_vm3 = vcmask 517120  }
   0x6   :  { %v165_v15 = vsel %vm163_vm0, %v136_v6, 0  ;;  %v171_v16 = vsel %vm163_vm0, %v138_v7, 0  ;;  %v174_v17 = vsel %vm163_vm0, %v139_v8, 0  ;;  %v38_v28 = vld [vmem:[%s582_s1 + $0x88] sm:$0x7]  ;;  %44 = vperm.xlu0 %385, %v39_v25   ;;  %v329_v35 = vor.u32 %v371_v26, %v326_v27  ;;  %v364_v49 = vld [vmem:[%s584_s0] sm:$0xff] }
   0x7   :  { %183 = vmatpush.bf16.msra.mxu0 %v165_v15  ;;  %380 = vmatpush.bf16.msra.mxu1 %v165_v15  ;;  %v120_v30 = vunpack.c.l.b16 %v38_v28  ;;  %v296_v32 = vld [vmem:[%s582_s1] sm:$0xf]  ;;  %v17_v33 = vld [vmem:[%s584_s0 + $0x8] sm:$0x1]  ;;  %v367_v36 = vld [vmem:[%s582_s1 + $0x10] sm:$0xf0] }
   0x8   :  { %219 = vmatpush.bf16.msra.mxu2 %v171_v16  ;;  %237 = vmatpush.bf16.msra.mxu3 %v174_v17  ;;  %v304_v37 = vld [vmem:[%s582_s1 + $0x8] sm:$0xf]  ;;  %v41_v38 = vld [vmem:[%s583_s2 + $0x10] sm:$0x3]  ;;  %v368_v39 = vld [vmem:[%s582_s1 + $0x18] sm:$0xf0]  ;;  %v62_v42 = vunpack.c.l.b16 %v17_v33  ;;  %v297_v46 = vor.u32 %v367_v36, %v296_v32 }
   0x9   :  { %v366_v40 = vld [vmem:[%s582_s1 + $0xc] sm:$0xf]  ;;  %v306_v41 = vld [vmem:[%s582_s1 + $0x1c] sm:$0xf0]  ;;  %54 = vperm.xlu1 %386, %v41_v38   ;;  %v140_v44 = vpack.c.b16 %v120_v30, %v120_v30  ;;  %v305_v47 = vor.u32 %v368_v39, %v304_v37  ;;  %v375_v50 = vld [vmem:[%s582_s1 + $0x54] sm:$0xf] }
   0xa   :  { %v40_v45 = vld [vmem:[%s583_s2 + $0x8] sm:$0xff]  ;;  %v309_v48 = vor.u32 %v366_v40, %v306_v41  ;;  %v64_v52 = vpack.c.b16 %v62_v42, %v62_v42  ;;  %v168_v53 = vsel %vm163_vm0, %v137_v43, 0  ;;  %v352_v55 = vld [vmem:[%s582_s1 + $0x60] sm:$0xf]  ;;  %v379_v56 = vld [vmem:[%s582_s1 + $0x70] sm:$0xf0] }
   0xb   :  { %184 = vmatpush.bf16.msra.mxu0 %v337_v18  ;;  %381 = vmatpush.bf16.msra.mxu1 %v337_v18  ;;  %v338_v51 = vld [vmem:[%s582_s1 + $0x64] sm:$0xf0]  ;;  %v177_v54 = vsel %vm163_vm0, %v140_v44, 0  ;;  %v353_v58 = vor.u32 %v379_v56, %v352_v55  ;;  %v370_v59 = vld [vmem:[%s582_s1 + $0x2c] sm:$0xf] }
   0xc   :  { %220 = vmatpush.bf16.msra.mxu2 %v345_v21  ;;  %238 = vmatpush.bf16.msra.mxu3 %v349_v22  ;;  %v341_v57 = vor.u32 %v375_v50, %v338_v51  ;;  %v318_v60 = vld [vmem:[%s582_s1 + $0x3c] sm:$0xf0]  ;;  %v332_v61 = vld [vmem:[%s582_s1 + $0x38] sm:$0xf]  ;;  %v374_v62 = vld [vmem:[%s582_s1 + $0x48] sm:$0xf0] }
   0xd   :  { %v321_v63 = vor.u32 %v370_v59, %v318_v60  ;;  %v333_v0 = vor.u32 %v374_v62, %v332_v61  ;;  %v365_v1 = vld [vmem:[%s582_s1 + $0x4] sm:$0xf]  ;;  %v298_v2 = vld [vmem:[%s582_s1 + $0x14] sm:$0xf0]  ;;  %v312_v3 = vld [vmem:[%s582_s1 + $0x10] sm:$0xf] }
   0xe   :  { %49 = vperm.xlu0 %385, %v40_v45   ;;  %v369_v4 = vld [vmem:[%s582_s1 + $0x20] sm:$0xf0]  ;;  %v301_v5 = vor.u32 %v365_v1, %v298_v2 }
   0xf   :  { %185 = vmatpush.bf16.msra.mxu0 %v317_v31  ;;  %382 = vmatpush.bf16.msra.mxu1 %v317_v31  ;;  %v313_v6 = vor.u32 %v369_v4, %v312_v3 }
  0x10   :  { %221 = vmatpush.bf16.msra.mxu2 %v325_v34  ;;  %239 = vmatpush.bf16.msra.mxu3 %v329_v35 }
  0x13   :  { %186 = vmatpush.bf16.msra.mxu0 %v297_v46  ;;  %383 = vmatpush.bf16.msra.mxu1 %v297_v46 }
  0x14   :  { %222 = vmatpush.bf16.msra.mxu2 %v305_v47  ;;  %240 = vmatpush.bf16.msra.mxu3 %v309_v48 }
  0x16   :  { %354 = vmatmul.msk.bf16.vlgmr.msra.gmra.mxu0 %vm156_vm1, %v364_v49  ;;  %355 = vmatmul.msk.bf16.vlgmr.msra.gmra.mxu1 %vm156_vm1, %v64_v52 }
  0x17   :  { %201 = vmatpush.bf16.msrb.mxu1 %v168_v53  ;;  %255 = vmatpush.bf16.msrb.mxu0 %v177_v54 }
  0x18   :  { %358 = vmatmul.msk.bf16.vlgmr.msra.gmra.mxu2 %vm156_vm1, %v364_v49  ;;  %360 = vmatmul.msk.bf16.vlgmr.msra.gmra.mxu3 %vm156_vm1, %v364_v49 }
  0x1b   :  { %202 = vmatpush.bf16.msrb.mxu1 %v341_v57  ;;  %256 = vmatpush.bf16.msrb.mxu0 %v353_v58 }
  0x1f   :  { %203 = vmatpush.bf16.msrb.mxu1 %v321_v63  ;;  %257 = vmatpush.bf16.msrb.mxu0 %v333_v0 }
  0x23   :  { %204 = vmatpush.bf16.msrb.mxu1 %v301_v5  ;;  %258 = vmatpush.bf16.msrb.mxu0 %v313_v6 }
  0x26   :  { %356 = vmatmul.msk.bf16.vlgmr.msrb.gmra.mxu1 %vm156_vm1, %v364_v49  ;;  %362 = vmatmul.msk.bf16.vlgmr.msrb.gmra.mxu0 %vm156_vm1, %v364_v49 }
  0x28   :  { %359 = vmatmul.msk.bf16.gmra.mxu2 %vm156_vm1, %v64_v52  ;;  %361 = vmatmul.msk.bf16.gmra.mxu3 %vm156_vm1, %v64_v52 }
  0x36   :  { %357 = vmatmul.msk.bf16.gmra.mxu1 %vm156_vm1, %v64_v52  ;;  %363 = vmatmul.msk.bf16.gmra.mxu0 %vm156_vm1, %v64_v52 }
  0x78   :  { %v45_v7 = vpop.permute.xlu0 %44 }
  0x7b   :  { %v55_v8 = vpop.permute.xlu1 %54 }
  0x80   :  { %v50_v13 = vpop.permute.xlu0 %49 }
  0x93   :  { %v188_v9 = vpop.f32.mrf.mxu0  ;;  %v193_v10 = vpop.f32.mrf.mxu1 }
  0x94   :  { %v189_v11 = vadd.f32 %v188_v9, %v45_v7  ;;  %v194_v12 = vadd.f32 %v193_v10, %v55_v8 }
  0x96   :  { %269 = vst [vmem:[%s585_s3] sm:$0xff] %v189_v11 }
  0x97   :  { %280 = vst [vmem:[%s585_s3 + $0x50] sm:$0x3] %v194_v12 }
  0x9b   :  { %v224_v14 = vpop.f32.mrf.mxu2  ;;  %v242_v15 = vpop.f32.mrf.mxu3 }
  0x9c   :  { %v190_v16 = vpop.f32.mrf.mxu0  ;;  %v195_v17 = vpop.f32.mrf.mxu1  ;;  %v225_v18 = vadd.f32 %v224_v14, %v45_v7  ;;  %v243_v19 = vadd.f32 %v242_v15, %v45_v7 }
  0x9d   :  { %v191_v20 = vadd.f32 %v190_v16, %v50_v13 }
  0x9e   :  { %271 = vst [vmem:[%s585_s3 + $0x10] sm:$0xff] %v225_v18 }
  0x9f   :  { %275 = vst [vmem:[%s585_s3 + $0x28] sm:$0xff] %v191_v20 }
  0xa0   :  { %272 = vst [vmem:[%s585_s3 + $0x18] sm:$0xff] %v243_v19 }
  0xa3   :  { %v226_v21 = vpop.f32.mrf.mxu2  ;;  %v244_v22 = vpop.f32.mrf.mxu3 }
  0xa4   :  { %v206_v23 = vpop.f32.mrf.mxu1  ;;  %v227_v24 = vadd.f32 %v226_v21, %v50_v13  ;;  %v245_v25 = vadd.f32 %v244_v22, %v50_v13  ;;  %v260_v26 = vpop.f32.mrf.mxu0 }
  0xa5   :  { %v207_v27 = vadd.f32 %v206_v23, %v45_v7  ;;  %v261_v28 = vadd.f32 %v260_v26, %v45_v7 }
  0xa6   :  { %277 = vst [vmem:[%s585_s3 + $0x38] sm:$0xff] %v227_v24 }
  0xa7   :  { %270 = vst [vmem:[%s585_s3 + $0x8] sm:$0xff] %v207_v27 }
  0xa8   :  { %278 = vst [vmem:[%s585_s3 + $0x40] sm:$0xff] %v245_v25 }
  0xa9   :  { %274 = vst.msk [vmem:[%s585_s3 + $0x20] sm:$0xff] %vm273_vm2, %v261_v28 }
  0xab   :  { %v229_v29 = vpop.f32.mrf.mxu2  ;;  %v247_v30 = vpop.f32.mrf.mxu3 }
  0xac   :  { %v208_v31 = vpop.f32.mrf.mxu1  ;;  %v230_v32 = vadd.f32 %v229_v29, %v55_v8  ;;  %v248_v33 = vadd.f32 %v247_v30, %v55_v8  ;;  %v262_v34 = vpop.f32.mrf.mxu0 }
  0xad   :  { %v209_v35 = vadd.f32 %v208_v31, %v50_v13  ;;  %v263_v36 = vadd.f32 %v262_v34, %v50_v13 }
  0xae   :  { %282 = vst [vmem:[%s585_s3 + $0x60] sm:$0x3] %v230_v32 }
  0xaf   :  { %276 = vst [vmem:[%s585_s3 + $0x30] sm:$0xff] %v209_v35 }
  0xb0   :  { %283 = vst [vmem:[%s585_s3 + $0x68] sm:$0x3] %v248_v33 }
  0xb1   :  { %279 = vst.msk [vmem:[%s585_s3 + $0x48] sm:$0xff] %vm273_vm2, %v263_v36 }
  0xb3   :  { %v231_v37 = vpop.f32.mrf.mxu2  ;;  %v249_v38 = vpop.f32.mrf.mxu3 }
  0xb4   :  { %v211_v39 = vpop.f32.mrf.mxu1  ;;  %v265_v40 = vpop.f32.mrf.mxu0 }
  0xb5   :  { %v212_v41 = vadd.f32 %v211_v39, %v55_v8  ;;  %v266_v42 = vadd.f32 %v265_v40, %v55_v8 }
  0xb7   :  { %281 = vst [vmem:[%s585_s3 + $0x58] sm:$0x3] %v212_v41 }
  0xb8   :  { %285 = vst.msk [vmem:[%s585_s3 + $0x70] sm:$0x3] %vm284_vm3, %v266_v42 }
  0xbc   :  { %v213_v43 = vpop.f32.mrf.mxu1  ;;  %v267_v44 = vpop.f32.mrf.mxu0 }

// kernel: _lambda_.18
= control target key start
LH: loop header
LB: loop body
LE: loop exit
PB: predicated region body
PF: predicated region fallthrough
CT: control target
= control target key end

     0   :  { %vm273_vm0 = vcmask 1045504   ;;  %v630_v24 = vmov 0   ;;  %vm266_vm1 = vcmask 883712   ;;  %vm413_vm2 = vcmask 523264   ;;  %s1000_s1 = inlined_call_operand.vmem [shape: bf16[108,576], index: 1, kind: input, shape index: {}]   ;;  %s1001_s2 = inlined_call_operand.vmem [shape: f32[18,1], index: 2, kind: input, shape index: {}]   ;;  %s1002_s0 = inlined_call_operand.vmem [shape: bf16[18,108], index: 0, kind: input, shape index: {}]   ;;  %s1003_s3 = inlined_call_operand.vmem [shape: f32[18,576], index: 3, kind: input, shape index: {}]   ;;  %s1004_s4 = inlined_call_operand.vmem [shape: f32[18,576], index: 4, kind: output, shape index: {}]  }
   0x1   :  { %v556_v0 = vld [vmem:[%s1000_s1 + $0xf0] sm:$0xf]  ;;  %v617_v1 = vld [vmem:[%s1000_s1 + $0x100] sm:$0x30]  ;;  %v615_v2 = vld [vmem:[%s1000_s1 + $0xf4] sm:$0xf]  ;;  %628 = vset.pattern.permute.xlu0 %v630_v24  ;;  %629 = vset.pattern.permute.xlu1 %v630_v24 }
   0x2   :  { %v557_v3 = vor.u32 %v617_v1, %v556_v0  ;;  %v558_v4 = vld [vmem:[%s1000_s1 + $0x104] sm:$0x30]  ;;  %v612_v6 = vld [vmem:[%s1000_s1 + $0xd8] sm:$0xf0]  ;;  %v610_v8 = vld [vmem:[%s1000_s1 + $0xcc] sm:$0xf] }
   0x3   :  { %v536_v5 = vld [vmem:[%s1000_s1 + $0xc8] sm:$0xf]  ;;  %v561_v7 = vor.u32 %v615_v2, %v558_v4  ;;  %v538_v9 = vld [vmem:[%s1000_s1 + $0xdc] sm:$0xf0]  ;;  %v564_v10 = vld [vmem:[%s1000_s1 + $0xf8] sm:$0xf] }
   0x4   :  { %v275_v11 = vsel %vm273_vm0, %v557_v3, 0  ;;  %v618_v12 = vld [vmem:[%s1000_s1 + $0x108] sm:$0x30]  ;;  %v616_v13 = vld [vmem:[%s1000_s1 + $0xfc] sm:$0xf]  ;;  %v537_v15 = vor.u32 %v612_v6, %v536_v5  ;;  %v541_v19 = vor.u32 %v610_v8, %v538_v9  ;;  %v63_v28 = vld [vmem:[%s1001_s2] sm:$0xff] }
   0x5   :  { %290 = vmatpush.bf16.msra.mxu0 %v275_v11  ;;  %v278_v14 = vsel %vm273_vm0, %v561_v7, 0  ;;  %v565_v16 = vor.u32 %v618_v12, %v564_v10  ;;  %v566_v17 = vld [vmem:[%s1000_s1 + $0x10c] sm:$0x30]  ;;  %v516_v18 = vld [vmem:[%s1000_s1 + $0xa0] sm:$0xf]  ;;  %68 = vperm.xlu0 %628, %v63_v28   ;;  %vm424_vm3 = vcmask 517120  }
   0x6   :  { %308 = vmatpush.bf16.msra.mxu1 %v278_v14  ;;  %v569_v20 = vor.u32 %v616_v13, %v566_v17  ;;  %v607_v21 = vld [vmem:[%s1000_s1 + $0xb0] sm:$0xf0]  ;;  %v605_v22 = vld [vmem:[%s1000_s1 + $0xa4] sm:$0xf]  ;;  %v518_v23 = vld [vmem:[%s1000_s1 + $0xb4] sm:$0xf0] }
   0x7   :  { %v281_v25 = vsel %vm273_vm0, %v565_v16, 0  ;;  %v544_v26 = vld [vmem:[%s1000_s1 + $0xd0] sm:$0xf]  ;;  %v613_v27 = vld [vmem:[%s1000_s1 + $0xe0] sm:$0xf0]  ;;  %v517_v33 = vor.u32 %v607_v21, %v516_v18  ;;  %v521_v37 = vor.u32 %v605_v22, %v518_v23 }
   0x8   :  { %326 = vmatpush.bf16.msra.mxu2 %v281_v25  ;;  %v284_v29 = vsel %vm273_vm0, %v569_v20, 0  ;;  %v545_v30 = vor.u32 %v613_v27, %v544_v26  ;;  %v611_v31 = vld [vmem:[%s1000_s1 + $0xd4] sm:$0xf]  ;;  %v546_v32 = vld [vmem:[%s1000_s1 + $0xe4] sm:$0xf0] }
   0x9   :  { %291 = vmatpush.bf16.msra.mxu0 %v537_v15  ;;  %344 = vmatpush.bf16.msra.mxu3 %v284_v29  ;;  %v549_v34 = vor.u32 %v611_v31, %v546_v32  ;;  %v496_v35 = vld [vmem:[%s1000_s1 + $0x78] sm:$0xf]  ;;  %v602_v36 = vld [vmem:[%s1000_s1 + $0x88] sm:$0xf0]  ;;  %v600_v38 = vld [vmem:[%s1000_s1 + $0x7c] sm:$0xf] }
   0xa   :  { %309 = vmatpush.bf16.msra.mxu1 %v541_v19  ;;  %v524_v39 = vld [vmem:[%s1000_s1 + $0xa8] sm:$0xf]  ;;  %v608_v40 = vld [vmem:[%s1000_s1 + $0xb8] sm:$0xf0]  ;;  %v498_v41 = vld [vmem:[%s1000_s1 + $0x8c] sm:$0xf0]  ;;  %v497_v45 = vor.u32 %v602_v36, %v496_v35 }
   0xb   :  { %v606_v42 = vld [vmem:[%s1000_s1 + $0xac] sm:$0xf]  ;;  %v526_v43 = vld [vmem:[%s1000_s1 + $0xbc] sm:$0xf0]  ;;  %v525_v44 = vor.u32 %v608_v40, %v524_v39  ;;  %v476_v47 = vld [vmem:[%s1000_s1 + $0x50] sm:$0xf]  ;;  %v501_v50 = vor.u32 %v600_v38, %v498_v41 }
   0xc   :  { %327 = vmatpush.bf16.msra.mxu2 %v545_v30  ;;  %v529_v46 = vor.u32 %v606_v42, %v526_v43  ;;  %v504_v48 = vld [vmem:[%s1000_s1 + $0x80] sm:$0xf]  ;;  %v603_v49 = vld [vmem:[%s1000_s1 + $0x90] sm:$0xf0]  ;;  %v597_v51 = vld [vmem:[%s1000_s1 + $0x60] sm:$0xf0] }
   0xd   :  { %292 = vmatpush.bf16.msra.mxu0 %v517_v33  ;;  %345 = vmatpush.bf16.msra.mxu3 %v549_v34  ;;  %v601_v52 = vld [vmem:[%s1000_s1 + $0x84] sm:$0xf]  ;;  %v506_v53 = vld [vmem:[%s1000_s1 + $0x94] sm:$0xf0]  ;;  %v595_v54 = vld [vmem:[%s1000_s1 + $0x54] sm:$0xf]  ;;  %v505_v56 = vor.u32 %v603_v49, %v504_v48  ;;  %v477_v57 = vor.u32 %v597_v51, %v476_v47 }
   0xe   :  { %310 = vmatpush.bf16.msra.mxu1 %v521_v37  ;;  %v478_v55 = vld [vmem:[%s1000_s1 + $0x64] sm:$0xf0]  ;;  %v509_v58 = vor.u32 %v601_v52, %v506_v53  ;;  %v484_v60 = vld [vmem:[%s1000_s1 + $0x58] sm:$0xf]  ;;  %v598_v61 = vld [vmem:[%s1000_s1 + $0x68] sm:$0xf0] }
   0xf   :  { %v456_v59 = vld [vmem:[%s1000_s1 + $0x28] sm:$0xf]  ;;  %v481_v62 = vor.u32 %v595_v54, %v478_v55  ;;  %v592_v63 = vld [vmem:[%s1000_s1 + $0x38] sm:$0xf0]  ;;  %v486_v1 = vld [vmem:[%s1000_s1 + $0x6c] sm:$0xf0]  ;;  %v485_v4 = vor.u32 %v598_v61, %v484_v60 }
  0x10   :  { %328 = vmatpush.bf16.msra.mxu2 %v525_v44  ;;  %v596_v0 = vld [vmem:[%s1000_s1 + $0x5c] sm:$0xf]  ;;  %v590_v2 = vld [vmem:[%s1000_s1 + $0x2c] sm:$0xf]  ;;  %v458_v3 = vld [vmem:[%s1000_s1 + $0x3c] sm:$0xf0]  ;;  %v457_v7 = vor.u32 %v592_v63, %v456_v59 }
  0x11   :  { %293 = vmatpush.bf16.msra.mxu0 %v497_v45  ;;  %346 = vmatpush.bf16.msra.mxu3 %v529_v46  ;;  %v572_v5 = vld [vmem:[%s1000_s1 + $0x100] sm:$0xf]  ;;  %v619_v6 = vld [vmem:[%s1000_s1 + $0x110] sm:$0x30]  ;;  %v489_v8 = vor.u32 %v596_v0, %v486_v1  ;;  %v464_v10 = vld [vmem:[%s1000_s1 + $0x30] sm:$0xf]  ;;  %v461_v12 = vor.u32 %v590_v2, %v458_v3 }
  0x12   :  { %311 = vmatpush.bf16.msra.mxu1 %v501_v50  ;;  %v436_v9 = vld [vmem:[%s1000_s1] sm:$0xf]  ;;  %v593_v11 = vld [vmem:[%s1000_s1 + $0x40] sm:$0xf0]  ;;  %v587_v13 = vld [vmem:[%s1000_s1 + $0x10] sm:$0xf0]  ;;  %v573_v18 = vor.u32 %v619_v6, %v572_v5 }
  0x13   :  { %v591_v14 = vld [vmem:[%s1000_s1 + $0x34] sm:$0xf]  ;;  %v466_v15 = vld [vmem:[%s1000_s1 + $0x44] sm:$0xf0]  ;;  %v585_v16 = vld [vmem:[%s1000_s1 + $0x4] sm:$0xf]  ;;  %v465_v20 = vor.u32 %v593_v11, %v464_v10  ;;  %v437_v21 = vor.u32 %v587_v13, %v436_v9 }
  0x14   :  { %329 = vmatpush.bf16.msra.mxu2 %v505_v56  ;;  %v438_v17 = vld [vmem:[%s1000_s1 + $0x14] sm:$0xf0]  ;;  %v64_v19 = vld [vmem:[%s1001_s2 + $0x8] sm:$0xff]  ;;  %v469_v22 = vor.u32 %v591_v14, %v466_v15  ;;  %v588_v24 = vld [vmem:[%s1000_s1 + $0x18] sm:$0xf0]  ;;  %v287_v29 = vsel %vm273_vm0, %v573_v18, 0 }
  0x15   :  { %294 = vmatpush.bf16.msra.mxu0 %v477_v57  ;;  %347 = vmatpush.bf16.msra.mxu3 %v509_v58  ;;  %v444_v23 = vld [vmem:[%s1000_s1 + $0x8] sm:$0xf]  ;;  %v65_v25 = vld [vmem:[%s1001_s2 + $0x10] sm:$0x3]  ;;  %v441_v26 = vor.u32 %v585_v16, %v438_v17  ;;  %v586_v27 = vld [vmem:[%s1000_s1 + $0xc] sm:$0xf] }
  0x16   :  { %312 = vmatpush.bf16.msra.mxu1 %v481_v62  ;;  %73 = vperm.xlu0 %628, %v64_v19   ;;  %v446_v28 = vld [vmem:[%s1000_s1 + $0x1c] sm:$0xf0]  ;;  %v552_v30 = vld [vmem:[%s1000_s1 + $0xd8] sm:$0xf]  ;;  %v614_v31 = vld [vmem:[%s1000_s1 + $0xe8] sm:$0xf0]  ;;  %v445_v33 = vor.u32 %v588_v24, %v444_v23 }
  0x17   :  { %78 = vperm.xlu1 %629, %v65_v25   ;;  %v584_v32 = vld [vmem:[%s1002_s0] sm:$0xff]  ;;  %v449_v34 = vor.u32 %v586_v27, %v446_v28  ;;  %v553_v35 = vor.u32 %v614_v31, %v552_v30  ;;  %v532_v36 = vld [vmem:[%s1000_s1 + $0xb0] sm:$0xf]  ;;  %v512_v39 = vld [vmem:[%s1000_s1 + $0x88] sm:$0xf] }
  0x18   :  { %330 = vmatpush.bf16.msra.mxu2 %v485_v4  ;;  %v609_v37 = vld [vmem:[%s1000_s1 + $0xc0] sm:$0xf0]  ;;  %v604_v40 = vld [vmem:[%s1000_s1 + $0x98] sm:$0xf0]  ;;  %v20_v41 = vld [vmem:[%s1002_s0 + $0x8] sm:$0x1] }
  0x19   :  { %295 = vmatpush.bf16.msra.mxu0 %v457_v7  ;;  %348 = vmatpush.bf16.msra.mxu3 %v489_v8  ;;  %v533_v38 = vor.u32 %v609_v37, %v532_v36  ;;  %v513_v42 = vor.u32 %v604_v40, %v512_v39  ;;  %v492_v43 = vld [vmem:[%s1000_s1 + $0x60] sm:$0xf]  ;;  %v599_v44 = vld [vmem:[%s1000_s1 + $0x70] sm:$0xf0]  ;;  %v86_v45 = vunpack.c.l.b16 %v20_v41  ;;  %v472_v47 = vld [vmem:[%s1000_s1 + $0x38] sm:$0xf] }
  0x1a   :  { %313 = vmatpush.bf16.msra.mxu1 %v461_v12  ;;  %v493_v46 = vor.u32 %v599_v44, %v492_v43  ;;  %v594_v48 = vld [vmem:[%s1000_s1 + $0x48] sm:$0xf0]  ;;  %v452_v51 = vld [vmem:[%s1000_s1 + $0x10] sm:$0xf]  ;;  %v589_v52 = vld [vmem:[%s1000_s1 + $0x20] sm:$0xf0] }
  0x1b   :  { %v88_v49 = vpack.c.b16 %v86_v45, %v86_v45  ;;  %v473_v50 = vor.u32 %v594_v48, %v472_v47  ;;  %v453_v53 = vor.u32 %v589_v52, %v452_v51  ;;  %v379_v56 = vld [vmem:[%s1003_s3] sm:$0xff]  ;;  %v380_v59 = vld [vmem:[%s1003_s3 + $0x8] sm:$0xff]  ;;  %v385_v4 = vld [vmem:[%s1003_s3 + $0x30] sm:$0xff] }
  0x1c   :  { %331 = vmatpush.bf16.msra.mxu2 %v465_v20  ;;  %v384_v1 = vld [vmem:[%s1003_s3 + $0x28] sm:$0xff]  ;;  %v381_v6 = vld [vmem:[%s1003_s3 + $0x10] sm:$0xff]  ;;  %v382_v10 = vld [vmem:[%s1003_s3 + $0x18] sm:$0xff] }
  0x1d   :  { %296 = vmatpush.bf16.msra.mxu0 %v437_v21  ;;  %349 = vmatpush.bf16.msra.mxu3 %v469_v22  ;;  %v389_v18 = vld [vmem:[%s1003_s3 + $0x50] sm:$0x3]  ;;  %v390_v21 = vld [vmem:[%s1003_s3 + $0x58] sm:$0x3]  ;;  %v387_v27 = vld [vmem:[%s1003_s3 + $0x40] sm:$0xff] }
  0x1e   :  { %314 = vmatpush.bf16.msra.mxu1 %v441_v26  ;;  %v386_v23 = vld [vmem:[%s1003_s3 + $0x38] sm:$0xff]  ;;  %v391_v36 = vld [vmem:[%s1003_s3 + $0x60] sm:$0x3]  ;;  %v392_v39 = vld [vmem:[%s1003_s3 + $0x68] sm:$0x3] }
  0x1f   :  { %v383_v44 = vld [vmem:[%s1003_s3 + $0x20] sm:$0xff]  ;;  %v393_v47 = vld [vmem:[%s1003_s3 + $0x70] sm:$0x3] }
  0x20   :  { %574 = vmatmul.msk.bf16.vlgmr.msra.gmra.mxu0 %vm266_vm1, %v584_v32  ;;  %332 = vmatpush.bf16.msra.mxu2 %v445_v33 }
  0x21   :  { %362 = vmatpush.bf16.msrb.mxu0 %v287_v29  ;;  %576 = vmatmul.msk.bf16.vlgmr.msra.gmra.mxu1 %vm266_vm1, %v584_v32 }
  0x22   :  { %620 = vmatpush.bf16.msrb.mxu1 %v287_v29  ;;  %350 = vmatpush.bf16.msra.mxu3 %v449_v34 }
  0x23   :  { %578 = vmatmul.msk.bf16.vlgmr.msra.gmra.mxu2 %vm266_vm1, %v584_v32 }
  0x25   :  { %363 = vmatpush.bf16.msrb.mxu0 %v553_v35  ;;  %580 = vmatmul.msk.bf16.vlgmr.msra.gmra.mxu3 %vm266_vm1, %v584_v32 }
  0x26   :  { %621 = vmatpush.bf16.msrb.mxu1 %v553_v35 }
  0x29   :  { %364 = vmatpush.bf16.msrb.mxu0 %v533_v38 }
  0x2a   :  { %622 = vmatpush.bf16.msrb.mxu1 %v533_v38 }
  0x2d   :  { %365 = vmatpush.bf16.msrb.mxu0 %v513_v42 }
  0x2e   :  { %623 = vmatpush.bf16.msrb.mxu1 %v513_v42 }
  0x30   :  { %575 = vmatmul.msk.bf16.gmra.mxu0 %vm266_vm1, %v88_v49 }
  0x31   :  { %366 = vmatpush.bf16.msrb.mxu0 %v493_v46  ;;  %577 = vmatmul.msk.bf16.gmra.mxu1 %vm266_vm1, %v88_v49 }
  0x32   :  { %624 = vmatpush.bf16.msrb.mxu1 %v493_v46 }
  0x33   :  { %579 = vmatmul.msk.bf16.gmra.mxu2 %vm266_vm1, %v88_v49 }
  0x35   :  { %367 = vmatpush.bf16.msrb.mxu0 %v473_v50  ;;  %581 = vmatmul.msk.bf16.gmra.mxu3 %vm266_vm1, %v88_v49 }
  0x36   :  { %625 = vmatpush.bf16.msrb.mxu1 %v473_v50 }
  0x39   :  { %368 = vmatpush.bf16.msrb.mxu0 %v453_v53 }
  0x3a   :  { %626 = vmatpush.bf16.msrb.mxu1 %v453_v53 }
  0x40   :  { %582 = vmatmul.msk.bf16.vlgmr.msrb.gmra.mxu0 %vm266_vm1, %v584_v32 }
  0x41   :  { %583 = vmatmul.msk.bf16.vlgmr.msrb.gmra.mxu1 %vm266_vm1, %v88_v49 }
  0x77   :  { %v896_v54 = vpop.permute.xlu0 %68 }
  0x88   :  { %v912_v63 = vpop.permute.xlu0 %73 }
  0x89   :  { %v79_v16 = vpop.permute.xlu1 %78 }
  0x9d   :  { %v298_v55 = vpop.f32.mrf.mxu0 }
  0x9e   :  { %v299_v57 = vadd.f32 %v298_v55, %v896_v54  ;;  %v316_v58 = vpop.f32.mrf.mxu1 }
  0x9f   :  { %v317_v60 = vadd.f32 %v316_v58, %v896_v54 }
  0xa0   :  { %v394_v61 = vadd.f32 %v379_v56, %v299_v57 }
  0xa1   :  { %v395_v62 = vadd.f32 %v380_v59, %v317_v60 }
  0xa2   :  { %409 = vst [vmem:[%s1004_s4] sm:$0xff] %v394_v61 }
  0xa3   :  { %410 = vst [vmem:[%s1004_s4 + $0x8] sm:$0xff] %v395_v62 }
  0xa5   :  { %v300_v0 = vpop.f32.mrf.mxu0 }
  0xa6   :  { %v301_v2 = vadd.f32 %v300_v0, %v912_v63  ;;  %v318_v3 = vpop.f32.mrf.mxu1  ;;  %v334_v5 = vpop.f32.mrf.mxu2 }
  0xa7   :  { %v319_v7 = vadd.f32 %v318_v3, %v912_v63  ;;  %v335_v8 = vadd.f32 %v334_v5, %v896_v54 }
  0xa8   :  { %v352_v9 = vpop.f32.mrf.mxu3  ;;  %v399_v11 = vadd.f32 %v384_v1, %v301_v2 }
  0xa9   :  { %v353_v12 = vadd.f32 %v352_v9, %v896_v54  ;;  %v400_v13 = vadd.f32 %v385_v4, %v319_v7  ;;  %v396_v14 = vadd.f32 %v381_v6, %v335_v8 }
  0xaa   :  { %415 = vst [vmem:[%s1004_s4 + $0x28] sm:$0xff] %v399_v11 }
  0xab   :  { %v397_v15 = vadd.f32 %v382_v10, %v353_v12  ;;  %416 = vst [vmem:[%s1004_s4 + $0x30] sm:$0xff] %v400_v13 }
  0xac   :  { %411 = vst [vmem:[%s1004_s4 + $0x10] sm:$0xff] %v396_v14 }
  0xad   :  { %412 = vst [vmem:[%s1004_s4 + $0x18] sm:$0xff] %v397_v15  ;;  %v303_v17 = vpop.f32.mrf.mxu0 }
  0xae   :  { %v304_v19 = vadd.f32 %v303_v17, %v79_v16  ;;  %v321_v20 = vpop.f32.mrf.mxu1  ;;  %v336_v22 = vpop.f32.mrf.mxu2 }
  0xaf   :  { %v322_v24 = vadd.f32 %v321_v20, %v79_v16  ;;  %v337_v25 = vadd.f32 %v336_v22, %v912_v63 }
  0xb0   :  { %v354_v26 = vpop.f32.mrf.mxu3  ;;  %v404_v28 = vadd.f32 %v389_v18, %v304_v19 }
  0xb1   :  { %v355_v29 = vadd.f32 %v354_v26, %v912_v63  ;;  %v405_v30 = vadd.f32 %v390_v21, %v322_v24  ;;  %v401_v31 = vadd.f32 %v386_v23, %v337_v25 }
  0xb2   :  { %420 = vst [vmem:[%s1004_s4 + $0x50] sm:$0x3] %v404_v28 }
  0xb3   :  { %v402_v32 = vadd.f32 %v387_v27, %v355_v29  ;;  %421 = vst [vmem:[%s1004_s4 + $0x58] sm:$0x3] %v405_v30 }
  0xb4   :  { %417 = vst [vmem:[%s1004_s4 + $0x38] sm:$0xff] %v401_v31 }
  0xb5   :  { %418 = vst [vmem:[%s1004_s4 + $0x40] sm:$0xff] %v402_v32  ;;  %v305_v33 = vpop.f32.mrf.mxu0 }
  0xb6   :  { %v323_v34 = vpop.f32.mrf.mxu1  ;;  %v339_v35 = vpop.f32.mrf.mxu2 }
  0xb7   :  { %v340_v37 = vadd.f32 %v339_v35, %v79_v16 }
  0xb8   :  { %v357_v38 = vpop.f32.mrf.mxu3 }
  0xb9   :  { %v358_v40 = vadd.f32 %v357_v38, %v79_v16  ;;  %v406_v41 = vadd.f32 %v391_v36, %v340_v37 }
  0xbb   :  { %v407_v42 = vadd.f32 %v392_v39, %v358_v40  ;;  %422 = vst [vmem:[%s1004_s4 + $0x60] sm:$0x3] %v406_v41 }
  0xbd   :  { %423 = vst [vmem:[%s1004_s4 + $0x68] sm:$0x3] %v407_v42  ;;  %v370_v43 = vpop.f32.mrf.mxu0 }
  0xbe   :  { %v371_v45 = vadd.f32 %v370_v43, %v896_v54  ;;  %v375_v46 = vpop.f32.mrf.mxu1  ;;  %v341_v48 = vpop.f32.mrf.mxu2  ;;  %v388_v54 = vld [vmem:[%s1003_s3 + $0x48] sm:$0xff] }
  0xbf   :  { %v376_v49 = vadd.f32 %v375_v46, %v79_v16 }
  0xc0   :  { %v359_v50 = vpop.f32.mrf.mxu3  ;;  %v398_v51 = vadd.f32 %v383_v44, %v371_v45 }
  0xc1   :  { %v408_v52 = vadd.f32 %v393_v47, %v376_v49 }
  0xc2   :  { %414 = vst.msk [vmem:[%s1004_s4 + $0x20] sm:$0xff] %vm413_vm2, %v398_v51 }
  0xc3   :  { %425 = vst.msk [vmem:[%s1004_s4 + $0x70] sm:$0x3] %vm424_vm3, %v408_v52 }
  0xc5   :  { %v372_v53 = vpop.f32.mrf.mxu0 }
  0xc6   :  { %v373_v55 = vadd.f32 %v372_v53, %v912_v63  ;;  %v377_v56 = vpop.f32.mrf.mxu1 }
  0xc8   :  { %v403_v57 = vadd.f32 %v388_v54, %v373_v55 }
  0xca   :  { %419 = vst.msk [vmem:[%s1004_s4 + $0x48] sm:$0xff] %vm413_vm2, %v403_v57 }

// kernel: _lambda_.20
= control target key start
LH: loop header
LB: loop body
LE: loop exit
PB: predicated region body
PF: predicated region fallthrough
CT: control target
= control target key end

     0   :  { %v423_v1 = vmov 0   ;;  %vm162_vm0 = vcmask 1041408   ;;  %vm152_vm1 = vcmask 293888   ;;  %vm302_vm2 = vcmask 523264   ;;  %s684_s1 = inlined_call_operand.vmem [shape: bf16[36,576], index: 1, kind: input, shape index: {}]   ;;  %s685_s2 = inlined_call_operand.vmem [shape: f32[48,1], index: 2, kind: input, shape index: {}]   ;;  %s686_s0 = inlined_call_operand.vmem [shape: bf16[48,36], index: 0, kind: input, shape index: {}]   ;;  %s687_s3 = inlined_call_operand.vmem [shape: f32[48,576], index: 3, kind: output, shape index: {}]  }
   0x1   :  { %v33_v0 = vld [vmem:[%s684_s1 + $0x50] sm:$0x33]  ;;  %421 = vset.pattern.permute.xlu1 %v423_v1  ;;  %420 = vset.pattern.permute.xlu0 %v423_v1  ;;  %v34_v3 = vld [vmem:[%s684_s1 + $0x58] sm:$0x33]  ;;  %v367_v6 = vld [vmem:[%s684_s1 + $0x28] sm:$0xf] }
   0x2   :  { %v122_v2 = vunpack.c.l.b16 %v33_v0  ;;  %422 = vset.pattern.permute.xlu2 %v423_v1  ;;  %v125_v4 = vunpack.c.h.b16 %v34_v3  ;;  %v410_v7 = vld [vmem:[%s684_s1 + $0x38] sm:$0xf0]  ;;  %v409_v9 = vld [vmem:[%s684_s1 + $0x34] sm:$0xf]  ;;  %v377_v10 = vld [vmem:[%s684_s1 + $0x44] sm:$0xf0]  ;;  %v123_v11 = vunpack.c.h.b16 %v33_v0  ;;  %v124_v14 = vunpack.c.l.b16 %v34_v3 }
   0x3   :  { %v35_v12 = vld [vmem:[%s684_s1 + $0x60] sm:$0x3]  ;;  %v368_v15 = vor.u32 %v410_v7, %v367_v6  ;;  %v405_v18 = vld [vmem:[%s684_s1 + $0x10] sm:$0xf0]  ;;  %v380_v19 = vor.u32 %v409_v9, %v377_v10  ;;  %v404_v25 = vld [vmem:[%s684_s1 + $0xc] sm:$0xf] }
   0x4   :  { %v137_v5 = vpack.c.b16 %v122_v2, %v122_v2  ;;  %v140_v8 = vpack.c.b16 %v125_v4, %v125_v4  ;;  %v347_v16 = vld [vmem:[%s684_s1] sm:$0xf]  ;;  %v126_v20 = vunpack.c.l.b16 %v35_v12  ;;  %v38_v21 = vld [vmem:[%s685_s2 + $0x10] sm:$0xff]  ;;  %v138_v23 = vpack.c.b16 %v123_v11, %v123_v11  ;;  %v408_v32 = vld [vmem:[%s684_s1 + $0x2c] sm:$0xf] }
   0x5   :  { %v36_v22 = vld [vmem:[%s685_s2] sm:$0xff]  ;;  %54 = vperm.xlu1 %421, %v38_v21   ;;  %v139_v24 = vpack.c.b16 %v124_v14, %v124_v14  ;;  %v348_v27 = vor.u32 %v405_v18, %v347_v16  ;;  %v401_v34 = vld [vmem:[%s686_s0 + $0x8] sm:$0xff]  ;;  %v375_v36 = vld [vmem:[%s684_s1 + $0x30] sm:$0xf] }
   0x6   :  { %v164_v13 = vsel %vm162_vm0, %v137_v5, 0  ;;  %v173_v17 = vsel %vm162_vm0, %v140_v8, 0  ;;  %44 = vperm.xlu0 %420, %v36_v22   ;;  %v357_v26 = vld [vmem:[%s684_s1 + $0x1c] sm:$0xf0]  ;;  %v141_v28 = vpack.c.b16 %v126_v20, %v126_v20  ;;  %v167_v30 = vsel %vm162_vm0, %v138_v23, 0  ;;  %v402_v38 = vld [vmem:[%s686_s0 + $0x10] sm:$0xff] }
   0x7   :  { %183 = vmatpush.bf16.msra.mxu0 %v164_v13  ;;  %413 = vmatpush.bf16.msra.mxu1 %v164_v13  ;;  %v400_v29 = vld [vmem:[%s686_s0] sm:$0xff]  ;;  %v360_v31 = vor.u32 %v404_v25, %v357_v26  ;;  %v170_v35 = vsel %vm162_vm0, %v139_v24, 0  ;;  %v383_v41 = vld [vmem:[%s684_s1 + $0x38] sm:$0xf]  ;;  %v412_v42 = vld [vmem:[%s684_s1 + $0x48] sm:$0xf0] }
   0x8   :  { %414 = vmatpush.bf16.msra.mxu2 %v164_v13  ;;  %255 = vmatpush.bf16.msra.mxu3 %v173_v17  ;;  %v369_v33 = vld [vmem:[%s684_s1 + $0x3c] sm:$0xf0]  ;;  %v411_v37 = vld [vmem:[%s684_s1 + $0x40] sm:$0xf0]  ;;  %v176_v39 = vsel %vm162_vm0, %v141_v28, 0  ;;  %v39_v48 = vld [vmem:[%s685_s2 + $0x18] sm:$0xff]  ;;  %v384_v49 = vor.u32 %v412_v42, %v383_v41 }
   0x9   :  { %v372_v40 = vor.u32 %v408_v32, %v369_v33  ;;  %v376_v43 = vor.u32 %v411_v37, %v375_v36  ;;  %v403_v44 = vld [vmem:[%s684_s1 + $0x4] sm:$0xf]  ;;  %v349_v45 = vld [vmem:[%s684_s1 + $0x14] sm:$0xf0]  ;;  %v355_v46 = vld [vmem:[%s684_s1 + $0x8] sm:$0xf] }
   0xa   :  { %v406_v47 = vld [vmem:[%s684_s1 + $0x18] sm:$0xf0]  ;;  %v37_v50 = vld [vmem:[%s685_s2 + $0x8] sm:$0xff]  ;;  %v352_v51 = vor.u32 %v403_v44, %v349_v45  ;;  %v363_v52 = vld [vmem:[%s684_s1 + $0x10] sm:$0xf] }
   0xb   :  { %184 = vmatpush.bf16.msra.mxu0 %v368_v15  ;;  %415 = vmatpush.bf16.msra.mxu1 %v368_v15  ;;  %v407_v53 = vld [vmem:[%s684_s1 + $0x20] sm:$0xf0]  ;;  %v356_v55 = vor.u32 %v406_v47, %v355_v46  ;;  %v41_v57 = vld [vmem:[%s685_s2 + $0x28] sm:$0xff] }
   0xc   :  { %416 = vmatpush.bf16.msra.mxu2 %v368_v15  ;;  %256 = vmatpush.bf16.msra.mxu3 %v380_v19  ;;  %v40_v54 = vld [vmem:[%s685_s2 + $0x20] sm:$0xff]  ;;  %v364_v56 = vor.u32 %v407_v53, %v363_v52 }
   0xd   :  { %59 = vperm.xlu1 %421, %v39_v48   ;;  %64 = vperm.xlu2 %422, %v40_v54  }
   0xe   :  { %49 = vperm.xlu0 %420, %v37_v50  }
   0xf   :  { %185 = vmatpush.bf16.msra.mxu0 %v348_v27  ;;  %417 = vmatpush.bf16.msra.mxu1 %v348_v27 }
  0x10   :  { %418 = vmatpush.bf16.msra.mxu2 %v348_v27  ;;  %257 = vmatpush.bf16.msra.mxu3 %v360_v31 }
  0x12   :  { %385 = vmatmul.msk.bf16.vlgmr.msra.gmra.mxu0 %vm152_vm1, %v400_v29  ;;  %386 = vmatmul.msk.bf16.vlgmr.msra.gmra.mxu1 %vm152_vm1, %v401_v34 }
  0x13   :  { %207 = vmatpush.bf16.msrb.mxu1 %v167_v30  ;;  %387 = vmatmul.msk.bf16.vlgmr.msra.gmra.mxu2 %vm152_vm1, %v402_v38 }
  0x14   :  { %231 = vmatpush.bf16.msrb.mxu2 %v170_v35  ;;  %279 = vmatpush.bf16.msrb.mxu0 %v176_v39 }
  0x15   :  { %394 = vmatmul.msk.bf16.vlgmr.msra.gmra.mxu3 %vm152_vm1, %v400_v29  ;;  %69 = vperm.xlu2 %422, %v41_v57  }
  0x17   :  { %208 = vmatpush.bf16.msrb.mxu1 %v372_v40 }
  0x18   :  { %232 = vmatpush.bf16.msrb.mxu2 %v376_v43  ;;  %280 = vmatpush.bf16.msrb.mxu0 %v384_v49 }
  0x1b   :  { %209 = vmatpush.bf16.msrb.mxu1 %v352_v51 }
  0x1c   :  { %233 = vmatpush.bf16.msrb.mxu2 %v356_v55  ;;  %281 = vmatpush.bf16.msrb.mxu0 %v364_v56 }
  0x22   :  { %388 = vmatmul.msk.bf16.vlgmr.msrb.gmra.mxu1 %vm152_vm1, %v400_v29  ;;  %397 = vmatmul.msk.bf16.vlgmr.msrb.gmra.mxu0 %vm152_vm1, %v400_v29 }
  0x23   :  { %391 = vmatmul.msk.bf16.vlgmr.msrb.gmra.mxu2 %vm152_vm1, %v400_v29 }
  0x25   :  { %395 = vmatmul.msk.bf16.gmra.mxu3 %vm152_vm1, %v401_v34 }
  0x32   :  { %389 = vmatmul.msk.bf16.gmra.mxu1 %vm152_vm1, %v401_v34  ;;  %398 = vmatmul.msk.bf16.gmra.mxu0 %vm152_vm1, %v401_v34 }
  0x33   :  { %392 = vmatmul.msk.bf16.gmra.mxu2 %vm152_vm1, %v401_v34 }
  0x35   :  { %396 = vmatmul.msk.bf16.gmra.mxu3 %vm152_vm1, %v402_v38 }
  0x42   :  { %390 = vmatmul.msk.bf16.gmra.mxu1 %vm152_vm1, %v402_v38  ;;  %399 = vmatmul.msk.bf16.gmra.mxu0 %vm152_vm1, %v402_v38 }
  0x43   :  { %393 = vmatmul.msk.bf16.gmra.mxu2 %vm152_vm1, %v402_v38 }
  0x67   :  { %v566_v0 = vpop.permute.xlu2 %64 }
  0x6f   :  { %v584_v11 = vpop.permute.xlu2 %69 }
  0x77   :  { %v560_v58 = vpop.permute.xlu1 %54 }
  0x78   :  { %v45_v59 = vpop.permute.xlu0 %44 }
  0x7f   :  { %v571_v1 = vpop.permute.xlu1 %59 }
  0x80   :  { %v50_v2 = vpop.permute.xlu0 %49 }
  0x8f   :  { %v187_v60 = vpop.f32.mrf.mxu0  ;;  %v192_v61 = vpop.f32.mrf.mxu1 }
  0x90   :  { %v188_v62 = vadd.f32 %v187_v60, %v45_v59  ;;  %v193_v63 = vadd.f32 %v192_v61, %v560_v58 }
  0x92   :  { %298 = vst [vmem:[%s687_s3] sm:$0xff] %v188_v62 }
  0x93   :  { %309 = vst [vmem:[%s687_s3 + $0x50] sm:$0xff] %v193_v63 }
  0x96   :  { %v197_v3 = vpop.f32.mrf.mxu2 }
  0x97   :  { %v198_v4 = vadd.f32 %v197_v3, %v566_v0  ;;  %v189_v5 = vpop.f32.mrf.mxu0  ;;  %v194_v6 = vpop.f32.mrf.mxu1 }
  0x98   :  { %v190_v7 = vadd.f32 %v189_v5, %v50_v2  ;;  %v195_v8 = vadd.f32 %v194_v6, %v571_v1  ;;  %v259_v9 = vpop.f32.mrf.mxu3 }
  0x99   :  { %319 = vst [vmem:[%s687_s3 + $0xa0] sm:$0xff] %v198_v4  ;;  %v260_v10 = vadd.f32 %v259_v9, %v45_v59 }
  0x9a   :  { %304 = vst [vmem:[%s687_s3 + $0x28] sm:$0xff] %v190_v7 }
  0x9b   :  { %314 = vst [vmem:[%s687_s3 + $0x78] sm:$0xff] %v195_v8 }
  0x9c   :  { %301 = vst [vmem:[%s687_s3 + $0x18] sm:$0xff] %v260_v10 }
  0x9e   :  { %v199_v12 = vpop.f32.mrf.mxu2 }
  0x9f   :  { %v200_v13 = vadd.f32 %v199_v12, %v584_v11  ;;  %v211_v14 = vpop.f32.mrf.mxu1  ;;  %v283_v15 = vpop.f32.mrf.mxu0 }
  0xa0   :  { %v212_v16 = vadd.f32 %v211_v14, %v45_v59  ;;  %v284_v17 = vadd.f32 %v283_v15, %v45_v59  ;;  %v261_v18 = vpop.f32.mrf.mxu3 }
  0xa1   :  { %324 = vst [vmem:[%s687_s3 + $0xc8] sm:$0xff] %v200_v13  ;;  %v262_v19 = vadd.f32 %v261_v18, %v50_v2 }
  0xa2   :  { %299 = vst [vmem:[%s687_s3 + $0x8] sm:$0xff] %v212_v16 }
  0xa3   :  { %303 = vst.msk [vmem:[%s687_s3 + $0x20] sm:$0xff] %vm302_vm2, %v284_v17 }
  0xa4   :  { %307 = vst [vmem:[%s687_s3 + $0x40] sm:$0xff] %v262_v19 }
  0xa6   :  { %v235_v20 = vpop.f32.mrf.mxu2 }
  0xa7   :  { %v236_v21 = vadd.f32 %v235_v20, %v45_v59  ;;  %v213_v22 = vpop.f32.mrf.mxu1  ;;  %v285_v23 = vpop.f32.mrf.mxu0 }
  0xa8   :  { %v214_v24 = vadd.f32 %v213_v22, %v50_v2  ;;  %v286_v25 = vadd.f32 %v285_v23, %v50_v2  ;;  %v264_v26 = vpop.f32.mrf.mxu3 }
  0xa9   :  { %300 = vst [vmem:[%s687_s3 + $0x10] sm:$0xff] %v236_v21  ;;  %v265_v27 = vadd.f32 %v264_v26, %v560_v58 }
  0xaa   :  { %305 = vst [vmem:[%s687_s3 + $0x30] sm:$0xff] %v214_v24 }
  0xab   :  { %308 = vst.msk [vmem:[%s687_s3 + $0x48] sm:$0xff] %vm302_vm2, %v286_v25 }
  0xac   :  { %312 = vst [vmem:[%s687_s3 + $0x68] sm:$0xff] %v265_v27 }
  0xae   :  { %v237_v28 = vpop.f32.mrf.mxu2 }
  0xaf   :  { %v238_v29 = vadd.f32 %v237_v28, %v50_v2  ;;  %v216_v30 = vpop.f32.mrf.mxu1  ;;  %v288_v31 = vpop.f32.mrf.mxu0 }
  0xb0   :  { %v217_v32 = vadd.f32 %v216_v30, %v560_v58  ;;  %v289_v33 = vadd.f32 %v288_v31, %v560_v58  ;;  %v266_v34 = vpop.f32.mrf.mxu3 }
  0xb1   :  { %306 = vst [vmem:[%s687_s3 + $0x38] sm:$0xff] %v238_v29  ;;  %v267_v35 = vadd.f32 %v266_v34, %v571_v1 }
  0xb2   :  { %310 = vst [vmem:[%s687_s3 + $0x58] sm:$0xff] %v217_v32 }
  0xb3   :  { %313 = vst.msk [vmem:[%s687_s3 + $0x70] sm:$0xff] %vm302_vm2, %v289_v33 }
  0xb4   :  { %317 = vst [vmem:[%s687_s3 + $0x90] sm:$0xff] %v267_v35 }
  0xb6   :  { %v240_v36 = vpop.f32.mrf.mxu2 }
  0xb7   :  { %v241_v37 = vadd.f32 %v240_v36, %v560_v58  ;;  %v218_v38 = vpop.f32.mrf.mxu1  ;;  %v290_v39 = vpop.f32.mrf.mxu0 }
  0xb8   :  { %v219_v40 = vadd.f32 %v218_v38, %v571_v1  ;;  %v291_v41 = vadd.f32 %v290_v39, %v571_v1  ;;  %v269_v42 = vpop.f32.mrf.mxu3 }
  0xb9   :  { %311 = vst [vmem:[%s687_s3 + $0x60] sm:$0xff] %v241_v37  ;;  %v270_v43 = vadd.f32 %v269_v42, %v566_v0 }
  0xba   :  { %315 = vst [vmem:[%s687_s3 + $0x80] sm:$0xff] %v219_v40 }
  0xbb   :  { %318 = vst.msk [vmem:[%s687_s3 + $0x98] sm:$0xff] %vm302_vm2, %v291_v41 }
  0xbc   :  { %322 = vst [vmem:[%s687_s3 + $0xb8] sm:$0xff] %v270_v43 }
  0xbe   :  { %v242_v44 = vpop.f32.mrf.mxu2 }
  0xbf   :  { %v243_v45 = vadd.f32 %v242_v44, %v571_v1  ;;  %v221_v46 = vpop.f32.mrf.mxu1  ;;  %v293_v47 = vpop.f32.mrf.mxu0 }
  0xc0   :  { %v222_v48 = vadd.f32 %v221_v46, %v566_v0  ;;  %v294_v49 = vadd.f32 %v293_v47, %v566_v0  ;;  %v271_v50 = vpop.f32.mrf.mxu3 }
  0xc1   :  { %316 = vst [vmem:[%s687_s3 + $0x88] sm:$0xff] %v243_v45  ;;  %v272_v51 = vadd.f32 %v271_v50, %v584_v11 }
  0xc2   :  { %320 = vst [vmem:[%s687_s3 + $0xa8] sm:$0xff] %v222_v48 }
  0xc3   :  { %323 = vst.msk [vmem:[%s687_s3 + $0xc0] sm:$0xff] %vm302_vm2, %v294_v49 }
  0xc4   :  { %327 = vst [vmem:[%s687_s3 + $0xe0] sm:$0xff] %v272_v51 }
  0xc6   :  { %v245_v52 = vpop.f32.mrf.mxu2 }
  0xc7   :  { %v246_v53 = vadd.f32 %v245_v52, %v566_v0  ;;  %v223_v54 = vpop.f32.mrf.mxu1  ;;  %v295_v55 = vpop.f32.mrf.mxu0 }
  0xc8   :  { %v224_v56 = vadd.f32 %v223_v54, %v584_v11  ;;  %v296_v57 = vadd.f32 %v295_v55, %v584_v11 }
  0xc9   :  { %321 = vst [vmem:[%s687_s3 + $0xb0] sm:$0xff] %v246_v53 }
  0xca   :  { %325 = vst [vmem:[%s687_s3 + $0xd0] sm:$0xff] %v224_v56 }
  0xcb   :  { %328 = vst.msk [vmem:[%s687_s3 + $0xe8] sm:$0xff] %vm302_vm2, %v296_v57 }
  0xce   :  { %v247_v58 = vpop.f32.mrf.mxu2 }
  0xcf   :  { %v248_v59 = vadd.f32 %v247_v58, %v584_v11 }
  0xd1   :  { %326 = vst [vmem:[%s687_s3 + $0xd8] sm:$0xff] %v248_v59 }

// kernel: _lambda_.21
= control target key start
LH: loop header
LB: loop body
LE: loop exit
PB: predicated region body
PF: predicated region fallthrough
CT: control target
= control target key end

     0   :  { %vm719_vm0 = vcmask 392192   ;;  %vm1017_vm1 = vcmask 818176   ;;  %s2435_s1 = inlined_call_operand.vmem [shape: bf16[432,484], index: 1, kind: input, shape index: {}]   ;;  %s2436_s0 = inlined_call_operand.vmem [shape: bf16[24,432], index: 0, kind: input, shape index: {}]   ;;  %s2437_s2 = inlined_call_operand.vmem [shape: f32[24,1], index: 2, kind: input, shape index: {}]   ;;  %s2438_s3 = inlined_call_operand.vmem [shape: f32[24,484], index: 3, kind: output, shape index: {}]  }
   0x1   :  { %v1161_v0 = vld [vmem:[%s2435_s1 + $0xe0] sm:$0xf]  ;;  %v1521_v1 = vld [vmem:[%s2435_s1 + $0xec] sm:$0xf0]  ;;  %v1488_v35 = vld [vmem:[%s2436_s0 + $0xc] sm:$0xf] }
   0x2   :  { %v1289_v2 = vld [vmem:[%s2435_s1 + $0x1e0] sm:$0xf]  ;;  %v1162_v3 = vor.u32 %v1521_v1, %v1161_v0  ;;  %v1553_v4 = vld [vmem:[%s2435_s1 + $0x1ec] sm:$0xf0]  ;;  %v1043_v36 = vld [vmem:[%s2436_s0 + $0x18] sm:$0xf0] }
   0x3   :  { %v1417_v5 = vld [vmem:[%s2435_s1 + $0x2e0] sm:$0xf]  ;;  %v1585_v6 = vld [vmem:[%s2435_s1 + $0x2ec] sm:$0xf0]  ;;  %v1290_v7 = vor.u32 %v1553_v4, %v1289_v2  ;;  %v1519_v44 = vld [vmem:[%s2435_s1 + $0xe4] sm:$0xf]  ;;  %v1733_v47 = vor.u32 %v1488_v35, %v1043_v36 }
   0x4   :  { %v1418_v8 = vor.u32 %v1585_v6, %v1417_v5  ;;  %v1465_v9 = vld [vmem:[%s2435_s1 + $0x340] sm:$0xf]  ;;  %v1597_v10 = vld [vmem:[%s2435_s1 + $0x34c] sm:$0xf0]  ;;  %726 = vmatpush.bf16.msra.mxu0 %v1162_v3  ;;  %v1163_v46 = vld [vmem:[%s2435_s1 + $0xf0] sm:$0xf0] }
   0x5   :  { %v1145_v11 = vld [vmem:[%s2435_s1 + $0xc0] sm:$0xf]  ;;  %v1466_v12 = vor.u32 %v1597_v10, %v1465_v9  ;;  %v1517_v13 = vld [vmem:[%s2435_s1 + $0xcc] sm:$0xf0]  ;;  %744 = vmatpush.bf16.msra.mxu1 %v1290_v7  ;;  %v1166_v49 = vor.u32 %v1519_v44, %v1163_v46  ;;  %v1515_v55 = vld [vmem:[%s2435_s1 + $0xc4] sm:$0xf] }
   0x6   :  { %v1273_v14 = vld [vmem:[%s2435_s1 + $0x1c0] sm:$0xf]  ;;  %v1549_v15 = vld [vmem:[%s2435_s1 + $0x1cc] sm:$0xf0]  ;;  %762 = vmatpush.bf16.msra.mxu2 %v1418_v8  ;;  %v1146_v16 = vor.u32 %v1517_v13, %v1145_v11  ;;  %v1147_v56 = vld [vmem:[%s2435_s1 + $0xd0] sm:$0xf0] }
   0x7   :  { %v1274_v17 = vor.u32 %v1549_v15, %v1273_v14  ;;  %v1401_v18 = vld [vmem:[%s2435_s1 + $0x2c0] sm:$0xf]  ;;  %v1581_v19 = vld [vmem:[%s2435_s1 + $0x2cc] sm:$0xf0]  ;;  %785 = vmatpush.bf16.msra.mxu3 %v1466_v12  ;;  %v1150_v59 = vor.u32 %v1515_v55, %v1147_v56  ;;  %v1511_v0 = vld [vmem:[%s2435_s1 + $0xa4] sm:$0xf] }
   0x8   :  { %v1449_v20 = vld [vmem:[%s2435_s1 + $0x320] sm:$0xf]  ;;  %v1402_v21 = vor.u32 %v1581_v19, %v1401_v18  ;;  %v1593_v22 = vld [vmem:[%s2435_s1 + $0x32c] sm:$0xf0]  ;;  %727 = vmatpush.bf16.msra.mxu0 %v1146_v16  ;;  %v1131_v1 = vld [vmem:[%s2435_s1 + $0xb0] sm:$0xf0] }
   0x9   :  { %v1129_v23 = vld [vmem:[%s2435_s1 + $0xa0] sm:$0xf]  ;;  %v1513_v24 = vld [vmem:[%s2435_s1 + $0xac] sm:$0xf0]  ;;  %v1450_v25 = vor.u32 %v1593_v22, %v1449_v20  ;;  %745 = vmatpush.bf16.msra.mxu1 %v1274_v17  ;;  %v1134_v7 = vor.u32 %v1511_v0, %v1131_v1  ;;  %v1507_v9 = vld [vmem:[%s2435_s1 + $0x84] sm:$0xf] }
   0xa   :  { %v1257_v26 = vld [vmem:[%s2435_s1 + $0x1a0] sm:$0xf]  ;;  %v1545_v27 = vld [vmem:[%s2435_s1 + $0x1ac] sm:$0xf0]  ;;  %v1130_v29 = vor.u32 %v1513_v24, %v1129_v23  ;;  %763 = vmatpush.bf16.msra.mxu2 %v1402_v21  ;;  %v1115_v10 = vld [vmem:[%s2435_s1 + $0x90] sm:$0xf0] }
   0xb   :  { %v1385_v28 = vld [vmem:[%s2435_s1 + $0x2a0] sm:$0xf]  ;;  %v1577_v30 = vld [vmem:[%s2435_s1 + $0x2ac] sm:$0xf0]  ;;  %v1258_v33 = vor.u32 %v1545_v27, %v1257_v26  ;;  %786 = vmatpush.bf16.msra.mxu3 %v1450_v25  ;;  %v1610_v14 = vmov 0   ;;  %v1806_v18 = vld [vmem:[%s2436_s0 + $0x28] sm:$0xff]  ;;  %v1118_v21 = vor.u32 %v1507_v9, %v1115_v10 }
   0xc   :  { %v1433_v31 = vld [vmem:[%s2435_s1 + $0x300] sm:$0xf]  ;;  %v1589_v32 = vld [vmem:[%s2435_s1 + $0x30c] sm:$0xf0]  ;;  %v1386_v34 = vor.u32 %v1577_v30, %v1385_v28  ;;  %728 = vmatpush.bf16.msra.mxu0 %v1130_v29  ;;  %1608 = vset.pattern.permute.xlu0 %v1610_v14  ;;  %v1503_v25 = vld [vmem:[%s2435_s1 + $0x64] sm:$0xf]  ;;  %v164_v28 = vunpack.c.h.b16 %v1806_v18 }
   0xd   :  { %v1113_v37 = vld [vmem:[%s2435_s1 + $0x80] sm:$0xf]  ;;  %v1434_v38 = vor.u32 %v1589_v32, %v1433_v31  ;;  %v1509_v39 = vld [vmem:[%s2435_s1 + $0x8c] sm:$0xf0]  ;;  %746 = vmatpush.bf16.msra.mxu1 %v1258_v33  ;;  %1609 = vset.pattern.permute.xlu1 %v1610_v14  ;;  %v1099_v26 = vld [vmem:[%s2435_s1 + $0x70] sm:$0xf0] }
   0xe   :  { %v1241_v40 = vld [vmem:[%s2435_s1 + $0x180] sm:$0xf]  ;;  %v1541_v41 = vld [vmem:[%s2435_s1 + $0x18c] sm:$0xf0]  ;;  %v1114_v45 = vor.u32 %v1509_v39, %v1113_v37  ;;  %764 = vmatpush.bf16.msra.mxu2 %v1386_v34  ;;  %v1102_v36 = vor.u32 %v1503_v25, %v1099_v26  ;;  %v1487_v37 = vld [vmem:[%s2436_s0 + $0x4] sm:$0xf]  ;;  %v1863_v44 = vpack.c.b16 %v164_v28, %v164_v28 }
   0xf   :  { %v1369_v42 = vld [vmem:[%s2435_s1 + $0x280] sm:$0xf]  ;;  %v1573_v43 = vld [vmem:[%s2435_s1 + $0x28c] sm:$0xf0]  ;;  %v1242_v48 = vor.u32 %v1541_v41, %v1241_v40  ;;  %787 = vmatpush.bf16.msra.mxu3 %v1434_v38  ;;  %v1551_v38 = vld [vmem:[%s2435_s1 + $0x1e4] sm:$0xf] }
  0x10   :  { %v1097_v50 = vld [vmem:[%s2435_s1 + $0x60] sm:$0xf]  ;;  %v1505_v51 = vld [vmem:[%s2435_s1 + $0x6c] sm:$0xf0]  ;;  %v1370_v53 = vor.u32 %v1573_v43, %v1369_v42  ;;  %729 = vmatpush.bf16.msra.mxu0 %v1114_v45  ;;  %v1291_v39 = vld [vmem:[%s2435_s1 + $0x1f0] sm:$0xf0] }
  0x11   :  { %v1225_v52 = vld [vmem:[%s2435_s1 + $0x160] sm:$0xf]  ;;  %v1537_v54 = vld [vmem:[%s2435_s1 + $0x16c] sm:$0xf0]  ;;  %v1098_v60 = vor.u32 %v1505_v51, %v1097_v50  ;;  %747 = vmatpush.bf16.msra.mxu1 %v1242_v48  ;;  %v1035_v41 = vld [vmem:[%s2436_s0 + $0x10] sm:$0xf0] }
  0x12   :  { %v1353_v57 = vld [vmem:[%s2435_s1 + $0x260] sm:$0xf]  ;;  %v1569_v58 = vld [vmem:[%s2435_s1 + $0x26c] sm:$0xf0]  ;;  %1479 = vmatmul.msk.bf16.vlgmr.msra.gmra.mxu3 %vm719_vm0, %v1733_v47  ;;  %v1226_v62 = vor.u32 %v1537_v54, %v1225_v52  ;;  %765 = vmatpush.bf16.msra.mxu2 %v1370_v53  ;;  %v1595_v42 = vld [vmem:[%s2435_s1 + $0x344] sm:$0xf]  ;;  %v1294_v52 = vor.u32 %v1551_v38, %v1291_v39 }
  0x13   :  { %798 = vmatpush.bf16.msrb.mxu3 %v1166_v49  ;;  %v1081_v61 = vld [vmem:[%s2435_s1 + $0x40] sm:$0xf]  ;;  %v1501_v63 = vld [vmem:[%s2435_s1 + $0x4c] sm:$0xf0]  ;;  %v1354_v2 = vor.u32 %v1569_v58, %v1353_v57  ;;  %v1467_v43 = vld [vmem:[%s2435_s1 + $0x350] sm:$0xf0] }
  0x14   :  { %v1209_v3 = vld [vmem:[%s2435_s1 + $0x140] sm:$0xf]  ;;  %v1533_v4 = vld [vmem:[%s2435_s1 + $0x14c] sm:$0xf0]  ;;  %730 = vmatpush.bf16.msra.mxu0 %v1098_v60  ;;  %v1082_v8 = vor.u32 %v1501_v63, %v1081_v61  ;;  %v1041_v46 = vld [vmem:[%s2436_s0 + $0x8] sm:$0xf]  ;;  %v1470_v56 = vor.u32 %v1595_v42, %v1467_v43  ;;  %v163_v42 = vunpack.c.l.b16 %v1806_v18 }
  0x15   :  { %v1337_v5 = vld [vmem:[%s2435_s1 + $0x240] sm:$0xf]  ;;  %v1565_v6 = vld [vmem:[%s2435_s1 + $0x24c] sm:$0xf0]  ;;  %748 = vmatpush.bf16.msra.mxu1 %v1226_v62  ;;  %v1210_v11 = vor.u32 %v1533_v4, %v1209_v3  ;;  %v1499_v48 = vld [vmem:[%s2435_s1 + $0x44] sm:$0xf] }
  0x16   :  { %v1065_v12 = vld [vmem:[%s2435_s1 + $0x20] sm:$0xf]  ;;  %v1497_v13 = vld [vmem:[%s2435_s1 + $0x2c] sm:$0xf0]  ;;  %766 = vmatpush.bf16.msra.mxu2 %v1354_v2  ;;  %v1338_v15 = vor.u32 %v1565_v6, %v1337_v5  ;;  %v1083_v49 = vld [vmem:[%s2435_s1 + $0x50] sm:$0xf0] }
  0x17   :  { %799 = vmatpush.bf16.msrb.mxu3 %v1150_v59  ;;  %v1193_v16 = vld [vmem:[%s2435_s1 + $0x120] sm:$0xf]  ;;  %v1529_v17 = vld [vmem:[%s2435_s1 + $0x12c] sm:$0xf0]  ;;  %v1066_v23 = vor.u32 %v1497_v13, %v1065_v12  ;;  %v1490_v51 = vld [vmem:[%s2436_s0 + $0x14] sm:$0xf0]  ;;  %v1891_v59 = vor.u32 %v1487_v37, %v1035_v41  ;;  %v1086_v60 = vor.u32 %v1499_v48, %v1083_v49 }
  0x18   :  { %v1321_v19 = vld [vmem:[%s2435_s1 + $0x220] sm:$0xf]  ;;  %v1561_v20 = vld [vmem:[%s2435_s1 + $0x22c] sm:$0xf0]  ;;  %731 = vmatpush.bf16.msra.mxu0 %v1082_v8  ;;  %v1194_v27 = vor.u32 %v1529_v17, %v1193_v16  ;;  %v1583_v53 = vld [vmem:[%s2435_s1 + $0x2e4] sm:$0xf]  ;;  %v1901_v63 = vor.u32 %v1490_v51, %v1041_v46 }
  0x19   :  { %v1049_v22 = vld [vmem:[%s2435_s1] sm:$0xf]  ;;  %v1493_v24 = vld [vmem:[%s2435_s1 + $0xc] sm:$0xf0]  ;;  %749 = vmatpush.bf16.msra.mxu1 %v1210_v11  ;;  %v1322_v32 = vor.u32 %v1561_v20, %v1321_v19  ;;  %v1419_v54 = vld [vmem:[%s2435_s1 + $0x2f0] sm:$0xf0] }
  0x1a   :  { %v1177_v29 = vld [vmem:[%s2435_s1 + $0x100] sm:$0xf]  ;;  %v1525_v30 = vld [vmem:[%s2435_s1 + $0x10c] sm:$0xf0]  ;;  %767 = vmatpush.bf16.msra.mxu2 %v1338_v15  ;;  %v1050_v40 = vor.u32 %v1493_v24, %v1049_v22  ;;  %v1547_v57 = vld [vmem:[%s2435_s1 + $0x1c4] sm:$0xf]  ;;  %v1422_v0 = vor.u32 %v1583_v53, %v1419_v54 }
  0x1b   :  { %800 = vmatpush.bf16.msrb.mxu3 %v1134_v7  ;;  %v1305_v31 = vld [vmem:[%s2435_s1 + $0x200] sm:$0xf]  ;;  %v1557_v33 = vld [vmem:[%s2435_s1 + $0x20c] sm:$0xf0]  ;;  %v1178_v45 = vor.u32 %v1525_v30, %v1177_v29  ;;  %v1275_v58 = vld [vmem:[%s2435_s1 + $0x1d0] sm:$0xf0] }
  0x1c   :  { %v1033_v34 = vld [vmem:[%s2436_s0] sm:$0xf]  ;;  %v1489_v35 = vld [vmem:[%s2436_s0 + $0xc] sm:$0xf0]  ;;  %732 = vmatpush.bf16.msra.mxu0 %v1066_v23  ;;  %v1306_v50 = vor.u32 %v1557_v33, %v1305_v31  ;;  %v1591_v61 = vld [vmem:[%s2435_s1 + $0x324] sm:$0xf]  ;;  %v1278_v3 = vor.u32 %v1547_v57, %v1275_v58  ;;  %v2014_v57 = vpack.c.b16 %v163_v42, %v163_v42 }
  0x1d   :  { %750 = vmatpush.bf16.msra.mxu1 %v1194_v27  ;;  %v1883_v55 = vor.u32 %v1489_v35, %v1033_v34  ;;  %v1451_v62 = vld [vmem:[%s2435_s1 + $0x330] sm:$0xf0]  ;;  %v1495_v1 = vld [vmem:[%s2435_s1 + $0x24] sm:$0xf]  ;;  %v1169_v17 = vld [vmem:[%s2435_s1 + $0xe8] sm:$0xf] }
  0x1e   :  { %768 = vmatpush.bf16.msra.mxu2 %v1322_v32  ;;  %v1067_v2 = vld [vmem:[%s2435_s1 + $0x30] sm:$0xf0]  ;;  %v1579_v4 = vld [vmem:[%s2435_s1 + $0x2c4] sm:$0xf]  ;;  %v1454_v9 = vor.u32 %v1591_v61, %v1451_v62  ;;  %v1522_v19 = vld [vmem:[%s2435_s1 + $0xf4] sm:$0xf0] }
  0x1f   :  { %801 = vmatpush.bf16.msrb.mxu3 %v1118_v21  ;;  %v1403_v5 = vld [vmem:[%s2435_s1 + $0x2d0] sm:$0xf0]  ;;  %v1543_v6 = vld [vmem:[%s2435_s1 + $0x1a4] sm:$0xf]  ;;  %v1070_v10 = vor.u32 %v1495_v1, %v1067_v2  ;;  %v1170_v29 = vor.u32 %v1522_v19, %v1169_v17  ;;  %v1518_v37 = vld [vmem:[%s2435_s1 + $0xd4] sm:$0xf0] }
  0x20   :  { %733 = vmatpush.bf16.msra.mxu0 %v1050_v40  ;;  %v1259_v7 = vld [vmem:[%s2435_s1 + $0x1b0] sm:$0xf0]  ;;  %v129_v8 = vld [vmem:[%s2437_s2] sm:$0xff]  ;;  %v1406_v11 = vor.u32 %v1579_v4, %v1403_v5  ;;  %v130_v38 = vld [vmem:[%s2437_s2 + $0x8] sm:$0xff] }
  0x21   :  { %751 = vmatpush.bf16.msra.mxu1 %v1178_v45  ;;  %v1491_v12 = vld [vmem:[%s2435_s1 + $0x4] sm:$0xf]  ;;  %v1051_v13 = vld [vmem:[%s2435_s1 + $0x10] sm:$0xf0]  ;;  %v1262_v15 = vor.u32 %v1543_v6, %v1259_v7  ;;  %134 = vperm.xlu0 %1608, %v129_v8   ;;  %v1473_v40 = vld [vmem:[%s2435_s1 + $0x348] sm:$0xf] }
  0x22   :  { %1480 = vmatmul.msk.bf16.gmra.mxu3 %vm719_vm0, %v1863_v44  ;;  %769 = vmatpush.bf16.msra.mxu2 %v1306_v50  ;;  %v1575_v14 = vld [vmem:[%s2435_s1 + $0x2a4] sm:$0xf]  ;;  %v1387_v16 = vld [vmem:[%s2435_s1 + $0x2b0] sm:$0xf0]  ;;  %v1054_v23 = vor.u32 %v1491_v12, %v1051_v13  ;;  %v1598_v43 = vld [vmem:[%s2435_s1 + $0x354] sm:$0xf0] }
  0x23   :  { %802 = vmatpush.bf16.msrb.mxu3 %v1102_v36  ;;  %734 = vmatmul.bf16.vlgmr.msra.gmra.mxu0 %v1883_v55  ;;  %v1539_v20 = vld [vmem:[%s2435_s1 + $0x184] sm:$0xf]  ;;  %v1243_v21 = vld [vmem:[%s2435_s1 + $0x190] sm:$0xf0]  ;;  %v1390_v26 = vor.u32 %v1575_v14, %v1387_v16  ;;  %v1153_v36 = vld [vmem:[%s2435_s1 + $0xc8] sm:$0xf]  ;;  %v1474_v50 = vor.u32 %v1598_v43, %v1473_v40 }
  0x24   :  { %816 = vmatpush.bf16.msrb.mxu0 %v1294_v52  ;;  %752 = vmatmul.bf16.vlgmr.msra.gmra.mxu1 %v1891_v59  ;;  %v1587_v22 = vld [vmem:[%s2435_s1 + $0x304] sm:$0xf]  ;;  %v1435_v25 = vld [vmem:[%s2435_s1 + $0x310] sm:$0xf0]  ;;  %v1246_v31 = vor.u32 %v1539_v20, %v1243_v21  ;;  %v1154_v49 = vor.u32 %v1518_v37, %v1153_v36  ;;  %v1137_v53 = vld [vmem:[%s2435_s1 + $0xa8] sm:$0xf] }
  0x25   :  { %770 = vmatmul.bf16.vlgmr.msra.gmra.mxu2 %v1901_v63  ;;  %834 = vmatpush.bf16.msrb.mxu1 %v1422_v0  ;;  %v19_v24 = vld [vmem:[%s2436_s0 + $0x20] sm:$0xff]  ;;  %v1371_v28 = vld [vmem:[%s2435_s1 + $0x290] sm:$0xf0]  ;;  %v1438_v30 = vor.u32 %v1587_v22, %v1435_v25  ;;  %v1514_v54 = vld [vmem:[%s2435_s1 + $0xb4] sm:$0xf0] }
  0x26   :  { %857 = vmatpush.bf16.msrb.mxu2 %v1470_v56  ;;  %v1571_v27 = vld [vmem:[%s2435_s1 + $0x284] sm:$0xf]  ;;  %v1227_v33 = vld [vmem:[%s2435_s1 + $0x170] sm:$0xf0]  ;;  %v161_v35 = vunpack.c.l.b16 %v19_v24  ;;  %v162_v39 = vunpack.c.h.b16 %v19_v24  ;;  %v1138_v0 = vor.u32 %v1514_v54, %v1137_v53  ;;  %v1510_v4 = vld [vmem:[%s2435_s1 + $0x94] sm:$0xf0] }
  0x27   :  { %803 = vmatpush.bf16.msrb.mxu3 %v1086_v60  ;;  %v1535_v32 = vld [vmem:[%s2435_s1 + $0x164] sm:$0xf]  ;;  %v131_v34 = vld [vmem:[%s2437_s2 + $0x10] sm:$0xff]  ;;  %v1374_v41 = vor.u32 %v1571_v27, %v1371_v28  ;;  %v1457_v5 = vld [vmem:[%s2435_s1 + $0x328] sm:$0xf] }
  0x28   :  { %817 = vmatpush.bf16.msrb.mxu0 %v1278_v3  ;;  %144 = vperm.xlu1 %1609, %v131_v34   ;;  %v1230_v45 = vor.u32 %v1535_v32, %v1227_v33  ;;  %v1567_v46 = vld [vmem:[%s2435_s1 + $0x264] sm:$0xf]  ;;  %v1355_v48 = vld [vmem:[%s2435_s1 + $0x270] sm:$0xf0]  ;;  %v2000_v51 = vpack.c.b16 %v161_v35, %v161_v35  ;;  %v2011_v56 = vpack.c.b16 %v162_v39, %v162_v39  ;;  %v1121_v3 = vld [vmem:[%s2435_s1 + $0x88] sm:$0xf] }
  0x29   :  { %835 = vmatpush.bf16.msrb.mxu1 %v1406_v11  ;;  %139 = vperm.xlu0 %1608, %v130_v38   ;;  %v1531_v18 = vld [vmem:[%s2435_s1 + $0x144] sm:$0xf]  ;;  %v1211_v52 = vld [vmem:[%s2435_s1 + $0x150] sm:$0xf0]  ;;  %v1358_v58 = vor.u32 %v1567_v46, %v1355_v48  ;;  %v1594_v6 = vld [vmem:[%s2435_s1 + $0x334] sm:$0xf0]  ;;  %v1122_v12 = vor.u32 %v1510_v4, %v1121_v3 }
  0x2a   :  { %858 = vmatpush.bf16.msrb.mxu2 %v1454_v9  ;;  %v1563_v60 = vld [vmem:[%s2435_s1 + $0x244] sm:$0xf]  ;;  %v1339_v61 = vld [vmem:[%s2435_s1 + $0x250] sm:$0xf0]  ;;  %v1214_v62 = vor.u32 %v1531_v18, %v1211_v52  ;;  %v1458_v7 = vor.u32 %v1594_v6, %v1457_v5  ;;  %v1506_v16 = vld [vmem:[%s2435_s1 + $0x74] sm:$0xf0] }
  0x2b   :  { %804 = vmatpush.bf16.msrb.mxu3 %v1070_v10  ;;  %v1527_v1 = vld [vmem:[%s2435_s1 + $0x124] sm:$0xf]  ;;  %v1195_v2 = vld [vmem:[%s2435_s1 + $0x130] sm:$0xf0]  ;;  %v1342_v8 = vor.u32 %v1563_v60, %v1339_v61  ;;  %v1297_v17 = vld [vmem:[%s2435_s1 + $0x1e8] sm:$0xf] }
  0x2c   :  { %818 = vmatpush.bf16.msrb.mxu0 %v1262_v15  ;;  %v1198_v9 = vor.u32 %v1527_v1, %v1195_v2  ;;  %v1559_v10 = vld [vmem:[%s2435_s1 + $0x224] sm:$0xf]  ;;  %v1323_v11 = vld [vmem:[%s2435_s1 + $0x230] sm:$0xf0]  ;;  %v1105_v15 = vld [vmem:[%s2435_s1 + $0x68] sm:$0xf] }
  0x2d   :  { %836 = vmatpush.bf16.msrb.mxu1 %v1390_v26  ;;  %v1523_v13 = vld [vmem:[%s2435_s1 + $0x104] sm:$0xf]  ;;  %v1179_v14 = vld [vmem:[%s2435_s1 + $0x110] sm:$0xf0]  ;;  %v1554_v19 = vld [vmem:[%s2435_s1 + $0x1f4] sm:$0xf0]  ;;  %v1326_v20 = vor.u32 %v1559_v10, %v1323_v11  ;;  %v1106_v24 = vor.u32 %v1506_v16, %v1105_v15 }
  0x2e   :  { %859 = vmatpush.bf16.msrb.mxu2 %v1438_v30  ;;  %v1555_v21 = vld [vmem:[%s2435_s1 + $0x204] sm:$0xf]  ;;  %v1307_v22 = vld [vmem:[%s2435_s1 + $0x210] sm:$0xf0]  ;;  %v1089_v25 = vld [vmem:[%s2435_s1 + $0x48] sm:$0xf] }
  0x2f   :  { %805 = vmatpush.bf16.msrb.mxu3 %v1054_v23  ;;  %v1182_v23 = vor.u32 %v1523_v13, %v1179_v14  ;;  %v1441_v26 = vld [vmem:[%s2435_s1 + $0x308] sm:$0xf]  ;;  %v1590_v27 = vld [vmem:[%s2435_s1 + $0x314] sm:$0xf0]  ;;  %v1310_v33 = vor.u32 %v1555_v21, %v1307_v22  ;;  %v1171_v60 = vld [vmem:[%s2435_s1 + $0xf8] sm:$0xf0] }
  0x30   :  { %819 = vmatpush.bf16.msrb.mxu0 %v1246_v31  ;;  %v1502_v28 = vld [vmem:[%s2435_s1 + $0x54] sm:$0xf0]  ;;  %v1425_v30 = vld [vmem:[%s2435_s1 + $0x2e8] sm:$0xf]  ;;  %v1442_v32 = vor.u32 %v1590_v27, %v1441_v26  ;;  %v1459_v14 = vld [vmem:[%s2435_s1 + $0x338] sm:$0xf0] }
  0x31   :  { %837 = vmatpush.bf16.msrb.mxu1 %v1374_v41  ;;  %v1586_v31 = vld [vmem:[%s2435_s1 + $0x2f4] sm:$0xf0]  ;;  %v1281_v34 = vld [vmem:[%s2435_s1 + $0x1c8] sm:$0xf]  ;;  %v1090_v36 = vor.u32 %v1502_v28, %v1089_v25  ;;  %v1512_v21 = vld [vmem:[%s2435_s1 + $0xac] sm:$0xf] }
  0x32   :  { %929 = vmatpush.bf16.msra.mxu2 %v1474_v50  ;;  %806 = vmatmul.bf16.vlgmr.msrb.gmra.mxu3 %v1883_v55  ;;  %v1550_v35 = vld [vmem:[%s2435_s1 + $0x1d4] sm:$0xf0]  ;;  %v1426_v37 = vor.u32 %v1586_v31, %v1425_v30  ;;  %v1073_v38 = vld [vmem:[%s2435_s1 + $0x28] sm:$0xf]  ;;  %v1139_v22 = vld [vmem:[%s2435_s1 + $0xb8] sm:$0xf0] }
  0x33   :  { %870 = vmatpush.bf16.msra.mxu3 %v1170_v29  ;;  %739 = vmatmul.bf16.gmra.mxu0 %v2000_v51  ;;  %v1298_v29 = vor.u32 %v1554_v19, %v1297_v17  ;;  %v1498_v39 = vld [vmem:[%s2435_s1 + $0x34] sm:$0xf0]  ;;  %v1409_v40 = vld [vmem:[%s2435_s1 + $0x2c8] sm:$0xf]  ;;  %v1282_v42 = vor.u32 %v1550_v35, %v1281_v34  ;;  %v1142_v28 = vor.u32 %v1512_v21, %v1139_v22  ;;  %v1508_v30 = vld [vmem:[%s2435_s1 + $0x8c] sm:$0xf] }
  0x34   :  { %820 = vmatpush.bf16.msrb.mxu0 %v1230_v45  ;;  %757 = vmatmul.bf16.gmra.mxu1 %v2011_v56  ;;  %v1582_v41 = vld [vmem:[%s2435_s1 + $0x2d4] sm:$0xf0]  ;;  %v1265_v43 = vld [vmem:[%s2435_s1 + $0x1a8] sm:$0xf]  ;;  %v1074_v46 = vor.u32 %v1498_v39, %v1073_v38  ;;  %v1123_v31 = vld [vmem:[%s2435_s1 + $0x98] sm:$0xf0] }
  0x35   :  { %775 = vmatmul.bf16.gmra.mxu2 %v2014_v57  ;;  %838 = vmatpush.bf16.msrb.mxu1 %v1358_v58  ;;  %v1546_v45 = vld [vmem:[%s2435_s1 + $0x1b4] sm:$0xf0]  ;;  %v1410_v48 = vor.u32 %v1582_v41, %v1409_v40  ;;  %v1393_v50 = vld [vmem:[%s2435_s1 + $0x2a8] sm:$0xf]  ;;  %v1520_v58 = vld [vmem:[%s2435_s1 + $0xec] sm:$0xf] }
  0x36   :  { %930 = vmatpush.bf16.msra.mxu2 %v1458_v7  ;;  %v1494_v18 = vld [vmem:[%s2435_s1 + $0x14] sm:$0xf0]  ;;  %v1266_v53 = vor.u32 %v1546_v45, %v1265_v43  ;;  %v1249_v54 = vld [vmem:[%s2435_s1 + $0x188] sm:$0xf]  ;;  %v1174_v6 = vor.u32 %v1520_v58, %v1171_v60  ;;  %v1504_v39 = vld [vmem:[%s2435_s1 + $0x6c] sm:$0xf] }
  0x37   :  { %871 = vmatpush.bf16.msra.mxu3 %v1154_v49  ;;  %v1057_v49 = vld [vmem:[%s2435_s1 + $0x8] sm:$0xf]  ;;  %v1578_v52 = vld [vmem:[%s2435_s1 + $0x2b4] sm:$0xf0]  ;;  %v1107_v40 = vld [vmem:[%s2435_s1 + $0x78] sm:$0xf0] }
  0x38   :  { %821 = vmatpush.bf16.msrb.mxu0 %v1214_v62  ;;  %v1542_v61 = vld [vmem:[%s2435_s1 + $0x194] sm:$0xf0]  ;;  %v1596_v62 = vld [vmem:[%s2435_s1 + $0x34c] sm:$0xf]  ;;  %v1058_v1 = vor.u32 %v1494_v18, %v1057_v49  ;;  %v1394_v2 = vor.u32 %v1578_v52, %v1393_v50  ;;  %v1377_v4 = vld [vmem:[%s2435_s1 + $0x288] sm:$0xf]  ;;  %v1110_v52 = vor.u32 %v1504_v39, %v1107_v40 }
  0x39   :  { %839 = vmatpush.bf16.msrb.mxu1 %v1342_v8  ;;  %v1574_v5 = vld [vmem:[%s2435_s1 + $0x294] sm:$0xf0]  ;;  %v1250_v7 = vor.u32 %v1542_v61, %v1249_v54  ;;  %v1516_v8 = vld [vmem:[%s2435_s1 + $0xcc] sm:$0xf]  ;;  %v1233_v10 = vld [vmem:[%s2435_s1 + $0x168] sm:$0xf] }
  0x3a   :  { %931 = vmatpush.bf16.msra.mxu2 %v1442_v32  ;;  %v1538_v11 = vld [vmem:[%s2435_s1 + $0x174] sm:$0xf0]  ;;  %v1378_v13 = vor.u32 %v1574_v5, %v1377_v4  ;;  %v1361_v15 = vld [vmem:[%s2435_s1 + $0x268] sm:$0xf]  ;;  %v1552_v43 = vld [vmem:[%s2435_s1 + $0x1ec] sm:$0xf] }
  0x3b   :  { %872 = vmatpush.bf16.msra.mxu3 %v1138_v0  ;;  %v1475_v0 = vld [vmem:[%s2435_s1 + $0x358] sm:$0xf0]  ;;  %v1570_v16 = vld [vmem:[%s2435_s1 + $0x274] sm:$0xf0]  ;;  %v1345_v26 = vld [vmem:[%s2435_s1 + $0x248] sm:$0xf] }
  0x3c   :  { %822 = vmatpush.bf16.msrb.mxu0 %v1198_v9  ;;  %v1478_v3 = vor.u32 %v1596_v62, %v1475_v0  ;;  %v1155_v9 = vld [vmem:[%s2435_s1 + $0xd8] sm:$0xf0]  ;;  %v1362_v25 = vor.u32 %v1570_v16, %v1361_v15  ;;  %v1566_v27 = vld [vmem:[%s2435_s1 + $0x254] sm:$0xf0]  ;;  %v1201_v32 = vld [vmem:[%s2435_s1 + $0x128] sm:$0xf] }
  0x3d   :  { %840 = vmatpush.bf16.msrb.mxu1 %v1326_v20  ;;  %v1158_v17 = vor.u32 %v1516_v8, %v1155_v9  ;;  %v1234_v20 = vor.u32 %v1538_v11, %v1233_v10  ;;  %v1346_v34 = vor.u32 %v1566_v27, %v1345_v26  ;;  %v1329_v35 = vld [vmem:[%s2435_s1 + $0x228] sm:$0xf]  ;;  %v1443_v49 = vld [vmem:[%s2435_s1 + $0x318] sm:$0xf0]  ;;  %v1558_v50 = vld [vmem:[%s2435_s1 + $0x214] sm:$0xf0] }
  0x3e   :  { %v1185_v41 = vld [vmem:[%s2435_s1 + $0x108] sm:$0xf]  ;;  %v1091_v60 = vld [vmem:[%s2435_s1 + $0x58] sm:$0xf0]  ;;  %v1584_v61 = vld [vmem:[%s2435_s1 + $0x2ec] sm:$0xf] }
  0x3f   :  { %873 = vmatpush.bf16.msra.mxu3 %v1122_v12  ;;  %v1592_v12 = vld [vmem:[%s2435_s1 + $0x32c] sm:$0xf]  ;;  %v1313_v18 = vld [vmem:[%s2435_s1 + $0x208] sm:$0xf]  ;;  %v1427_v62 = vld [vmem:[%s2435_s1 + $0x2f8] sm:$0xf0] }
  0x40   :  { %823 = vmatpush.bf16.msrb.mxu0 %v1182_v23  ;;  %v1462_v19 = vor.u32 %v1592_v12, %v1459_v14  ;;  %v1217_v23 = vld [vmem:[%s2435_s1 + $0x148] sm:$0xf]  ;;  %v1430_v5 = vor.u32 %v1584_v61, %v1427_v62  ;;  %v1580_v9 = vld [vmem:[%s2435_s1 + $0x2cc] sm:$0xf]  ;;  %v1411_v10 = vld [vmem:[%s2435_s1 + $0x2d8] sm:$0xf0] }
  0x41   :  { %841 = vmatpush.bf16.msrb.mxu1 %v1310_v33  ;;  %v1530_v33 = vld [vmem:[%s2435_s1 + $0x134] sm:$0xf0]  ;;  %v1544_v12 = vld [vmem:[%s2435_s1 + $0x1ac] sm:$0xf]  ;;  %v1059_v15 = vld [vmem:[%s2435_s1 + $0x18] sm:$0xf0]  ;;  %v1414_v16 = vor.u32 %v1580_v9, %v1411_v10 }
  0x42   :  { %811 = vmatmul.bf16.gmra.mxu3 %v2000_v51  ;;  %v1202_v38 = vor.u32 %v1530_v33, %v1201_v32  ;;  %v1492_v14 = vld [vmem:[%s2435_s1 + $0xc] sm:$0xf]  ;;  %v1379_v27 = vld [vmem:[%s2435_s1 + $0x298] sm:$0xf0] }
  0x43   :  { %874 = vmatpush.bf16.msra.mxu3 %v1106_v24  ;;  %824 = vmatmul.bf16.vlgmr.msrb.gmra.mxu0 %v1891_v59  ;;  %v1534_v24 = vld [vmem:[%s2435_s1 + $0x154] sm:$0xf0]  ;;  %v1062_v21 = vor.u32 %v1492_v14, %v1059_v15  ;;  %v1540_v22 = vld [vmem:[%s2435_s1 + $0x18c] sm:$0xf]  ;;  %v1363_v33 = vld [vmem:[%s2435_s1 + $0x278] sm:$0xf0] }
  0x44   :  { %888 = vmatpush.bf16.msra.mxu0 %v1298_v29  ;;  %842 = vmatmul.bf16.vlgmr.msrb.gmra.mxu1 %v1901_v63  ;;  %v1218_v29 = vor.u32 %v1534_v24, %v1217_v23  ;;  %v1251_v23 = vld [vmem:[%s2435_s1 + $0x198] sm:$0xf0]  ;;  %v1572_v26 = vld [vmem:[%s2435_s1 + $0x28c] sm:$0xf] }
  0x45   :  { %906 = vmatpush.bf16.msra.mxu1 %v1426_v37  ;;  %1481 = vmatmul.msk.bf16.vlgmr.msrb.gmra.mxu2 %vm719_vm0, %v1733_v47  ;;  %v1126_v37 = vor.u32 %v1508_v30, %v1123_v31  ;;  %v1382_v30 = vor.u32 %v1572_v26, %v1379_v27  ;;  %v1568_v32 = vld [vmem:[%s2435_s1 + $0x26c] sm:$0xf]  ;;  %v1347_v39 = vld [vmem:[%s2435_s1 + $0x258] sm:$0xf0] }
  0x46   :  { %1001 = vmatpush.bf16.msrb.mxu2 %v1478_v3  ;;  %v1283_v3 = vld [vmem:[%s2435_s1 + $0x1d8] sm:$0xf0]  ;;  %v1528_v40 = vld [vmem:[%s2435_s1 + $0x12c] sm:$0xf] }
  0x47   :  { %875 = vmatpush.bf16.msra.mxu3 %v1090_v36  ;;  %v1562_v36 = vld [vmem:[%s2435_s1 + $0x234] sm:$0xf0] }
  0x48   :  { %889 = vmatpush.bf16.msra.mxu0 %v1282_v42  ;;  %v1526_v42 = vld [vmem:[%s2435_s1 + $0x114] sm:$0xf0]  ;;  %v1330_v45 = vor.u32 %v1562_v36, %v1329_v35  ;;  %v1219_v35 = vld [vmem:[%s2435_s1 + $0x158] sm:$0xf0]  ;;  %v1366_v36 = vor.u32 %v1568_v32, %v1363_v33 }
  0x49   :  { %907 = vmatpush.bf16.msra.mxu1 %v1410_v48  ;;  %v1588_v48 = vld [vmem:[%s2435_s1 + $0x30c] sm:$0xf]  ;;  %v1186_v58 = vor.u32 %v1526_v42, %v1185_v41  ;;  %v1203_v41 = vld [vmem:[%s2435_s1 + $0x138] sm:$0xf0] }
  0x4a   :  { %1002 = vmatpush.bf16.msrb.mxu2 %v1462_v19  ;;  %v1446_v54 = vor.u32 %v1588_v48, %v1443_v49  ;;  %v1576_v19 = vld [vmem:[%s2435_s1 + $0x2ac] sm:$0xf] }
  0x4b   :  { %876 = vmatpush.bf16.msra.mxu3 %v1074_v46  ;;  %v1299_v46 = vld [vmem:[%s2435_s1 + $0x1f8] sm:$0xf0]  ;;  %v1524_v48 = vld [vmem:[%s2435_s1 + $0x10c] sm:$0xf] }
  0x4c   :  { %890 = vmatpush.bf16.msra.mxu0 %v1266_v53  ;;  %v1500_v53 = vld [vmem:[%s2435_s1 + $0x4c] sm:$0xf]  ;;  %v1302_v0 = vor.u32 %v1552_v43, %v1299_v46  ;;  %v1206_v43 = vor.u32 %v1528_v40, %v1203_v41  ;;  %v1331_v46 = vld [vmem:[%s2435_s1 + $0x238] sm:$0xf0] }
  0x4d   :  { %908 = vmatpush.bf16.msra.mxu1 %v1394_v2  ;;  %v1548_v2 = vld [vmem:[%s2435_s1 + $0x1cc] sm:$0xf]  ;;  %v1094_v4 = vor.u32 %v1500_v53, %v1091_v60 }
  0x4e   :  { %1003 = vmatpush.bf16.msrb.mxu2 %v1446_v54  ;;  %v1286_v8 = vor.u32 %v1548_v2, %v1283_v3 }
  0x4f   :  { %877 = vmatpush.bf16.msra.mxu3 %v1058_v1  ;;  %v1314_v1 = vor.u32 %v1558_v50, %v1313_v18  ;;  %v1556_v50 = vld [vmem:[%s2435_s1 + $0x20c] sm:$0xf] }
  0x50   :  { %891 = vmatpush.bf16.msra.mxu0 %v1250_v7  ;;  %v1075_v7 = vld [vmem:[%s2435_s1 + $0x38] sm:$0xf0] }
  0x51   :  { %909 = vmatpush.bf16.msra.mxu1 %v1378_v13  ;;  %v1267_v13 = vld [vmem:[%s2435_s1 + $0x1b8] sm:$0xf0] }
  0x52   :  { %878 = vmatmul.bf16.vlgmr.msra.gmra.mxu3 %v1883_v55 }
  0x53   :  { %942 = vmatpush.bf16.msrb.mxu3 %v1174_v6  ;;  %829 = vmatmul.bf16.gmra.mxu0 %v2011_v56  ;;  %v1496_v6 = vld [vmem:[%s2435_s1 + $0x2c] sm:$0xf] }
  0x54   :  { %892 = vmatpush.bf16.msra.mxu0 %v1234_v20  ;;  %847 = vmatmul.bf16.gmra.mxu1 %v2014_v57  ;;  %v1078_v11 = vor.u32 %v1496_v6, %v1075_v7  ;;  %v1395_v20 = vld [vmem:[%s2435_s1 + $0x2b8] sm:$0xf0] }
  0x55   :  { %910 = vmatpush.bf16.msra.mxu1 %v1362_v25  ;;  %1482 = vmatmul.msk.bf16.gmra.mxu2 %vm719_vm0, %v1863_v44  ;;  %v1398_v24 = vor.u32 %v1576_v19, %v1395_v20  ;;  %v1254_v25 = vor.u32 %v1540_v22, %v1251_v23 }
  0x57   :  { %943 = vmatpush.bf16.msrb.mxu3 %v1158_v17  ;;  %v1270_v17 = vor.u32 %v1544_v12, %v1267_v13 }
  0x58   :  { %893 = vmatpush.bf16.msra.mxu0 %v1218_v29  ;;  %v1235_v29 = vld [vmem:[%s2435_s1 + $0x178] sm:$0xf0] }
  0x59   :  { %911 = vmatpush.bf16.msra.mxu1 %v1346_v34  ;;  %v1532_v34 = vld [vmem:[%s2435_s1 + $0x14c] sm:$0xf] }
  0x5b   :  { %944 = vmatpush.bf16.msrb.mxu3 %v1142_v28  ;;  %v1536_v28 = vld [vmem:[%s2435_s1 + $0x16c] sm:$0xf] }
  0x5c   :  { %894 = vmatpush.bf16.msra.mxu0 %v1202_v38  ;;  %v1238_v31 = vor.u32 %v1536_v28, %v1235_v29  ;;  %v1564_v38 = vld [vmem:[%s2435_s1 + $0x24c] sm:$0xf] }
  0x5d   :  { %912 = vmatpush.bf16.msra.mxu1 %v1330_v45  ;;  %v1350_v42 = vor.u32 %v1564_v38, %v1347_v39  ;;  %v1560_v45 = vld [vmem:[%s2435_s1 + $0x22c] sm:$0xf] }
  0x5e   :  { %v1334_v49 = vor.u32 %v1560_v45, %v1331_v46 }
  0x5f   :  { %945 = vmatpush.bf16.msrb.mxu3 %v1126_v37  ;;  %v1222_v37 = vor.u32 %v1532_v34, %v1219_v35 }
  0x60   :  { %895 = vmatpush.bf16.msra.mxu0 %v1186_v58 }
  0x61   :  { %913 = vmatpush.bf16.msra.mxu1 %v1314_v1 }
  0x62   :  { %883 = vmatmul.bf16.gmra.mxu3 %v2000_v51 }
  0x63   :  { %946 = vmatpush.bf16.msrb.mxu3 %v1110_v52  ;;  %896 = vmatmul.bf16.vlgmr.msra.gmra.mxu0 %v1891_v59  ;;  %v1315_v52 = vld [vmem:[%s2435_s1 + $0x218] sm:$0xf0] }
  0x64   :  { %960 = vmatpush.bf16.msrb.mxu0 %v1302_v0  ;;  %914 = vmatmul.bf16.vlgmr.msra.gmra.mxu1 %v1901_v63  ;;  %v1318_v53 = vor.u32 %v1556_v50, %v1315_v52 }
  0x65   :  { %978 = vmatpush.bf16.msrb.mxu1 %v1430_v5  ;;  %1483 = vmatmul.msk.bf16.vlgmr.msra.gmra.mxu2 %vm719_vm0, %v1733_v47 }
  0x67   :  { %947 = vmatpush.bf16.msrb.mxu3 %v1094_v4 }
  0x68   :  { %961 = vmatpush.bf16.msrb.mxu0 %v1286_v8 }
  0x69   :  { %979 = vmatpush.bf16.msrb.mxu1 %v1414_v16 }
  0x6b   :  { %948 = vmatpush.bf16.msrb.mxu3 %v1078_v11 }
  0x6c   :  { %962 = vmatpush.bf16.msrb.mxu0 %v1270_v17 }
  0x6d   :  { %980 = vmatpush.bf16.msrb.mxu1 %v1398_v24 }
  0x6f   :  { %949 = vmatpush.bf16.msrb.mxu3 %v1062_v21 }
  0x70   :  { %963 = vmatpush.bf16.msrb.mxu0 %v1254_v25 }
  0x71   :  { %981 = vmatpush.bf16.msrb.mxu1 %v1382_v30 }
  0x72   :  { %950 = vmatmul.bf16.vlgmr.msrb.gmra.mxu3 %v1883_v55  ;;  %v1187_v55 = vld [vmem:[%s2435_s1 + $0x118] sm:$0xf0] }
  0x73   :  { %1599 = vmatpush.bf16.msra.mxu3 %v1302_v0  ;;  %901 = vmatmul.bf16.gmra.mxu0 %v2011_v56  ;;  %v1190_v18 = vor.u32 %v1524_v48, %v1187_v55 }
  0x74   :  { %964 = vmatpush.bf16.msrb.mxu0 %v1238_v31  ;;  %919 = vmatmul.bf16.gmra.mxu1 %v2014_v57 }
  0x75   :  { %982 = vmatpush.bf16.msrb.mxu1 %v1366_v36  ;;  %1484 = vmatmul.msk.bf16.gmra.mxu2 %vm719_vm0, %v1863_v44 }
  0x77   :  { %1600 = vmatpush.bf16.msra.mxu3 %v1286_v8 }
  0x78   :  { %965 = vmatpush.bf16.msrb.mxu0 %v1222_v37 }
  0x79   :  { %983 = vmatpush.bf16.msrb.mxu1 %v1350_v42 }
  0x7b   :  { %1601 = vmatpush.bf16.msra.mxu3 %v1270_v17 }
  0x7c   :  { %966 = vmatpush.bf16.msrb.mxu0 %v1206_v43 }
  0x7d   :  { %984 = vmatpush.bf16.msrb.mxu1 %v1334_v49 }
  0x7f   :  { %1602 = vmatpush.bf16.msra.mxu3 %v1254_v25 }
  0x80   :  { %967 = vmatpush.bf16.msrb.mxu0 %v1190_v18 }
  0x81   :  { %985 = vmatpush.bf16.msrb.mxu1 %v1318_v53 }
  0x82   :  { %955 = vmatmul.bf16.gmra.mxu3 %v2000_v51 }
  0x83   :  { %1603 = vmatpush.bf16.msra.mxu3 %v1238_v31  ;;  %968 = vmatmul.bf16.vlgmr.msrb.gmra.mxu0 %v1891_v59 }
  0x84   :  { %986 = vmatmul.bf16.vlgmr.msrb.gmra.mxu1 %v1901_v63 }
  0x85   :  { %1485 = vmatmul.msk.bf16.vlgmr.msrb.gmra.mxu2 %vm719_vm0, %v1733_v47 }
  0x87   :  { %1604 = vmatpush.bf16.msra.mxu3 %v1222_v37 }
  0x8b   :  { %1605 = vmatpush.bf16.msra.mxu3 %v1206_v43 }
  0x8f   :  { %1606 = vmatpush.bf16.msra.mxu3 %v1190_v18 }
  0x92   :  { %973 = vmatmul.bf16.vlgmr.msra.gmra.mxu3 %v2011_v56 }
  0x93   :  { %v2378_v60 = vpop.permute.xlu0 %134 }
  0x94   :  { %991 = vmatmul.bf16.gmra.mxu1 %v2014_v57 }
  0x95   :  { %v789_v54 = vpop.f32.mrf.mxu3  ;;  %1486 = vmatmul.msk.bf16.gmra.mxu2 %vm719_vm0, %v1863_v44 }
  0x9a   :  { %v2387_v44 = vpop.permute.xlu1 %144 }
  0x9b   :  { %v2381_v0 = vpop.permute.xlu0 %139 }
  0x9d   :  { %v791_v58 = vpop.f32.mrf.mxu3 }
  0xa0   :  { %v735_v51 = vpop.f32.mrf.mxu0 }
  0xa1   :  { %v736_v59 = vadd.f32 %v735_v51, %v2378_v60  ;;  %v753_v61 = vpop.f32.mrf.mxu1 }
  0xa3   :  { %v754_v62 = vadd.f32 %v753_v61, %v736_v59 }
  0xa5   :  { %v794_v63 = vpop.f32.mrf.mxu3 }
  0xa8   :  { %v771_v47 = vpop.f32.mrf.mxu2  ;;  %v737_v1 = vpop.f32.mrf.mxu0 }
  0xa9   :  { %v772_v56 = vadd.f32 %v771_v47, %v754_v62  ;;  %v755_v2 = vpop.f32.mrf.mxu1  ;;  %v738_v57 = vadd.f32 %v737_v1, %v2381_v0 }
  0xab   :  { %v790_v3 = vadd.f32 %v789_v54, %v772_v56  ;;  %v756_v5 = vadd.f32 %v755_v2, %v738_v57 }
  0xad   :  { %v796_v4 = vpop.f32.mrf.mxu3  ;;  %1014 = vst [vmem:[%s2438_s3] sm:$0xff] %v790_v3 }
  0xb0   :  { %v773_v6 = vpop.f32.mrf.mxu2  ;;  %v740_v7 = vpop.f32.mrf.mxu0 }
  0xb1   :  { %v774_v8 = vadd.f32 %v773_v6, %v756_v5  ;;  %v758_v9 = vpop.f32.mrf.mxu1  ;;  %v741_v10 = vadd.f32 %v740_v7, %v2387_v44 }
  0xb3   :  { %v792_v11 = vadd.f32 %v791_v58, %v774_v8  ;;  %v759_v13 = vadd.f32 %v758_v9, %v741_v10 }
  0xb5   :  { %v807_v12 = vpop.f32.mrf.mxu3  ;;  %1019 = vst [vmem:[%s2438_s3 + $0x20] sm:$0xff] %v792_v11 }
  0xb6   :  { %v808_v23 = vadd.f32 %v807_v12, %v2378_v60 }
  0xb8   :  { %v776_v14 = vpop.f32.mrf.mxu2  ;;  %v742_v15 = vpop.f32.mrf.mxu0 }
  0xb9   :  { %v777_v16 = vadd.f32 %v776_v14, %v759_v13  ;;  %v760_v17 = vpop.f32.mrf.mxu1 }
  0xbb   :  { %v795_v19 = vadd.f32 %v794_v63, %v777_v16 }
  0xbd   :  { %v809_v20 = vpop.f32.mrf.mxu3  ;;  %1023 = vst [vmem:[%s2438_s3 + $0x40] sm:$0xff] %v795_v19 }
  0xbe   :  { %v810_v30 = vadd.f32 %v809_v20, %v2381_v0 }
  0xc0   :  { %v778_v21 = vpop.f32.mrf.mxu2  ;;  %v825_v22 = vpop.f32.mrf.mxu0 }
  0xc1   :  { %v843_v24 = vpop.f32.mrf.mxu1  ;;  %v826_v25 = vadd.f32 %v825_v22, %v808_v23 }
  0xc3   :  { %v844_v27 = vadd.f32 %v843_v24, %v826_v25 }
  0xc5   :  { %v812_v26 = vpop.f32.mrf.mxu3 }
  0xc6   :  { %v813_v38 = vadd.f32 %v812_v26, %v2387_v44 }
  0xc8   :  { %v861_v28 = vpop.f32.mrf.mxu2  ;;  %v827_v29 = vpop.f32.mrf.mxu0 }
  0xc9   :  { %v862_v31 = vadd.f32 %v861_v28, %v844_v27  ;;  %v845_v32 = vpop.f32.mrf.mxu1  ;;  %v828_v33 = vadd.f32 %v827_v29, %v810_v30 }
  0xcb   :  { %1015 = vst [vmem:[%s2438_s3 + $0x8] sm:$0xff] %v862_v31  ;;  %v846_v35 = vadd.f32 %v845_v32, %v828_v33 }
  0xcd   :  { %v814_v34 = vpop.f32.mrf.mxu3 }
  0xd0   :  { %v863_v36 = vpop.f32.mrf.mxu2  ;;  %v830_v37 = vpop.f32.mrf.mxu0 }
  0xd1   :  { %v864_v39 = vadd.f32 %v863_v36, %v846_v35  ;;  %v848_v40 = vpop.f32.mrf.mxu1  ;;  %v831_v41 = vadd.f32 %v830_v37, %v813_v38 }
  0xd3   :  { %1020 = vst [vmem:[%s2438_s3 + $0x28] sm:$0xff] %v864_v39  ;;  %v849_v43 = vadd.f32 %v848_v40, %v831_v41 }
  0xd5   :  { %v879_v42 = vpop.f32.mrf.mxu3 }
  0xd6   :  { %v880_v52 = vadd.f32 %v879_v42, %v2378_v60 }
  0xd8   :  { %v866_v45 = vpop.f32.mrf.mxu2  ;;  %v832_v46 = vpop.f32.mrf.mxu0 }
  0xd9   :  { %v867_v48 = vadd.f32 %v866_v45, %v849_v43  ;;  %v850_v55 = vpop.f32.mrf.mxu1 }
  0xdb   :  { %1024 = vst [vmem:[%s2438_s3 + $0x48] sm:$0xff] %v867_v48 }
  0xdd   :  { %v881_v49 = vpop.f32.mrf.mxu3 }
  0xde   :  { %v882_v63 = vadd.f32 %v881_v49, %v2381_v0 }
  0xe0   :  { %v868_v18 = vpop.f32.mrf.mxu2  ;;  %v897_v50 = vpop.f32.mrf.mxu0 }
  0xe1   :  { %v915_v53 = vpop.f32.mrf.mxu1  ;;  %v898_v54 = vadd.f32 %v897_v50, %v880_v52 }
  0xe3   :  { %v916_v51 = vadd.f32 %v915_v53, %v898_v54 }
  0xe5   :  { %v884_v58 = vpop.f32.mrf.mxu3 }
  0xe6   :  { %v885_v4 = vadd.f32 %v884_v58, %v2387_v44 }
  0xe8   :  { %v933_v59 = vpop.f32.mrf.mxu2  ;;  %v899_v61 = vpop.f32.mrf.mxu0 }
  0xe9   :  { %v934_v62 = vadd.f32 %v933_v59, %v916_v51  ;;  %v917_v47 = vpop.f32.mrf.mxu1  ;;  %v900_v1 = vadd.f32 %v899_v61, %v882_v63 }
  0xeb   :  { %1016 = vst [vmem:[%s2438_s3 + $0x10] sm:$0xff] %v934_v62  ;;  %v918_v2 = vadd.f32 %v917_v47, %v900_v1 }
  0xed   :  { %v886_v56 = vpop.f32.mrf.mxu3 }
  0xf0   :  { %v935_v3 = vpop.f32.mrf.mxu2  ;;  %v902_v57 = vpop.f32.mrf.mxu0 }
  0xf1   :  { %v936_v5 = vadd.f32 %v935_v3, %v918_v2  ;;  %v920_v6 = vpop.f32.mrf.mxu1  ;;  %v903_v7 = vadd.f32 %v902_v57, %v885_v4 }
  0xf3   :  { %1021 = vst [vmem:[%s2438_s3 + $0x30] sm:$0xff] %v936_v5  ;;  %v921_v9 = vadd.f32 %v920_v6, %v903_v7 }
  0xf5   :  { %v951_v8 = vpop.f32.mrf.mxu3 }
  0xf6   :  { %v952_v17 = vadd.f32 %v951_v8, %v2378_v60 }
  0xf8   :  { %v938_v10 = vpop.f32.mrf.mxu2  ;;  %v904_v11 = vpop.f32.mrf.mxu0 }
  0xf9   :  { %v939_v12 = vadd.f32 %v938_v10, %v921_v9  ;;  %v922_v13 = vpop.f32.mrf.mxu1 }
  0xfb   :  { %1025 = vst [vmem:[%s2438_s3 + $0x50] sm:$0xff] %v939_v12 }
  0xfd   :  { %v953_v14 = vpop.f32.mrf.mxu3 }
  0xfe   :  { %v954_v25 = vadd.f32 %v953_v14, %v2381_v0 }
 0x100   :  { %v940_v15 = vpop.f32.mrf.mxu2  ;;  %v969_v16 = vpop.f32.mrf.mxu0 }
 0x101   :  { %v987_v19 = vpop.f32.mrf.mxu1  ;;  %v970_v20 = vadd.f32 %v969_v16, %v952_v17 }
 0x103   :  { %v988_v22 = vadd.f32 %v987_v19, %v970_v20 }
 0x105   :  { %v956_v21 = vpop.f32.mrf.mxu3 }
 0x106   :  { %v957_v33 = vadd.f32 %v956_v21, %v2387_v44 }
 0x108   :  { %v1005_v23 = vpop.f32.mrf.mxu2  ;;  %v971_v24 = vpop.f32.mrf.mxu0 }
 0x109   :  { %v1006_v26 = vadd.f32 %v1005_v23, %v988_v22  ;;  %v989_v27 = vpop.f32.mrf.mxu1  ;;  %v972_v28 = vadd.f32 %v971_v24, %v954_v25 }
 0x10b   :  { %1018 = vst.msk [vmem:[%s2438_s3 + $0x18] sm:$0xff] %vm1017_vm1, %v1006_v26  ;;  %v990_v30 = vadd.f32 %v989_v27, %v972_v28 }
 0x10d   :  { %v958_v29 = vpop.f32.mrf.mxu3 }
 0x110   :  { %v1007_v60 = vpop.f32.mrf.mxu2 }
 0x111   :  { %v1008_v31 = vadd.f32 %v1007_v60, %v990_v30  ;;  %v992_v32 = vpop.f32.mrf.mxu1 }
 0x113   :  { %1022 = vst.msk [vmem:[%s2438_s3 + $0x38] sm:$0xff] %vm1017_vm1, %v1008_v31 }
 0x115   :  { %v974_v0 = vpop.f32.mrf.mxu3 }
 0x116   :  { %v975_v34 = vadd.f32 %v974_v0, %v957_v33 }
 0x118   :  { %v993_v35 = vadd.f32 %v992_v32, %v975_v34  ;;  %v1010_v36 = vpop.f32.mrf.mxu2 }
 0x119   :  { %v994_v38 = vpop.f32.mrf.mxu1 }
 0x11a   :  { %v1011_v37 = vadd.f32 %v1010_v36, %v993_v35 }
 0x11c   :  { %1026 = vst.msk [vmem:[%s2438_s3 + $0x58] sm:$0xff] %vm1017_vm1, %v1011_v37 }
 0x11d   :  { %v976_v39 = vpop.f32.mrf.mxu3 }
 0x120   :  { %v1012_v40 = vpop.f32.mrf.mxu2 }

// kernel: _lambda_.22
= control target key start
LH: loop header
LB: loop body
LE: loop exit
PB: predicated region body
PF: predicated region fallthrough
CT: control target
= control target key end

     0   :  { %vm613_vm0 = vcmask 1041408   ;;  %vm603_vm1 = vcmask 556032   ;;  %vm965_vm2 = vcmask 818176   ;;  %s2314_s1 = inlined_call_operand.vmem [shape: bf16[324,484], index: 1, kind: input, shape index: {}]   ;;  %s2315_s0 = inlined_call_operand.vmem [shape: bf16[48,324], index: 0, kind: input, shape index: {}]   ;;  %s2316_s2 = inlined_call_operand.vmem [shape: f32[48,1], index: 2, kind: input, shape index: {}]   ;;  %s2317_s3 = inlined_call_operand.vmem [shape: f32[48,484], index: 3, kind: input, shape index: {}]   ;;  %s2318_s4 = inlined_call_operand.vmem [shape: f32[48,484], index: 4, kind: output, shape index: {}]  }
   0x1   :  { %v1141_v0 = vld [vmem:[%s2314_s1 + $0xe0] sm:$0xf]  ;;  %v1398_v1 = vld [vmem:[%s2314_s1 + $0xec] sm:$0xf0]  ;;  %v1396_v5 = vld [vmem:[%s2314_s1 + $0xe4] sm:$0xf] }
   0x2   :  { %v1269_v2 = vld [vmem:[%s2314_s1 + $0x1e0] sm:$0xf]  ;;  %v1142_v3 = vor.u32 %v1398_v1, %v1141_v0  ;;  %v1430_v4 = vld [vmem:[%s2314_s1 + $0x1ec] sm:$0xf0]  ;;  %v1143_v6 = vld [vmem:[%s2314_s1 + $0xf0] sm:$0xf0] }
   0x3   :  { %v1270_v7 = vor.u32 %v1430_v4, %v1269_v2  ;;  %v1146_v8 = vor.u32 %v1396_v5, %v1143_v6  ;;  %v1499_v9 = vld [vmem:[%s2314_s1 + $0x280] sm:$0x33]  ;;  %v1394_v11 = vld [vmem:[%s2314_s1 + $0xcc] sm:$0xf0]  ;;  %v1127_v18 = vld [vmem:[%s2314_s1 + $0xd0] sm:$0xf0] }
   0x4   :  { %v1125_v10 = vld [vmem:[%s2314_s1 + $0xc0] sm:$0xf]  ;;  %626 = vmatpush.bf16.msra.mxu0 %v1142_v3  ;;  %v435_v12 = vunpack.c.l.b16 %v1499_v9  ;;  %v1426_v15 = vld [vmem:[%s2314_s1 + $0x1cc] sm:$0xf0]  ;;  %v1392_v16 = vld [vmem:[%s2314_s1 + $0xc4] sm:$0xf] }
   0x5   :  { %v1126_v13 = vor.u32 %v1394_v11, %v1125_v10  ;;  %v1253_v14 = vld [vmem:[%s2314_s1 + $0x1c0] sm:$0xf]  ;;  %650 = vmatpush.bf16.msra.mxu1 %v1270_v7  ;;  %698 = vmatpush.bf16.msra.mxu3 %v1146_v8  ;;  %v1446_v20 = vld [vmem:[%s2314_s1 + $0x26c] sm:$0xf0]  ;;  %v1130_v22 = vor.u32 %v1392_v16, %v1127_v18  ;;  %v1388_v27 = vld [vmem:[%s2314_s1 + $0xa4] sm:$0xf]  ;;  %v436_v16 = vunpack.c.h.b16 %v1499_v9 }
   0x6   :  { %v1254_v17 = vor.u32 %v1426_v15, %v1253_v14  ;;  %v1333_v19 = vld [vmem:[%s2314_s1 + $0x260] sm:$0xf]  ;;  %v519_v21 = vpack.c.b16 %v435_v12, %v435_v12  ;;  %v1390_v24 = vld [vmem:[%s2314_s1 + $0xac] sm:$0xf0]  ;;  %v1111_v28 = vld [vmem:[%s2314_s1 + $0xb0] sm:$0xf0] }
   0x7   :  { %v1109_v23 = vld [vmem:[%s2314_s1 + $0xa0] sm:$0xf]  ;;  %v1422_v26 = vld [vmem:[%s2314_s1 + $0x1ac] sm:$0xf0]  ;;  %v1334_v31 = vor.u32 %v1446_v20, %v1333_v19  ;;  %v1114_v36 = vor.u32 %v1388_v27, %v1111_v28  ;;  %v1384_v40 = vld [vmem:[%s2314_s1 + $0x84] sm:$0xf] }
   0x8   :  { %v1237_v25 = vld [vmem:[%s2314_s1 + $0x1a0] sm:$0xf]  ;;  %v615_v29 = vsel %vm613_vm0, %v519_v21, 0  ;;  %627 = vmatpush.bf16.msra.mxu0 %v1126_v13  ;;  %v1110_v30 = vor.u32 %v1390_v24, %v1109_v23  ;;  %v1386_v35 = vld [vmem:[%s2314_s1 + $0x8c] sm:$0xf0]  ;;  %v1452_v24 = vmov 0  }
   0x9   :  { %677 = vmatpush.bf16.msra.mxu2 %v615_v29  ;;  %651 = vmatpush.bf16.msra.mxu1 %v1254_v17  ;;  %v1238_v32 = vor.u32 %v1422_v26, %v1237_v25  ;;  %v1317_v33 = vld [vmem:[%s2314_s1 + $0x240] sm:$0xf]  ;;  %v1442_v37 = vld [vmem:[%s2314_s1 + $0x24c] sm:$0xf0]  ;;  %v1095_v41 = vld [vmem:[%s2314_s1 + $0x90] sm:$0xf0] }
   0xa   :  { %v1093_v34 = vld [vmem:[%s2314_s1 + $0x80] sm:$0xf]  ;;  %699 = vmatpush.bf16.msra.mxu3 %v1130_v22  ;;  %v1418_v39 = vld [vmem:[%s2314_s1 + $0x18c] sm:$0xf0]  ;;  %v1318_v43 = vor.u32 %v1442_v37, %v1317_v33  ;;  %v1098_v48 = vor.u32 %v1384_v40, %v1095_v41  ;;  %v1380_v52 = vld [vmem:[%s2314_s1 + $0x64] sm:$0xf]  ;;  %1449 = vset.pattern.permute.xlu0 %v1452_v24  ;;  %v520_v33 = vpack.c.b16 %v436_v16, %v436_v16 }
   0xb   :  { %v1221_v38 = vld [vmem:[%s2314_s1 + $0x180] sm:$0xf]  ;;  %v1094_v42 = vor.u32 %v1386_v35, %v1093_v34  ;;  %v1382_v47 = vld [vmem:[%s2314_s1 + $0x6c] sm:$0xf0]  ;;  %v1079_v53 = vld [vmem:[%s2314_s1 + $0x70] sm:$0xf0]  ;;  %1450 = vset.pattern.permute.xlu1 %v1452_v24  ;;  %1451 = vset.pattern.permute.xlu2 %v1452_v24 }
   0xc   :  { %628 = vmatpush.bf16.msra.mxu0 %v1110_v30  ;;  %v1222_v44 = vor.u32 %v1418_v39, %v1221_v38  ;;  %v1301_v45 = vld [vmem:[%s2314_s1 + $0x220] sm:$0xf]  ;;  %v1438_v49 = vld [vmem:[%s2314_s1 + $0x22c] sm:$0xf0]  ;;  %v1082_v60 = vor.u32 %v1380_v52, %v1079_v53  ;;  %v1376_v0 = vld [vmem:[%s2314_s1 + $0x44] sm:$0xf] }
   0xd   :  { %678 = vmatpush.bf16.msra.mxu2 %v1334_v31  ;;  %652 = vmatpush.bf16.msra.mxu1 %v1238_v32  ;;  %v1077_v46 = vld [vmem:[%s2314_s1 + $0x60] sm:$0xf]  ;;  %v1414_v51 = vld [vmem:[%s2314_s1 + $0x16c] sm:$0xf0]  ;;  %v1302_v55 = vor.u32 %v1438_v49, %v1301_v45  ;;  %v1063_v1 = vld [vmem:[%s2314_s1 + $0x50] sm:$0xf0] }
   0xe   :  { %700 = vmatpush.bf16.msra.mxu3 %v1114_v36  ;;  %v1205_v50 = vld [vmem:[%s2314_s1 + $0x160] sm:$0xf]  ;;  %v1078_v54 = vor.u32 %v1382_v47, %v1077_v46  ;;  %v1378_v59 = vld [vmem:[%s2314_s1 + $0x4c] sm:$0xf0]  ;;  %v1001_v3 = vld [vmem:[%s2315_s0 + $0x8] sm:$0xf]  ;;  %v1066_v12 = vor.u32 %v1376_v0, %v1063_v1 }
   0xf   :  { %v1206_v56 = vor.u32 %v1414_v51, %v1205_v50  ;;  %v1285_v57 = vld [vmem:[%s2314_s1 + $0x200] sm:$0xf]  ;;  %v1434_v61 = vld [vmem:[%s2314_s1 + $0x20c] sm:$0xf0]  ;;  %v1361_v4 = vld [vmem:[%s2315_s0 + $0x10] sm:$0xf0] }
  0x10   :  { %629 = vmatpush.bf16.msra.mxu0 %v1094_v42  ;;  %v1061_v58 = vld [vmem:[%s2314_s1 + $0x40] sm:$0xf]  ;;  %v1410_v63 = vld [vmem:[%s2314_s1 + $0x14c] sm:$0xf0]  ;;  %v1286_v6 = vor.u32 %v1434_v61, %v1285_v57  ;;  %v1372_v13 = vld [vmem:[%s2314_s1 + $0x24] sm:$0xf]  ;;  %v1651_v20 = vor.u32 %v1361_v4, %v1001_v3 }
  0x11   :  { %679 = vmatpush.bf16.msra.mxu2 %v1318_v43  ;;  %653 = vmatpush.bf16.msra.mxu1 %v1222_v44  ;;  %v1189_v62 = vld [vmem:[%s2314_s1 + $0x140] sm:$0xf]  ;;  %v1062_v2 = vor.u32 %v1378_v59, %v1061_v58  ;;  %v1374_v8 = vld [vmem:[%s2314_s1 + $0x2c] sm:$0xf0]  ;;  %v1428_v14 = vld [vmem:[%s2314_s1 + $0x1e4] sm:$0xf] }
  0x12   :  { %701 = vmatpush.bf16.msra.mxu3 %v1098_v48  ;;  %v1045_v5 = vld [vmem:[%s2314_s1 + $0x20] sm:$0xf]  ;;  %v1190_v7 = vor.u32 %v1410_v63, %v1189_v62  ;;  %v1406_v11 = vld [vmem:[%s2314_s1 + $0x12c] sm:$0xf0]  ;;  %v1271_v15 = vld [vmem:[%s2314_s1 + $0x1f0] sm:$0xf0] }
  0x13   :  { %v1173_v10 = vld [vmem:[%s2314_s1 + $0x120] sm:$0xf]  ;;  %v1047_v17 = vld [vmem:[%s2314_s1 + $0x30] sm:$0xf0]  ;;  %v1274_v19 = vor.u32 %v1428_v14, %v1271_v15  ;;  %v1046_v21 = vor.u32 %v1374_v8, %v1045_v5  ;;  %v1370_v22 = vld [vmem:[%s2314_s1 + $0xc] sm:$0xf0] }
  0x14   :  { %630 = vmatpush.bf16.msra.mxu0 %v1078_v54  ;;  %v1029_v18 = vld [vmem:[%s2314_s1] sm:$0xf]  ;;  %v1424_v23 = vld [vmem:[%s2314_s1 + $0x1c4] sm:$0xf]  ;;  %v1174_v25 = vor.u32 %v1406_v11, %v1173_v10  ;;  %v1402_v26 = vld [vmem:[%s2314_s1 + $0x10c] sm:$0xf0]  ;;  %v1050_v29 = vor.u32 %v1372_v13, %v1047_v17 }
  0x15   :  { %680 = vmatpush.bf16.msra.mxu2 %v1302_v55  ;;  %654 = vmatpush.bf16.msra.mxu1 %v1206_v56  ;;  %v1157_v9 = vld [vmem:[%s2314_s1 + $0x100] sm:$0xf]  ;;  %v1368_v27 = vld [vmem:[%s2314_s1 + $0x4] sm:$0xf]  ;;  %v1255_v28 = vld [vmem:[%s2314_s1 + $0x1d0] sm:$0xf0]  ;;  %v1030_v38 = vor.u32 %v1370_v22, %v1029_v18 }
  0x16   :  { %702 = vmatpush.bf16.msra.mxu3 %v1082_v60  ;;  %v1031_v30 = vld [vmem:[%s2314_s1 + $0x10] sm:$0xf0]  ;;  %v993_v31 = vld [vmem:[%s2315_s0] sm:$0xf]  ;;  %v1360_v32 = vld [vmem:[%s2315_s0 + $0x8] sm:$0xf0]  ;;  %v1258_v34 = vor.u32 %v1424_v23, %v1255_v28  ;;  %v1158_v42 = vor.u32 %v1402_v26, %v1157_v9 }
  0x17   :  { %v1149_v35 = vld [vmem:[%s2314_s1 + $0xe8] sm:$0xf]  ;;  %v1399_v36 = vld [vmem:[%s2314_s1 + $0xf4] sm:$0xf0]  ;;  %v112_v37 = vld [vmem:[%s2316_s2] sm:$0xff]  ;;  %v1034_v46 = vor.u32 %v1368_v27, %v1031_v30  ;;  %v618_v47 = vsel %vm613_vm0, %v520_v33, 0  ;;  %v1716_v51 = vor.u32 %v1360_v32, %v993_v31 }
  0x18   :  { %631 = vmatpush.bf16.msra.mxu0 %v1062_v2  ;;  %v1359_v39 = vld [vmem:[%s2315_s0 + $0x4] sm:$0xf]  ;;  %v1277_v40 = vld [vmem:[%s2314_s1 + $0x1e8] sm:$0xf]  ;;  %v1431_v41 = vld [vmem:[%s2314_s1 + $0x1f4] sm:$0xf0]  ;;  %120 = vperm.xlu0 %1449, %v112_v37   ;;  %v1150_v48 = vor.u32 %v1399_v36, %v1149_v35 }
  0x19   :  { %681 = vmatpush.bf16.msra.mxu2 %v1286_v6  ;;  %655 = vmatpush.bf16.msra.mxu1 %v1190_v7  ;;  %v995_v43 = vld [vmem:[%s2315_s0 + $0xc] sm:$0xf0]  ;;  %v1420_v44 = vld [vmem:[%s2314_s1 + $0x1a4] sm:$0xf]  ;;  %v1239_v45 = vld [vmem:[%s2314_s1 + $0x1b0] sm:$0xf0]  ;;  %v1278_v52 = vor.u32 %v1431_v41, %v1277_v40 }
  0x1a   :  { %703 = vmatpush.bf16.msra.mxu3 %v1066_v12  ;;  %v1444_v49 = vld [vmem:[%s2314_s1 + $0x264] sm:$0xf]  ;;  %v1335_v50 = vld [vmem:[%s2314_s1 + $0x270] sm:$0xf0]  ;;  %v1133_v53 = vld [vmem:[%s2314_s1 + $0xc8] sm:$0xf]  ;;  %v1724_v55 = vor.u32 %v1359_v39, %v995_v43  ;;  %v1242_v58 = vor.u32 %v1420_v44, %v1239_v45 }
  0x1b   :  { %v1395_v54 = vld [vmem:[%s2314_s1 + $0xd4] sm:$0xf0]  ;;  %v1261_v56 = vld [vmem:[%s2314_s1 + $0x1c8] sm:$0xf]  ;;  %v1338_v59 = vor.u32 %v1444_v49, %v1335_v50  ;;  %v1416_v60 = vld [vmem:[%s2314_s1 + $0x184] sm:$0xf] }
  0x1c   :  { %1347 = vmatmul.msk.bf16.vlgmr.msra.gmra.mxu2 %vm603_vm1, %v1651_v20  ;;  %632 = vmatpush.bf16.msra.mxu0 %v1046_v21  ;;  %v1427_v57 = vld [vmem:[%s2314_s1 + $0x1d4] sm:$0xf0]  ;;  %v1223_v61 = vld [vmem:[%s2314_s1 + $0x190] sm:$0xf0]  ;;  %v1134_v62 = vor.u32 %v1395_v54, %v1133_v53  ;;  %v1440_v63 = vld [vmem:[%s2314_s1 + $0x244] sm:$0xf] }
  0x1d   :  { %722 = vmatpush.bf16.msrb.mxu2 %v1274_v19  ;;  %656 = vmatpush.bf16.msra.mxu1 %v1174_v25  ;;  %v1319_v0 = vld [vmem:[%s2314_s1 + $0x250] sm:$0xf0]  ;;  %v1262_v1 = vor.u32 %v1427_v57, %v1261_v56  ;;  %v1117_v2 = vld [vmem:[%s2314_s1 + $0xa8] sm:$0xf]  ;;  %v1391_v3 = vld [vmem:[%s2314_s1 + $0xb4] sm:$0xf0]  ;;  %v1226_v7 = vor.u32 %v1416_v60, %v1223_v61 }
  0x1e   :  { %704 = vmatpush.bf16.msra.mxu3 %v1050_v29  ;;  %v113_v4 = vld [vmem:[%s2316_s2 + $0x8] sm:$0xff]  ;;  %v1423_v6 = vld [vmem:[%s2314_s1 + $0x1b4] sm:$0xf0]  ;;  %v114_v8 = vld [vmem:[%s2316_s2 + $0x10] sm:$0xff]  ;;  %v1322_v12 = vor.u32 %v1440_v63, %v1319_v0  ;;  %v1118_v13 = vor.u32 %v1391_v3, %v1117_v2 }
  0x1f   :  { %v1245_v5 = vld [vmem:[%s2314_s1 + $0x1a8] sm:$0xf]  ;;  %v1013_v10 = vld [vmem:[%s2315_s0 + $0x20] sm:$0xf]  ;;  %v1364_v11 = vld [vmem:[%s2315_s0 + $0x28] sm:$0xf0]  ;;  %130 = vperm.xlu1 %1450, %v114_v8  }
  0x20   :  { %633 = vmatpush.bf16.msra.mxu0 %v1030_v38  ;;  %125 = vperm.xlu0 %1449, %v113_v4   ;;  %v1101_v14 = vld [vmem:[%s2314_s1 + $0x88] sm:$0xf]  ;;  %v1412_v15 = vld [vmem:[%s2314_s1 + $0x164] sm:$0xf]  ;;  %v1207_v16 = vld [vmem:[%s2314_s1 + $0x170] sm:$0xf0]  ;;  %v1246_v17 = vor.u32 %v1423_v6, %v1245_v5  ;;  %v1789_v22 = vor.u32 %v1364_v11, %v1013_v10 }
  0x21   :  { %723 = vmatpush.bf16.msrb.mxu2 %v1258_v34  ;;  %657 = vmatpush.bf16.msra.mxu1 %v1158_v42  ;;  %v1387_v18 = vld [vmem:[%s2314_s1 + $0x94] sm:$0xf0]  ;;  %v1436_v19 = vld [vmem:[%s2314_s1 + $0x224] sm:$0xf]  ;;  %v1303_v21 = vld [vmem:[%s2314_s1 + $0x230] sm:$0xf0]  ;;  %v1210_v24 = vor.u32 %v1412_v15, %v1207_v16 }
  0x22   :  { %705 = vmatpush.bf16.msra.mxu3 %v1034_v46  ;;  %v1229_v9 = vld [vmem:[%s2314_s1 + $0x188] sm:$0xf]  ;;  %v1419_v23 = vld [vmem:[%s2314_s1 + $0x194] sm:$0xf0]  ;;  %v1306_v25 = vor.u32 %v1436_v19, %v1303_v21  ;;  %v1363_v27 = vld [vmem:[%s2315_s0 + $0x20] sm:$0xf0]  ;;  %v1102_v28 = vor.u32 %v1387_v18, %v1101_v14 }
  0x23   :  { %634 = vmatmul.bf16.vlgmr.msra.gmra.mxu0 %v1716_v51  ;;  %v1005_v26 = vld [vmem:[%s2315_s0 + $0x18] sm:$0xf]  ;;  %v1408_v29 = vld [vmem:[%s2314_s1 + $0x144] sm:$0xf]  ;;  %v1191_v30 = vld [vmem:[%s2314_s1 + $0x150] sm:$0xf0]  ;;  %v1230_v31 = vor.u32 %v1419_v23, %v1229_v9 }
  0x24   :  { %749 = vmatpush.bf16.msrb.mxu0 %v618_v47  ;;  %658 = vmatmul.bf16.vlgmr.msra.gmra.mxu1 %v1724_v55  ;;  %v1213_v32 = vld [vmem:[%s2314_s1 + $0x168] sm:$0xf]  ;;  %v1383_v34 = vld [vmem:[%s2314_s1 + $0x74] sm:$0xf0]  ;;  %v1432_v37 = vld [vmem:[%s2314_s1 + $0x204] sm:$0xf]  ;;  %v1194_v40 = vor.u32 %v1408_v29, %v1191_v30  ;;  %v1844_v46 = vor.u32 %v1363_v27, %v1005_v26 }
  0x25   :  { %770 = vmatpush.bf16.msrb.mxu1 %v1150_v48  ;;  %724 = vmatpush.bf16.msrb.mxu2 %v1242_v58  ;;  %v1085_v33 = vld [vmem:[%s2314_s1 + $0x68] sm:$0xf]  ;;  %v1415_v35 = vld [vmem:[%s2314_s1 + $0x174] sm:$0xf0]  ;;  %v1362_v38 = vld [vmem:[%s2315_s0 + $0x1c] sm:$0xf] }
  0x26   :  { %794 = vmatpush.bf16.msrb.mxu3 %v1278_v52  ;;  %v115_v36 = vld [vmem:[%s2316_s2 + $0x18] sm:$0xff]  ;;  %v1007_v39 = vld [vmem:[%s2315_s0 + $0x24] sm:$0xf0]  ;;  %v1287_v41 = vld [vmem:[%s2314_s1 + $0x210] sm:$0xf0]  ;;  %v1086_v42 = vor.u32 %v1383_v34, %v1085_v33  ;;  %v1214_v47 = vor.u32 %v1415_v35, %v1213_v32 }
  0x27   :  { %706 = vmatmul.bf16.vlgmr.msra.gmra.mxu3 %v1716_v51  ;;  %v1404_v43 = vld [vmem:[%s2314_s1 + $0x124] sm:$0xf]  ;;  %v1175_v44 = vld [vmem:[%s2314_s1 + $0x130] sm:$0xf0]  ;;  %v1290_v45 = vor.u32 %v1432_v37, %v1287_v41  ;;  %v1069_v48 = vld [vmem:[%s2314_s1 + $0x48] sm:$0xf]  ;;  %135 = vperm.xlu1 %1450, %v115_v36   ;;  %v1852_v50 = vor.u32 %v1362_v38, %v1007_v39 }
  0x28   :  { %750 = vmatpush.bf16.msrb.mxu0 %v1338_v59  ;;  %v1379_v49 = vld [vmem:[%s2314_s1 + $0x54] sm:$0xf0]  ;;  %v1197_v52 = vld [vmem:[%s2314_s1 + $0x148] sm:$0xf]  ;;  %v1178_v54 = vor.u32 %v1404_v43, %v1175_v44  ;;  %v1400_v57 = vld [vmem:[%s2314_s1 + $0x104] sm:$0xf] }
  0x29   :  { %771 = vmatpush.bf16.msrb.mxu1 %v1134_v62  ;;  %725 = vmatpush.bf16.msrb.mxu2 %v1226_v7  ;;  %v1411_v53 = vld [vmem:[%s2314_s1 + $0x154] sm:$0xf0]  ;;  %v1070_v56 = vor.u32 %v1379_v49, %v1069_v48  ;;  %v1159_v58 = vld [vmem:[%s2314_s1 + $0x110] sm:$0xf0]  ;;  %v1053_v61 = vld [vmem:[%s2314_s1 + $0x28] sm:$0xf] }
  0x2a   :  { %795 = vmatpush.bf16.msrb.mxu3 %v1262_v1  ;;  %v1025_v59 = vld [vmem:[%s2315_s0 + $0x38] sm:$0xf]  ;;  %v1198_v60 = vor.u32 %v1411_v53, %v1197_v52  ;;  %v1367_v63 = vld [vmem:[%s2315_s0 + $0x40] sm:$0xf0]  ;;  %v1181_v0 = vld [vmem:[%s2314_s1 + $0x128] sm:$0xf]  ;;  %v1162_v2 = vor.u32 %v1400_v57, %v1159_v58 }
  0x2b   :  { %v1375_v62 = vld [vmem:[%s2314_s1 + $0x34] sm:$0xf0]  ;;  %v111_v3 = vld [vmem:[%s2314_s1 + $0x288] sm:$0x33]  ;;  %v1151_v5 = vld [vmem:[%s2314_s1 + $0xf8] sm:$0xf0]  ;;  %v1905_v15 = vor.u32 %v1367_v63, %v1025_v59 }
  0x2c   :  { %751 = vmatpush.bf16.msrb.mxu0 %v1322_v12  ;;  %1348 = vmatmul.msk.bf16.gmra.mxu2 %vm603_vm1, %v1789_v22  ;;  %v1407_v1 = vld [vmem:[%s2314_s1 + $0x134] sm:$0xf0]  ;;  %v1397_v4 = vld [vmem:[%s2314_s1 + $0xec] sm:$0xf]  ;;  %v1054_v6 = vor.u32 %v1375_v62, %v1053_v61  ;;  %v437_v7 = vunpack.c.l.b16 %v111_v3  ;;  %v438_v8 = vunpack.c.h.b16 %v111_v3  ;;  %v1165_v12 = vld [vmem:[%s2314_s1 + $0x108] sm:$0xf] }
  0x2d   :  { %772 = vmatpush.bf16.msrb.mxu1 %v1118_v13  ;;  %726 = vmatpush.bf16.msrb.mxu2 %v1210_v24  ;;  %v1154_v10 = vor.u32 %v1397_v4, %v1151_v5  ;;  %v1182_v11 = vor.u32 %v1407_v1, %v1181_v0  ;;  %v1037_v13 = vld [vmem:[%s2314_s1 + $0x8] sm:$0xf]  ;;  %v1371_v14 = vld [vmem:[%s2314_s1 + $0x14] sm:$0xf0]  ;;  %v1429_v19 = vld [vmem:[%s2314_s1 + $0x1ec] sm:$0xf] }
  0x2e   :  { %796 = vmatpush.bf16.msrb.mxu3 %v1246_v17  ;;  %v1403_v16 = vld [vmem:[%s2314_s1 + $0x114] sm:$0xf0]  ;;  %v521_v17 = vpack.c.b16 %v437_v7, %v437_v7  ;;  %v522_v18 = vpack.c.b16 %v438_v8, %v438_v8  ;;  %v1279_v21 = vld [vmem:[%s2314_s1 + $0x1f8] sm:$0xf0]  ;;  %v1017_v9 = vld [vmem:[%s2315_s0 + $0x30] sm:$0xf]  ;;  %v1038_v24 = vor.u32 %v1371_v14, %v1037_v13 }
  0x2f   :  { %v1366_v23 = vld [vmem:[%s2315_s0 + $0x38] sm:$0xf0]  ;;  %v1365_v26 = vld [vmem:[%s2315_s0 + $0x34] sm:$0xf]  ;;  %v1019_v27 = vld [vmem:[%s2315_s0 + $0x3c] sm:$0xf0]  ;;  %v1282_v30 = vor.u32 %v1429_v19, %v1279_v21 }
  0x30   :  { %752 = vmatpush.bf16.msrb.mxu0 %v1306_v25  ;;  %v621_v25 = vsel %vm613_vm0, %v521_v17, 0  ;;  %v624_v29 = vsel %vm613_vm0, %v522_v18, 0  ;;  %v1135_v32 = vld [vmem:[%s2314_s1 + $0xd8] sm:$0xf0]  ;;  %v1341_v33 = vld [vmem:[%s2314_s1 + $0x268] sm:$0xf] }
  0x31   :  { %773 = vmatpush.bf16.msrb.mxu1 %v1102_v28  ;;  %727 = vmatpush.bf16.msrb.mxu2 %v1194_v40  ;;  %v1166_v28 = vor.u32 %v1403_v16, %v1165_v12  ;;  %v1447_v35 = vld [vmem:[%s2314_s1 + $0x274] sm:$0xf0]  ;;  %v1425_v36 = vld [vmem:[%s2314_s1 + $0x1cc] sm:$0xf]  ;;  %v1263_v37 = vld [vmem:[%s2314_s1 + $0x1d8] sm:$0xf0] }
  0x32   :  { %797 = vmatpush.bf16.msrb.mxu3 %v1230_v31  ;;  %v1393_v31 = vld [vmem:[%s2314_s1 + $0xcc] sm:$0xf]  ;;  %v1342_v38 = vor.u32 %v1447_v35, %v1341_v33  ;;  %v1343_v40 = vld [vmem:[%s2314_s1 + $0x278] sm:$0xf0]  ;;  %v1266_v43 = vor.u32 %v1425_v36, %v1263_v37  ;;  %v116_v53 = vld [vmem:[%s2316_s2 + $0x20] sm:$0xff] }
  0x33   :  { %639 = vmatmul.bf16.gmra.mxu0 %v1844_v46  ;;  %v1138_v34 = vor.u32 %v1393_v31, %v1135_v32  ;;  %v1445_v39 = vld [vmem:[%s2314_s1 + $0x26c] sm:$0xf]  ;;  %v1119_v44 = vld [vmem:[%s2314_s1 + $0xb8] sm:$0xf0]  ;;  %140 = vperm.xlu2 %1451, %v116_v53   ;;  %v1443_v57 = vld [vmem:[%s2314_s1 + $0x254] sm:$0xf0] }
  0x34   :  { %753 = vmatpush.bf16.msrb.mxu0 %v1290_v45  ;;  %663 = vmatmul.bf16.gmra.mxu1 %v1852_v50  ;;  %v1389_v41 = vld [vmem:[%s2314_s1 + $0xac] sm:$0xf]  ;;  %v1964_v45 = vor.u32 %v1365_v26, %v1019_v27  ;;  %v1247_v52 = vld [vmem:[%s2314_s1 + $0x1b8] sm:$0xf0]  ;;  %v1439_v13 = vld [vmem:[%s2314_s1 + $0x234] sm:$0xf0] }
  0x35   :  { %774 = vmatpush.bf16.msrb.mxu1 %v1086_v42  ;;  %728 = vmatpush.bf16.msrb.mxu2 %v1178_v54  ;;  %v1959_v42 = vor.u32 %v1366_v23, %v1017_v9  ;;  %v1122_v48 = vor.u32 %v1389_v41, %v1119_v44  ;;  %v1421_v49 = vld [vmem:[%s2314_s1 + $0x1ac] sm:$0xf]  ;;  %v1327_v62 = vld [vmem:[%s2314_s1 + $0x258] sm:$0xf0]  ;;  %v1435_v26 = vld [vmem:[%s2314_s1 + $0x214] sm:$0xf0] }
  0x36   :  { %798 = vmatpush.bf16.msrb.mxu3 %v1214_v47  ;;  %v1346_v47 = vor.u32 %v1445_v39, %v1343_v40  ;;  %v1250_v54 = vor.u32 %v1421_v49, %v1247_v52  ;;  %v1385_v58 = vld [vmem:[%s2314_s1 + $0x8c] sm:$0xf]  ;;  %v1087_v5 = vld [vmem:[%s2314_s1 + $0x78] sm:$0xf0] }
  0x37   :  { %711 = vmatmul.bf16.gmra.mxu3 %v1844_v46  ;;  %v1441_v61 = vld [vmem:[%s2314_s1 + $0x24c] sm:$0xf]  ;;  %v1311_v16 = vld [vmem:[%s2314_s1 + $0x238] sm:$0xf0] }
  0x38   :  { %842 = vmatpush.bf16.msra.mxu0 %v1154_v10  ;;  %v1330_v0 = vor.u32 %v1441_v61, %v1327_v62  ;;  %v1417_v1 = vld [vmem:[%s2314_s1 + $0x18c] sm:$0xf]  ;;  %v1215_v10 = vld [vmem:[%s2314_s1 + $0x178] sm:$0xf0] }
  0x39   :  { %775 = vmatpush.bf16.msrb.mxu1 %v1070_v56  ;;  %729 = vmatpush.bf16.msrb.mxu2 %v1162_v2  ;;  %v1325_v56 = vld [vmem:[%s2314_s1 + $0x248] sm:$0xf]  ;;  %v1231_v2 = vld [vmem:[%s2314_s1 + $0x198] sm:$0xf0]  ;;  %v1381_v4 = vld [vmem:[%s2314_s1 + $0x6c] sm:$0xf] }
  0x3a   :  { %799 = vmatpush.bf16.msrb.mxu3 %v1198_v60  ;;  %v1326_v59 = vor.u32 %v1443_v57, %v1325_v56  ;;  %v1103_v60 = vld [vmem:[%s2314_s1 + $0x98] sm:$0xf0]  ;;  %v1234_v3 = vor.u32 %v1417_v1, %v1231_v2  ;;  %v1090_v7 = vor.u32 %v1381_v4, %v1087_v5  ;;  %v1413_v8 = vld [vmem:[%s2314_s1 + $0x16c] sm:$0xf] }
  0x3b   :  { %v1106_v63 = vor.u32 %v1385_v58, %v1103_v60  ;;  %v1218_v12 = vor.u32 %v1413_v8, %v1215_v10  ;;  %v1437_v14 = vld [vmem:[%s2314_s1 + $0x22c] sm:$0xf]  ;;  %v1071_v21 = vld [vmem:[%s2314_s1 + $0x58] sm:$0xf0] }
  0x3c   :  { %1349 = vmatmul.msk.bf16.gmra.mxu2 %vm603_vm1, %v1905_v15  ;;  %843 = vmatpush.bf16.msra.mxu0 %v1138_v34  ;;  %v1314_v18 = vor.u32 %v1437_v14, %v1311_v16  ;;  %v1377_v19 = vld [vmem:[%s2314_s1 + $0x4c] sm:$0xf]  ;;  %v1183_v33 = vld [vmem:[%s2314_s1 + $0x138] sm:$0xf0]  ;;  %v926_v14 = vld [vmem:[%s2317_s3 + $0x60] sm:$0xff] }
  0x3d   :  { %776 = vmatpush.bf16.msrb.mxu1 %v1054_v6  ;;  %821 = vmatpush.bf16.msra.mxu2 %v621_v25  ;;  %v117_v6 = vld [vmem:[%s2316_s2 + $0x28] sm:$0xff]  ;;  %v1074_v23 = vor.u32 %v1377_v19, %v1071_v21  ;;  %v1295_v35 = vld [vmem:[%s2314_s1 + $0x218] sm:$0xf0] }
  0x3e   :  { %800 = vmatpush.bf16.msrb.mxu3 %v1182_v11  ;;  %v1309_v11 = vld [vmem:[%s2314_s1 + $0x228] sm:$0xf]  ;;  %145 = vperm.xlu2 %1451, %v117_v6   ;;  %v1409_v9 = vld [vmem:[%s2314_s1 + $0x14c] sm:$0xf]  ;;  %v1039_v39 = vld [vmem:[%s2314_s1 + $0x18] sm:$0xf0] }
  0x3f   :  { %v1310_v17 = vor.u32 %v1439_v13, %v1309_v11  ;;  %v1293_v25 = vld [vmem:[%s2314_s1 + $0x208] sm:$0xf]  ;;  %v1405_v32 = vld [vmem:[%s2314_s1 + $0x12c] sm:$0xf]  ;;  %v1167_v41 = vld [vmem:[%s2314_s1 + $0x118] sm:$0xf0] }
  0x40   :  { %844 = vmatpush.bf16.msra.mxu0 %v1122_v48  ;;  %v1433_v34 = vld [vmem:[%s2314_s1 + $0x20c] sm:$0xf]  ;;  %v1186_v36 = vor.u32 %v1405_v32, %v1183_v33 }
  0x41   :  { %777 = vmatpush.bf16.msrb.mxu1 %v1038_v24  ;;  %822 = vmatpush.bf16.msra.mxu2 %v1342_v38  ;;  %v1199_v24 = vld [vmem:[%s2314_s1 + $0x158] sm:$0xf0]  ;;  %v1369_v37 = vld [vmem:[%s2314_s1 + $0xc] sm:$0xf]  ;;  %v1298_v38 = vor.u32 %v1433_v34, %v1295_v35 }
  0x42   :  { %801 = vmatpush.bf16.msrb.mxu3 %v1166_v28  ;;  %v1202_v27 = vor.u32 %v1409_v9, %v1199_v24  ;;  %v1294_v28 = vor.u32 %v1435_v26, %v1293_v25  ;;  %v1401_v40 = vld [vmem:[%s2314_s1 + $0x10c] sm:$0xf]  ;;  %v930_v26 = vld [vmem:[%s2317_s3 + $0x80] sm:$0xff] }
  0x43   :  { %644 = vmatmul.bf16.gmra.mxu0 %v1959_v42  ;;  %v1170_v44 = vor.u32 %v1401_v40, %v1167_v41 }
  0x44   :  { %668 = vmatmul.bf16.gmra.mxu1 %v1964_v45  ;;  %845 = vmatpush.bf16.msra.mxu0 %v1106_v63 }
  0x45   :  { %866 = vmatpush.bf16.msra.mxu1 %v1282_v30  ;;  %823 = vmatpush.bf16.msra.mxu2 %v1326_v59  ;;  %v1055_v30 = vld [vmem:[%s2314_s1 + $0x38] sm:$0xf0] }
  0x46   :  { %893 = vmatpush.bf16.msra.mxu3 %v624_v29  ;;  %v1373_v29 = vld [vmem:[%s2314_s1 + $0x2c] sm:$0xf] }
  0x47   :  { %716 = vmatmul.bf16.gmra.mxu3 %v1959_v42  ;;  %v1058_v31 = vor.u32 %v1373_v29, %v1055_v30 }
  0x48   :  { %846 = vmatpush.bf16.msra.mxu0 %v1090_v7 }
  0x49   :  { %867 = vmatpush.bf16.msra.mxu1 %v1266_v43  ;;  %824 = vmatpush.bf16.msra.mxu2 %v1310_v17  ;;  %v1042_v43 = vor.u32 %v1369_v37, %v1039_v39 }
  0x4a   :  { %894 = vmatpush.bf16.msra.mxu3 %v1346_v47 }
  0x4c   :  { %730 = vmatmul.bf16.vlgmr.msrb.gmra.mxu2 %v1724_v55  ;;  %847 = vmatpush.bf16.msra.mxu0 %v1074_v23 }
  0x4d   :  { %868 = vmatpush.bf16.msra.mxu1 %v1250_v54  ;;  %825 = vmatpush.bf16.msra.mxu2 %v1294_v28 }
  0x4e   :  { %895 = vmatpush.bf16.msra.mxu3 %v1330_v0 }
  0x50   :  { %848 = vmatpush.bf16.msra.mxu0 %v1058_v31 }
  0x51   :  { %869 = vmatpush.bf16.msra.mxu1 %v1234_v3  ;;  %v922_v3 = vld [vmem:[%s2317_s3 + $0x40] sm:$0xff] }
  0x52   :  { %896 = vmatpush.bf16.msra.mxu3 %v1314_v18 }
  0x53   :  { %1350 = vmatmul.msk.bf16.vlgmr.msrb.gmra.mxu0 %vm603_vm1, %v1651_v20 }
  0x54   :  { %778 = vmatmul.bf16.vlgmr.msrb.gmra.mxu1 %v1716_v51  ;;  %849 = vmatpush.bf16.msra.mxu0 %v1042_v43 }
  0x55   :  { %870 = vmatpush.bf16.msra.mxu1 %v1218_v12 }
  0x56   :  { %897 = vmatpush.bf16.msra.mxu3 %v1298_v38 }
  0x57   :  { %802 = vmatmul.bf16.vlgmr.msrb.gmra.mxu3 %v1724_v55 }
  0x59   :  { %871 = vmatpush.bf16.msra.mxu1 %v1202_v27 }
  0x5c   :  { %735 = vmatmul.bf16.gmra.mxu2 %v1852_v50 }
  0x5d   :  { %872 = vmatpush.bf16.msra.mxu1 %v1186_v36  ;;  %v934_v36 = vld [vmem:[%s2317_s3 + $0xa0] sm:$0xff] }
  0x61   :  { %873 = vmatpush.bf16.msra.mxu1 %v1170_v44 }
  0x63   :  { %1351 = vmatmul.msk.bf16.gmra.mxu0 %vm603_vm1, %v1789_v22 }
  0x64   :  { %783 = vmatmul.bf16.gmra.mxu1 %v1844_v46 }
  0x67   :  { %807 = vmatmul.bf16.gmra.mxu3 %v1852_v50 }
  0x6c   :  { %740 = vmatmul.bf16.gmra.mxu2 %v1964_v45 }
  0x73   :  { %1352 = vmatmul.msk.bf16.gmra.mxu0 %vm603_vm1, %v1905_v15 }
  0x74   :  { %788 = vmatmul.bf16.gmra.mxu1 %v1959_v42 }
  0x77   :  { %812 = vmatmul.bf16.gmra.mxu3 %v1964_v45 }
  0x7c   :  { %1353 = vmatmul.msk.bf16.vlgmr.msra.gmra.mxu2 %vm603_vm1, %v1651_v20 }
  0x83   :  { %850 = vmatmul.bf16.vlgmr.msra.gmra.mxu0 %v1716_v51 }
  0x84   :  { %874 = vmatmul.bf16.vlgmr.msra.gmra.mxu1 %v1724_v55 }
  0x87   :  { %1356 = vmatmul.msk.bf16.vlgmr.msra.gmra.mxu3 %vm603_vm1, %v1651_v20 }
  0x8a   :  { %v2106_v47 = vpop.permute.xlu0 %120 }
  0x8c   :  { %1354 = vmatmul.msk.bf16.gmra.mxu2 %vm603_vm1, %v1789_v22 }
  0x8d   :  { %v2143_v16 = vpop.permute.xlu2 %140 }
  0x91   :  { %v2125_v59 = vpop.permute.xlu1 %130 }
  0x93   :  { %855 = vmatmul.bf16.gmra.mxu0 %v1844_v46  ;;  %v914_v46 = vld [vmem:[%s2317_s3] sm:$0xff] }
  0x94   :  { %879 = vmatmul.bf16.gmra.mxu1 %v1852_v50  ;;  %v2116_v50 = vpop.permute.xlu0 %125 }
  0x97   :  { %1357 = vmatmul.msk.bf16.gmra.mxu3 %vm603_vm1, %v1789_v22 }
  0x98   :  { %v2152_v28 = vpop.permute.xlu2 %145 }
  0x99   :  { %v2134_v5 = vpop.permute.xlu1 %135 }
  0x9c   :  { %1355 = vmatmul.msk.bf16.gmra.mxu2 %vm603_vm1, %v1905_v15 }
  0x9f   :  { %v683_v51 = vpop.f32.mrf.mxu2 }
  0xa0   :  { %v635_v55 = vpop.f32.mrf.mxu0 }
  0xa1   :  { %v636_v48 = vadd.f32 %v635_v55, %v2106_v47  ;;  %v659_v20 = vpop.f32.mrf.mxu1 }
  0xa3   :  { %v660_v49 = vadd.f32 %v659_v20, %v636_v48  ;;  %860 = vmatmul.bf16.gmra.mxu0 %v1959_v42 }
  0xa4   :  { %884 = vmatmul.bf16.gmra.mxu1 %v1964_v45  ;;  %v918_v45 = vld [vmem:[%s2317_s3 + $0x20] sm:$0xff] }
  0xa5   :  { %v684_v22 = vadd.f32 %v683_v51, %v660_v49  ;;  %v915_v51 = vld [vmem:[%s2317_s3 + $0x8] sm:$0xff] }
  0xa7   :  { %1358 = vmatmul.msk.bf16.gmra.mxu3 %vm603_vm1, %v1905_v15  ;;  %v938_v52 = vadd.f32 %v914_v46, %v684_v22  ;;  %v685_v53 = vpop.f32.mrf.mxu2 }
  0xa8   :  { %v637_v56 = vpop.f32.mrf.mxu0 }
  0xa9   :  { %962 = vst [vmem:[%s2318_s4] sm:$0xff] %v938_v52  ;;  %v638_v42 = vadd.f32 %v637_v56, %v2116_v50  ;;  %v661_v57 = vpop.f32.mrf.mxu1 }
  0xaa   :  { %v707_v54 = vpop.f32.mrf.mxu3 }
  0xab   :  { %v662_v58 = vadd.f32 %v661_v57, %v638_v42  ;;  %v708_v38 = vadd.f32 %v707_v54, %v2106_v47  ;;  %v919_v54 = vld [vmem:[%s2317_s3 + $0x28] sm:$0xff] }
  0xad   :  { %v686_v15 = vadd.f32 %v685_v53, %v662_v58 }
  0xaf   :  { %v942_v60 = vadd.f32 %v918_v45, %v686_v15  ;;  %v688_v61 = vpop.f32.mrf.mxu2 }
  0xb0   :  { %v640_v63 = vpop.f32.mrf.mxu0 }
  0xb1   :  { %967 = vst [vmem:[%s2318_s4 + $0x20] sm:$0xff] %v942_v60  ;;  %v641_v0 = vadd.f32 %v640_v63, %v2125_v59  ;;  %v664_v1 = vpop.f32.mrf.mxu1 }
  0xb2   :  { %v709_v62 = vpop.f32.mrf.mxu3 }
  0xb3   :  { %v665_v2 = vadd.f32 %v664_v1, %v641_v0  ;;  %v710_v49 = vadd.f32 %v709_v62, %v2116_v50  ;;  %v923_v62 = vld [vmem:[%s2317_s3 + $0x48] sm:$0xff] }
  0xb5   :  { %v689_v4 = vadd.f32 %v688_v61, %v665_v2 }
  0xb7   :  { %v946_v6 = vadd.f32 %v922_v3, %v689_v4  ;;  %v690_v7 = vpop.f32.mrf.mxu2 }
  0xb8   :  { %v642_v10 = vpop.f32.mrf.mxu0 }
  0xb9   :  { %971 = vst [vmem:[%s2318_s4 + $0x40] sm:$0xff] %v946_v6  ;;  %v643_v11 = vadd.f32 %v642_v10, %v2134_v5  ;;  %v666_v12 = vpop.f32.mrf.mxu1 }
  0xba   :  { %v712_v8 = vpop.f32.mrf.mxu3 }
  0xbb   :  { %v667_v13 = vadd.f32 %v666_v12, %v643_v11  ;;  %v713_v58 = vadd.f32 %v712_v8, %v2125_v59  ;;  %v927_v8 = vld [vmem:[%s2317_s3 + $0x68] sm:$0xff] }
  0xbd   :  { %v691_v17 = vadd.f32 %v690_v7, %v667_v13 }
  0xbf   :  { %v950_v18 = vadd.f32 %v926_v14, %v691_v17  ;;  %v693_v19 = vpop.f32.mrf.mxu2 }
  0xc0   :  { %v645_v9 = vpop.f32.mrf.mxu0 }
  0xc1   :  { %975 = vst [vmem:[%s2318_s4 + $0x60] sm:$0xff] %v950_v18  ;;  %v646_v23 = vadd.f32 %v645_v9, %v2143_v16  ;;  %v669_v24 = vpop.f32.mrf.mxu1 }
  0xc2   :  { %v714_v21 = vpop.f32.mrf.mxu3 }
  0xc3   :  { %v670_v25 = vadd.f32 %v669_v24, %v646_v23  ;;  %v715_v2 = vadd.f32 %v714_v21, %v2134_v5  ;;  %v931_v21 = vld [vmem:[%s2317_s3 + $0x88] sm:$0xff] }
  0xc5   :  { %v694_v27 = vadd.f32 %v693_v19, %v670_v25 }
  0xc7   :  { %v954_v29 = vadd.f32 %v930_v26, %v694_v27  ;;  %v695_v30 = vpop.f32.mrf.mxu2 }
  0xc8   :  { %v647_v32 = vpop.f32.mrf.mxu0 }
  0xc9   :  { %979 = vst [vmem:[%s2318_s4 + $0x80] sm:$0xff] %v954_v29  ;;  %v648_v33 = vadd.f32 %v647_v32, %v2152_v28  ;;  %v671_v34 = vpop.f32.mrf.mxu1 }
  0xca   :  { %v717_v31 = vpop.f32.mrf.mxu3 }
  0xcb   :  { %v672_v35 = vadd.f32 %v671_v34, %v648_v33  ;;  %v718_v13 = vadd.f32 %v717_v31, %v2143_v16  ;;  %v935_v31 = vld [vmem:[%s2317_s3 + $0xa8] sm:$0xff] }
  0xcd   :  { %v696_v37 = vadd.f32 %v695_v30, %v672_v35 }
  0xcf   :  { %v958_v39 = vadd.f32 %v934_v36, %v696_v37  ;;  %v731_v40 = vpop.f32.mrf.mxu2 }
  0xd0   :  { %v732_v41 = vadd.f32 %v731_v40, %v708_v38  ;;  %v755_v44 = vpop.f32.mrf.mxu0  ;;  %v916_v38 = vld [vmem:[%s2317_s3 + $0x10] sm:$0xff] }
  0xd1   :  { %983 = vst [vmem:[%s2318_s4 + $0xa0] sm:$0xff] %v958_v39  ;;  %v779_v55 = vpop.f32.mrf.mxu1 }
  0xd2   :  { %v719_v43 = vpop.f32.mrf.mxu3  ;;  %v756_v48 = vadd.f32 %v755_v44, %v732_v41  ;;  %v780_v33 = vadd.f32 %v779_v55, %v2106_v47 }
  0xd3   :  { %v720_v25 = vadd.f32 %v719_v43, %v2152_v28 }
  0xd4   :  { %v939_v20 = vadd.f32 %v915_v51, %v756_v48 }
  0xd6   :  { %963 = vst [vmem:[%s2318_s4 + $0x8] sm:$0xff] %v939_v20 }
  0xd7   :  { %v733_v46 = vpop.f32.mrf.mxu2 }
  0xd8   :  { %v734_v22 = vadd.f32 %v733_v46, %v710_v49  ;;  %v757_v53 = vpop.f32.mrf.mxu0  ;;  %v920_v46 = vld [vmem:[%s2317_s3 + $0x30] sm:$0xff] }
  0xd9   :  { %v781_v56 = vpop.f32.mrf.mxu1 }
  0xda   :  { %v803_v52 = vpop.f32.mrf.mxu3  ;;  %v758_v42 = vadd.f32 %v757_v53, %v734_v22  ;;  %v782_v55 = vadd.f32 %v781_v56, %v2116_v50 }
  0xdb   :  { %v804_v36 = vadd.f32 %v803_v52, %v780_v33 }
  0xdc   :  { %v943_v57 = vadd.f32 %v919_v54, %v758_v42 }
  0xde   :  { %968 = vst [vmem:[%s2318_s4 + $0x28] sm:$0xff] %v943_v57 }
  0xdf   :  { %v736_v45 = vpop.f32.mrf.mxu2 }
  0xe0   :  { %v737_v15 = vadd.f32 %v736_v45, %v713_v58  ;;  %v760_v61 = vpop.f32.mrf.mxu0 }
  0xe1   :  { %v784_v63 = vpop.f32.mrf.mxu1 }
  0xe2   :  { %v805_v60 = vpop.f32.mrf.mxu3  ;;  %v761_v0 = vadd.f32 %v760_v61, %v737_v15  ;;  %v785_v42 = vadd.f32 %v784_v63, %v2125_v59 }
  0xe3   :  { %v806_v20 = vadd.f32 %v805_v60, %v782_v55 }
  0xe4   :  { %v947_v1 = vadd.f32 %v923_v62, %v761_v0  ;;  %v924_v62 = vld [vmem:[%s2317_s3 + $0x50] sm:$0xff] }
  0xe6   :  { %972 = vst [vmem:[%s2318_s4 + $0x48] sm:$0xff] %v947_v1 }
  0xe7   :  { %v738_v3 = vpop.f32.mrf.mxu2 }
  0xe8   :  { %v739_v4 = vadd.f32 %v738_v3, %v715_v2  ;;  %v762_v7 = vpop.f32.mrf.mxu0 }
  0xe9   :  { %v2189_v10 = vpop.f32.mrf.mxu1 }
  0xea   :  { %v808_v6 = vpop.f32.mrf.mxu3  ;;  %v763_v11 = vadd.f32 %v762_v7, %v739_v4 }
  0xeb   :  { %v809_v15 = vadd.f32 %v808_v6, %v785_v42  ;;  %v787_v6 = vadd.f32 %v2189_v10, %v2134_v5  ;;  %v925_v10 = vld [vmem:[%s2317_s3 + $0x58] sm:$0xff] }
  0xec   :  { %v951_v12 = vadd.f32 %v927_v8, %v763_v11 }
  0xee   :  { %976 = vst [vmem:[%s2318_s4 + $0x68] sm:$0xff] %v951_v12 }
  0xef   :  { %v741_v14 = vpop.f32.mrf.mxu2 }
  0xf0   :  { %v742_v17 = vadd.f32 %v741_v14, %v718_v13  ;;  %v765_v19 = vpop.f32.mrf.mxu0 }
  0xf1   :  { %v2200_v9 = vpop.f32.mrf.mxu1 }
  0xf2   :  { %v2195_v18 = vpop.f32.mrf.mxu3  ;;  %v766_v23 = vadd.f32 %v765_v19, %v742_v17 }
  0xf3   :  { %v811_v12 = vadd.f32 %v2195_v18, %v787_v6 }
  0xf4   :  { %v955_v24 = vadd.f32 %v931_v21, %v766_v23  ;;  %v790_v23 = vadd.f32 %v2200_v9, %v2143_v16  ;;  %v932_v9 = vld [vmem:[%s2317_s3 + $0x90] sm:$0xff] }
  0xf6   :  { %980 = vst [vmem:[%s2318_s4 + $0x88] sm:$0xff] %v955_v24 }
  0xf7   :  { %v743_v26 = vpop.f32.mrf.mxu2 }
  0xf8   :  { %v744_v27 = vadd.f32 %v743_v26, %v720_v25  ;;  %v767_v30 = vpop.f32.mrf.mxu0 }
  0xf9   :  { %v2211_v32 = vpop.f32.mrf.mxu1 }
  0xfa   :  { %v2206_v29 = vpop.f32.mrf.mxu3  ;;  %v768_v34 = vadd.f32 %v767_v30, %v744_v27 }
  0xfb   :  { %v814_v27 = vadd.f32 %v2206_v29, %v790_v23  ;;  %v792_v29 = vadd.f32 %v2211_v32, %v2152_v28 }
  0xfc   :  { %v959_v35 = vadd.f32 %v935_v31, %v768_v34 }
  0xfe   :  { %984 = vst [vmem:[%s2318_s4 + $0xa8] sm:$0xff] %v959_v35 }
  0xff   :  { %v827_v37 = vpop.f32.mrf.mxu2 }
 0x100   :  { %v828_v39 = vadd.f32 %v827_v37, %v804_v36  ;;  %v851_v41 = vpop.f32.mrf.mxu0 }
 0x101   :  { %v852_v43 = vadd.f32 %v851_v41, %v2106_v47  ;;  %v875_v44 = vpop.f32.mrf.mxu1  ;;  %v917_v47 = vld [vmem:[%s2317_s3 + $0x18] sm:$0xff] }
 0x102   :  { %v2220_v40 = vpop.f32.mrf.mxu3  ;;  %v940_v51 = vadd.f32 %v916_v38, %v828_v39 }
 0x103   :  { %v876_v48 = vadd.f32 %v875_v44, %v852_v43  ;;  %v816_v44 = vadd.f32 %v2220_v40, %v792_v29 }
 0x104   :  { %964 = vst [vmem:[%s2318_s4 + $0x10] sm:$0xff] %v940_v51 }
 0x107   :  { %v829_v49 = vpop.f32.mrf.mxu2 }
 0x108   :  { %v830_v22 = vadd.f32 %v829_v49, %v806_v20  ;;  %v853_v53 = vpop.f32.mrf.mxu0 }
 0x109   :  { %v877_v56 = vpop.f32.mrf.mxu1  ;;  %v854_v45 = vadd.f32 %v853_v53, %v2116_v50  ;;  %v921_v50 = vld [vmem:[%s2317_s3 + $0x38] sm:$0xff] }
 0x10a   :  { %v899_v52 = vpop.f32.mrf.mxu3  ;;  %v944_v57 = vadd.f32 %v920_v46, %v830_v22 }
 0x10b   :  { %v900_v54 = vadd.f32 %v899_v52, %v876_v48  ;;  %v878_v60 = vadd.f32 %v877_v56, %v854_v45  ;;  %v933_v48 = vld [vmem:[%s2317_s3 + $0x98] sm:$0xff] }
 0x10c   :  { %969 = vst [vmem:[%s2318_s4 + $0x30] sm:$0xff] %v944_v57 }
 0x10d   :  { %v941_v58 = vadd.f32 %v917_v47, %v900_v54  ;;  %v937_v54 = vld [vmem:[%s2317_s3 + $0xb8] sm:$0xff] }
 0x10f   :  { %966 = vst.msk [vmem:[%s2318_s4 + $0x18] sm:$0xff] %vm965_vm2, %v941_v58  ;;  %v832_v61 = vpop.f32.mrf.mxu2 }
 0x110   :  { %v833_v63 = vadd.f32 %v832_v61, %v809_v15  ;;  %v856_v1 = vpop.f32.mrf.mxu0 }
 0x111   :  { %v857_v3 = vadd.f32 %v856_v1, %v2125_v59  ;;  %v880_v4 = vpop.f32.mrf.mxu1  ;;  %v928_v59 = vld [vmem:[%s2317_s3 + $0x70] sm:$0xff] }
 0x112   :  { %v901_v0 = vpop.f32.mrf.mxu3  ;;  %v948_v7 = vadd.f32 %v924_v62, %v833_v63 }
 0x113   :  { %v902_v2 = vadd.f32 %v901_v0, %v878_v60  ;;  %v881_v11 = vadd.f32 %v880_v4, %v857_v3 }
 0x114   :  { %973 = vst [vmem:[%s2318_s4 + $0x50] sm:$0xff] %v948_v7 }
 0x115   :  { %v945_v8 = vadd.f32 %v921_v50, %v902_v2 }
 0x117   :  { %970 = vst.msk [vmem:[%s2318_s4 + $0x38] sm:$0xff] %vm965_vm2, %v945_v8  ;;  %v834_v13 = vpop.f32.mrf.mxu2 }
 0x118   :  { %v835_v14 = vadd.f32 %v834_v13, %v811_v12  ;;  %v858_v19 = vpop.f32.mrf.mxu0 }
 0x119   :  { %v882_v25 = vpop.f32.mrf.mxu1  ;;  %v859_v18 = vadd.f32 %v858_v19, %v2134_v5  ;;  %v929_v5 = vld [vmem:[%s2317_s3 + $0x78] sm:$0xff] }
 0x11a   :  { %v904_v17 = vpop.f32.mrf.mxu3  ;;  %v952_v24 = vadd.f32 %v928_v59, %v835_v14 }
 0x11b   :  { %v905_v21 = vadd.f32 %v904_v17, %v881_v11  ;;  %v883_v30 = vadd.f32 %v882_v25, %v859_v18 }
 0x11c   :  { %977 = vst [vmem:[%s2318_s4 + $0x70] sm:$0xff] %v952_v24 }
 0x11d   :  { %v949_v26 = vadd.f32 %v925_v10, %v905_v21 }
 0x11f   :  { %974 = vst.msk [vmem:[%s2318_s4 + $0x58] sm:$0xff] %vm965_vm2, %v949_v26  ;;  %v837_v31 = vpop.f32.mrf.mxu2 }
 0x120   :  { %v838_v33 = vadd.f32 %v837_v31, %v814_v27  ;;  %v861_v35 = vpop.f32.mrf.mxu0 }
 0x121   :  { %v862_v37 = vadd.f32 %v861_v35, %v2143_v16  ;;  %v885_v41 = vpop.f32.mrf.mxu1  ;;  %v936_v16 = vld [vmem:[%s2317_s3 + $0xb0] sm:$0xff] }
 0x122   :  { %v906_v34 = vpop.f32.mrf.mxu3  ;;  %v956_v38 = vadd.f32 %v932_v9, %v838_v33 }
 0x123   :  { %v907_v36 = vadd.f32 %v906_v34, %v883_v30  ;;  %v886_v43 = vadd.f32 %v885_v41, %v862_v37 }
 0x124   :  { %981 = vst [vmem:[%s2318_s4 + $0x90] sm:$0xff] %v956_v38 }
 0x125   :  { %v953_v39 = vadd.f32 %v929_v5, %v907_v36 }
 0x127   :  { %978 = vst.msk [vmem:[%s2318_s4 + $0x78] sm:$0xff] %vm965_vm2, %v953_v39  ;;  %v839_v51 = vpop.f32.mrf.mxu2 }
 0x128   :  { %v840_v55 = vadd.f32 %v839_v51, %v816_v44  ;;  %v863_v20 = vpop.f32.mrf.mxu0 }
 0x129   :  { %v864_v52 = vadd.f32 %v863_v20, %v2152_v28  ;;  %v887_v40 = vpop.f32.mrf.mxu1 }
 0x12a   :  { %v909_v32 = vpop.f32.mrf.mxu3  ;;  %v960_v46 = vadd.f32 %v936_v16, %v840_v55 }
 0x12b   :  { %v910_v49 = vadd.f32 %v909_v32, %v886_v43  ;;  %v888_v47 = vadd.f32 %v887_v40, %v864_v52 }
 0x12c   :  { %985 = vst [vmem:[%s2318_s4 + $0xb0] sm:$0xff] %v960_v46 }
 0x12d   :  { %v957_v22 = vadd.f32 %v933_v48, %v910_v49 }
 0x12f   :  { %982 = vst.msk [vmem:[%s2318_s4 + $0x98] sm:$0xff] %vm965_vm2, %v957_v22 }
 0x132   :  { %v911_v53 = vpop.f32.mrf.mxu3 }
 0x133   :  { %v912_v56 = vadd.f32 %v911_v53, %v888_v47 }
 0x135   :  { %v961_v42 = vadd.f32 %v937_v54, %v912_v56 }
 0x137   :  { %986 = vst.msk [vmem:[%s2318_s4 + $0xb8] sm:$0xff] %vm965_vm2, %v961_v42 }

// kernel: _lambda_.23
= control target key start
LH: loop header
LB: loop body
LE: loop exit
PB: predicated region body
PF: predicated region fallthrough
CT: control target
= control target key end

     0   :  { %vm2584_vm0 = vcmask 1043456   ;;  %vm2574_vm1 = vcmask 64512   ;;  %vm3676_vm2 = vcmask 556032   ;;  %s8701_s1 = inlined_call_operand.vmem [shape: bf16[1800,324], index: 1, kind: input, shape index: {}]   ;;  %s8702_s0 = inlined_call_operand.vmem [shape: bf16[48,1800], index: 0, kind: input, shape index: {}]   ;;  %s8703_s2 = inlined_call_operand.vmem [shape: f32[48,1], index: 2, kind: input, shape index: {}]   ;;  %s8704_s3 = inlined_call_operand.vmem [shape: f32[48,324], index: 3, kind: output, shape index: {}]  }
   0x1   :  { %v3963_v0 = vld [vmem:[%s8701_s1 + $0xa8] sm:$0xf]  ;;  %v5297_v1 = vld [vmem:[%s8701_s1 + $0xb0] sm:$0xf0]  ;;  %v3951_v5 = vld [vmem:[%s8701_s1 + $0x90] sm:$0xf] }
   0x2   :  { %v4155_v2 = vld [vmem:[%s8701_s1 + $0x228] sm:$0xf]  ;;  %v3964_v3 = vor.u32 %v5297_v1, %v3963_v0  ;;  %v5345_v4 = vld [vmem:[%s8701_s1 + $0x230] sm:$0xf0]  ;;  %v5294_v6 = vld [vmem:[%s8701_s1 + $0x98] sm:$0xf0] }
   0x3   :  { %v4156_v7 = vor.u32 %v5345_v4, %v4155_v2  ;;  %v4143_v8 = vld [vmem:[%s8701_s1 + $0x210] sm:$0xf]  ;;  %v5342_v9 = vld [vmem:[%s8701_s1 + $0x218] sm:$0xf0]  ;;  %v3952_v10 = vor.u32 %v5294_v6, %v3951_v5  ;;  %v3939_v12 = vld [vmem:[%s8701_s1 + $0x78] sm:$0xf] }
   0x4   :  { %5611 = vmatpush.bf16.msra.mxu1 %v3964_v3  ;;  %2594 = vmatpush.bf16.msra.mxu0 %v3964_v3  ;;  %v4144_v11 = vor.u32 %v5342_v9, %v4143_v8  ;;  %v5291_v13 = vld [vmem:[%s8701_s1 + $0x80] sm:$0xf0]  ;;  %v4131_v14 = vld [vmem:[%s8701_s1 + $0x1f8] sm:$0xf]  ;;  %v4251_v16 = vld [vmem:[%s8701_s1 + $0x2e8] sm:$0xf] }
   0x5   :  { %2642 = vmatpush.bf16.msra.mxu2 %v4156_v7  ;;  %v5339_v15 = vld [vmem:[%s8701_s1 + $0x200] sm:$0xf0]  ;;  %v3940_v17 = vor.u32 %v5291_v13, %v3939_v12  ;;  %v5369_v18 = vld [vmem:[%s8701_s1 + $0x2f0] sm:$0xf0]  ;;  %v3927_v20 = vld [vmem:[%s8701_s1 + $0x60] sm:$0xf] }
   0x6   :  { %v4132_v19 = vor.u32 %v5339_v15, %v4131_v14  ;;  %v5288_v21 = vld [vmem:[%s8701_s1 + $0x68] sm:$0xf0]  ;;  %v4252_v22 = vor.u32 %v5369_v18, %v4251_v16  ;;  %v4239_v23 = vld [vmem:[%s8701_s1 + $0x2d0] sm:$0xf]  ;;  %v4119_v24 = vld [vmem:[%s8701_s1 + $0x1e0] sm:$0xf] }
   0x7   :  { %v5336_v25 = vld [vmem:[%s8701_s1 + $0x1e8] sm:$0xf0]  ;;  %v5366_v26 = vld [vmem:[%s8701_s1 + $0x2d8] sm:$0xf0]  ;;  %v3928_v28 = vor.u32 %v5288_v21, %v3927_v20  ;;  %v4227_v29 = vld [vmem:[%s8701_s1 + $0x2b8] sm:$0xf] }
   0x8   :  { %5612 = vmatpush.bf16.msra.mxu1 %v3952_v10  ;;  %2595 = vmatpush.bf16.msra.mxu0 %v3952_v10  ;;  %v4240_v27 = vor.u32 %v5366_v26, %v4239_v23  ;;  %v5363_v30 = vld [vmem:[%s8701_s1 + $0x2c0] sm:$0xf0]  ;;  %v4120_v31 = vor.u32 %v5336_v25, %v4119_v24  ;;  %v3915_v32 = vld [vmem:[%s8701_s1 + $0x48] sm:$0xf]  ;;  %v5285_v33 = vld [vmem:[%s8701_s1 + $0x50] sm:$0xf0] }
   0x9   :  { %2643 = vmatpush.bf16.msra.mxu2 %v4144_v11  ;;  %2666 = vmatpush.bf16.msra.mxu3 %v4252_v22  ;;  %v4107_v34 = vld [vmem:[%s8701_s1 + $0x1c8] sm:$0xf]  ;;  %v5333_v35 = vld [vmem:[%s8701_s1 + $0x1d0] sm:$0xf0]  ;;  %v4228_v36 = vor.u32 %v5363_v30, %v4227_v29  ;;  %v3916_v37 = vor.u32 %v5285_v33, %v3915_v32  ;;  %v4215_v38 = vld [vmem:[%s8701_s1 + $0x2a0] sm:$0xf] }
   0xa   :  { %v5360_v39 = vld [vmem:[%s8701_s1 + $0x2a8] sm:$0xf0]  ;;  %v4108_v40 = vor.u32 %v5333_v35, %v4107_v34  ;;  %v3903_v41 = vld [vmem:[%s8701_s1 + $0x30] sm:$0xf]  ;;  %v5282_v42 = vld [vmem:[%s8701_s1 + $0x38] sm:$0xf0] }
   0xb   :  { %v4095_v43 = vld [vmem:[%s8701_s1 + $0x1b0] sm:$0xf]  ;;  %v5330_v44 = vld [vmem:[%s8701_s1 + $0x1b8] sm:$0xf0]  ;;  %v4216_v45 = vor.u32 %v5360_v39, %v4215_v38  ;;  %v3904_v46 = vor.u32 %v5282_v42, %v3903_v41  ;;  %v4203_v47 = vld [vmem:[%s8701_s1 + $0x288] sm:$0xf] }
   0xc   :  { %5613 = vmatpush.bf16.msra.mxu1 %v3940_v17  ;;  %2596 = vmatpush.bf16.msra.mxu0 %v3940_v17  ;;  %v5357_v48 = vld [vmem:[%s8701_s1 + $0x290] sm:$0xf0]  ;;  %v4096_v49 = vor.u32 %v5330_v44, %v4095_v43  ;;  %v3891_v50 = vld [vmem:[%s8701_s1 + $0x18] sm:$0xf]  ;;  %v5279_v51 = vld [vmem:[%s8701_s1 + $0x20] sm:$0xf0] }
   0xd   :  { %2644 = vmatpush.bf16.msra.mxu2 %v4132_v19  ;;  %2667 = vmatpush.bf16.msra.mxu3 %v4240_v27  ;;  %v4083_v52 = vld [vmem:[%s8701_s1 + $0x198] sm:$0xf]  ;;  %v5327_v53 = vld [vmem:[%s8701_s1 + $0x1a0] sm:$0xf0]  ;;  %v3879_v54 = vld [vmem:[%s8701_s1] sm:$0xf]  ;;  %v4204_v55 = vor.u32 %v5357_v48, %v4203_v47  ;;  %v3892_v56 = vor.u32 %v5279_v51, %v3891_v50 }
   0xe   :  { %v5276_v57 = vld [vmem:[%s8701_s1 + $0x8] sm:$0xf0]  ;;  %v4191_v58 = vld [vmem:[%s8701_s1 + $0x270] sm:$0xf]  ;;  %v5354_v59 = vld [vmem:[%s8701_s1 + $0x278] sm:$0xf0]  ;;  %v4084_v60 = vor.u32 %v5327_v53, %v4083_v52 }
   0xf   :  { %v4059_v61 = vld [vmem:[%s8701_s1 + $0x168] sm:$0xf]  ;;  %v5321_v62 = vld [vmem:[%s8701_s1 + $0x170] sm:$0xf0]  ;;  %v4071_v63 = vld [vmem:[%s8701_s1 + $0x180] sm:$0xf]  ;;  %v4192_v6 = vor.u32 %v5354_v59, %v4191_v58  ;;  %v3880_v9 = vor.u32 %v5276_v57, %v3879_v54 }
  0x10   :  { %5614 = vmatpush.bf16.msra.mxu1 %v3928_v28  ;;  %2597 = vmatpush.bf16.msra.mxu0 %v3928_v28  ;;  %v5324_v0 = vld [vmem:[%s8701_s1 + $0x188] sm:$0xf0]  ;;  %v3699_v1 = vld [vmem:[%s8702_s0] sm:$0xf]  ;;  %v4347_v2 = vld [vmem:[%s8701_s1 + $0x3a8] sm:$0xf]  ;;  %v4060_v13 = vor.u32 %v5321_v62, %v4059_v61 }
  0x11   :  { %2645 = vmatpush.bf16.msra.mxu2 %v4120_v31  ;;  %2668 = vmatpush.bf16.msra.mxu3 %v4228_v36  ;;  %v3707_v3 = vld [vmem:[%s8702_s0 + $0x8] sm:$0xf]  ;;  %v5238_v4 = vld [vmem:[%s8702_s0 + $0x40] sm:$0xf0]  ;;  %v5393_v5 = vld [vmem:[%s8701_s1 + $0x3b0] sm:$0xf0]  ;;  %v4072_v14 = vor.u32 %v5324_v0, %v4071_v63 }
  0x12   :  { %v4539_v7 = vld [vmem:[%s8701_s1 + $0x528] sm:$0xf]  ;;  %v5441_v8 = vld [vmem:[%s8701_s1 + $0x530] sm:$0xf0]  ;;  %v5237_v10 = vld [vmem:[%s8702_s0 + $0x38] sm:$0xf0]  ;;  %v4348_v20 = vor.u32 %v5393_v5, %v4347_v2  ;;  %v5852_v29 = vor.u32 %v5238_v4, %v3707_v3 }
  0x13   :  { %v3819_v11 = vld [vmem:[%s8702_s0 + $0xf0] sm:$0xf]  ;;  %v5267_v12 = vld [vmem:[%s8702_s0 + $0x128] sm:$0xf0]  ;;  %v4179_v15 = vld [vmem:[%s8701_s1 + $0x258] sm:$0xf]  ;;  %v4540_v22 = vor.u32 %v5441_v8, %v4539_v7  ;;  %v5839_v24 = vor.u32 %v5237_v10, %v3699_v1 }
  0x14   :  { %5615 = vmatpush.bf16.msra.mxu1 %v3916_v37  ;;  %2598 = vmatpush.bf16.msra.mxu0 %v3916_v37  ;;  %v5351_v16 = vld [vmem:[%s8701_s1 + $0x260] sm:$0xf0]  ;;  %v4047_v18 = vld [vmem:[%s8701_s1 + $0x150] sm:$0xf]  ;;  %v5318_v19 = vld [vmem:[%s8701_s1 + $0x158] sm:$0xf0]  ;;  %v5841_v25 = vor.u32 %v5267_v12, %v3819_v11 }
  0x15   :  { %2646 = vmatpush.bf16.msra.mxu2 %v4108_v40  ;;  %2669 = vmatpush.bf16.msra.mxu3 %v4216_v45  ;;  %v513_v17 = vld [vmem:[%s8703_s2] sm:$0xff]  ;;  %v4335_v21 = vld [vmem:[%s8701_s1 + $0x390] sm:$0xf]  ;;  %v5632_v23 = vmov 0   ;;  %8744 = vst [vmem:[#allocation2_spill] sm:$0xff] %v5839_v24  ;;  %v4180_v31 = vor.u32 %v5351_v16, %v4179_v15  ;;  %v4048_v32 = vor.u32 %v5318_v19, %v4047_v18  ;;  %v514_v47 = vld [vmem:[%s8703_s2 + $0x8] sm:$0xff] }
  0x16   :  { %5628 = vset.pattern.permute.xlu0 %v5632_v23  ;;  %5629 = vset.pattern.permute.xlu1 %v5632_v23  ;;  %8745 = vst [vmem:[#allocation3_spill] sm:$0xff] %v5841_v25  ;;  %v5390_v26 = vld [vmem:[%s8701_s1 + $0x398] sm:$0xf0]  ;;  %v4527_v27 = vld [vmem:[%s8701_s1 + $0x510] sm:$0xf]  ;;  %v517_v7 = vld [vmem:[%s8703_s2 + $0x20] sm:$0xff] }
  0x17   :  { %v5438_v28 = vld [vmem:[%s8701_s1 + $0x518] sm:$0xf0]  ;;  %521 = vperm.xlu0 %5628, %v513_v17   ;;  %v4035_v30 = vld [vmem:[%s8701_s1 + $0x138] sm:$0xf]  ;;  %v5315_v33 = vld [vmem:[%s8701_s1 + $0x140] sm:$0xf0]  ;;  %v4336_v36 = vor.u32 %v5390_v26, %v4335_v21  ;;  %5630 = vset.pattern.permute.xlu2 %v5632_v23 }
  0x18   :  { %5616 = vmatpush.bf16.msra.mxu1 %v3904_v46  ;;  %2599 = vmatpush.bf16.msra.mxu0 %v3904_v46  ;;  %v4167_v34 = vld [vmem:[%s8701_s1 + $0x240] sm:$0xf]  ;;  %v5348_v35 = vld [vmem:[%s8701_s1 + $0x248] sm:$0xf0]  ;;  %v4323_v37 = vld [vmem:[%s8701_s1 + $0x378] sm:$0xf]  ;;  %v4528_v38 = vor.u32 %v5438_v28, %v4527_v27  ;;  %v4036_v48 = vor.u32 %v5315_v33, %v4035_v30 }
  0x19   :  { %2647 = vmatpush.bf16.msra.mxu2 %v4096_v49  ;;  %2670 = vmatpush.bf16.msra.mxu3 %v4204_v55  ;;  %v4635_v39 = vld [vmem:[%s8701_s1 + $0x5e8] sm:$0xf]  ;;  %v5465_v40 = vld [vmem:[%s8701_s1 + $0x5f0] sm:$0xf0]  ;;  %v5387_v41 = vld [vmem:[%s8701_s1 + $0x380] sm:$0xf0]  ;;  %v4168_v44 = vor.u32 %v5348_v35, %v4167_v34 }
  0x1a   :  { %v4515_v42 = vld [vmem:[%s8701_s1 + $0x4f8] sm:$0xf]  ;;  %v5435_v43 = vld [vmem:[%s8701_s1 + $0x500] sm:$0xf0]  ;;  %v5231_v45 = vld [vmem:[%s8702_s0 + $0xc] sm:$0xf]  ;;  %v4636_v51 = vor.u32 %v5465_v40, %v4635_v39  ;;  %v4324_v52 = vor.u32 %v5387_v41, %v4323_v37  ;;  %541 = vperm.xlu2 %5630, %v517_v7  }
  0x1b   :  { %v3709_v46 = vld [vmem:[%s8702_s0 + $0x44] sm:$0xf0]  ;;  %v4023_v49 = vld [vmem:[%s8701_s1 + $0x120] sm:$0xf]  ;;  %v5312_v50 = vld [vmem:[%s8701_s1 + $0x128] sm:$0xf0]  ;;  %v4516_v54 = vor.u32 %v5435_v43, %v4515_v42 }
  0x1c   :  { %5617 = vmatpush.bf16.msra.mxu1 %v3892_v56  ;;  %2600 = vmatpush.bf16.msra.mxu0 %v3892_v56  ;;  %v4311_v53 = vld [vmem:[%s8701_s1 + $0x360] sm:$0xf]  ;;  %v4623_v55 = vld [vmem:[%s8701_s1 + $0x5d0] sm:$0xf]  ;;  %v5462_v56 = vld [vmem:[%s8701_s1 + $0x5d8] sm:$0xf0]  ;;  %v5914_v58 = vor.u32 %v5231_v45, %v3709_v46  ;;  %v4024_v62 = vor.u32 %v5312_v50, %v4023_v49 }
  0x1d   :  { %2648 = vmatpush.bf16.msra.mxu2 %v4084_v60  ;;  %2671 = vmatpush.bf16.msra.mxu3 %v4192_v6  ;;  %v5384_v57 = vld [vmem:[%s8701_s1 + $0x368] sm:$0xf0]  ;;  %v4503_v59 = vld [vmem:[%s8701_s1 + $0x4e0] sm:$0xf]  ;;  %v4011_v61 = vld [vmem:[%s8701_s1 + $0x108] sm:$0xf]  ;;  %v4624_v1 = vor.u32 %v5462_v56, %v4623_v55 }
  0x1e   :  { %8746 = vst [vmem:[#allocation4_spill] sm:$0xff] %v5914_v58  ;;  %v5432_v60 = vld [vmem:[%s8701_s1 + $0x4e8] sm:$0xf0]  ;;  %v5309_v63 = vld [vmem:[%s8701_s1 + $0x110] sm:$0xf0]  ;;  %v4312_v3 = vor.u32 %v5384_v57, %v4311_v53 }
  0x1f   :  { %526 = vperm.xlu0 %5628, %v514_v47   ;;  %v4299_v0 = vld [vmem:[%s8701_s1 + $0x348] sm:$0xf]  ;;  %v515_v2 = vld [vmem:[%s8703_s2 + $0x10] sm:$0xff]  ;;  %v4504_v4 = vor.u32 %v5432_v60, %v4503_v59  ;;  %v4611_v5 = vld [vmem:[%s8701_s1 + $0x5b8] sm:$0xf] }
  0x20   :  { %5618 = vmatpush.bf16.msra.mxu1 %v3880_v9  ;;  %2601 = vmatpush.bf16.msra.mxu0 %v3880_v9  ;;  %v5459_v6 = vld [vmem:[%s8701_s1 + $0x5c0] sm:$0xf0]  ;;  %v5381_v8 = vld [vmem:[%s8701_s1 + $0x350] sm:$0xf0]  ;;  %v4491_v9 = vld [vmem:[%s8701_s1 + $0x4c8] sm:$0xf] }
  0x21   :  { %2649 = vmatpush.bf16.msra.mxu2 %v4072_v14  ;;  %2672 = vmatpush.bf16.msra.mxu3 %v4180_v31  ;;  %v5429_v10 = vld [vmem:[%s8701_s1 + $0x4d0] sm:$0xf0]  ;;  %v3759_v11 = vld [vmem:[%s8702_s0 + $0x78] sm:$0xf]  ;;  %v3767_v14 = vld [vmem:[%s8702_s0 + $0x80] sm:$0xf]  ;;  %v4612_v16 = vor.u32 %v5459_v6, %v4611_v5  ;;  %v4300_v19 = vor.u32 %v5381_v8, %v4299_v0 }
  0x22   :  { %531 = vperm.xlu1 %5629, %v515_v2   ;;  %v5252_v12 = vld [vmem:[%s8702_s0 + $0xb0] sm:$0xf0]  ;;  %v5253_v15 = vld [vmem:[%s8702_s0 + $0xb8] sm:$0xf0]  ;;  %v3999_v17 = vld [vmem:[%s8701_s1 + $0xf0] sm:$0xf]  ;;  %v4492_v21 = vor.u32 %v5429_v10, %v4491_v9 }
  0x23   :  { %2602 = vmatmul.bf16.vlgmr.msra.gmra.mxu0 %v5839_v24  ;;  %2612 = vmatmul.bf16.vlgmr.msra.gmra.mxu1 %v5841_v25  ;;  %v5306_v18 = vld [vmem:[%s8701_s1 + $0xf8] sm:$0xf0]  ;;  %v4479_v26 = vld [vmem:[%s8701_s1 + $0x4b0] sm:$0xf]  ;;  %v5985_v28 = vor.u32 %v5253_v15, %v3767_v14  ;;  %v4599_v30 = vld [vmem:[%s8701_s1 + $0x5a0] sm:$0xf] }
  0x24   :  { %2618 = vmatpush.bf16.msrb.mxu1 %v4060_v13  ;;  %2690 = vmatpush.bf16.msrb.mxu0 %v4348_v20  ;;  %v4012_v13 = vor.u32 %v5309_v63, %v4011_v61  ;;  %v4287_v20 = vld [vmem:[%s8701_s1 + $0x330] sm:$0xf]  ;;  %v5378_v23 = vld [vmem:[%s8701_s1 + $0x338] sm:$0xf0]  ;;  %v5456_v31 = vld [vmem:[%s8701_s1 + $0x5a8] sm:$0xf0]  ;;  %v4000_v33 = vor.u32 %v5306_v18, %v3999_v17 }
  0x25   :  { %2738 = vmatpush.bf16.msrb.mxu2 %v4540_v22  ;;  %2673 = vmatpush.bf16.msra.mxu3 %v4168_v44  ;;  %v5974_v22 = vor.u32 %v5252_v12, %v3759_v11  ;;  %v5426_v27 = vld [vmem:[%s8701_s1 + $0x4b8] sm:$0xf0]  ;;  %v3987_v34 = vld [vmem:[%s8701_s1 + $0xd8] sm:$0xf]  ;;  %v4600_v35 = vor.u32 %v5456_v31, %v4599_v30  ;;  %v5303_v37 = vld [vmem:[%s8701_s1 + $0xe0] sm:$0xf0] }
  0x26   :  { %2650 = vmatmul.bf16.vlgmr.msra.gmra.mxu2 %v5852_v29  ;;  %v4275_v39 = vld [vmem:[%s8701_s1 + $0x318] sm:$0xf]  ;;  %v5375_v40 = vld [vmem:[%s8701_s1 + $0x320] sm:$0xf0]  ;;  %v4480_v41 = vor.u32 %v5426_v27, %v4479_v26  ;;  %v3769_v45 = vld [vmem:[%s8702_s0 + $0xbc] sm:$0xf0] }
  0x27   :  { %8747 = vst [vmem:[#allocation5_spill] sm:$0xff] %v5974_v22  ;;  %v5246_v42 = vld [vmem:[%s8702_s0 + $0x84] sm:$0xf]  ;;  %v4467_v43 = vld [vmem:[%s8701_s1 + $0x498] sm:$0xf]  ;;  %v4276_v53 = vor.u32 %v5375_v40, %v4275_v39 }
  0x28   :  { %2619 = vmatpush.bf16.msrb.mxu1 %v4048_v32  ;;  %2691 = vmatpush.bf16.msrb.mxu0 %v4336_v36  ;;  %v516_v32 = vld [vmem:[%s8703_s2 + $0x18] sm:$0xff]  ;;  %v518_v36 = vld [vmem:[%s8703_s2 + $0x28] sm:$0xff]  ;;  %v5423_v44 = vld [vmem:[%s8701_s1 + $0x4a0] sm:$0xf0] }
  0x29   :  { %2739 = vmatpush.bf16.msrb.mxu2 %v4528_v38  ;;  %2762 = vmatpush.bf16.msrb.mxu3 %v4636_v51  ;;  %v4288_v38 = vor.u32 %v5378_v23, %v4287_v20  ;;  %v4587_v46 = vld [vmem:[%s8701_s1 + $0x588] sm:$0xf]  ;;  %v5453_v47 = vld [vmem:[%s8701_s1 + $0x590] sm:$0xf0]  ;;  %v3975_v49 = vld [vmem:[%s8701_s1 + $0xc0] sm:$0xf]  ;;  %v4468_v55 = vor.u32 %v5423_v44, %v4467_v43 }
  0x2a   :  { %2674 = vmatmul.bf16.vlgmr.msra.gmra.mxu3 %v5914_v58  ;;  %536 = vperm.xlu1 %5629, %v516_v32   ;;  %v5300_v50 = vld [vmem:[%s8701_s1 + $0xc8] sm:$0xf0]  ;;  %v4443_v51 = vld [vmem:[%s8701_s1 + $0x468] sm:$0xf]  ;;  %v4575_v56 = vld [vmem:[%s8701_s1 + $0x570] sm:$0xf] }
  0x2b   :  { %546 = vperm.xlu2 %5630, %v518_v36   ;;  %v5450_v57 = vld [vmem:[%s8701_s1 + $0x578] sm:$0xf0]  ;;  %v5230_v59 = vld [vmem:[%s8702_s0 + $0x4] sm:$0xf]  ;;  %v4263_v60 = vld [vmem:[%s8701_s1 + $0x300] sm:$0xf] }
  0x2c   :  { %2620 = vmatpush.bf16.msrb.mxu1 %v4036_v48  ;;  %2692 = vmatpush.bf16.msrb.mxu0 %v4324_v52  ;;  %v3988_v48 = vor.u32 %v5303_v37, %v3987_v34  ;;  %v4588_v52 = vor.u32 %v5453_v47, %v4587_v46  ;;  %v5372_v61 = vld [vmem:[%s8701_s1 + $0x308] sm:$0xf0]  ;;  %v4455_v63 = vld [vmem:[%s8701_s1 + $0x480] sm:$0xf]  ;;  %v5489_v2 = vld [vmem:[%s8701_s1 + $0x6b0] sm:$0xf0]  ;;  %v4576_v5 = vor.u32 %v5450_v57, %v4575_v56 }
  0x2d   :  { %2740 = vmatpush.bf16.msrb.mxu2 %v4516_v54  ;;  %2763 = vmatpush.bf16.msrb.mxu3 %v4624_v1  ;;  %v5417_v54 = vld [vmem:[%s8701_s1 + $0x470] sm:$0xf0]  ;;  %v5420_v0 = vld [vmem:[%s8701_s1 + $0x488] sm:$0xf0]  ;;  %v4731_v1 = vld [vmem:[%s8701_s1 + $0x6a8] sm:$0xf]  ;;  %v4264_v9 = vor.u32 %v5372_v61, %v4263_v60 }
  0x2e   :  { %v4923_v6 = vld [vmem:[%s8701_s1 + $0x828] sm:$0xf]  ;;  %v5537_v7 = vld [vmem:[%s8701_s1 + $0x830] sm:$0xf0]  ;;  %v4444_v8 = vor.u32 %v5417_v54, %v4443_v51  ;;  %v4563_v10 = vld [vmem:[%s8701_s1 + $0x558] sm:$0xf]  ;;  %v4456_v14 = vor.u32 %v5420_v0, %v4455_v63  ;;  %v4732_v15 = vor.u32 %v5489_v2, %v4731_v1 }
  0x2f   :  { %v5447_v11 = vld [vmem:[%s8701_s1 + $0x560] sm:$0xf0]  ;;  %v4431_v12 = vld [vmem:[%s8701_s1 + $0x450] sm:$0xf]  ;;  %v3827_v17 = vld [vmem:[%s8702_s0 + $0xf8] sm:$0xf]  ;;  %v4924_v20 = vor.u32 %v5537_v7, %v4923_v6 }
  0x30   :  { %2621 = vmatpush.bf16.msrb.mxu1 %v4024_v62  ;;  %2693 = vmatpush.bf16.msrb.mxu0 %v4312_v3  ;;  %v6058_v62 = vor.u32 %v5246_v42, %v3769_v45  ;;  %v3976_v3 = vor.u32 %v5300_v50, %v3975_v49  ;;  %v3715_v18 = vld [vmem:[%s8702_s0 + $0x10] sm:$0xf]  ;;  %v5486_v26 = vld [vmem:[%s8701_s1 + $0x698] sm:$0xf0]  ;;  %v4564_v27 = vor.u32 %v5447_v11, %v4563_v10  ;;  %v4419_v32 = vld [vmem:[%s8701_s1 + $0x438] sm:$0xf] }
  0x31   :  { %2741 = vmatpush.bf16.msrb.mxu2 %v4504_v4  ;;  %2764 = vmatpush.bf16.msrb.mxu3 %v4612_v16  ;;  %v3701_v4 = vld [vmem:[%s8702_s0 + $0x3c] sm:$0xf0]  ;;  %v4719_v23 = vld [vmem:[%s8701_s1 + $0x690] sm:$0xf]  ;;  %v5534_v37 = vld [vmem:[%s8701_s1 + $0x818] sm:$0xf0] }
  0x32   :  { %8748 = vst [vmem:[#allocation6_spill] sm:$0xff] %v6058_v62  ;;  %v6094_v16 = vor.u32 %v5230_v59, %v3701_v4  ;;  %v4911_v36 = vld [vmem:[%s8701_s1 + $0x810] sm:$0xf]  ;;  %v4707_v39 = vld [vmem:[%s8701_s1 + $0x678] sm:$0xf] }
  0x33   :  { %2607 = vmatmul.bf16.gmra.mxu0 %v5974_v22  ;;  %v5483_v40 = vld [vmem:[%s8701_s1 + $0x680] sm:$0xf0]  ;;  %v5444_v42 = vld [vmem:[%s8701_s1 + $0x548] sm:$0xf0]  ;;  %v4407_v45 = vld [vmem:[%s8701_s1 + $0x420] sm:$0xf] }
  0x34   :  { %2622 = vmatpush.bf16.msrb.mxu1 %v4012_v13  ;;  %2694 = vmatpush.bf16.msrb.mxu0 %v4300_v19  ;;  %v5414_v13 = vld [vmem:[%s8701_s1 + $0x458] sm:$0xf0]  ;;  %8749 = vst [vmem:[#allocation7_spill] sm:$0xff] %v6094_v16  ;;  %v5239_v19 = vld [vmem:[%s8702_s0 + $0x48] sm:$0xf0]  ;;  %v4708_v49 = vor.u32 %v5483_v40, %v4707_v39 }
  0x35   :  { %2742 = vmatpush.bf16.msrb.mxu2 %v4492_v21  ;;  %2765 = vmatpush.bf16.msrb.mxu3 %v4600_v35  ;;  %v5268_v21 = vld [vmem:[%s8702_s0 + $0x130] sm:$0xf0]  ;;  %v4432_v30 = vor.u32 %v5414_v13, %v4431_v12  ;;  %v6114_v31 = vor.u32 %v5239_v19, %v3715_v18  ;;  %v4720_v35 = vor.u32 %v5486_v26, %v4719_v23  ;;  %v5408_v46 = vld [vmem:[%s8701_s1 + $0x428] sm:$0xf0]  ;;  %v5261_v47 = vld [vmem:[%s8702_s0 + $0xfc] sm:$0xf] }
  0x36   :  { %2655 = vmatmul.bf16.gmra.mxu2 %v5985_v28  ;;  %v6123_v34 = vor.u32 %v5268_v21, %v3827_v17  ;;  %v4695_v50 = vld [vmem:[%s8701_s1 + $0x660] sm:$0xf]  ;;  %v5480_v51 = vld [vmem:[%s8701_s1 + $0x668] sm:$0xf0]  ;;  %v4408_v54 = vor.u32 %v5408_v46, %v4407_v45  ;;  %v5405_v59 = vld [vmem:[%s8701_s1 + $0x410] sm:$0xf0] }
  0x37   :  { %v4887_v60 = vld [vmem:[%s8701_s1 + $0x7e0] sm:$0xf]  ;;  %v5528_v61 = vld [vmem:[%s8701_s1 + $0x7e8] sm:$0xf0]  ;;  %v5245_v63 = vld [vmem:[%s8702_s0 + $0x7c] sm:$0xf]  ;;  %v4696_v0 = vor.u32 %v5480_v51, %v4695_v50 }
  0x38   :  { %2623 = vmatpush.bf16.msrb.mxu1 %v4000_v33  ;;  %2695 = vmatpush.bf16.msrb.mxu0 %v4288_v38  ;;  %v5411_v33 = vld [vmem:[%s8701_s1 + $0x440] sm:$0xf0]  ;;  %v4551_v38 = vld [vmem:[%s8701_s1 + $0x540] sm:$0xf]  ;;  %v5019_v1 = vld [vmem:[%s8701_s1 + $0x8e8] sm:$0xf]  ;;  %v4888_v6 = vor.u32 %v5528_v61, %v4887_v60 }
  0x39   :  { %2743 = vmatpush.bf16.msrb.mxu2 %v4480_v41  ;;  %2766 = vmatpush.bf16.msrb.mxu3 %v4588_v52  ;;  %v4912_v41 = vor.u32 %v5534_v37, %v4911_v36  ;;  %v4420_v43 = vor.u32 %v5411_v33, %v4419_v32  ;;  %v4552_v44 = vor.u32 %v5444_v42, %v4551_v38  ;;  %v4899_v52 = vld [vmem:[%s8701_s1 + $0x7f8] sm:$0xf]  ;;  %v5561_v2 = vld [vmem:[%s8701_s1 + $0x8f0] sm:$0xf0]  ;;  %v4683_v4 = vld [vmem:[%s8701_s1 + $0x648] sm:$0xf] }
  0x3a   :  { %2679 = vmatmul.bf16.gmra.mxu3 %v6058_v62  ;;  %v5020_v7 = vor.u32 %v5561_v2, %v5019_v1  ;;  %v5402_v10 = vld [vmem:[%s8701_s1 + $0x3f8] sm:$0xf0]  ;;  %v3723_v12 = vld [vmem:[%s8702_s0 + $0x18] sm:$0xf]  ;;  %v3775_v13 = vld [vmem:[%s8702_s0 + $0x88] sm:$0xf] }
  0x3b   :  { %v5240_v17 = vld [vmem:[%s8702_s0 + $0x50] sm:$0xf0]  ;;  %v4671_v18 = vld [vmem:[%s8701_s1 + $0x630] sm:$0xf]  ;;  %v5474_v19 = vld [vmem:[%s8701_s1 + $0x638] sm:$0xf0] }
  0x3c   :  { %2624 = vmatpush.bf16.msrb.mxu1 %v3988_v48  ;;  %2696 = vmatpush.bf16.msrb.mxu0 %v4276_v53  ;;  %v3829_v48 = vld [vmem:[%s8702_s0 + $0x134] sm:$0xf0]  ;;  %v5531_v53 = vld [vmem:[%s8701_s1 + $0x800] sm:$0xf0]  ;;  %v5233_v36 = vld [vmem:[%s8702_s0 + $0x1c] sm:$0xf] }
  0x3d   :  { %2744 = vmatpush.bf16.msrb.mxu2 %v4468_v55  ;;  %2767 = vmatpush.bf16.msrb.mxu3 %v4576_v5  ;;  %v4395_v55 = vld [vmem:[%s8701_s1 + $0x408] sm:$0xf]  ;;  %v4900_v56 = vor.u32 %v5531_v53, %v4899_v52  ;;  %v6172_v57 = vor.u32 %v5261_v47, %v3829_v48  ;;  %v5477_v5 = vld [vmem:[%s8701_s1 + $0x650] sm:$0xf0]  ;;  %v4371_v23 = vld [vmem:[%s8701_s1 + $0x3d8] sm:$0xf] }
  0x3e   :  { %v5399_v26 = vld [vmem:[%s8701_s1 + $0x3e0] sm:$0xf0]  ;;  %v4659_v32 = vld [vmem:[%s8701_s1 + $0x618] sm:$0xf]  ;;  %v4875_v38 = vld [vmem:[%s8701_s1 + $0x7c8] sm:$0xf] }
  0x3f   :  { %8750 = vst [vmem:[#allocation8_spill] sm:$0xff] %v6172_v57  ;;  %v5471_v33 = vld [vmem:[%s8701_s1 + $0x620] sm:$0xf0]  ;;  %v3725_v37 = vld [vmem:[%s8702_s0 + $0x54] sm:$0xf0] }
  0x40   :  { %2625 = vmatpush.bf16.msrb.mxu1 %v3976_v3  ;;  %2697 = vmatpush.bf16.msrb.mxu0 %v4264_v9  ;;  %v3761_v3 = vld [vmem:[%s8702_s0 + $0xb4] sm:$0xf0]  ;;  %v4383_v9 = vld [vmem:[%s8701_s1 + $0x3f0] sm:$0xf]  ;;  %v5525_v39 = vld [vmem:[%s8701_s1 + $0x7d0] sm:$0xf0] }
  0x41   :  { %2745 = vmatpush.bf16.msrb.mxu2 %v4456_v14  ;;  %2768 = vmatpush.bf16.msrb.mxu3 %v4564_v27  ;;  %v6208_v11 = vor.u32 %v5245_v63, %v3761_v3  ;;  %v5254_v14 = vld [vmem:[%s8702_s0 + $0xc0] sm:$0xf0]  ;;  %v6237_v27 = vor.u32 %v5240_v17, %v3723_v12  ;;  %v4359_v40 = vld [vmem:[%s8701_s1 + $0x3c0] sm:$0xf]  ;;  %v4827_v42 = vld [vmem:[%s8701_s1 + $0x768] sm:$0xf] }
  0x42   :  { %v6228_v21 = vor.u32 %v5254_v14, %v3775_v13  ;;  %v5513_v45 = vld [vmem:[%s8701_s1 + $0x770] sm:$0xf0]  ;;  %v5007_v46 = vld [vmem:[%s8701_s1 + $0x8d0] sm:$0xf]  ;;  %v5558_v47 = vld [vmem:[%s8701_s1 + $0x8d8] sm:$0xf0] }
  0x43   :  { %2626 = vmatmul.bf16.vlgmr.msrb.gmra.mxu1 %v6094_v16  ;;  %2698 = vmatmul.bf16.vlgmr.msrb.gmra.mxu0 %v6114_v31  ;;  %8751 = vst [vmem:[#allocation9_spill] sm:$0xff] %v6208_v11  ;;  %v4647_v48 = vld [vmem:[%s8701_s1 + $0x600] sm:$0xf]  ;;  %v5008_v50 = vor.u32 %v5558_v47, %v5007_v46  ;;  %v4863_v51 = vld [vmem:[%s8701_s1 + $0x7b0] sm:$0xf] }
  0x44   :  { %2714 = vmatpush.bf16.msra.mxu1 %v4444_v8  ;;  %2786 = vmatpush.bf16.msra.mxu0 %v4732_v15  ;;  %v4396_v8 = vor.u32 %v5405_v59, %v4395_v55  ;;  %v4684_v15 = vor.u32 %v5477_v5, %v4683_v4  ;;  %8752 = vst [vmem:[#allocation10_spill] sm:$0xff] %v6228_v21  ;;  %v5522_v53 = vld [vmem:[%s8701_s1 + $0x7b8] sm:$0xf0]  ;;  %v5555_v55 = vld [vmem:[%s8701_s1 + $0x8c0] sm:$0xf0] }
  0x45   :  { %2834 = vmatpush.bf16.msra.mxu2 %v4924_v20  ;;  %2769 = vmatpush.bf16.msrb.mxu3 %v4552_v44  ;;  %v4384_v20 = vor.u32 %v5402_v10, %v4383_v9  ;;  %v4660_v44 = vor.u32 %v5471_v33, %v4659_v32  ;;  %v4828_v59 = vor.u32 %v5513_v45, %v4827_v42  ;;  %v4851_v61 = vld [vmem:[%s8701_s1 + $0x798] sm:$0xf]  ;;  %v5510_v1 = vld [vmem:[%s8701_s1 + $0x758] sm:$0xf0]  ;;  %v5519_v3 = vld [vmem:[%s8701_s1 + $0x7a0] sm:$0xf0] }
  0x46   :  { %2660 = vmatmul.bf16.gmra.mxu2 %v6123_v34  ;;  %v4864_v60 = vor.u32 %v5522_v53, %v4863_v51  ;;  %v5260_v4 = vld [vmem:[%s8702_s0 + $0xf4] sm:$0xf]  ;;  %v3821_v5 = vld [vmem:[%s8702_s0 + $0x12c] sm:$0xf0]  ;;  %v5269_v10 = vld [vmem:[%s8702_s0 + $0x138] sm:$0xf0] }
  0x47   :  { %v6319_v9 = vor.u32 %v5260_v4, %v3821_v5  ;;  %v4803_v12 = vld [vmem:[%s8701_s1 + $0x738] sm:$0xf]  ;;  %v5507_v13 = vld [vmem:[%s8701_s1 + $0x740] sm:$0xf0]  ;;  %v3783_v14 = vld [vmem:[%s8702_s0 + $0x90] sm:$0xf] }
  0x48   :  { %2715 = vmatpush.bf16.msra.mxu1 %v4432_v30  ;;  %2787 = vmatpush.bf16.msra.mxu0 %v4720_v35  ;;  %v4672_v30 = vor.u32 %v5474_v19, %v4671_v18  ;;  %v4372_v35 = vor.u32 %v5399_v26, %v4371_v23  ;;  %v4839_v17 = vld [vmem:[%s8701_s1 + $0x780] sm:$0xf]  ;;  %v5516_v18 = vld [vmem:[%s8701_s1 + $0x788] sm:$0xf0]  ;;  %v4779_v45 = vld [vmem:[%s8701_s1 + $0x708] sm:$0xf] }
  0x49   :  { %2835 = vmatpush.bf16.msra.mxu2 %v4912_v41  ;;  %2858 = vmatpush.bf16.msra.mxu3 %v5020_v7  ;;  %v5396_v41 = vld [vmem:[%s8701_s1 + $0x3c8] sm:$0xf0]  ;;  %v3835_v7 = vld [vmem:[%s8702_s0 + $0x100] sm:$0xf]  ;;  %8754 = vst [vmem:[#allocation12_spill] sm:$0xff] %v6319_v9  ;;  %v4840_v23 = vor.u32 %v5516_v18, %v4839_v17 }
  0x4a   :  { %2684 = vmatmul.bf16.gmra.mxu3 %v6172_v57  ;;  %v4360_v52 = vor.u32 %v5396_v41, %v4359_v40  ;;  %v6342_v19 = vor.u32 %v5269_v10, %v3835_v7  ;;  %v5552_v32 = vld [vmem:[%s8701_s1 + $0x8a8] sm:$0xf0]  ;;  %v4791_v33 = vld [vmem:[%s8701_s1 + $0x720] sm:$0xf]  ;;  %v4971_v40 = vld [vmem:[%s8701_s1 + $0x888] sm:$0xf] }
  0x4b   :  { %v5549_v41 = vld [vmem:[%s8701_s1 + $0x890] sm:$0xf0]  ;;  %v5582_v53 = vld [vmem:[%s8701_s1 + $0x998] sm:$0xf0]  ;;  %v3843_v10 = vld [vmem:[%s8702_s0 + $0x108] sm:$0xf] }
  0x4c   :  { %2716 = vmatpush.bf16.msra.mxu1 %v4420_v43  ;;  %2788 = vmatpush.bf16.msra.mxu0 %v4708_v49  ;;  %v4876_v43 = vor.u32 %v5525_v39, %v4875_v38  ;;  %v5468_v49 = vld [vmem:[%s8701_s1 + $0x608] sm:$0xf0]  ;;  %8755 = vst [vmem:[#allocation13_spill] sm:$0xff] %v6342_v19  ;;  %v3785_v39 = vld [vmem:[%s8702_s0 + $0xcc] sm:$0xf0]  ;;  %v4972_v42 = vor.u32 %v5549_v41, %v4971_v40 }
  0x4d   :  { %2836 = vmatpush.bf16.msra.mxu2 %v4900_v56  ;;  %v6295_v56 = vor.u32 %v5233_v36, %v3725_v37  ;;  %2859 = vmatpush.bf16.msra.mxu3 %v5008_v50  ;;  %v4648_v63 = vor.u32 %v5468_v49, %v4647_v48  ;;  %v5504_v36 = vld [vmem:[%s8701_s1 + $0x728] sm:$0xf0]  ;;  %v5248_v37 = vld [vmem:[%s8702_s0 + $0x94] sm:$0xf]  ;;  %v4959_v48 = vld [vmem:[%s8701_s1 + $0x870] sm:$0xf] }
  0x4e   :  { %v4792_v38 = vor.u32 %v5504_v36, %v4791_v33  ;;  %v5501_v47 = vld [vmem:[%s8701_s1 + $0x710] sm:$0xf0]  ;;  %v5546_v49 = vld [vmem:[%s8701_s1 + $0x878] sm:$0xf0]  ;;  %v6391_v50 = vor.u32 %v5248_v37, %v3785_v39  ;;  %v4935_v17 = vld [vmem:[%s8701_s1 + $0x840] sm:$0xf] }
  0x4f   :  { %8753 = vst [vmem:[#allocation11_spill] sm:$0xff] %v6295_v56  ;;  %v4780_v51 = vor.u32 %v5501_v47, %v4779_v45  ;;  %v5241_v7 = vld [vmem:[%s8702_s0 + $0x58] sm:$0xf0]  ;;  %v5540_v18 = vld [vmem:[%s8701_s1 + $0x848] sm:$0xf0] }
  0x50   :  { %2717 = vmatpush.bf16.msra.mxu1 %v4408_v54  ;;  %2789 = vmatpush.bf16.msra.mxu0 %v4696_v0  ;;  %v4995_v54 = vld [vmem:[%s8701_s1 + $0x8b8] sm:$0xf]  ;;  %v4815_v0 = vld [vmem:[%s8701_s1 + $0x750] sm:$0xf]  ;;  %8756 = vst [vmem:[#allocation14_spill] sm:$0xff] %v6391_v50 }
  0x51   :  { %2837 = vmatpush.bf16.msra.mxu2 %v4888_v6  ;;  %v4996_v2 = vor.u32 %v5555_v55, %v4995_v54  ;;  %v4852_v6 = vor.u32 %v5519_v3, %v4851_v61  ;;  %v5232_v54 = vld [vmem:[%s8702_s0 + $0x14] sm:$0xf]  ;;  %v4960_v55 = vor.u32 %v5546_v49, %v4959_v48  ;;  %v5498_v61 = vld [vmem:[%s8701_s1 + $0x6f8] sm:$0xf0]  ;;  %v5579_v3 = vld [vmem:[%s8701_s1 + $0x980] sm:$0xf0] }
  0x52   :  { %v5495_v33 = vld [vmem:[%s8701_s1 + $0x6e0] sm:$0xf0]  ;;  %v5263_v37 = vld [vmem:[%s8702_s0 + $0x10c] sm:$0xf]  ;;  %v5067_v39 = vld [vmem:[%s8701_s1 + $0x948] sm:$0xf] }
  0x53   :  { %2631 = vmatmul.bf16.gmra.mxu1 %v6208_v11  ;;  %2703 = vmatmul.bf16.gmra.mxu0 %v6228_v21  ;;  %v5573_v40 = vld [vmem:[%s8701_s1 + $0x950] sm:$0xf0]  ;;  %v5296_v47 = vld [vmem:[%s8701_s1 + $0xac] sm:$0xf]  ;;  %v3965_v48 = vld [vmem:[%s8701_s1 + $0xb4] sm:$0xf0] }
  0x54   :  { %2718 = vmatpush.bf16.msra.mxu1 %v4396_v8  ;;  %2790 = vmatpush.bf16.msra.mxu0 %v4684_v15  ;;  %v4816_v8 = vor.u32 %v5510_v1, %v4815_v0  ;;  %v5255_v15 = vld [vmem:[%s8702_s0 + $0xc8] sm:$0xf0]  ;;  %v4947_v0 = vld [vmem:[%s8701_s1 + $0x858] sm:$0xf]  ;;  %v5543_v1 = vld [vmem:[%s8701_s1 + $0x860] sm:$0xf0]  ;;  %v5068_v41 = vor.u32 %v5573_v40, %v5067_v39 }
  0x55   :  { %2838 = vmatpush.bf16.msra.mxu2 %v4876_v43  ;;  %2860 = vmatpush.bf16.msra.mxu3 %v4996_v2  ;;  %v6345_v26 = vor.u32 %v5255_v15, %v3783_v14  ;;  %v5115_v43 = vld [vmem:[%s8701_s1 + $0x9a8] sm:$0xf]  ;;  %v5091_v2 = vld [vmem:[%s8701_s1 + $0x978] sm:$0xf] }
  0x56   :  { %2746 = vmatmul.bf16.vlgmr.msrb.gmra.mxu2 %v6237_v27  ;;  %v5187_v40 = vld [vmem:[%s8701_s1 + $0xa38] sm:$0xf] }
  0x58   :  { %2719 = vmatpush.bf16.msra.mxu1 %v4384_v20  ;;  %2791 = vmatpush.bf16.msra.mxu0 %v4672_v30  ;;  %v4804_v20 = vor.u32 %v5507_v13, %v4803_v12  ;;  %v4983_v30 = vld [vmem:[%s8701_s1 + $0x8a0] sm:$0xf]  ;;  %v5270_v12 = vld [vmem:[%s8702_s0 + $0x140] sm:$0xf0]  ;;  %v5092_v13 = vor.u32 %v5579_v3, %v5091_v2 }
  0x59   :  { %2839 = vmatpush.bf16.msra.mxu2 %v4864_v60  ;;  %v4767_v60 = vld [vmem:[%s8701_s1 + $0x6f0] sm:$0xf]  ;;  %v6441_v15 = vor.u32 %v5270_v12, %v3843_v10  ;;  %v5564_v12 = vld [vmem:[%s8701_s1 + $0x908] sm:$0xf0] }
  0x5a   :  { %2770 = vmatmul.bf16.vlgmr.msrb.gmra.mxu3 %v6295_v56  ;;  %v4768_v4 = vor.u32 %v5498_v61, %v4767_v60  ;;  %v3791_v61 = vld [vmem:[%s8702_s0 + $0x98] sm:$0xf] }
  0x5c   :  { %2720 = vmatpush.bf16.msra.mxu1 %v4372_v35  ;;  %2792 = vmatpush.bf16.msra.mxu0 %v4660_v44  ;;  %v4984_v35 = vor.u32 %v5552_v32, %v4983_v30  ;;  %v5585_v44 = vld [vmem:[%s8701_s1 + $0x9b0] sm:$0xf0]  ;;  %v5576_v30 = vld [vmem:[%s8701_s1 + $0x968] sm:$0xf0]  ;;  %v4755_v32 = vld [vmem:[%s8701_s1 + $0x6d8] sm:$0xf] }
  0x5d   :  { %2840 = vmatpush.bf16.msra.mxu2 %v4852_v6  ;;  %v5116_v46 = vor.u32 %v5585_v44, %v5115_v43  ;;  %v3731_v6 = vld [vmem:[%s8702_s0 + $0x20] sm:$0xf]  ;;  %v4756_v36 = vor.u32 %v5495_v33, %v4755_v32  ;;  %v5492_v43 = vld [vmem:[%s8701_s1 + $0x6c8] sm:$0xf0]  ;;  %v5055_v44 = vld [vmem:[%s8701_s1 + $0x930] sm:$0xf] }
  0x5e   :  { %2861 = vmatpush.bf16.msra.mxu3 %v4984_v35  ;;  %v6438_v14 = vor.u32 %v5241_v7, %v3731_v6  ;;  %v5211_v6 = vld [vmem:[%s8701_s1 + $0xa68] sm:$0xf]  ;;  %v5609_v7 = vld [vmem:[%s8701_s1 + $0xa70] sm:$0xf0]  ;;  %v5199_v32 = vld [vmem:[%s8701_s1 + $0xa50] sm:$0xf] }
  0x5f   :  { %v5212_v10 = vor.u32 %v5609_v7, %v5211_v6  ;;  %v5606_v33 = vld [vmem:[%s8701_s1 + $0xa58] sm:$0xf0]  ;;  %v5317_v6 = vld [vmem:[%s8701_s1 + $0x154] sm:$0xf]  ;;  %v4049_v7 = vld [vmem:[%s8701_s1 + $0x15c] sm:$0xf0] }
  0x60   :  { %2721 = vmatpush.bf16.msra.mxu1 %v4360_v52  ;;  %2793 = vmatpush.bf16.msra.mxu0 %v4648_v63  ;;  %v5103_v52 = vld [vmem:[%s8701_s1 + $0x990] sm:$0xf]  ;;  %8757 = vst [vmem:[#allocation15_spill] sm:$0xff] %v6438_v14 }
  0x61   :  { %2841 = vmatpush.bf16.msra.mxu2 %v4840_v23  ;;  %v3717_v63 = vld [vmem:[%s8702_s0 + $0x4c] sm:$0xf0]  ;;  %v4936_v23 = vor.u32 %v5540_v18, %v4935_v17  ;;  %v5235_v17 = vld [vmem:[%s8702_s0 + $0x2c] sm:$0xf]  ;;  %v3741_v18 = vld [vmem:[%s8702_s0 + $0x64] sm:$0xf0] }
  0x62   :  { %2862 = vmatpush.bf16.msra.mxu3 %v4972_v42  ;;  %v6424_v5 = vor.u32 %v5232_v54, %v3717_v63  ;;  %v4743_v42 = vld [vmem:[%s8701_s1 + $0x6c0] sm:$0xf]  ;;  %v5256_v63 = vld [vmem:[%s8702_s0 + $0xd0] sm:$0xf0] }
  0x63   :  { %2636 = vmatmul.bf16.gmra.mxu1 %v6319_v9  ;;  %2708 = vmatmul.bf16.gmra.mxu0 %v6342_v19  ;;  %v4744_v45 = vor.u32 %v5492_v43, %v4743_v42  ;;  %v6522_v3 = vor.u32 %v5256_v63, %v3791_v61  ;;  %v5262_v42 = vld [vmem:[%s8702_s0 + $0x104] sm:$0xf]  ;;  %v3837_v43 = vld [vmem:[%s8702_s0 + $0x13c] sm:$0xf0]  ;;  %v3929_v63 = vld [vmem:[%s8701_s1 + $0x6c] sm:$0xf0] }
  0x64   :  { %2810 = vmatpush.bf16.msrb.mxu1 %v4828_v59  ;;  %2882 = vmatpush.bf16.msrb.mxu0 %v5116_v46  ;;  %v5104_v59 = vor.u32 %v5582_v53, %v5103_v52  ;;  %v5247_v52 = vld [vmem:[%s8702_s0 + $0x8c] sm:$0xf]  ;;  %v3777_v53 = vld [vmem:[%s8702_s0 + $0xc4] sm:$0xf0]  ;;  %v5287_v61 = vld [vmem:[%s8701_s1 + $0x64] sm:$0xf] }
  0x65   :  { %5619 = vmatpush.bf16.msrb.mxu2 %v5116_v46  ;;  %v5570_v46 = vld [vmem:[%s8701_s1 + $0x938] sm:$0xf0]  ;;  %v6508_v60 = vor.u32 %v5247_v52, %v3777_v53  ;;  %8759 = vst [vmem:[#allocation17_spill] sm:$0xff] %v6522_v3  ;;  %v3799_v52 = vld [vmem:[%s8702_s0 + $0xa0] sm:$0xf] }
  0x66   :  { %2751 = vmatmul.bf16.gmra.mxu2 %v6345_v26  ;;  %2863 = vmatpush.bf16.msra.mxu3 %v4960_v55  ;;  %v5056_v54 = vor.u32 %v5570_v46, %v5055_v44  ;;  %v5043_v55 = vld [vmem:[%s8701_s1 + $0x918] sm:$0xf]  ;;  %v6583_v46 = vor.u32 %v5262_v42, %v3837_v43  ;;  %v5257_v53 = vld [vmem:[%s8702_s0 + $0xd8] sm:$0xf0]  ;;  %v5311_v42 = vld [vmem:[%s8701_s1 + $0x124] sm:$0xf] }
  0x67   :  { %v3733_v43 = vld [vmem:[%s8702_s0 + $0x5c] sm:$0xf0] }
  0x68   :  { %2811 = vmatpush.bf16.msrb.mxu1 %v4816_v8  ;;  %2883 = vmatpush.bf16.msrb.mxu0 %v5104_v59  ;;  %v4948_v8 = vor.u32 %v5543_v1, %v4947_v0  ;;  %v3739_v0 = vld [vmem:[%s8702_s0 + $0x28] sm:$0xf]  ;;  %v5242_v1 = vld [vmem:[%s8702_s0 + $0x60] sm:$0xf0]  ;;  %8760 = vst [vmem:[#allocation18_spill] sm:$0xff] %v6583_v46 }
  0x69   :  { %5620 = vmatpush.bf16.msrb.mxu2 %v5104_v59  ;;  %v5567_v59 = vld [vmem:[%s8701_s1 + $0x920] sm:$0xf0] }
  0x6a   :  { %2775 = vmatmul.bf16.gmra.mxu3 %v6391_v50  ;;  %v5044_v2 = vor.u32 %v5567_v59, %v5043_v55  ;;  %v6603_v59 = vor.u32 %v5257_v53, %v3799_v52  ;;  %v3747_v52 = vld [vmem:[%s8702_s0 + $0x30] sm:$0xf]  ;;  %v5243_v53 = vld [vmem:[%s8702_s0 + $0x68] sm:$0xf0] }
  0x6b   :  { %2864 = vmatpush.bf16.msra.mxu3 %v4948_v8  ;;  %v5031_v8 = vld [vmem:[%s8701_s1 + $0x900] sm:$0xf] }
  0x6c   :  { %2812 = vmatpush.bf16.msrb.mxu1 %v4804_v20  ;;  %v5079_v20 = vld [vmem:[%s8701_s1 + $0x960] sm:$0xf]  ;;  %2884 = vmatpush.bf16.msrb.mxu0 %v5092_v13  ;;  %8762 = vst [vmem:[#allocation20_spill] sm:$0xff] %v6603_v59 }
  0x6d   :  { %5621 = vmatpush.bf16.msrb.mxu2 %v5092_v13  ;;  %v5080_v35 = vor.u32 %v5576_v30, %v5079_v20  ;;  %v5032_v13 = vor.u32 %v5564_v12, %v5031_v8  ;;  %v5293_v20 = vld [vmem:[%s8701_s1 + $0x94] sm:$0xf]  ;;  %v5250_v12 = vld [vmem:[%s8702_s0 + $0xa4] sm:$0xf] }
  0x6f   :  { %2865 = vmatpush.bf16.msra.mxu3 %v4936_v23  ;;  %v3953_v23 = vld [vmem:[%s8701_s1 + $0x9c] sm:$0xf0] }
  0x70   :  { %2813 = vmatpush.bf16.msrb.mxu1 %v4792_v38  ;;  %v3845_v38 = vld [vmem:[%s8702_s0 + $0x144] sm:$0xf0]  ;;  %2885 = vmatpush.bf16.msrb.mxu0 %v5080_v35  ;;  %v3956_v30 = vor.u32 %v5293_v20, %v3953_v23  ;;  %v5314_v23 = vld [vmem:[%s8701_s1 + $0x13c] sm:$0xf] }
  0x71   :  { %5622 = vmatpush.bf16.msrb.mxu2 %v5080_v35  ;;  %v6493_v49 = vor.u32 %v5263_v37, %v3845_v38  ;;  %v5200_v35 = vor.u32 %v5606_v33, %v5199_v32  ;;  %v5290_v37 = vld [vmem:[%s8701_s1 + $0x7c] sm:$0xf]  ;;  %v3941_v38 = vld [vmem:[%s8701_s1 + $0x84] sm:$0xf0]  ;;  %v5234_v33 = vld [vmem:[%s8702_s0 + $0x24] sm:$0xf] }
  0x72   :  { %v3944_v39 = vor.u32 %v5290_v37, %v3941_v38  ;;  %v5163_v37 = vld [vmem:[%s8701_s1 + $0xa08] sm:$0xf]  ;;  %v5597_v38 = vld [vmem:[%s8701_s1 + $0xa10] sm:$0xf0] }
  0x73   :  { %2722 = vmatmul.bf16.vlgmr.msra.gmra.mxu1 %v6424_v5  ;;  %2794 = vmatmul.bf16.vlgmr.msra.gmra.mxu0 %v6438_v14  ;;  %8758 = vst [vmem:[#allocation16_spill] sm:$0xff] %v6493_v49 }
  0x74   :  { %2814 = vmatpush.bf16.msrb.mxu1 %v4780_v51  ;;  %v3968_v51 = vor.u32 %v5296_v47, %v3965_v48  ;;  %2886 = vmatpush.bf16.msrb.mxu0 %v5068_v41  ;;  %v5271_v47 = vld [vmem:[%s8702_s0 + $0x148] sm:$0xf0] }
  0x75   :  { %5623 = vmatpush.bf16.msrb.mxu2 %v5068_v41  ;;  %v5603_v41 = vld [vmem:[%s8701_s1 + $0xa40] sm:$0xf0]  ;;  %v5320_v48 = vld [vmem:[%s8701_s1 + $0x16c] sm:$0xf] }
  0x76   :  { %2756 = vmatmul.bf16.gmra.mxu2 %v6441_v15  ;;  %2954 = vmatpush.bf16.msrb.mxu3 %v3968_v51  ;;  %v5188_v44 = vor.u32 %v5603_v41, %v5187_v40  ;;  %v4061_v51 = vld [vmem:[%s8701_s1 + $0x174] sm:$0xf0]  ;;  %v5281_v40 = vld [vmem:[%s8701_s1 + $0x34] sm:$0xf]  ;;  %v3905_v41 = vld [vmem:[%s8701_s1 + $0x3c] sm:$0xf0] }
  0x78   :  { %2815 = vmatpush.bf16.msrb.mxu1 %v4768_v4  ;;  %2887 = vmatpush.bf16.msrb.mxu0 %v5056_v54  ;;  %v6525_v4 = vor.u32 %v5242_v1, %v3739_v0  ;;  %v5175_v0 = vld [vmem:[%s8701_s1 + $0xa20] sm:$0xf]  ;;  %v3932_v1 = vor.u32 %v5287_v61, %v3929_v63  ;;  %v5278_v63 = vld [vmem:[%s8701_s1 + $0x1c] sm:$0xf] }
  0x79   :  { %5624 = vmatpush.bf16.msrb.mxu2 %v5056_v54  ;;  %v4064_v54 = vor.u32 %v5320_v48, %v4061_v51 }
  0x7a   :  { %2780 = vmatmul.bf16.gmra.mxu3 %v6493_v49 }
  0x7b   :  { %2955 = vmatpush.bf16.msrb.mxu3 %v3956_v30  ;;  %v4037_v30 = vld [vmem:[%s8701_s1 + $0x144] sm:$0xf0] }
  0x7c   :  { %2816 = vmatpush.bf16.msrb.mxu1 %v4756_v36  ;;  %2888 = vmatpush.bf16.msrb.mxu0 %v5044_v2  ;;  %v6559_v36 = vor.u32 %v5235_v17, %v3741_v18  ;;  %v5284_v17 = vld [vmem:[%s8701_s1 + $0x4c] sm:$0xf]  ;;  %v3917_v18 = vld [vmem:[%s8701_s1 + $0x54] sm:$0xf0]  ;;  %v4040_v32 = vor.u32 %v5314_v23, %v4037_v30  ;;  %v5594_v23 = vld [vmem:[%s8701_s1 + $0x9f8] sm:$0xf0] }
  0x7d   :  { %5625 = vmatpush.bf16.msrb.mxu2 %v5044_v2  ;;  %v5600_v2 = vld [vmem:[%s8701_s1 + $0xa28] sm:$0xf0]  ;;  %v3920_v20 = vor.u32 %v5284_v17, %v3917_v18  ;;  %v5275_v30 = vld [vmem:[%s8701_s1 + $0x4] sm:$0xf] }
  0x7e   :  { %v5176_v8 = vor.u32 %v5600_v2, %v5175_v0  ;;  %v3893_v0 = vld [vmem:[%s8701_s1 + $0x24] sm:$0xf0]  ;;  %v3859_v2 = vld [vmem:[%s8702_s0 + $0x118] sm:$0xf] }
  0x7f   :  { %2956 = vmatpush.bf16.msrb.mxu3 %v3944_v39  ;;  %v5164_v39 = vor.u32 %v5597_v38, %v5163_v37  ;;  %v5305_v37 = vld [vmem:[%s8701_s1 + $0xf4] sm:$0xf]  ;;  %v4001_v38 = vld [vmem:[%s8701_s1 + $0xfc] sm:$0xf0] }
  0x80   :  { %2817 = vmatpush.bf16.msrb.mxu1 %v4744_v45  ;;  %2889 = vmatpush.bf16.msrb.mxu0 %v5032_v13  ;;  %v3851_v45 = vld [vmem:[%s8702_s0 + $0x110] sm:$0xf] }
  0x81   :  { %5626 = vmatpush.bf16.msrb.mxu2 %v5032_v13  ;;  %v6600_v55 = vor.u32 %v5271_v47, %v3851_v45  ;;  %v3801_v13 = vld [vmem:[%s8702_s0 + $0xdc] sm:$0xf0]  ;;  %v4025_v45 = vld [vmem:[%s8701_s1 + $0x12c] sm:$0xf0] }
  0x82   :  { %v511_v47 = vld [vmem:[%s8701_s1 + $0xa80] sm:$0xff]  ;;  %v4028_v48 = vor.u32 %v5311_v42, %v4025_v45  ;;  %v3861_v42 = vld [vmem:[%s8702_s0 + $0x154] sm:$0xf0]  ;;  %v5302_v45 = vld [vmem:[%s8701_s1 + $0xdc] sm:$0xf] }
  0x83   :  { %2727 = vmatmul.bf16.gmra.mxu1 %v6508_v60  ;;  %2799 = vmatmul.bf16.gmra.mxu0 %v6522_v3  ;;  %8761 = vst [vmem:[#allocation19_spill] sm:$0xff] %v6600_v55  ;;  %v1896_v51 = vunpack.c.l.b16 %v511_v47 }
  0x84   :  { %2906 = vmatpush.bf16.msra.mxu1 %v5212_v10  ;;  %2978 = vmatpush.bf16.msra.mxu0 %v4064_v54  ;;  %v4052_v10 = vor.u32 %v5317_v6, %v4049_v7  ;;  %v6679_v54 = vor.u32 %v5234_v33, %v3733_v43  ;;  %v5272_v6 = vld [vmem:[%s8702_s0 + $0x150] sm:$0xf0]  ;;  %v3896_v7 = vor.u32 %v5278_v63, %v3893_v0  ;;  %v3881_v33 = vld [vmem:[%s8701_s1 + $0xc] sm:$0xf0]  ;;  %v5139_v43 = vld [vmem:[%s8701_s1 + $0x9d8] sm:$0xf] }
  0x85   :  { %2957 = vmatpush.bf16.msrb.mxu3 %v3932_v1  ;;  %v2235_v61 = vpack.c.b16 %v1896_v51, %v1896_v51  ;;  %v5308_v1 = vld [vmem:[%s8701_s1 + $0x10c] sm:$0xf]  ;;  %v6705_v18 = vor.u32 %v5272_v6, %v3859_v2  ;;  %v5127_v63 = vld [vmem:[%s8701_s1 + $0x9c0] sm:$0xf]  ;;  %v5249_v2 = vld [vmem:[%s8702_s0 + $0x9c] sm:$0xf] }
  0x86   :  { %2842 = vmatmul.bf16.vlgmr.msra.gmra.mxu2 %v6525_v4  ;;  %8763 = vst [vmem:[#allocation21_spill] sm:$0xff] %v6679_v54  ;;  %v5588_v0 = vld [vmem:[%s8701_s1 + $0x9c8] sm:$0xf0]  ;;  %v3793_v6 = vld [vmem:[%s8702_s0 + $0xd4] sm:$0xf0] }
  0x87   :  { %8765 = vst [vmem:[#allocation23_spill] sm:$0xff] %v6705_v18 }
  0x88   :  { %2907 = vmatpush.bf16.msra.mxu1 %v5200_v35  ;;  %2979 = vmatpush.bf16.msra.mxu0 %v4052_v10  ;;  %v6646_v35 = vor.u32 %v5250_v12, %v3801_v13  ;;  %v2586_v10 = vsel %vm2584_vm0, %v2235_v61, 0  ;;  %v6700_v13 = vor.u32 %v5243_v53, %v3747_v52 }
  0x89   :  { %2958 = vmatpush.bf16.msrb.mxu3 %v3920_v20  ;;  %2937 = vmatpush.bf16.msra.mxu2 %v2586_v10  ;;  %v5151_v20 = vld [vmem:[%s8701_s1 + $0x9f0] sm:$0xf] }
  0x8a   :  { %2866 = vmatmul.bf16.vlgmr.msra.gmra.mxu3 %v6559_v36  ;;  %8764 = vst [vmem:[#allocation22_spill] sm:$0xff] %v6700_v13 }
  0x8c   :  { %2908 = vmatpush.bf16.msra.mxu1 %v5188_v44  ;;  %2980 = vmatpush.bf16.msra.mxu0 %v4040_v32  ;;  %v3908_v44 = vor.u32 %v5281_v40, %v3905_v41  ;;  %v5152_v32 = vor.u32 %v5594_v23, %v5151_v20  ;;  %v4004_v40 = vor.u32 %v5305_v37, %v4001_v38  ;;  %v5265_v41 = vld [vmem:[%s8702_s0 + $0x11c] sm:$0xf]  ;;  %v3807_v23 = vld [vmem:[%s8702_s0 + $0xa8] sm:$0xf]  ;;  %v5368_v38 = vld [vmem:[%s8701_s1 + $0x2ec] sm:$0xf] }
  0x8d   :  { %v6747_v53 = vor.u32 %v5265_v41, %v3861_v42  ;;  %v6772_v20 = vor.u32 %v5249_v2, %v3793_v6  ;;  %v4241_v2 = vld [vmem:[%s8701_s1 + $0x2dc] sm:$0xf0]  ;;  %v5389_v6 = vld [vmem:[%s8701_s1 + $0x394] sm:$0xf] }
  0x8e   :  { %2959 = vmatpush.bf16.msrb.mxu3 %v3908_v44  ;;  %v5591_v44 = vld [vmem:[%s8701_s1 + $0x9e0] sm:$0xf0] }
  0x8f   :  { %v5140_v47 = vor.u32 %v5591_v44, %v5139_v43  ;;  %8766 = vst [vmem:[#allocation24_spill] sm:$0xff] %v6747_v53  ;;  %v5392_v44 = vld [vmem:[%s8701_s1 + $0x3ac] sm:$0xf] }
  0x90   :  { %2909 = vmatpush.bf16.msra.mxu1 %v5176_v8  ;;  %2981 = vmatpush.bf16.msra.mxu0 %v4028_v48  ;;  %v4013_v8 = vld [vmem:[%s8701_s1 + $0x114] sm:$0xf0]  ;;  %v3989_v48 = vld [vmem:[%s8701_s1 + $0xe4] sm:$0xf0]  ;;  %8767 = vst [vmem:[#allocation25_spill] sm:$0xff] %v6772_v20 }
  0x91   :  { %v4016_v12 = vor.u32 %v5308_v1, %v4013_v8  ;;  %v3992_v51 = vor.u32 %v5302_v45, %v3989_v48  ;;  %v5299_v1 = vld [vmem:[%s8701_s1 + $0xc4] sm:$0xf]  ;;  %v3977_v8 = vld [vmem:[%s8701_s1 + $0xcc] sm:$0xf0]  ;;  %v4349_v45 = vld [vmem:[%s8701_s1 + $0x3b4] sm:$0xf0] }
  0x92   :  { %2960 = vmatpush.bf16.msrb.mxu3 %v3896_v7  ;;  %v5128_v7 = vor.u32 %v5588_v0, %v5127_v63  ;;  %v3980_v10 = vor.u32 %v5299_v1, %v3977_v8  ;;  %v4157_v63 = vld [vmem:[%s8701_s1 + $0x234] sm:$0xf0]  ;;  %v5365_v1 = vld [vmem:[%s8701_s1 + $0x2d4] sm:$0xf] }
  0x93   :  { %2732 = vmatmul.bf16.gmra.mxu1 %v6583_v46  ;;  %2804 = vmatmul.bf16.gmra.mxu0 %v6600_v55 }
  0x94   :  { %2910 = vmatpush.bf16.msra.mxu1 %v5164_v39  ;;  %2982 = vmatpush.bf16.msra.mxu0 %v4016_v12  ;;  %v3884_v39 = vor.u32 %v5275_v30, %v3881_v33  ;;  %v5258_v30 = vld [vmem:[%s8702_s0 + $0xe0] sm:$0xf0]  ;;  %v5273_v33 = vld [vmem:[%s8702_s0 + $0x158] sm:$0xf0] }
  0x95   :  { %v6796_v41 = vor.u32 %v5258_v30, %v3807_v23 }
  0x96   :  { %2847 = vmatmul.bf16.gmra.mxu2 %v6603_v59  ;;  %2961 = vmatpush.bf16.msrb.mxu3 %v3884_v39  ;;  %v4253_v39 = vld [vmem:[%s8701_s1 + $0x2f4] sm:$0xf0] }
  0x97   :  { %v4256_v48 = vor.u32 %v5368_v38, %v4253_v39  ;;  %v5264_v38 = vld [vmem:[%s8702_s0 + $0x114] sm:$0xf]  ;;  %v3853_v39 = vld [vmem:[%s8702_s0 + $0x14c] sm:$0xf0] }
  0x98   :  { %2911 = vmatpush.bf16.msra.mxu1 %v5152_v32  ;;  %2983 = vmatpush.bf16.msra.mxu0 %v4004_v40  ;;  %v3867_v32 = vld [vmem:[%s8702_s0 + $0x120] sm:$0xf] }
  0x99   :  { %v6801_v43 = vor.u32 %v5273_v33, %v3867_v32  ;;  %v6833_v32 = vpop.permute.xlu0 %521 }
  0x9a   :  { %2871 = vmatmul.bf16.gmra.mxu3 %v6646_v35  ;;  %8769 = vst [vmem:[#allocation27_spill] sm:$0xff] %v6833_v32 }
  0x9b   :  { %8768 = vst [vmem:[#allocation26_spill] sm:$0xff] %v6801_v43 }
  0x9c   :  { %2912 = vmatpush.bf16.msra.mxu1 %v5140_v47  ;;  %2984 = vmatpush.bf16.msra.mxu0 %v3992_v51  ;;  %v5344_v47 = vld [vmem:[%s8701_s1 + $0x22c] sm:$0xf]  ;;  %v4352_v51 = vor.u32 %v5392_v44, %v4349_v45  ;;  %v5341_v45 = vld [vmem:[%s8701_s1 + $0x214] sm:$0xf] }
  0x9d   :  { %v4160_v0 = vor.u32 %v5344_v47, %v4157_v63  ;;  %v4145_v47 = vld [vmem:[%s8701_s1 + $0x21c] sm:$0xf0]  ;;  %v4445_v63 = vld [vmem:[%s8701_s1 + $0x474] sm:$0xf0] }
  0x9e   :  { %3050 = vmatpush.bf16.msra.mxu3 %v4352_v51  ;;  %v4148_v51 = vor.u32 %v5341_v45, %v4145_v47  ;;  %v6872_v47 = vor.u32 %v5264_v38, %v3853_v39  ;;  %v5244_v38 = vld [vmem:[%s8702_s0 + $0x70] sm:$0xf0] }
  0xa0   :  { %v6703_v17 = vpop.f32.mrf.mxu0  ;;  %v6769_v12 = vpop.f32.mrf.mxu1  ;;  %2913 = vmatpush.bf16.msra.mxu1 %v5128_v7  ;;  %2985 = vmatpush.bf16.msra.mxu0 %v3980_v10  ;;  %v4337_v7 = vld [vmem:[%s8701_s1 + $0x39c] sm:$0xf0]  ;;  %v4244_v10 = vor.u32 %v5365_v1, %v4241_v2  ;;  %v4229_v1 = vld [vmem:[%s8701_s1 + $0x2c4] sm:$0xf0]  ;;  %8770 = vst [vmem:[#allocation28_spill] sm:$0xff] %v6872_v47 }
  0xa1   :  { %v4340_v23 = vor.u32 %v5389_v6, %v4337_v7  ;;  %v5386_v7 = vld [vmem:[%s8701_s1 + $0x37c] sm:$0xf]  ;;  %v2604_v45 = vadd.f32 %v6703_v17, %v6833_v32  ;;  %v3755_v17 = vld [vmem:[%s8702_s0 + $0x38] sm:$0xf] }
  0xa3   :  { %2818 = vmatmul.bf16.vlgmr.msrb.gmra.mxu1 %v6679_v54  ;;  %2890 = vmatmul.bf16.vlgmr.msrb.gmra.mxu0 %v6700_v13 }
  0xa4   :  { %3002 = vmatpush.bf16.msrb.mxu1 %v4160_v0  ;;  %3051 = vmatpush.bf16.msra.mxu3 %v4340_v23  ;;  %v5362_v0 = vld [vmem:[%s8701_s1 + $0x2bc] sm:$0xf] }
  0xa5   :  { %v4232_v6 = vor.u32 %v5362_v0, %v4229_v1  ;;  %v5413_v0 = vld [vmem:[%s8701_s1 + $0x454] sm:$0xf]  ;;  %v4433_v1 = vld [vmem:[%s8701_s1 + $0x45c] sm:$0xf0] }
  0xa6   :  { %2852 = vmatmul.bf16.gmra.mxu2 %v6705_v18  ;;  %v4217_v18 = vld [vmem:[%s8701_s1 + $0x2ac] sm:$0xf0] }
  0xa8   :  { %v6749_v61 = vpop.f32.mrf.mxu0  ;;  %v6829_v8 = vpop.f32.mrf.mxu1  ;;  %3003 = vmatpush.bf16.msrb.mxu1 %v4148_v51 }
  0xa9   :  { %v6745_v52 = vpop.f32.mrf.mxu2 }
  0xaa   :  { %2876 = vmatmul.bf16.gmra.mxu3 %v6747_v53 }
  0xad   :  { %v6786_v37 = vpop.f32.mrf.mxu3 }
  0xb0   :  { %v6799_v42 = vpop.f32.mrf.mxu0 }
  0xb1   :  { %v6794_v40 = vpop.f32.mrf.mxu2 }
  0xb3   :  { %2823 = vmatmul.bf16.gmra.mxu1 %v6772_v20  ;;  %2895 = vmatmul.bf16.gmra.mxu0 %v6796_v41 }
  0xb5   :  { %v6831_v30 = vpop.f32.mrf.mxu3 }
  0xb6   :  { %2900 = vmatmul.bf16.vlgmr.msrb.gmra.mxu2 %v6801_v43 }
  0xb7   :  { %3026 = vmatpush.bf16.msrb.mxu2 %v4256_v48  ;;  %v5416_v48 = vld [vmem:[%s8701_s1 + $0x46c] sm:$0xf] }
  0xb8   :  { %v6843_v44 = vpop.f32.mrf.mxu0  ;;  %v4448_v2 = vor.u32 %v5416_v48, %v4445_v63  ;;  %v5338_v48 = vld [vmem:[%s8701_s1 + $0x1fc] sm:$0xf]  ;;  %v4133_v63 = vld [vmem:[%s8701_s1 + $0x204] sm:$0xf0] }
  0xb9   :  { %v6835_v33 = vpop.f32.mrf.mxu2  ;;  %v4136_v39 = vor.u32 %v5338_v48, %v4133_v63  ;;  %v6904_v48 = vor.u32 %v5244_v38, %v3755_v17  ;;  %v5383_v63 = vld [vmem:[%s8701_s1 + $0x364] sm:$0xf]  ;;  %v5410_v17 = vld [vmem:[%s8701_s1 + $0x43c] sm:$0xf]  ;;  %v4421_v38 = vld [vmem:[%s8701_s1 + $0x444] sm:$0xf0] }
  0xba   :  { %2962 = vmatmul.bf16.vlgmr.msrb.gmra.mxu3 %v5839_v24  ;;  %3074 = vmatpush.bf16.msrb.mxu0 %v4448_v2  ;;  %v5359_v24 = vld [vmem:[%s8701_s1 + $0x2a4] sm:$0xf] }
  0xbb   :  { %3027 = vmatpush.bf16.msrb.mxu2 %v4244_v10  ;;  %v4325_v10 = vld [vmem:[%s8701_s1 + $0x384] sm:$0xf0]  ;;  %3004 = vmatpush.bf16.msrb.mxu1 %v4136_v39  ;;  %8771 = vst [vmem:[#allocation29_spill] sm:$0xff] %v6904_v48 }
  0xbc   :  { %v4328_v23 = vor.u32 %v5386_v7, %v4325_v10  ;;  %v4436_v10 = vor.u32 %v5413_v0, %v4433_v1  ;;  %v4313_v0 = vld [vmem:[%s8701_s1 + $0x36c] sm:$0xf0] }
  0xbd   :  { %v6892_v7 = vpop.f32.mrf.mxu3 }
  0xbe   :  { %3052 = vmatpush.bf16.msra.mxu3 %v4328_v23  ;;  %3075 = vmatpush.bf16.msrb.mxu0 %v4436_v10  ;;  %v5356_v10 = vld [vmem:[%s8701_s1 + $0x28c] sm:$0xf] }
  0xbf   :  { %3028 = vmatpush.bf16.msrb.mxu2 %v4232_v6  ;;  %v4220_v6 = vor.u32 %v5359_v24, %v4217_v18  ;;  %v5335_v24 = vld [vmem:[%s8701_s1 + $0x1e4] sm:$0xf]  ;;  %v6915_v18 = vpop.permute.xlu0 %526 }
  0xc0   :  { %v2627_v51 = vpop.f32.mrf.mxu1 }
  0xc1   :  { %v2628_v2 = vadd.f32 %v2627_v51, %v2604_v45  ;;  %v6900_v53 = vpop.f32.mrf.mxu2  ;;  %v2699_v45 = vpop.f32.mrf.mxu0  ;;  %v4121_v51 = vld [vmem:[%s8701_s1 + $0x1ec] sm:$0xf0] }
  0xc2   :  { %v4124_v1 = vor.u32 %v5335_v24, %v4121_v51  ;;  %v4301_v24 = vld [vmem:[%s8701_s1 + $0x354] sm:$0xf0] }
  0xc3   :  { %v2652_v23 = vadd.f32 %v6745_v52, %v2628_v2  ;;  %2828 = vmatmul.bf16.gmra.mxu1 %v6872_v47  ;;  %3029 = vmatpush.bf16.msrb.mxu2 %v4220_v6  ;;  %v4316_v52 = vor.u32 %v5383_v63, %v4313_v0  ;;  %v4424_v2 = vor.u32 %v5410_v17, %v4421_v38  ;;  %v4205_v6 = vld [vmem:[%s8701_s1 + $0x294] sm:$0xf0]  ;;  %v4193_v38 = vld [vmem:[%s8701_s1 + $0x27c] sm:$0xf0] }
  0xc4   :  { %2986 = vmatmul.bf16.vlgmr.msra.gmra.mxu0 %v6094_v16  ;;  %v2606_v63 = vadd.f32 %v6749_v61, %v6915_v18  ;;  %3005 = vmatpush.bf16.msrb.mxu1 %v4124_v1 }
  0xc5   :  { %v2676_v39 = vadd.f32 %v6786_v37, %v2652_v23  ;;  %3053 = vmatpush.bf16.msra.mxu3 %v4316_v52  ;;  %v4208_v37 = vor.u32 %v5356_v10, %v4205_v6  ;;  %v5380_v23 = vld [vmem:[%s8701_s1 + $0x34c] sm:$0xf]  ;;  %3076 = vmatpush.bf16.msrb.mxu0 %v4424_v2  ;;  %v6946_v61 = vpop.f32.mrf.mxu3  ;;  %v5236_v2 = vld [vmem:[%s8702_s0 + $0x34] sm:$0xf]  ;;  %v3749_v10 = vld [vmem:[%s8702_s0 + $0x6c] sm:$0xf0] }
  0xc6   :  { %5221 = vmatmul.msk.bf16.vlgmr.msra.gmra.mxu2 %vm2574_vm1, %v6904_v48  ;;  %v4304_v51 = vor.u32 %v5380_v23, %v4301_v24  ;;  %v5332_v23 = vld [vmem:[%s8701_s1 + $0x1cc] sm:$0xf]  ;;  %v4109_v24 = vld [vmem:[%s8701_s1 + $0x1d4] sm:$0xf0] }
  0xc7   :  { %v6936_v0 = vadd.f32 %v2699_v45, %v2676_v39  ;;  %3030 = vmatpush.bf16.msrb.mxu2 %v4208_v37  ;;  %v5353_v45 = vld [vmem:[%s8701_s1 + $0x274] sm:$0xf]  ;;  %v6954_v39 = vpop.permute.xlu1 %531  ;;  %v4112_v48 = vor.u32 %v5332_v23, %v4109_v24  ;;  %v5350_v23 = vld [vmem:[%s8701_s1 + $0x25c] sm:$0xf]  ;;  %v4181_v24 = vld [vmem:[%s8701_s1 + $0x264] sm:$0xf0] }
  0xc8   :  { %v2629_v52 = vpop.f32.mrf.mxu1  ;;  %v4196_v6 = vor.u32 %v5353_v45, %v4193_v38  ;;  %v4184_v59 = vor.u32 %v5350_v23, %v4181_v24 }
  0xc9   :  { %v2630_v17 = vadd.f32 %v2629_v52, %v2606_v63  ;;  %v6956_v1 = vpop.f32.mrf.mxu2  ;;  %3054 = vmatpush.bf16.msra.mxu3 %v4304_v51  ;;  %v2701_v37 = vpop.f32.mrf.mxu0  ;;  %v5407_v52 = vld [vmem:[%s8701_s1 + $0x424] sm:$0xf]  ;;  %v4409_v51 = vld [vmem:[%s8701_s1 + $0x42c] sm:$0xf0]  ;;  %3006 = vmatpush.bf16.msrb.mxu1 %v4112_v48  ;;  %v5374_v48 = vld [vmem:[%s8701_s1 + $0x31c] sm:$0xf] }
  0xca   :  { %v4412_v38 = vor.u32 %v5407_v52, %v4409_v51  ;;  %2967 = vmatmul.bf16.gmra.mxu3 %v5974_v22  ;;  %v4397_v52 = vld [vmem:[%s8701_s1 + $0x414] sm:$0xf0]  ;;  %v5485_v22 = vld [vmem:[%s8701_s1 + $0x694] sm:$0xf] }
  0xcb   :  { %v2654_v63 = vadd.f32 %v6794_v40, %v2630_v17  ;;  %v5377_v40 = vld [vmem:[%s8701_s1 + $0x334] sm:$0xf]  ;;  %v4289_v17 = vld [vmem:[%s8701_s1 + $0x33c] sm:$0xf0]  ;;  %3031 = vmatpush.bf16.msrb.mxu2 %v4196_v6  ;;  %v5404_v6 = vld [vmem:[%s8701_s1 + $0x40c] sm:$0xf] }
  0xcc   :  { %v4292_v16 = vor.u32 %v5377_v40, %v4289_v17  ;;  %3077 = vmatpush.bf16.msrb.mxu0 %v4412_v38  ;;  %v4169_v38 = vld [vmem:[%s8701_s1 + $0x24c] sm:$0xf0] }
  0xcd   :  { %v2678_v45 = vadd.f32 %v6831_v30, %v2654_v63  ;;  %v2609_v30 = vadd.f32 %v6799_v42, %v6954_v39  ;;  %v6995_v63 = vor.u32 %v5236_v2, %v3749_v10  ;;  %v3815_v42 = vld [vmem:[%s8702_s0 + $0xb0] sm:$0xf]  ;;  %v4400_v2 = vor.u32 %v5404_v6, %v4397_v52  ;;  %v4277_v10 = vld [vmem:[%s8701_s1 + $0x324] sm:$0xf0]  ;;  %v7015_v40 = vpop.f32.mrf.mxu3 }
  0xce   :  { %3055 = vmatpush.bf16.msra.mxu3 %v4292_v16  ;;  %v5259_v16 = vld [vmem:[%s8702_s0 + $0xe8] sm:$0xf0]  ;;  %v4280_v17 = vor.u32 %v5374_v48, %v4277_v10  ;;  %v4097_v48 = vld [vmem:[%s8701_s1 + $0x1bc] sm:$0xf0] }
  0xcf   :  { %v6991_v43 = vadd.f32 %v2701_v37, %v2678_v45  ;;  %3032 = vmatpush.bf16.msrb.mxu2 %v4184_v59  ;;  %v5347_v45 = vld [vmem:[%s8701_s1 + $0x244] sm:$0xf]  ;;  %v7027_v52 = vor.u32 %v5259_v16, %v3815_v42  ;;  %v5329_v59 = vld [vmem:[%s8701_s1 + $0x1b4] sm:$0xf]  ;;  %v7038_v10 = vpop.permute.xlu1 %536  ;;  %v4265_v42 = vld [vmem:[%s8701_s1 + $0x30c] sm:$0xf0] }
  0xd0   :  { %v2632_v37 = vpop.f32.mrf.mxu1  ;;  %v4172_v24 = vor.u32 %v5347_v45, %v4169_v38  ;;  %3078 = vmatpush.bf16.msrb.mxu0 %v4400_v2  ;;  %v5401_v16 = vld [vmem:[%s8701_s1 + $0x3f4] sm:$0xf]  ;;  %v4385_v2 = vld [vmem:[%s8701_s1 + $0x3fc] sm:$0xf0] }
  0xd1   :  { %v2633_v51 = vadd.f32 %v2632_v37, %v2609_v30  ;;  %v7023_v23 = vpop.f32.mrf.mxu2  ;;  %v2704_v30 = vpop.f32.mrf.mxu0  ;;  %8772 = vst [vmem:[#allocation30_spill] sm:$0xff] %v7027_v52  ;;  %v5371_v37 = vld [vmem:[%s8701_s1 + $0x304] sm:$0xf]  ;;  %v4388_v38 = vor.u32 %v5401_v16, %v4385_v2 }
  0xd2   :  { %3056 = vmatpush.bf16.msra.mxu3 %v4280_v17  ;;  %v4268_v45 = vor.u32 %v5371_v37, %v4265_v42  ;;  %v2611_v17 = vadd.f32 %v6843_v44, %v7038_v10  ;;  %v7071_v16 = vpop.permute.xlu2 %541 }
  0xd3   :  { %v2657_v6 = vadd.f32 %v6835_v33, %v2633_v51  ;;  %2914 = vmatmul.bf16.vlgmr.msra.gmra.mxu1 %v6995_v63  ;;  %v4100_v33 = vor.u32 %v5329_v59, %v4097_v48  ;;  %3033 = vmatpush.bf16.msrb.mxu2 %v4172_v24  ;;  %v5326_v48 = vld [vmem:[%s8701_s1 + $0x19c] sm:$0xf] }
  0xd4   :  { %2991 = vmatmul.bf16.gmra.mxu0 %v6208_v11  ;;  %v5398_v24 = vld [vmem:[%s8701_s1 + $0x3dc] sm:$0xf] }
  0xd5   :  { %v2681_v51 = vadd.f32 %v6892_v7, %v2657_v6  ;;  %3007 = vmatpush.bf16.msrb.mxu1 %v4100_v33  ;;  %3079 = vmatpush.bf16.msrb.mxu0 %v4388_v38  ;;  %v4085_v7 = vld [vmem:[%s8701_s1 + $0x1a4] sm:$0xf0]  ;;  %v7069_v33 = vpop.f32.mrf.mxu3 }
  0xd6   :  { %5222 = vmatmul.msk.bf16.gmra.mxu2 %vm2574_vm1, %v7027_v52  ;;  %3057 = vmatpush.bf16.msra.mxu3 %v4268_v45  ;;  %v4088_v44 = vor.u32 %v5326_v48, %v4085_v7  ;;  %v5323_v45 = vld [vmem:[%s8701_s1 + $0x184] sm:$0xf]  ;;  %v5251_v7 = vld [vmem:[%s8702_s0 + $0xac] sm:$0xf] }
  0xd7   :  { %v7053_v59 = vadd.f32 %v2704_v30, %v2681_v51  ;;  %v4373_v30 = vld [vmem:[%s8701_s1 + $0x3e4] sm:$0xf0]  ;;  %v5395_v48 = vld [vmem:[%s8701_s1 + $0x3c4] sm:$0xf] }
  0xd8   :  { %v2634_v6 = vpop.f32.mrf.mxu1  ;;  %v4376_v42 = vor.u32 %v5398_v24, %v4373_v30 }
  0xd9   :  { %v2635_v37 = vadd.f32 %v2634_v6, %v2611_v17  ;;  %v7073_v2 = vpop.f32.mrf.mxu2  ;;  %3008 = vmatpush.bf16.msrb.mxu1 %v4088_v44  ;;  %v2706_v38 = vpop.f32.mrf.mxu0  ;;  %v4073_v17 = vld [vmem:[%s8701_s1 + $0x18c] sm:$0xf0] }
  0xda   :  { %3080 = vmatpush.bf16.msrb.mxu0 %v4376_v42  ;;  %v4076_v24 = vor.u32 %v5323_v45, %v4073_v17  ;;  %v4361_v6 = vld [vmem:[%s8701_s1 + $0x3cc] sm:$0xf0]  ;;  %2972 = vmatmul.bf16.gmra.mxu3 %v5841_v25  ;;  %v5464_v45 = vld [vmem:[%s8701_s1 + $0x5ec] sm:$0xf]  ;;  %v3875_v17 = vld [vmem:[%s8702_s0 + $0x128] sm:$0xf] }
  0xdb   :  { %v2659_v51 = vadd.f32 %v6900_v53, %v2635_v37  ;;  %v3809_v53 = vld [vmem:[%s8702_s0 + $0xe4] sm:$0xf0]  ;;  %v4364_v30 = vor.u32 %v5395_v48, %v4361_v6  ;;  %v2614_v37 = vadd.f32 %v6769_v12, %v7071_v16  ;;  %v5274_v12 = vld [vmem:[%s8702_s0 + $0x160] sm:$0xf0] }
  0xdc   :  { %v7100_v52 = vor.u32 %v5251_v7, %v3809_v53 }
  0xdd   :  { %v2683_v44 = vadd.f32 %v6946_v61, %v2659_v51  ;;  %3009 = vmatpush.bf16.msrb.mxu1 %v4076_v24  ;;  %v4637_v61 = vld [vmem:[%s8701_s1 + $0x5f4] sm:$0xf0]  ;;  %v7114_v7 = vpop.f32.mrf.mxu3 }
  0xde   :  { %3081 = vmatpush.bf16.msrb.mxu0 %v4364_v30  ;;  %v5488_v30 = vld [vmem:[%s8701_s1 + $0x6ac] sm:$0xf] }
  0xdf   :  { %v7098_v42 = vadd.f32 %v2706_v38, %v2683_v44  ;;  %v4640_v38 = vor.u32 %v5464_v45, %v4637_v61  ;;  %v7120_v44 = vor.u32 %v5274_v12, %v3875_v17  ;;  %v5440_v45 = vld [vmem:[%s8701_s1 + $0x52c] sm:$0xf]  ;;  %v7131_v61 = vpop.permute.xlu2 %546  ;;  %v5461_v17 = vld [vmem:[%s8701_s1 + $0x5d4] sm:$0xf]  ;;  %v4625_v12 = vld [vmem:[%s8701_s1 + $0x5dc] sm:$0xf0] }
  0xe0   :  { %v2637_v51 = vpop.f32.mrf.mxu1  ;;  %8774 = vst [vmem:[#allocation32_spill] sm:$0xff] %v7131_v61  ;;  %v4628_v25 = vor.u32 %v5461_v17, %v4625_v12  ;;  %v3869_v17 = vld [vmem:[%s8702_s0 + $0x15c] sm:$0xf0] }
  0xe1   :  { %v2638_v48 = vadd.f32 %v2637_v51, %v2614_v37  ;;  %v7116_v53 = vpop.f32.mrf.mxu2  ;;  %3122 = vmatpush.bf16.msra.mxu2 %v4640_v38  ;;  %v2709_v6 = vpop.f32.mrf.mxu0  ;;  %8773 = vst [vmem:[#allocation31_spill] sm:$0xff] %v7120_v44  ;;  %v4733_v37 = vld [vmem:[%s8701_s1 + $0x6b4] sm:$0xf0] }
  0xe2   :  { %v4541_v51 = vld [vmem:[%s8701_s1 + $0x534] sm:$0xf0] }
  0xe3   :  { %v2662_v24 = vadd.f32 %v6956_v1, %v2638_v48  ;;  %2919 = vmatmul.bf16.gmra.mxu1 %v7100_v52  ;;  %v4736_v1 = vor.u32 %v5488_v30, %v4733_v37  ;;  %v4544_v48 = vor.u32 %v5440_v45, %v4541_v51  ;;  %v2616_v30 = vadd.f32 %v6829_v8, %v7131_v61 }
  0xe4   :  { %2996 = vmatmul.bf16.gmra.mxu0 %v6319_v9 }
  0xe5   :  { %v2686_v38 = vadd.f32 %v7015_v40, %v2662_v24  ;;  %3146 = vmatpush.bf16.msrb.mxu3 %v4736_v1  ;;  %3098 = vmatpush.bf16.msra.mxu1 %v4544_v48  ;;  %v4721_v40 = vld [vmem:[%s8701_s1 + $0x69c] sm:$0xf0]  ;;  %v7156_v51 = vpop.f32.mrf.mxu3  ;;  %v5512_v48 = vld [vmem:[%s8701_s1 + $0x76c] sm:$0xf] }
  0xe6   :  { %5223 = vmatmul.msk.bf16.gmra.mxu2 %vm2574_vm1, %v7120_v44  ;;  %v4724_v45 = vor.u32 %v5485_v22, %v4721_v40  ;;  %v4529_v22 = vld [vmem:[%s8701_s1 + $0x51c] sm:$0xf0]  ;;  %v4829_v40 = vld [vmem:[%s8701_s1 + $0x774] sm:$0xf0] }
  0xe7   :  { %v7146_v37 = vadd.f32 %v2709_v6, %v2686_v38  ;;  %3123 = vmatpush.bf16.msra.mxu2 %v4628_v25  ;;  %v5266_v6 = vld [vmem:[%s8702_s0 + $0x124] sm:$0xf]  ;;  %v5437_v25 = vld [vmem:[%s8701_s1 + $0x514] sm:$0xf] }
  0xe8   :  { %v2639_v24 = vpop.f32.mrf.mxu1  ;;  %v7195_v61 = vor.u32 %v5266_v6, %v3869_v17  ;;  %v4817_v6 = vld [vmem:[%s8701_s1 + $0x75c] sm:$0xf0] }
  0xe9   :  { %v2640_v1 = vadd.f32 %v2639_v24, %v2616_v30  ;;  %v7158_v8 = vpop.f32.mrf.mxu2  ;;  %3147 = vmatpush.bf16.msrb.mxu3 %v4724_v45  ;;  %v2711_v38 = vpop.f32.mrf.mxu0  ;;  %v4532_v30 = vor.u32 %v5437_v25, %v4529_v22  ;;  %v4613_v24 = vld [vmem:[%s8701_s1 + $0x5c4] sm:$0xf0]  ;;  %v5482_v25 = vld [vmem:[%s8701_s1 + $0x67c] sm:$0xf] }
  0xea   :  { %v4709_v22 = vld [vmem:[%s8701_s1 + $0x684] sm:$0xf0]  ;;  %3058 = vmatmul.bf16.vlgmr.msra.gmra.mxu3 %v6114_v31 }
  0xeb   :  { %v2664_v12 = vadd.f32 %v7023_v23, %v2640_v1  ;;  %v5458_v23 = vld [vmem:[%s8701_s1 + $0x5bc] sm:$0xf]  ;;  %v4832_v1 = vor.u32 %v5512_v48, %v4829_v40  ;;  %3099 = vmatpush.bf16.msra.mxu1 %v4532_v30  ;;  %v4712_v9 = vor.u32 %v5482_v25, %v4709_v22  ;;  %v5509_v48 = vld [vmem:[%s8701_s1 + $0x754] sm:$0xf]  ;;  %v5479_v25 = vld [vmem:[%s8701_s1 + $0x664] sm:$0xf] }
  0xec   :  { %v4616_v44 = vor.u32 %v5458_v23, %v4613_v24  ;;  %v4820_v40 = vor.u32 %v5509_v48, %v4817_v6  ;;  %v5455_v23 = vld [vmem:[%s8701_s1 + $0x5a4] sm:$0xf]  ;;  %v4601_v24 = vld [vmem:[%s8701_s1 + $0x5ac] sm:$0xf0]  ;;  %v5506_v48 = vld [vmem:[%s8701_s1 + $0x73c] sm:$0xf] }
  0xed   :  { %v2688_v45 = vadd.f32 %v7069_v33, %v2664_v12  ;;  %3170 = vmatpush.bf16.msra.mxu0 %v4832_v1  ;;  %v5434_v33 = vld [vmem:[%s8701_s1 + $0x4fc] sm:$0xf]  ;;  %v4517_v12 = vld [vmem:[%s8701_s1 + $0x504] sm:$0xf0]  ;;  %3148 = vmatpush.bf16.msrb.mxu3 %v4712_v9  ;;  %v7210_v17 = vpop.f32.mrf.mxu3  ;;  %v4604_v9 = vor.u32 %v5455_v23, %v4601_v24  ;;  %v4697_v22 = vld [vmem:[%s8701_s1 + $0x66c] sm:$0xf0] }
  0xee   :  { %3124 = vmatpush.bf16.msra.mxu2 %v4616_v44  ;;  %v4589_v23 = vld [vmem:[%s8701_s1 + $0x594] sm:$0xf0] }
  0xef   :  { %v7193_v11 = vadd.f32 %v2711_v38, %v2688_v45  ;;  %v4520_v38 = vor.u32 %v5434_v33, %v4517_v12  ;;  %v5431_v33 = vld [vmem:[%s8701_s1 + $0x4e4] sm:$0xf]  ;;  %v4700_v12 = vor.u32 %v5479_v25, %v4697_v22 }
  0xf0   :  { %v2723_v30 = vpop.f32.mrf.mxu1 }
  0xf1   :  { %v2724_v44 = vadd.f32 %v2723_v30, %v6936_v0  ;;  %v7218_v45 = vpop.f32.mrf.mxu2  ;;  %3100 = vmatpush.bf16.msra.mxu1 %v4520_v38  ;;  %v2795_v0 = vpop.f32.mrf.mxu0  ;;  %3171 = vmatpush.bf16.msra.mxu0 %v4820_v40  ;;  %v4805_v30 = vld [vmem:[%s8701_s1 + $0x744] sm:$0xf0]  ;;  %v5452_v40 = vld [vmem:[%s8701_s1 + $0x58c] sm:$0xf] }
  0xf2   :  { %3125 = vmatpush.bf16.msra.mxu2 %v4604_v9  ;;  %3149 = vmatpush.bf16.msrb.mxu3 %v4700_v12  ;;  %v4592_v24 = vor.u32 %v5452_v40, %v4589_v23  ;;  %v5503_v40 = vld [vmem:[%s8701_s1 + $0x724] sm:$0xf] }
  0xf3   :  { %v2748_v1 = vadd.f32 %v7073_v2, %v2724_v44  ;;  %2924 = vmatmul.bf16.gmra.mxu1 %v7195_v61  ;;  %v4505_v2 = vld [vmem:[%s8701_s1 + $0x4ec] sm:$0xf0]  ;;  %v4808_v44 = vor.u32 %v5506_v48, %v4805_v30 }
  0xf4   :  { %v4508_v6 = vor.u32 %v5431_v33, %v4505_v2  ;;  %3082 = vmatmul.bf16.vlgmr.msrb.gmra.mxu0 %v6424_v5  ;;  %v4577_v2 = vld [vmem:[%s8701_s1 + $0x57c] sm:$0xf0] }
  0xf5   :  { %v2772_v38 = vadd.f32 %v7114_v7, %v2748_v1  ;;  %v5476_v7 = vld [vmem:[%s8701_s1 + $0x64c] sm:$0xf]  ;;  %v4685_v1 = vld [vmem:[%s8701_s1 + $0x654] sm:$0xf0]  ;;  %3172 = vmatpush.bf16.msra.mxu0 %v4808_v44  ;;  %v7258_v12 = vpop.f32.mrf.mxu3 }
  0xf6   :  { %3034 = vmatmul.bf16.vlgmr.msrb.gmra.mxu2 %v5914_v58  ;;  %3101 = vmatpush.bf16.msra.mxu1 %v4508_v6  ;;  %v4688_v22 = vor.u32 %v5476_v7, %v4685_v1  ;;  %v4493_v44 = vld [vmem:[%s8701_s1 + $0x4d4] sm:$0xf0]  ;;  %v4673_v7 = vld [vmem:[%s8701_s1 + $0x63c] sm:$0xf0] }
  0xf7   :  { %v7248_v9 = vadd.f32 %v2795_v0, %v2772_v38  ;;  %3126 = vmatpush.bf16.msra.mxu2 %v4592_v24  ;;  %v5449_v0 = vld [vmem:[%s8701_s1 + $0x574] sm:$0xf]  ;;  %v4793_v24 = vld [vmem:[%s8701_s1 + $0x72c] sm:$0xf0] }
  0xf8   :  { %v2725_v25 = vpop.f32.mrf.mxu1  ;;  %3150 = vmatpush.bf16.msrb.mxu3 %v4688_v22  ;;  %v4580_v30 = vor.u32 %v5449_v0, %v4577_v2  ;;  %v4565_v0 = vld [vmem:[%s8701_s1 + $0x564] sm:$0xf0] }
  0xf9   :  { %v2726_v33 = vadd.f32 %v2725_v25, %v6991_v43  ;;  %v7266_v48 = vpop.f32.mrf.mxu2  ;;  %v2797_v6 = vpop.f32.mrf.mxu0  ;;  %v5428_v43 = vld [vmem:[%s8701_s1 + $0x4cc] sm:$0xf]  ;;  %v4796_v25 = vor.u32 %v5503_v40, %v4793_v24 }
  0xfa   :  { %v4496_v23 = vor.u32 %v5428_v43, %v4493_v44  ;;  %3063 = vmatmul.bf16.gmra.mxu3 %v6228_v21  ;;  %v5470_v43 = vld [vmem:[%s8701_s1 + $0x61c] sm:$0xf] }
  0xfb   :  { %v2750_v38 = vadd.f32 %v7116_v53, %v2726_v33  ;;  %3127 = vmatpush.bf16.msra.mxu2 %v4580_v30  ;;  %v5473_v53 = vld [vmem:[%s8701_s1 + $0x634] sm:$0xf]  ;;  %v5446_v33 = vld [vmem:[%s8701_s1 + $0x55c] sm:$0xf]  ;;  %3173 = vmatpush.bf16.msra.mxu0 %v4796_v25 }
  0xfc   :  { %v4676_v22 = vor.u32 %v5473_v53, %v4673_v7  ;;  %3102 = vmatpush.bf16.msra.mxu1 %v4496_v23  ;;  %v4568_v2 = vor.u32 %v5446_v33, %v4565_v0  ;;  %v5443_v7 = vld [vmem:[%s8701_s1 + $0x544] sm:$0xf] }
  0xfd   :  { %v2774_v1 = vadd.f32 %v7156_v51, %v2750_v38  ;;  %v5500_v51 = vld [vmem:[%s8701_s1 + $0x70c] sm:$0xf]  ;;  %v4781_v38 = vld [vmem:[%s8701_s1 + $0x714] sm:$0xf0]  ;;  %v7310_v24 = vpop.f32.mrf.mxu3 }
  0xfe   :  { %3151 = vmatpush.bf16.msrb.mxu3 %v4676_v22  ;;  %v4784_v40 = vor.u32 %v5500_v51, %v4781_v38  ;;  %v5467_v51 = vld [vmem:[%s8701_s1 + $0x604] sm:$0xf] }
  0xff   :  { %v7295_v30 = vadd.f32 %v2797_v6, %v2774_v1  ;;  %3128 = vmatpush.bf16.msra.mxu2 %v4568_v2  ;;  %v4661_v6 = vld [vmem:[%s8701_s1 + $0x624] sm:$0xf0]  ;;  %v4553_v1 = vld [vmem:[%s8701_s1 + $0x54c] sm:$0xf0]  ;;  %v4481_v2 = vld [vmem:[%s8701_s1 + $0x4bc] sm:$0xf0] }
 0x100   :  { %v2728_v44 = vpop.f32.mrf.mxu1  ;;  %v4664_v53 = vor.u32 %v5470_v43, %v4661_v6  ;;  %v4556_v22 = vor.u32 %v5443_v7, %v4553_v1  ;;  %3174 = vmatpush.bf16.msra.mxu0 %v4784_v40  ;;  %v5497_v43 = vld [vmem:[%s8701_s1 + $0x6f4] sm:$0xf]  ;;  %v5422_v7 = vld [vmem:[%s8701_s1 + $0x49c] sm:$0xf]  ;;  %v4469_v1 = vld [vmem:[%s8701_s1 + $0x4a4] sm:$0xf0] }
 0x101   :  { %v2729_v23 = vadd.f32 %v2728_v44, %v7053_v59  ;;  %v7318_v25 = vpop.f32.mrf.mxu2  ;;  %v2800_v0 = vpop.f32.mrf.mxu0  ;;  %v5425_v59 = vld [vmem:[%s8701_s1 + $0x4b4] sm:$0xf]  ;;  %v4769_v44 = vld [vmem:[%s8701_s1 + $0x6fc] sm:$0xf0] }
 0x102   :  { %v4484_v38 = vor.u32 %v5425_v59, %v4481_v2  ;;  %3152 = vmatpush.bf16.msrb.mxu3 %v4664_v53 }
 0x103   :  { %v2753_v33 = vadd.f32 %v7158_v8, %v2729_v23  ;;  %3010 = vmatmul.bf16.vlgmr.msrb.gmra.mxu1 %v5852_v29  ;;  %3129 = vmatpush.bf16.msra.mxu2 %v4556_v22  ;;  %v4649_v8 = vld [vmem:[%s8701_s1 + $0x60c] sm:$0xf0]  ;;  %v4772_v23 = vor.u32 %v5497_v43, %v4769_v44  ;;  %v5419_v44 = vld [vmem:[%s8701_s1 + $0x484] sm:$0xf] }
 0x104   :  { %v4652_v6 = vor.u32 %v5467_v51, %v4649_v8  ;;  %3087 = vmatmul.bf16.gmra.mxu0 %v6508_v60  ;;  %3103 = vmatpush.bf16.msra.mxu1 %v4484_v38 }
 0x105   :  { %v2777_v40 = vadd.f32 %v7210_v17, %v2753_v33  ;;  %3175 = vmatpush.bf16.msra.mxu0 %v4772_v23  ;;  %v5494_v17 = vld [vmem:[%s8701_s1 + $0x6dc] sm:$0xf]  ;;  %v4472_v33 = vor.u32 %v5422_v7, %v4469_v1  ;;  %v2783_v2 = vpop.f32.mrf.mxu3  ;;  %v4745_v23 = vld [vmem:[%s8701_s1 + $0x6cc] sm:$0xf0] }
 0x106   :  { %3039 = vmatmul.bf16.gmra.mxu2 %v6058_v62  ;;  %3153 = vmatpush.bf16.msrb.mxu3 %v4652_v6  ;;  %v5518_v62 = vld [vmem:[%s8701_s1 + $0x79c] sm:$0xf] }
 0x107   :  { %v7342_v53 = vadd.f32 %v2800_v0, %v2777_v40  ;;  %v4757_v0 = vld [vmem:[%s8701_s1 + $0x6e4] sm:$0xf0]  ;;  %v4457_v40 = vld [vmem:[%s8701_s1 + $0x48c] sm:$0xf0] }
 0x108   :  { %v2730_v22 = vpop.f32.mrf.mxu1  ;;  %v4760_v51 = vor.u32 %v5494_v17, %v4757_v0  ;;  %3104 = vmatpush.bf16.msra.mxu1 %v4472_v33  ;;  %v4460_v6 = vor.u32 %v5419_v44, %v4457_v40  ;;  %v5560_v17 = vld [vmem:[%s8701_s1 + $0x8ec] sm:$0xf]  ;;  %v5117_v40 = vld [vmem:[%s8701_s1 + $0x9b4] sm:$0xf0] }
 0x109   :  { %v2731_v59 = vadd.f32 %v2730_v22, %v7098_v42  ;;  %v7358_v38 = vpop.f32.mrf.mxu2  ;;  %v2802_v43 = vpop.f32.mrf.mxu0  ;;  %v5491_v42 = vld [vmem:[%s8701_s1 + $0x6c4] sm:$0xf]  ;;  %v5021_v22 = vld [vmem:[%s8701_s1 + $0x8f4] sm:$0xf0]  ;;  %v5584_v44 = vld [vmem:[%s8701_s1 + $0x9ac] sm:$0xf] }
 0x10a   :  { %3176 = vmatpush.bf16.msra.mxu0 %v4760_v51  ;;  %v4748_v7 = vor.u32 %v5491_v42, %v4745_v23  ;;  %3068 = vmatmul.bf16.gmra.mxu3 %v6342_v19  ;;  %v5024_v0 = vor.u32 %v5560_v17, %v5021_v22  ;;  %v5120_v42 = vor.u32 %v5584_v44, %v5117_v40  ;;  %v5009_v23 = vld [vmem:[%s8701_s1 + $0x8dc] sm:$0xf0] }
 0x10b   :  { %v2755_v8 = vadd.f32 %v7218_v45, %v2731_v59 }
 0x10c   :  { %3105 = vmatpush.bf16.msra.mxu1 %v4460_v6  ;;  %3218 = vmatpush.bf16.msrb.mxu2 %v5024_v0  ;;  %v5557_v6 = vld [vmem:[%s8701_s1 + $0x8d4] sm:$0xf]  ;;  %v5105_v0 = vld [vmem:[%s8701_s1 + $0x99c] sm:$0xf0] }
 0x10d   :  { %v2779_v45 = vadd.f32 %v7258_v12, %v2755_v8  ;;  %v7384_v12 = vpop.f32.mrf.mxu3  ;;  %v5012_v17 = vor.u32 %v5557_v6, %v5009_v23  ;;  %3242 = vmatpush.bf16.msra.mxu3 %v5120_v42  ;;  %v5533_v42 = vld [vmem:[%s8701_s1 + $0x814] sm:$0xf]  ;;  %v5213_v23 = vld [vmem:[%s8701_s1 + $0xa74] sm:$0xf0] }
 0x10e   :  { %3177 = vmatpush.bf16.msra.mxu0 %v4748_v7 }
 0x10f   :  { %v7375_v1 = vadd.f32 %v2802_v43, %v2779_v45 }
 0x110   :  { %v2733_v33 = vpop.f32.mrf.mxu1  ;;  %3219 = vmatpush.bf16.msrb.mxu2 %v5012_v17 }
 0x111   :  { %v2734_v59 = vadd.f32 %v2733_v33, %v7146_v37  ;;  %v7386_v51 = vpop.f32.mrf.mxu2  ;;  %v2805_v43 = vpop.f32.mrf.mxu0  ;;  %v5536_v37 = vld [vmem:[%s8701_s1 + $0x82c] sm:$0xf]  ;;  %v5581_v33 = vld [vmem:[%s8701_s1 + $0x994] sm:$0xf] }
 0x113   :  { %v2758_v8 = vadd.f32 %v7266_v48, %v2734_v59  ;;  %3015 = vmatmul.bf16.gmra.mxu1 %v5985_v28  ;;  %v4925_v48 = vld [vmem:[%s8701_s1 + $0x834] sm:$0xf0] }
 0x114   :  { %v4928_v7 = vor.u32 %v5536_v37, %v4925_v48  ;;  %3092 = vmatmul.bf16.gmra.mxu0 %v6583_v46  ;;  %v4913_v48 = vld [vmem:[%s8701_s1 + $0x81c] sm:$0xf0]  ;;  %v5129_v46 = vld [vmem:[%s8701_s1 + $0x9cc] sm:$0xf0] }
 0x115   :  { %v2782_v45 = vadd.f32 %v7310_v24, %v2758_v8  ;;  %v5108_v24 = vor.u32 %v5581_v33, %v5105_v0  ;;  %v7420_v44 = vpop.f32.mrf.mxu3  ;;  %v4916_v6 = vor.u32 %v5533_v42, %v4913_v48  ;;  %v5578_v0 = vld [vmem:[%s8701_s1 + $0x97c] sm:$0xf]  ;;  %v5605_v42 = vld [vmem:[%s8701_s1 + $0xa54] sm:$0xf] }
 0x116   :  { %3044 = vmatmul.bf16.gmra.mxu2 %v6172_v57  ;;  %3194 = vmatpush.bf16.msrb.mxu1 %v4928_v7  ;;  %v5542_v57 = vld [vmem:[%s8701_s1 + $0x85c] sm:$0xf] }
 0x117   :  { %v7410_v22 = vadd.f32 %v2805_v43, %v2782_v45  ;;  %3243 = vmatpush.bf16.msra.mxu3 %v5108_v24  ;;  %v4997_v45 = vld [vmem:[%s8701_s1 + $0x8c4] sm:$0xf0] }
 0x118   :  { %v2735_v59 = vpop.f32.mrf.mxu1 }
 0x119   :  { %v2736_v8 = vadd.f32 %v2735_v59, %v7193_v11  ;;  %v7422_v43 = vpop.f32.mrf.mxu2  ;;  %v2807_v37 = vpop.f32.mrf.mxu0  ;;  %v5608_v11 = vld [vmem:[%s8701_s1 + $0xa6c] sm:$0xf]  ;;  %v5093_v59 = vld [vmem:[%s8701_s1 + $0x984] sm:$0xf0] }
 0x11a   :  { %v5216_v17 = vor.u32 %v5608_v11, %v5213_v23  ;;  %3154 = vmatmul.bf16.vlgmr.msrb.gmra.mxu3 %v6438_v14  ;;  %3195 = vmatpush.bf16.msrb.mxu1 %v4916_v6  ;;  %v5096_v24 = vor.u32 %v5578_v0, %v5093_v59  ;;  %v5575_v0 = vld [vmem:[%s8701_s1 + $0x964] sm:$0xf]  ;;  %v5081_v59 = vld [vmem:[%s8701_s1 + $0x96c] sm:$0xf0] }
 0x11b   :  { %v2760_v40 = vadd.f32 %v7318_v25, %v2736_v8  ;;  %v5554_v25 = vld [vmem:[%s8701_s1 + $0x8bc] sm:$0xf] }
 0x11c   :  { %v5000_v33 = vor.u32 %v5554_v25, %v4997_v45  ;;  %3266 = vmatpush.bf16.msrb.mxu0 %v5216_v17  ;;  %3244 = vmatpush.bf16.msra.mxu3 %v5096_v24  ;;  %v5551_v25 = vld [vmem:[%s8701_s1 + $0x8a4] sm:$0xf]  ;;  %v4985_v45 = vld [vmem:[%s8701_s1 + $0x8ac] sm:$0xf0] }
 0x11d   :  { %v2784_v7 = vadd.f32 %v2783_v2, %v2760_v40  ;;  %v5530_v2 = vld [vmem:[%s8701_s1 + $0x7fc] sm:$0xf]  ;;  %v4901_v40 = vld [vmem:[%s8701_s1 + $0x804] sm:$0xf0]  ;;  %v7466_v6 = vpop.f32.mrf.mxu3  ;;  %v4988_v17 = vor.u32 %v5551_v25, %v4985_v45  ;;  %v5527_v24 = vld [vmem:[%s8701_s1 + $0x7e4] sm:$0xf] }
 0x11e   :  { %3220 = vmatpush.bf16.msrb.mxu2 %v5000_v33  ;;  %v4904_v11 = vor.u32 %v5530_v2, %v4901_v40  ;;  %v5084_v2 = vor.u32 %v5575_v0, %v5081_v59  ;;  %v4889_v40 = vld [vmem:[%s8701_s1 + $0x7ec] sm:$0xf0]  ;;  %v5548_v25 = vld [vmem:[%s8701_s1 + $0x88c] sm:$0xf]  ;;  %v4973_v45 = vld [vmem:[%s8701_s1 + $0x894] sm:$0xf0] }
 0x11f   :  { %v7450_v8 = vadd.f32 %v2807_v37, %v2784_v7  ;;  %v5201_v37 = vld [vmem:[%s8701_s1 + $0xa5c] sm:$0xf0]  ;;  %v5572_v0 = vld [vmem:[%s8701_s1 + $0x94c] sm:$0xf]  ;;  %v5069_v59 = vld [vmem:[%s8701_s1 + $0x954] sm:$0xf0] }
 0x120   :  { %v7461_v48 = vpop.f32.mrf.mxu1  ;;  %v5204_v23 = vor.u32 %v5605_v42, %v5201_v37  ;;  %3196 = vmatpush.bf16.msrb.mxu1 %v4904_v11  ;;  %v5602_v42 = vld [vmem:[%s8701_s1 + $0xa3c] sm:$0xf]  ;;  %v5189_v11 = vld [vmem:[%s8701_s1 + $0xa44] sm:$0xf0]  ;;  %v4892_v37 = vor.u32 %v5527_v24, %v4889_v40  ;;  %3245 = vmatpush.bf16.msra.mxu3 %v5084_v2  ;;  %v5072_v40 = vor.u32 %v5572_v0, %v5069_v59  ;;  %v5545_v2 = vld [vmem:[%s8701_s1 + $0x874] sm:$0xf] }
 0x121   :  { %v7474_v7 = vpop.f32.mrf.mxu2  ;;  %v7477_v33 = vpop.f32.mrf.mxu0  ;;  %v5599_v0 = vld [vmem:[%s8701_s1 + $0xa24] sm:$0xf]  ;;  %v2820_v58 = vadd.f32 %v7461_v48, %v7248_v9  ;;  %v3959_v9 = vld [vmem:[%s8701_s1 + $0x98] sm:$0xf] }
 0x122   :  { %3267 = vmatpush.bf16.msrb.mxu0 %v5204_v23  ;;  %3221 = vmatpush.bf16.msrb.mxu2 %v4988_v17  ;;  %v5192_v23 = vor.u32 %v5602_v42, %v5189_v11  ;;  %v4976_v17 = vor.u32 %v5548_v25, %v4973_v45  ;;  %v4961_v11 = vld [vmem:[%s8701_s1 + $0x87c] sm:$0xf0]  ;;  %v5295_v48 = vld [vmem:[%s8701_s1 + $0xa0] sm:$0xf0] }
 0x123   :  { %3020 = vmatmul.bf16.gmra.mxu1 %v6123_v34  ;;  %v4964_v25 = vor.u32 %v5545_v2, %v4961_v11  ;;  %v5569_v2 = vld [vmem:[%s8701_s1 + $0x934] sm:$0xf]  ;;  %v5057_v11 = vld [vmem:[%s8701_s1 + $0x93c] sm:$0xf0] }
 0x124   :  { %3178 = vmatmul.bf16.vlgmr.msra.gmra.mxu0 %v6679_v54  ;;  %3197 = vmatpush.bf16.msrb.mxu1 %v4892_v37  ;;  %v5060_v14 = vor.u32 %v5569_v2, %v5057_v11 }
 0x125   :  { %v7513_v42 = vpop.f32.mrf.mxu3  ;;  %3246 = vmatpush.bf16.msra.mxu3 %v5072_v40  ;;  %v5177_v40 = vld [vmem:[%s8701_s1 + $0xa2c] sm:$0xf0] }
 0x126   :  { %3130 = vmatmul.bf16.vlgmr.msra.gmra.mxu2 %v6295_v56  ;;  %3268 = vmatpush.bf16.msrb.mxu0 %v5192_v23  ;;  %v5524_v23 = vld [vmem:[%s8701_s1 + $0x7cc] sm:$0xf]  ;;  %v5180_v56 = vor.u32 %v5599_v0, %v5177_v40  ;;  %v5165_v0 = vld [vmem:[%s8701_s1 + $0xa14] sm:$0xf0]  ;;  %v5566_v40 = vld [vmem:[%s8701_s1 + $0x91c] sm:$0xf] }
 0x127   :  { %3222 = vmatpush.bf16.msrb.mxu2 %v4976_v17  ;;  %v4877_v17 = vld [vmem:[%s8701_s1 + $0x7d4] sm:$0xf0] }
 0x128   :  { %v7511_v24 = vpop.f32.mrf.mxu1  ;;  %v4880_v59 = vor.u32 %v5524_v23, %v4877_v17  ;;  %v4949_v23 = vld [vmem:[%s8701_s1 + $0x864] sm:$0xf0]  ;;  %v5596_v17 = vld [vmem:[%s8701_s1 + $0xa0c] sm:$0xf] }
 0x129   :  { %v7521_v37 = vpop.f32.mrf.mxu2  ;;  %v7523_v45 = vpop.f32.mrf.mxu0  ;;  %3247 = vmatpush.bf16.msra.mxu3 %v5060_v14  ;;  %v5168_v11 = vor.u32 %v5596_v17, %v5165_v0  ;;  %v5563_v17 = vld [vmem:[%s8701_s1 + $0x904] sm:$0xf]  ;;  %v5033_v0 = vld [vmem:[%s8701_s1 + $0x90c] sm:$0xf0] }
 0x12a   :  { %3159 = vmatmul.bf16.gmra.mxu3 %v6522_v3  ;;  %3198 = vmatpush.bf16.msrb.mxu1 %v4880_v59  ;;  %v5539_v59 = vld [vmem:[%s8701_s1 + $0x844] sm:$0xf] }
 0x12b   :  { %3223 = vmatpush.bf16.msrb.mxu2 %v4964_v25  ;;  %v4952_v25 = vor.u32 %v5542_v57, %v4949_v23  ;;  %3269 = vmatpush.bf16.msrb.mxu0 %v5180_v56  ;;  %v5045_v57 = vld [vmem:[%s8701_s1 + $0x924] sm:$0xf0]  ;;  %v4937_v23 = vld [vmem:[%s8701_s1 + $0x84c] sm:$0xf0] }
 0x12c   :  { %v5048_v14 = vor.u32 %v5566_v40, %v5045_v57  ;;  %v4940_v54 = vor.u32 %v5539_v59, %v4937_v23  ;;  %v5593_v40 = vld [vmem:[%s8701_s1 + $0x9f4] sm:$0xf]  ;;  %v5036_v57 = vor.u32 %v5563_v17, %v5033_v0  ;;  %v5153_v59 = vld [vmem:[%s8701_s1 + $0x9fc] sm:$0xf0]  ;;  %v5590_v17 = vld [vmem:[%s8701_s1 + $0x9dc] sm:$0xf] }
 0x12d   :  { %v7564_v56 = vpop.f32.mrf.mxu3  ;;  %v4865_v23 = vld [vmem:[%s8701_s1 + $0x7bc] sm:$0xf0]  ;;  %v5156_v19 = vor.u32 %v5593_v40, %v5153_v59  ;;  %v5141_v0 = vld [vmem:[%s8701_s1 + $0x9e4] sm:$0xf0] }
 0x12e   :  { %3248 = vmatpush.bf16.msra.mxu3 %v5048_v14  ;;  %v4853_v14 = vld [vmem:[%s8701_s1 + $0x7a4] sm:$0xf0] }
 0x12f   :  { %3224 = vmatpush.bf16.msrb.mxu2 %v4952_v25  ;;  %3270 = vmatpush.bf16.msrb.mxu0 %v5168_v11  ;;  %v5521_v11 = vld [vmem:[%s8701_s1 + $0x7b4] sm:$0xf]  ;;  %v4856_v59 = vor.u32 %v5518_v62, %v4853_v14  ;;  %v5515_v62 = vld [vmem:[%s8701_s1 + $0x784] sm:$0xf]  ;;  %v3971_v14 = vld [vmem:[%s8701_s1 + $0xb0] sm:$0xf] }
 0x130   :  { %v7559_v2 = vpop.f32.mrf.mxu1 }
 0x131   :  { %v7572_v3 = vpop.f32.mrf.mxu2  ;;  %v7575_v25 = vpop.f32.mrf.mxu0 }
 0x132   :  { %3249 = vmatpush.bf16.msra.mxu3 %v5036_v57  ;;  %v4841_v57 = vld [vmem:[%s8701_s1 + $0x78c] sm:$0xf0] }
 0x133   :  { %3106 = vmatmul.bf16.vlgmr.msra.gmra.mxu1 %v6237_v27  ;;  %3225 = vmatpush.bf16.msrb.mxu2 %v4940_v54  ;;  %v4868_v54 = vor.u32 %v5521_v11, %v4865_v23  ;;  %v5144_v11 = vor.u32 %v5590_v17, %v5141_v0  ;;  %v4844_v17 = vor.u32 %v5515_v62, %v4841_v57  ;;  %v5298_v0 = vld [vmem:[%s8701_s1 + $0xb8] sm:$0xf0] }
 0x134   :  { %3183 = vmatmul.bf16.gmra.mxu0 %v6772_v20 }
 0x135   :  { %3271 = vmatpush.bf16.msrb.mxu0 %v5156_v19  ;;  %3199 = vmatpush.bf16.msrb.mxu1 %v4868_v54  ;;  %v7611_v23 = vpop.f32.mrf.mxu3  ;;  %v5587_v19 = vld [vmem:[%s8701_s1 + $0x9c4] sm:$0xf] }
 0x136   :  { %3135 = vmatmul.bf16.gmra.mxu2 %v6391_v50  ;;  %v5132_v54 = vor.u32 %v5587_v19, %v5129_v46  ;;  %v3972_v46 = vor.u32 %v5298_v0, %v3971_v14  ;;  %v5322_v14 = vld [vmem:[%s8701_s1 + $0x178] sm:$0xf0] }
 0x138   :  { %v7609_v40 = vpop.f32.mrf.mxu1  ;;  %3314 = vmatpush.bf16.msra.mxu2 %v3972_v46  ;;  %v2844_v46 = vadd.f32 %v7358_v38, %v2820_v58 }
 0x139   :  { %v7613_v20 = vpop.f32.mrf.mxu2  ;;  %v7615_v50 = vpop.f32.mrf.mxu0  ;;  %3272 = vmatpush.bf16.msrb.mxu0 %v5144_v11  ;;  %3200 = vmatpush.bf16.msrb.mxu1 %v4856_v59 }
 0x13a   :  { %3164 = vmatmul.bf16.gmra.mxu3 %v6600_v55 }
 0x13d   :  { %3273 = vmatpush.bf16.msrb.mxu0 %v5132_v54  ;;  %3201 = vmatpush.bf16.msrb.mxu1 %v4844_v17  ;;  %v2963_v11 = vpop.f32.mrf.mxu3  ;;  %v4067_v54 = vld [vmem:[%s8701_s1 + $0x170] sm:$0xf]  ;;  %v5631_v17 = vld [vmem:[%s8701_s1 + $0xa80] sm:$0xff] }
 0x13e   :  { %v2964_v21 = vadd.f32 %v2963_v11, %v6833_v32  ;;  %v1897_v0 = vunpack.c.h.b16 %v5631_v17  ;;  %v4055_v17 = vld [vmem:[%s8701_s1 + $0x158] sm:$0xf]  ;;  %v5319_v32 = vld [vmem:[%s8701_s1 + $0x160] sm:$0xf0] }
 0x140   :  { %v7636_v59 = vpop.f32.mrf.mxu1  ;;  %v2236_v11 = vpack.c.b16 %v1897_v0, %v1897_v0  ;;  %v2868_v0 = vadd.f32 %v7384_v12, %v2844_v46  ;;  %v5316_v46 = vld [vmem:[%s8701_s1 + $0x148] sm:$0xf0] }
 0x141   :  { %v7638_v19 = vpop.f32.mrf.mxu2  ;;  %v2987_v62 = vpop.f32.mrf.mxu0 }
 0x142   :  { %v7644_v57 = vadd.f32 %v2987_v62, %v2964_v21  ;;  %v4068_v21 = vor.u32 %v5322_v14, %v4067_v54  ;;  %v3960_v62 = vor.u32 %v5295_v48, %v3959_v9  ;;  %v4056_v54 = vor.u32 %v5319_v32, %v4055_v17  ;;  %v4163_v32 = vld [vmem:[%s8701_s1 + $0x230] sm:$0xf] }
 0x143   :  { %3111 = vmatmul.bf16.gmra.mxu1 %v6345_v26  ;;  %v2822_v9 = vadd.f32 %v7511_v24, %v7295_v30  ;;  %v5292_v30 = vld [vmem:[%s8701_s1 + $0x88] sm:$0xf0]  ;;  %v4043_v24 = vld [vmem:[%s8701_s1 + $0x140] sm:$0xf] }
 0x144   :  { %3188 = vmatmul.bf16.gmra.mxu0 %v6872_v47  ;;  %3338 = vmatpush.bf16.msrb.mxu3 %v4068_v21  ;;  %v2589_v47 = vsel %vm2584_vm0, %v2236_v11, 0  ;;  %v5346_v21 = vld [vmem:[%s8701_s1 + $0x238] sm:$0xf0]  ;;  %v2892_v11 = vadd.f32 %v7477_v33, %v2868_v0  ;;  %v5289_v33 = vld [vmem:[%s8701_s1 + $0x70] sm:$0xf0] }
 0x145   :  { %v2965_v14 = vpop.f32.mrf.mxu3  ;;  %3315 = vmatpush.bf16.msra.mxu2 %v3960_v62  ;;  %3297 = vmatpush.bf16.msra.mxu1 %v2589_v47  ;;  %v3947_v47 = vld [vmem:[%s8701_s1 + $0x80] sm:$0xf]  ;;  %v4164_v12 = vor.u32 %v5346_v21, %v4163_v32  ;;  %v2846_v62 = vadd.f32 %v7386_v51, %v2822_v9  ;;  %v3935_v51 = vld [vmem:[%s8701_s1 + $0x68] sm:$0xf] }
 0x146   :  { %3140 = vmatmul.bf16.gmra.mxu2 %v6493_v49  ;;  %v2966_v38 = vadd.f32 %v2965_v14, %v6915_v18  ;;  %v3948_v17 = vor.u32 %v5292_v30, %v3947_v47  ;;  %v4151_v14 = vld [vmem:[%s8701_s1 + $0x218] sm:$0xf]  ;;  %v3936_v47 = vor.u32 %v5289_v33, %v3935_v51 }
 0x147   :  { %3362 = vmatpush.bf16.msra.mxu0 %v4164_v12  ;;  %v2870_v30 = vadd.f32 %v7420_v44, %v2846_v62  ;;  %v2825_v12 = vadd.f32 %v7559_v2, %v7342_v53  ;;  %v4139_v53 = vld [vmem:[%s8701_s1 + $0x200] sm:$0xf]  ;;  %v5340_v44 = vld [vmem:[%s8701_s1 + $0x208] sm:$0xf0]  ;;  %v3923_v2 = vld [vmem:[%s8701_s1 + $0x50] sm:$0xf] }
 0x148   :  { %v7670_v55 = vpop.f32.mrf.mxu1  ;;  %3339 = vmatpush.bf16.msrb.mxu3 %v4056_v54  ;;  %v4044_v54 = vor.u32 %v5316_v46, %v4043_v24  ;;  %v5286_v62 = vld [vmem:[%s8701_s1 + $0x58] sm:$0xf0] }
 0x149   :  { %v2939_v58 = vpop.f32.mrf.mxu2  ;;  %v2989_v48 = vpop.f32.mrf.mxu0  ;;  %3316 = vmatpush.bf16.msra.mxu2 %v3948_v17  ;;  %v5313_v17 = vld [vmem:[%s8701_s1 + $0x130] sm:$0xf0] }
 0x14a   :  { %v7677_v49 = vadd.f32 %v2989_v48, %v2966_v38  ;;  %3250 = vmatmul.bf16.vlgmr.msra.gmra.mxu3 %v6700_v13  ;;  %v5343_v38 = vld [vmem:[%s8701_s1 + $0x220] sm:$0xf0] }
 0x14b   :  { %v4152_v32 = vor.u32 %v5343_v38, %v4151_v14  ;;  %v2894_v14 = vadd.f32 %v7523_v45, %v2870_v30  ;;  %v2849_v38 = vadd.f32 %v7422_v43, %v2825_v12  ;;  %v3911_v43 = vld [vmem:[%s8701_s1 + $0x38] sm:$0xf]  ;;  %v5283_v45 = vld [vmem:[%s8701_s1 + $0x40] sm:$0xf0] }
 0x14c   :  { %3340 = vmatpush.bf16.msrb.mxu3 %v4044_v54 }
 0x14d   :  { %v2968_v13 = vpop.f32.mrf.mxu3  ;;  %3363 = vmatpush.bf16.msra.mxu0 %v4152_v32  ;;  %3317 = vmatpush.bf16.msra.mxu2 %v3936_v47  ;;  %v4019_v32 = vld [vmem:[%s8701_s1 + $0x110] sm:$0xf] }
 0x14e   :  { %v2969_v9 = vadd.f32 %v2968_v13, %v6954_v39 }
 0x150   :  { %v2915_v48 = vpop.f32.mrf.mxu1 }
 0x151   :  { %v2916_v21 = vadd.f32 %v2915_v48, %v2892_v11  ;;  %v2941_v0 = vpop.f32.mrf.mxu2  ;;  %v2992_v46 = vpop.f32.mrf.mxu0  ;;  %v4031_v11 = vld [vmem:[%s8701_s1 + $0x128] sm:$0xf]  ;;  %v3924_v48 = vor.u32 %v5286_v62, %v3923_v2  ;;  %v4007_v2 = vld [vmem:[%s8701_s1 + $0xf8] sm:$0xf]  ;;  %v5280_v62 = vld [vmem:[%s8701_s1 + $0x28] sm:$0xf0] }
 0x152   :  { %v7723_v54 = vadd.f32 %v2992_v46, %v2969_v9  ;;  %v4032_v13 = vor.u32 %v5313_v17, %v4031_v11  ;;  %v2873_v46 = vadd.f32 %v7466_v6, %v2849_v38  ;;  %v2827_v11 = vadd.f32 %v7609_v40, %v7375_v1  ;;  %v5307_v1 = vld [vmem:[%s8701_s1 + $0x100] sm:$0xf0] }
 0x153   :  { %v2940_v24 = vadd.f32 %v2939_v58, %v2916_v21  ;;  %3116 = vmatmul.bf16.gmra.mxu1 %v6441_v15  ;;  %v4140_v58 = vor.u32 %v5340_v44, %v4139_v53  ;;  %v5310_v21 = vld [vmem:[%s8701_s1 + $0x118] sm:$0xf0]  ;;  %3318 = vmatpush.bf16.msra.mxu2 %v3924_v48  ;;  %v4127_v53 = vld [vmem:[%s8701_s1 + $0x1e8] sm:$0xf]  ;;  %v5337_v44 = vld [vmem:[%s8701_s1 + $0x1f0] sm:$0xf0]  ;;  %v4008_v40 = vor.u32 %v5307_v1, %v4007_v2 }
 0x154   :  { %3274 = vmatmul.bf16.vlgmr.msrb.gmra.mxu0 %v6995_v63  ;;  %3341 = vmatpush.bf16.msrb.mxu3 %v4032_v13  ;;  %v4020_v33 = vor.u32 %v5310_v21, %v4019_v32  ;;  %v4128_v6 = vor.u32 %v5337_v44, %v4127_v53  ;;  %v2897_v38 = vadd.f32 %v7575_v25, %v2873_v46  ;;  %v4115_v32 = vld [vmem:[%s8701_s1 + $0x1d0] sm:$0xf]  ;;  %v5334_v21 = vld [vmem:[%s8701_s1 + $0x1d8] sm:$0xf0]  ;;  %v5304_v25 = vld [vmem:[%s8701_s1 + $0xe8] sm:$0xf0] }
 0x155   :  { %3674 = vst [vmem:[%s8704_s3] sm:$0xff] %v2940_v24  ;;  %3364 = vmatpush.bf16.msra.mxu0 %v4140_v58  ;;  %v2970_v47 = vpop.f32.mrf.mxu3  ;;  %v3912_v24 = vor.u32 %v5283_v45, %v3911_v43  ;;  %v2851_v48 = vadd.f32 %v7474_v7, %v2827_v11  ;;  %v3887_v45 = vld [vmem:[%s8701_s1 + $0x8] sm:$0xf] }
 0x156   :  { %3226 = vmatmul.bf16.vlgmr.msrb.gmra.mxu2 %v6559_v36  ;;  %v2971_v12 = vadd.f32 %v2970_v47, %v7038_v10  ;;  %v3983_v2 = vld [vmem:[%s8701_s1 + $0xc8] sm:$0xf] }
 0x157   :  { %3319 = vmatpush.bf16.msra.mxu2 %v3912_v24 }
 0x158   :  { %v2917_v51 = vpop.f32.mrf.mxu1  ;;  %3342 = vmatpush.bf16.msrb.mxu3 %v4020_v33 }
 0x159   :  { %v2918_v9 = vadd.f32 %v2917_v51, %v2894_v14  ;;  %v2944_v30 = vpop.f32.mrf.mxu2  ;;  %v2994_v13 = vpop.f32.mrf.mxu0  ;;  %3365 = vmatpush.bf16.msra.mxu0 %v4128_v6  ;;  %v3995_v51 = vld [vmem:[%s8701_s1 + $0xe0] sm:$0xf]  ;;  %v5301_v6 = vld [vmem:[%s8701_s1 + $0xd0] sm:$0xf0] }
 0x15a   :  { %v7769_v58 = vadd.f32 %v2994_v13, %v2971_v12  ;;  %3255 = vmatmul.bf16.gmra.mxu3 %v6796_v41  ;;  %v3996_v43 = vor.u32 %v5304_v25, %v3995_v51  ;;  %v5277_v12 = vld [vmem:[%s8701_s1 + $0x10] sm:$0xf0]  ;;  %v2830_v13 = vadd.f32 %v7636_v59, %v7410_v22  ;;  %v3984_v22 = vor.u32 %v5301_v6, %v3983_v2  ;;  %v5331_v59 = vld [vmem:[%s8701_s1 + $0x1c0] sm:$0xf0] }
 0x15b   :  { %v2942_v17 = vadd.f32 %v2941_v0, %v2918_v9  ;;  %v3899_v0 = vld [vmem:[%s8701_s1 + $0x20] sm:$0xf]  ;;  %v4116_v9 = vor.u32 %v5334_v21, %v4115_v32  ;;  %v3888_v11 = vor.u32 %v5277_v12, %v3887_v45  ;;  %v4355_v45 = vld [vmem:[%s8701_s1 + $0x3b0] sm:$0xf] }
 0x15c   :  { %v3900_v14 = vor.u32 %v5280_v62, %v3899_v0  ;;  %3343 = vmatpush.bf16.msrb.mxu3 %v4008_v40  ;;  %v2854_v0 = vadd.f32 %v7521_v37, %v2830_v13  ;;  %v4091_v62 = vld [vmem:[%s8701_s1 + $0x1a0] sm:$0xf]  ;;  %v2832_v37 = vadd.f32 %v7670_v55, %v7450_v8  ;;  %v5394_v8 = vld [vmem:[%s8701_s1 + $0x3b8] sm:$0xf0]  ;;  %v8777_v6 = vld [vmem:[#allocation20_spill] sm:$0xff] }
 0x15d   :  { %3678 = vst [vmem:[%s8704_s3 + $0x18] sm:$0xff] %v2942_v17  ;;  %v2973_v47 = vpop.f32.mrf.mxu3  ;;  %3366 = vmatpush.bf16.msra.mxu0 %v4116_v9  ;;  %v2875_v17 = vadd.f32 %v7513_v42, %v2851_v48  ;;  %v4103_v42 = vld [vmem:[%s8701_s1 + $0x1b8] sm:$0xf] }
 0x15e   :  { %3320 = vmatpush.bf16.msra.mxu2 %v3900_v14  ;;  %v2974_v46 = vadd.f32 %v2973_v47, %v7071_v16  ;;  %v5328_v14 = vld [vmem:[%s8701_s1 + $0x1a8] sm:$0xf0]  ;;  %v2878_v25 = vadd.f32 %v7564_v56, %v2854_v0  ;;  %v4079_v47 = vld [vmem:[%s8701_s1 + $0x188] sm:$0xf]  ;;  %v4356_v56 = vor.u32 %v5394_v8, %v4355_v45  ;;  %v5391_v0 = vld [vmem:[%s8701_s1 + $0x3a0] sm:$0xf0] }
 0x15f   :  { %v2899_v40 = vadd.f32 %v7615_v50, %v2875_v17  ;;  %v4092_v48 = vor.u32 %v5328_v14, %v4091_v62  ;;  %v8775_v50 = vld [vmem:[#allocation32_spill] sm:$0xff]  ;;  %v5442_v8 = vld [vmem:[%s8701_s1 + $0x538] sm:$0xf0] }
 0x160   :  { %v2920_v33 = vpop.f32.mrf.mxu1  ;;  %3344 = vmatpush.bf16.msrb.mxu3 %v3996_v43  ;;  %v5325_v43 = vld [vmem:[%s8701_s1 + $0x190] sm:$0xf0]  ;;  %v4547_v45 = vld [vmem:[%s8701_s1 + $0x530] sm:$0xf] }
 0x161   :  { %v2921_v7 = vadd.f32 %v2920_v33, %v2897_v38  ;;  %v2946_v24 = vpop.f32.mrf.mxu2  ;;  %v2997_v44 = vpop.f32.mrf.mxu0  ;;  %v4080_v55 = vor.u32 %v5325_v43, %v4079_v47  ;;  %v5367_v43 = vld [vmem:[%s8701_s1 + $0x2e0] sm:$0xf0] }
 0x162   :  { %v7818_v1 = vadd.f32 %v2997_v44, %v2974_v46  ;;  %3321 = vmatpush.bf16.msra.mxu2 %v3888_v11  ;;  %v2856_v46 = vadd.f32 %v7572_v3, %v2832_v37  ;;  %v2902_v11 = vadd.f32 %v7613_v20, %v2878_v25  ;;  %v4451_v3 = vld [vmem:[%s8701_s1 + $0x470] sm:$0xf]  ;;  %v5418_v20 = vld [vmem:[%s8701_s1 + $0x478] sm:$0xf0] }
 0x163   :  { %v2945_v53 = vadd.f32 %v2944_v30, %v2921_v7  ;;  %3202 = vmatmul.bf16.vlgmr.msrb.gmra.mxu1 %v6525_v4  ;;  %v4104_v30 = vor.u32 %v5331_v59, %v4103_v42  ;;  %v4259_v59 = vld [vmem:[%s8701_s1 + $0x2f0] sm:$0xf] }
 0x164   :  { %3279 = vmatmul.bf16.gmra.mxu0 %v7100_v52  ;;  %3345 = vmatpush.bf16.msrb.mxu3 %v3984_v22  ;;  %v2880_v42 = vadd.f32 %v7611_v23, %v2856_v46  ;;  %v4343_v23 = vld [vmem:[%s8701_s1 + $0x398] sm:$0xf]  ;;  %v5388_v46 = vld [vmem:[%s8701_s1 + $0x388] sm:$0xf0] }
 0x165   :  { %3681 = vst [vmem:[%s8704_s3 + $0x30] sm:$0xff] %v2945_v53  ;;  %3367 = vmatpush.bf16.msra.mxu0 %v4104_v30  ;;  %v2975_v21 = vpop.f32.mrf.mxu3  ;;  %v4452_v30 = vor.u32 %v5418_v20, %v4451_v3  ;;  %v4344_v14 = vor.u32 %v5391_v0, %v4343_v23  ;;  %v4235_v3 = vld [vmem:[%s8701_s1 + $0x2c0] sm:$0xf]  ;;  %v5364_v20 = vld [vmem:[%s8701_s1 + $0x2c8] sm:$0xf0] }
 0x166   :  { %3231 = vmatmul.bf16.gmra.mxu2 %v6646_v35  ;;  %v2976_v33 = vadd.f32 %v2975_v21, %v8775_v50  ;;  %v5415_v21 = vld [vmem:[%s8701_s1 + $0x460] sm:$0xf0] }
 0x167   :  { %3410 = vmatpush.bf16.msrb.mxu2 %v4356_v56  ;;  %v4331_v56 = vld [vmem:[%s8701_s1 + $0x380] sm:$0xf] }
 0x168   :  { %v2922_v38 = vpop.f32.mrf.mxu1  ;;  %3434 = vmatpush.bf16.msra.mxu3 %v4452_v30  ;;  %v4236_v30 = vor.u32 %v5364_v20, %v4235_v3  ;;  %v5406_v3 = vld [vmem:[%s8701_s1 + $0x418] sm:$0xf0] }
 0x169   :  { %v2923_v32 = vadd.f32 %v2922_v38, %v2899_v40  ;;  %v2949_v51 = vpop.f32.mrf.mxu2  ;;  %v2999_v7 = vpop.f32.mrf.mxu0  ;;  %3368 = vmatpush.bf16.msra.mxu0 %v4092_v48  ;;  %v5370_v40 = vld [vmem:[%s8701_s1 + $0x2f8] sm:$0xf0]  ;;  %v8778_v38 = vld [vmem:[#allocation24_spill] sm:$0xff]  ;;  %v2904_v48 = vadd.f32 %v7638_v19, %v2880_v42  ;;  %v4247_v19 = vld [vmem:[%s8701_s1 + $0x2d8] sm:$0xf] }
 0x16a   :  { %v7849_v12 = vadd.f32 %v2999_v7, %v2976_v33  ;;  %v4260_v62 = vor.u32 %v5370_v40, %v4259_v59  ;;  %v4535_v59 = vld [vmem:[%s8701_s1 + $0x518] sm:$0xf]  ;;  %v5439_v40 = vld [vmem:[%s8701_s1 + $0x520] sm:$0xf0] }
 0x16b   :  { %v2947_v9 = vadd.f32 %v2946_v24, %v2923_v32  ;;  %v8776_v24 = vld [vmem:[#allocation26_spill] sm:$0xff]  ;;  %v4439_v32 = vld [vmem:[%s8701_s1 + $0x458] sm:$0xf]  ;;  %3411 = vmatpush.bf16.msrb.mxu2 %v4344_v14  ;;  %v4536_v0 = vor.u32 %v5439_v40, %v4535_v59 }
 0x16c   :  { %3260 = vmatmul.bf16.gmra.mxu3 %v8776_v24  ;;  %3386 = vmatpush.bf16.msrb.mxu1 %v4260_v62  ;;  %v4440_v33 = vor.u32 %v5415_v21, %v4439_v32  ;;  %v5385_v32 = vld [vmem:[%s8701_s1 + $0x370] sm:$0xf0]  ;;  %v4295_v40 = vld [vmem:[%s8701_s1 + $0x338] sm:$0xf] }
 0x16d   :  { %3684 = vst [vmem:[%s8704_s3 + $0x48] sm:$0xff] %v2947_v9  ;;  %3369 = vmatpush.bf16.msra.mxu0 %v4080_v55  ;;  %v7860_v53 = vpop.f32.mrf.mxu3  ;;  %v4248_v55 = vor.u32 %v5367_v43, %v4247_v19  ;;  %v5409_v19 = vld [vmem:[%s8701_s1 + $0x430] sm:$0xf0]  ;;  %v4223_v43 = vld [vmem:[%s8701_s1 + $0x2a8] sm:$0xf] }
 0x16e   :  { %3435 = vmatpush.bf16.msra.mxu3 %v4440_v33 }
 0x170   :  { %v2925_v17 = vpop.f32.mrf.mxu1  ;;  %3387 = vmatpush.bf16.msrb.mxu1 %v4248_v55  ;;  %v4523_v55 = vld [vmem:[%s8701_s1 + $0x500] sm:$0xf] }
 0x171   :  { %v2926_v13 = vadd.f32 %v2925_v17, %v2902_v11  ;;  %v2951_v44 = vpop.f32.mrf.mxu2  ;;  %v7864_v22 = vpop.f32.mrf.mxu0  ;;  %v4548_v11 = vor.u32 %v5442_v8, %v4547_v45  ;;  %v4332_v17 = vor.u32 %v5388_v46, %v4331_v56  ;;  %v5436_v8 = vld [vmem:[%s8701_s1 + $0x508] sm:$0xf0] }
 0x172   :  { %v4524_v46 = vor.u32 %v5436_v8, %v4523_v55  ;;  %v5376_v55 = vld [vmem:[%s8701_s1 + $0x328] sm:$0xf0] }
 0x173   :  { %v2950_v2 = vadd.f32 %v2949_v51, %v2926_v13  ;;  %3207 = vmatmul.bf16.gmra.mxu1 %v8777_v6  ;;  %v4427_v13 = vld [vmem:[%s8701_s1 + $0x440] sm:$0xf]  ;;  %3458 = vmatpush.bf16.msrb.mxu0 %v4548_v11  ;;  %v4307_v11 = vld [vmem:[%s8701_s1 + $0x350] sm:$0xf] }
 0x174   :  { %3284 = vmatmul.bf16.gmra.mxu0 %v7195_v61  ;;  %3412 = vmatpush.bf16.msrb.mxu2 %v4332_v17  ;;  %v5382_v17 = vld [vmem:[%s8701_s1 + $0x358] sm:$0xf0] }
 0x175   :  { %3687 = vst [vmem:[%s8704_s3 + $0x60] sm:$0xff] %v2950_v2  ;;  %v7896_v9 = vpop.f32.mrf.mxu3  ;;  %v8779_v2 = vld [vmem:[#allocation7_spill] sm:$0xff]  ;;  %3388 = vmatpush.bf16.msrb.mxu1 %v4236_v30 }
 0x176   :  { %3236 = vmatmul.bf16.gmra.mxu2 %v8778_v38 }
 0x177   :  { %3459 = vmatpush.bf16.msrb.mxu0 %v4536_v0 }
 0x178   :  { %v2927_v51 = vpop.f32.mrf.mxu1 }
 0x179   :  { %v2928_v37 = vadd.f32 %v2927_v51, %v2904_v48  ;;  %v3035_v25 = vpop.f32.mrf.mxu2  ;;  %v7898_v47 = vpop.f32.mrf.mxu0  ;;  %v4319_v48 = vld [vmem:[%s8701_s1 + $0x368] sm:$0xf] }
 0x17a   :  { %v4320_v51 = vor.u32 %v5385_v32, %v4319_v48  ;;  %v5358_v32 = vld [vmem:[%s8701_s1 + $0x298] sm:$0xf0] }
 0x17b   :  { %v2952_v7 = vadd.f32 %v2951_v44, %v2928_v37  ;;  %v5412_v44 = vld [vmem:[%s8701_s1 + $0x448] sm:$0xf0]  ;;  %3460 = vmatpush.bf16.msrb.mxu0 %v4524_v46 }
 0x17c   :  { %3346 = vmatmul.bf16.vlgmr.msrb.gmra.mxu3 %v8779_v2  ;;  %v4428_v42 = vor.u32 %v5412_v44, %v4427_v13  ;;  %v8780_v37 = vld [vmem:[#allocation23_spill] sm:$0xff]  ;;  %3413 = vmatpush.bf16.msrb.mxu2 %v4320_v51  ;;  %v4308_v44 = vor.u32 %v5382_v17, %v4307_v11  ;;  %v8781_v2 = vld [vmem:[#allocation2_spill] sm:$0xff]  ;;  %v4499_v11 = vld [vmem:[%s8701_s1 + $0x4d0] sm:$0xf] }
 0x17d   :  { %3690 = vst [vmem:[%s8704_s3 + $0x78] sm:$0xff] %v2952_v7  ;;  %v7941_v14 = vpop.f32.mrf.mxu3  ;;  %v4511_v51 = vld [vmem:[%s8701_s1 + $0x4e8] sm:$0xf]  ;;  %v5430_v17 = vld [vmem:[%s8701_s1 + $0x4d8] sm:$0xf0] }
 0x17e   :  { %3436 = vmatpush.bf16.msra.mxu3 %v4428_v42  ;;  %v4403_v42 = vld [vmem:[%s8701_s1 + $0x410] sm:$0xf] }
 0x180   :  { %v3011_v23 = vpop.f32.mrf.mxu1  ;;  %3414 = vmatpush.bf16.msrb.mxu2 %v4308_v44 }
 0x181   :  { %v3012_v62 = vadd.f32 %v3011_v23, %v7644_v57  ;;  %v3037_v21 = vpop.f32.mrf.mxu2  ;;  %v7950_v7 = vpop.f32.mrf.mxu0  ;;  %v4415_v57 = vld [vmem:[%s8701_s1 + $0x428] sm:$0xf]  ;;  %v5379_v23 = vld [vmem:[%s8701_s1 + $0x340] sm:$0xf0] }
 0x182   :  { %v4416_v45 = vor.u32 %v5409_v19, %v4415_v57  ;;  %v5433_v57 = vld [vmem:[%s8701_s1 + $0x4f0] sm:$0xf0]  ;;  %v5403_v19 = vld [vmem:[%s8701_s1 + $0x400] sm:$0xf0] }
 0x183   :  { %v3036_v33 = vadd.f32 %v3035_v25, %v3012_v62  ;;  %3212 = vmatmul.bf16.gmra.mxu1 %v8780_v37  ;;  %v5361_v25 = vld [vmem:[%s8701_s1 + $0x2b0] sm:$0xf0] }
 0x184   :  { %v4224_v56 = vor.u32 %v5361_v25, %v4223_v43  ;;  %3370 = vmatmul.bf16.vlgmr.msra.gmra.mxu0 %v5852_v29  ;;  %3437 = vmatpush.bf16.msra.mxu3 %v4416_v45  ;;  %v4404_v29 = vor.u32 %v5406_v3, %v4403_v42  ;;  %v4512_v43 = vor.u32 %v5433_v57, %v4511_v51  ;;  %v4283_v25 = vld [vmem:[%s8701_s1 + $0x320] sm:$0xf]  ;;  %v5400_v42 = vld [vmem:[%s8701_s1 + $0x3e8] sm:$0xf0]  ;;  %v4367_v51 = vld [vmem:[%s8701_s1 + $0x3c8] sm:$0xf] }
 0x185   :  { %v3060_v13 = vadd.f32 %v7860_v53, %v3036_v33  ;;  %v7989_v30 = vpop.f32.mrf.mxu3  ;;  %v4284_v46 = vor.u32 %v5376_v55, %v4283_v25  ;;  %v4487_v57 = vld [vmem:[%s8701_s1 + $0x4b8] sm:$0xf]  ;;  %v5352_v25 = vld [vmem:[%s8701_s1 + $0x268] sm:$0xf0] }
 0x186   :  { %3322 = vmatmul.bf16.vlgmr.msra.gmra.mxu2 %v8781_v2  ;;  %3389 = vmatpush.bf16.msrb.mxu1 %v4224_v56  ;;  %v8782_v56 = vld [vmem:[#allocation9_spill] sm:$0xff]  ;;  %v4500_v2 = vor.u32 %v5430_v17, %v4499_v11  ;;  %v5424_v11 = vld [vmem:[%s8701_s1 + $0x4a8] sm:$0xf0] }
 0x187   :  { %v7986_v20 = vadd.f32 %v7864_v22, %v3060_v13  ;;  %v4296_v22 = vor.u32 %v5379_v23, %v4295_v40  ;;  %3461 = vmatpush.bf16.msrb.mxu0 %v4512_v43  ;;  %v4379_v13 = vld [vmem:[%s8701_s1 + $0x3e0] sm:$0xf] }
 0x188   :  { %v3013_v59 = vpop.f32.mrf.mxu1  ;;  %3438 = vmatpush.bf16.msra.mxu3 %v4404_v29  ;;  %v4380_v29 = vor.u32 %v5400_v42, %v4379_v13 }
 0x189   :  { %v3014_v53 = vadd.f32 %v3013_v59, %v7677_v49  ;;  %v3040_v0 = vpop.f32.mrf.mxu2  ;;  %v7997_v48 = vpop.f32.mrf.mxu0  ;;  %v4211_v49 = vld [vmem:[%s8701_s1 + $0x290] sm:$0xf]  ;;  %3415 = vmatpush.bf16.msrb.mxu2 %v4296_v22 }
 0x18a   :  { %v4212_v33 = vor.u32 %v5358_v32, %v4211_v49  ;;  %v5355_v32 = vld [vmem:[%s8701_s1 + $0x280] sm:$0xf0] }
 0x18b   :  { %v3038_v62 = vadd.f32 %v3037_v21, %v3014_v53  ;;  %v4391_v21 = vld [vmem:[%s8701_s1 + $0x3f8] sm:$0xf]  ;;  %v4271_v53 = vld [vmem:[%s8701_s1 + $0x308] sm:$0xf]  ;;  %3462 = vmatpush.bf16.msrb.mxu0 %v4500_v2 }
 0x18c   :  { %v4392_v45 = vor.u32 %v5403_v19, %v4391_v21  ;;  %3351 = vmatmul.bf16.gmra.mxu3 %v8782_v56  ;;  %3390 = vmatpush.bf16.msrb.mxu1 %v4212_v33  ;;  %v5427_v21 = vld [vmem:[%s8701_s1 + $0x4c0] sm:$0xf0]  ;;  %v8784_v56 = vld [vmem:[#allocation5_spill] sm:$0xff] }
 0x18d   :  { %v3062_v8 = vadd.f32 %v7896_v9, %v3038_v62  ;;  %3416 = vmatpush.bf16.msrb.mxu2 %v4284_v46  ;;  %v8041_v59 = vpop.f32.mrf.mxu3  ;;  %v8783_v62 = vld [vmem:[#allocation29_spill] sm:$0xff]  ;;  %v4488_v43 = vor.u32 %v5427_v21, %v4487_v57  ;;  %v4475_v46 = vld [vmem:[%s8701_s1 + $0x4a0] sm:$0xf] }
 0x18e   :  { %3439 = vmatpush.bf16.msra.mxu3 %v4392_v45  ;;  %v4187_v45 = vld [vmem:[%s8701_s1 + $0x260] sm:$0xf] }
 0x18f   :  { %v8035_v9 = vadd.f32 %v7898_v47, %v3062_v8  ;;  %v5373_v47 = vld [vmem:[%s8701_s1 + $0x310] sm:$0xf0]  ;;  %v4188_v8 = vor.u32 %v5352_v25, %v4187_v45  ;;  %3463 = vmatpush.bf16.msrb.mxu0 %v4488_v43  ;;  %v8786_v45 = vld [vmem:[#allocation30_spill] sm:$0xff] }
 0x190   :  { %v3016_v44 = vpop.f32.mrf.mxu1  ;;  %v4272_v23 = vor.u32 %v5373_v47, %v4271_v53  ;;  %v5421_v47 = vld [vmem:[%s8701_s1 + $0x490] sm:$0xf0] }
 0x191   :  { %v3017_v3 = vadd.f32 %v3016_v44, %v7723_v54  ;;  %v3042_v40 = vpop.f32.mrf.mxu2  ;;  %v8051_v49 = vpop.f32.mrf.mxu0  ;;  %v4199_v54 = vld [vmem:[%s8701_s1 + $0x278] sm:$0xf] }
 0x192   :  { %v4200_v33 = vor.u32 %v5355_v32, %v4199_v54  ;;  %3440 = vmatpush.bf16.msra.mxu3 %v4380_v29  ;;  %3417 = vmatpush.bf16.msrb.mxu2 %v4272_v23  ;;  %v4175_v29 = vld [vmem:[%s8701_s1 + $0x248] sm:$0xf]  ;;  %v5490_v23 = vld [vmem:[%s8701_s1 + $0x6b8] sm:$0xf0] }
 0x193   :  { %v3041_v22 = vadd.f32 %v3040_v0, %v3017_v3  ;;  %5224 = vmatmul.msk.bf16.vlgmr.msra.gmra.mxu1 %vm2574_vm1, %v8783_v62  ;;  %v5397_v0 = vld [vmem:[%s8701_s1 + $0x3d0] sm:$0xf0] }
 0x194   :  { %v4368_v19 = vor.u32 %v5397_v0, %v4367_v51  ;;  %3375 = vmatmul.bf16.gmra.mxu0 %v5985_v28  ;;  %3391 = vmatpush.bf16.msrb.mxu1 %v4200_v33  ;;  %v8785_v51 = vld [vmem:[#allocation12_spill] sm:$0xff] }
 0x195   :  { %v3065_v55 = vadd.f32 %v7941_v14, %v3041_v22  ;;  %v4476_v14 = vor.u32 %v5424_v11, %v4475_v46  ;;  %v8090_v44 = vpop.f32.mrf.mxu3  ;;  %v5487_v46 = vld [vmem:[%s8701_s1 + $0x6a0] sm:$0xf0] }
 0x196   :  { %3327 = vmatmul.bf16.gmra.mxu2 %v8784_v56  ;;  %3441 = vmatpush.bf16.msra.mxu3 %v4368_v19  ;;  %v4727_v56 = vld [vmem:[%s8701_s1 + $0x698] sm:$0xf] }
 0x197   :  { %v8087_v17 = vadd.f32 %v7950_v7, %v3065_v55  ;;  %3464 = vmatpush.bf16.msrb.mxu0 %v4476_v14  ;;  %v5349_v7 = vld [vmem:[%s8701_s1 + $0x250] sm:$0xf0] }
 0x198   :  { %v3018_v13 = vpop.f32.mrf.mxu1  ;;  %3392 = vmatpush.bf16.msrb.mxu1 %v4188_v8  ;;  %v4176_v53 = vor.u32 %v5349_v7, %v4175_v29  ;;  %v5466_v8 = vld [vmem:[%s8701_s1 + $0x5f8] sm:$0xf0] }
 0x199   :  { %v3019_v28 = vadd.f32 %v3018_v13, %v7769_v58  ;;  %v3045_v2 = vpop.f32.mrf.mxu2  ;;  %v8092_v3 = vpop.f32.mrf.mxu0  ;;  %v4463_v58 = vld [vmem:[%s8701_s1 + $0x488] sm:$0xf]  ;;  %v4728_v13 = vor.u32 %v5487_v46, %v4727_v56  ;;  %v5535_v56 = vld [vmem:[%s8701_s1 + $0x820] sm:$0xf0] }
 0x19a   :  { %v4464_v22 = vor.u32 %v5421_v47, %v4463_v58 }
 0x19b   :  { %v3043_v42 = vadd.f32 %v3042_v40, %v3019_v28  ;;  %v4739_v40 = vld [vmem:[%s8701_s1 + $0x6b0] sm:$0xf]  ;;  %v8787_v28 = vld [vmem:[#allocation3_spill] sm:$0xff] }
 0x19c   :  { %v4740_v54 = vor.u32 %v5490_v23, %v4739_v40  ;;  %3356 = vmatmul.bf16.gmra.mxu3 %v8785_v51  ;;  %3393 = vmatpush.bf16.msrb.mxu1 %v4176_v53  ;;  %v4631_v23 = vld [vmem:[%s8701_s1 + $0x5d8] sm:$0xf]  ;;  %v5484_v51 = vld [vmem:[%s8701_s1 + $0x688] sm:$0xf0] }
 0x19d   :  { %v3067_v32 = vadd.f32 %v7989_v30, %v3043_v42  ;;  %3465 = vmatpush.bf16.msrb.mxu0 %v4464_v22  ;;  %v8118_v21 = vpop.f32.mrf.mxu3  ;;  %v4835_v30 = vld [vmem:[%s8701_s1 + $0x770] sm:$0xf]  ;;  %v5511_v42 = vld [vmem:[%s8701_s1 + $0x760] sm:$0xf0] }
 0x19e   :  { %3506 = vmatpush.bf16.msra.mxu2 %v4740_v54  ;;  %v4931_v22 = vld [vmem:[%s8701_s1 + $0x830] sm:$0xf]  ;;  %v5538_v54 = vld [vmem:[%s8701_s1 + $0x838] sm:$0xf0] }
 0x19f   :  { %v8115_v33 = vadd.f32 %v7997_v48, %v3067_v32  ;;  %v5514_v48 = vld [vmem:[%s8701_s1 + $0x778] sm:$0xf0]  ;;  %v4715_v32 = vld [vmem:[%s8701_s1 + $0x680] sm:$0xf] }
 0x1a0   :  { %v3021_v0 = vpop.f32.mrf.mxu1  ;;  %v4836_v55 = vor.u32 %v5514_v48, %v4835_v30  ;;  %v4619_v30 = vld [vmem:[%s8701_s1 + $0x5c0] sm:$0xf] }
 0x1a1   :  { %v3022_v57 = vadd.f32 %v3021_v0, %v7818_v1  ;;  %v3047_v19 = vpop.f32.mrf.mxu2  ;;  %v8122_v25 = vpop.f32.mrf.mxu0  ;;  %v4643_v1 = vld [vmem:[%s8701_s1 + $0x5f0] sm:$0xf]  ;;  %v4932_v0 = vor.u32 %v5538_v54, %v4931_v22  ;;  %v4907_v22 = vld [vmem:[%s8701_s1 + $0x800] sm:$0xf] }
 0x1a2   :  { %v4644_v11 = vor.u32 %v5466_v8, %v4643_v1  ;;  %3530 = vmatpush.bf16.msrb.mxu3 %v4836_v55  ;;  %3507 = vmatpush.bf16.msra.mxu2 %v4728_v13  ;;  %v5460_v55 = vld [vmem:[%s8701_s1 + $0x5c8] sm:$0xf0]  ;;  %v4919_v8 = vld [vmem:[%s8701_s1 + $0x818] sm:$0xf] }
 0x1a3   :  { %v3046_v43 = vadd.f32 %v3045_v2, %v3022_v57  ;;  %5225 = vmatmul.msk.bf16.gmra.mxu1 %vm2574_vm1, %v8786_v45  ;;  %v4823_v2 = vld [vmem:[%s8701_s1 + $0x758] sm:$0xf]  ;;  %v4716_v57 = vor.u32 %v5484_v51, %v4715_v32  ;;  %3554 = vmatpush.bf16.msra.mxu0 %v4932_v0  ;;  %v4620_v46 = vor.u32 %v5460_v55, %v4619_v30  ;;  %v4691_v51 = vld [vmem:[%s8701_s1 + $0x650] sm:$0xf]  ;;  %v5478_v0 = vld [vmem:[%s8701_s1 + $0x658] sm:$0xf0] }
 0x1a4   :  { %3380 = vmatmul.bf16.gmra.mxu0 %v6123_v34  ;;  %3482 = vmatpush.bf16.msra.mxu1 %v4644_v11  ;;  %v5502_v30 = vld [vmem:[%s8701_s1 + $0x718] sm:$0xf0] }
 0x1a5   :  { %v3070_v14 = vadd.f32 %v8041_v59, %v3046_v43  ;;  %v4824_v59 = vor.u32 %v5511_v42, %v4823_v2  ;;  %v8155_v58 = vpop.f32.mrf.mxu3  ;;  %v5508_v43 = vld [vmem:[%s8701_s1 + $0x748] sm:$0xf0]  ;;  %v5481_v2 = vld [vmem:[%s8701_s1 + $0x670] sm:$0xf0] }
 0x1a6   :  { %3332 = vmatmul.bf16.gmra.mxu2 %v8787_v28  ;;  %v4703_v28 = vld [vmem:[%s8701_s1 + $0x668] sm:$0xf] }
 0x1a7   :  { %v8152_v29 = vadd.f32 %v8051_v49, %v3070_v14  ;;  %3531 = vmatpush.bf16.msrb.mxu3 %v4824_v59  ;;  %v5463_v49 = vld [vmem:[%s8701_s1 + $0x5e0] sm:$0xf0]  ;;  %3508 = vmatpush.bf16.msra.mxu2 %v4716_v57 }
 0x1a8   :  { %v3023_v7 = vpop.f32.mrf.mxu1 }
 0x1a9   :  { %v3024_v34 = vadd.f32 %v3023_v7, %v7849_v12  ;;  %v3131_v53 = vpop.f32.mrf.mxu2  ;;  %v8157_v40 = vpop.f32.mrf.mxu0  ;;  %v4632_v12 = vor.u32 %v5463_v49, %v4631_v23  ;;  %v4704_v7 = vor.u32 %v5481_v2, %v4703_v28  ;;  %v4607_v23 = vld [vmem:[%s8701_s1 + $0x5a8] sm:$0xf]  ;;  %v5457_v49 = vld [vmem:[%s8701_s1 + $0x5b0] sm:$0xf0] }
 0x1aa   :  { %v4608_v54 = vor.u32 %v5457_v49, %v4607_v23  ;;  %v5529_v2 = vld [vmem:[%s8701_s1 + $0x7f0] sm:$0xf0]  ;;  %v5472_v23 = vld [vmem:[%s8701_s1 + $0x628] sm:$0xf0] }
 0x1ab   :  { %v3048_v47 = vadd.f32 %v3047_v19, %v3024_v34  ;;  %v4811_v19 = vld [vmem:[%s8701_s1 + $0x740] sm:$0xf]  ;;  %3483 = vmatpush.bf16.msra.mxu1 %v4632_v12  ;;  %3509 = vmatpush.bf16.msra.mxu2 %v4704_v7  ;;  %v5532_v12 = vld [vmem:[%s8701_s1 + $0x808] sm:$0xf0]  ;;  %v5499_v7 = vld [vmem:[%s8701_s1 + $0x700] sm:$0xf0] }
 0x1ac   :  { %3442 = vmatmul.bf16.vlgmr.msra.gmra.mxu3 %v6424_v5  ;;  %v4812_v1 = vor.u32 %v5508_v43, %v4811_v19  ;;  %v4908_v32 = vor.u32 %v5532_v12, %v4907_v22  ;;  %v4692_v19 = vor.u32 %v5478_v0, %v4691_v51  ;;  %v4787_v43 = vld [vmem:[%s8701_s1 + $0x710] sm:$0xf]  ;;  %v5526_v12 = vld [vmem:[%s8701_s1 + $0x7d8] sm:$0xf0]  ;;  %v5496_v51 = vld [vmem:[%s8701_s1 + $0x6e8] sm:$0xf0] }
 0x1ad   :  { %v3072_v48 = vadd.f32 %v8090_v44, %v3048_v47  ;;  %v4920_v44 = vor.u32 %v5535_v56, %v4919_v8  ;;  %v8201_v14 = vpop.f32.mrf.mxu3  ;;  %v5505_v47 = vld [vmem:[%s8701_s1 + $0x730] sm:$0xf0]  ;;  %v5475_v8 = vld [vmem:[%s8701_s1 + $0x640] sm:$0xf0]  ;;  %v4883_v22 = vld [vmem:[%s8701_s1 + $0x7d0] sm:$0xf] }
 0x1ae   :  { %3532 = vmatpush.bf16.msrb.mxu3 %v4812_v1 }
 0x1af   :  { %v8198_v5 = vadd.f32 %v8092_v3, %v3072_v48  ;;  %3484 = vmatpush.bf16.msra.mxu1 %v4620_v46  ;;  %v8788_v3 = vld [vmem:[#allocation31_spill] sm:$0xff]  ;;  %3555 = vmatpush.bf16.msra.mxu0 %v4920_v44 }
 0x1b0   :  { %v3107_v11 = vpop.f32.mrf.mxu1  ;;  %3510 = vmatpush.bf16.msra.mxu2 %v4692_v19 }
 0x1b1   :  { %v3108_v13 = vadd.f32 %v3107_v11, %v7986_v20  ;;  %v3133_v42 = vpop.f32.mrf.mxu2  ;;  %v8211_v34 = vpop.f32.mrf.mxu0  ;;  %v4799_v20 = vld [vmem:[%s8701_s1 + $0x728] sm:$0xf]  ;;  %v5454_v11 = vld [vmem:[%s8701_s1 + $0x598] sm:$0xf0] }
 0x1b3   :  { %v3132_v59 = vadd.f32 %v3131_v53, %v3108_v13  ;;  %5226 = vmatmul.msk.bf16.gmra.mxu1 %vm2574_vm1, %v8788_v3  ;;  %v4800_v53 = vor.u32 %v5505_v47, %v4799_v20  ;;  %3556 = vmatpush.bf16.msra.mxu0 %v4908_v32  ;;  %v4895_v13 = vld [vmem:[%s8701_s1 + $0x7e8] sm:$0xf]  ;;  %v4667_v47 = vld [vmem:[%s8701_s1 + $0x620] sm:$0xf]  ;;  %v4884_v32 = vor.u32 %v5526_v12, %v4883_v22 }
 0x1b4   :  { %3466 = vmatmul.bf16.vlgmr.msrb.gmra.mxu0 %v6237_v27  ;;  %3485 = vmatpush.bf16.msra.mxu1 %v4608_v54  ;;  %v4788_v27 = vor.u32 %v5502_v30, %v4787_v43  ;;  %v4668_v49 = vor.u32 %v5472_v23, %v4667_v47  ;;  %v4763_v54 = vld [vmem:[%s8701_s1 + $0x6e0] sm:$0xf]  ;;  %v4655_v43 = vld [vmem:[%s8701_s1 + $0x608] sm:$0xf]  ;;  %v5520_v23 = vld [vmem:[%s8701_s1 + $0x7a8] sm:$0xf0] }
 0x1b5   :  { %v3156_v57 = vadd.f32 %v8118_v21, %v3132_v59  ;;  %3533 = vmatpush.bf16.msrb.mxu3 %v4800_v53  ;;  %v8250_v55 = vpop.f32.mrf.mxu3  ;;  %v4896_v59 = vor.u32 %v5529_v2, %v4895_v13  ;;  %v4764_v19 = vor.u32 %v5496_v51, %v4763_v54  ;;  %v4571_v2 = vld [vmem:[%s8701_s1 + $0x560] sm:$0xf] }
 0x1b6   :  { %3418 = vmatmul.bf16.vlgmr.msrb.gmra.mxu2 %v6114_v31  ;;  %v4679_v31 = vld [vmem:[%s8701_s1 + $0x638] sm:$0xf]  ;;  %v4859_v47 = vld [vmem:[%s8701_s1 + $0x7a0] sm:$0xf] }
 0x1b7   :  { %v8247_v48 = vadd.f32 %v8122_v25, %v3156_v57  ;;  %v4680_v25 = vor.u32 %v5475_v8, %v4679_v31  ;;  %3557 = vmatpush.bf16.msra.mxu0 %v4896_v59  ;;  %v5451_v8 = vld [vmem:[%s8701_s1 + $0x580] sm:$0xf0] }
 0x1b8   :  { %v3109_v1 = vpop.f32.mrf.mxu1 }
 0x1b9   :  { %v3110_v21 = vadd.f32 %v3109_v1, %v8035_v9  ;;  %v3136_v56 = vpop.f32.mrf.mxu2  ;;  %3534 = vmatpush.bf16.msrb.mxu3 %v4788_v27  ;;  %v8258_v44 = vpop.f32.mrf.mxu0  ;;  %v4595_v9 = vld [vmem:[%s8701_s1 + $0x590] sm:$0xf]  ;;  %3511 = vmatpush.bf16.msra.mxu2 %v4680_v25  ;;  %v4751_v25 = vld [vmem:[%s8701_s1 + $0x6c8] sm:$0xf] }
 0x1ba   :  { %v4596_v28 = vor.u32 %v5454_v11, %v4595_v9  ;;  %v4871_v9 = vld [vmem:[%s8701_s1 + $0x7b8] sm:$0xf]  ;;  %v5523_v11 = vld [vmem:[%s8701_s1 + $0x7c0] sm:$0xf0] }
 0x1bb   :  { %v3134_v46 = vadd.f32 %v3133_v42, %v3110_v21  ;;  %v4775_v42 = vld [vmem:[%s8701_s1 + $0x6f8] sm:$0xf]  ;;  %v8789_v21 = vld [vmem:[#allocation4_spill] sm:$0xff]  ;;  %3558 = vmatpush.bf16.msra.mxu0 %v4884_v32  ;;  %v4559_v32 = vld [vmem:[%s8701_s1 + $0x548] sm:$0xf] }
 0x1bc   :  { %v4776_v20 = vor.u32 %v5499_v7, %v4775_v42  ;;  %3447 = vmatmul.bf16.gmra.mxu3 %v6508_v60  ;;  %3486 = vmatpush.bf16.msra.mxu1 %v4596_v28  ;;  %v4872_v28 = vor.u32 %v5523_v11, %v4871_v9  ;;  %v5448_v42 = vld [vmem:[%s8701_s1 + $0x568] sm:$0xf0]  ;;  %v8792_v9 = vld [vmem:[#allocation6_spill] sm:$0xff] }
 0x1bd   :  { %v3158_v53 = vadd.f32 %v8155_v58, %v3134_v46  ;;  %3512 = vmatpush.bf16.msra.mxu2 %v4668_v49  ;;  %v8302_v57 = vpop.f32.mrf.mxu3  ;;  %v4572_v59 = vor.u32 %v5448_v42, %v4571_v2  ;;  %v5111_v2 = vld [vmem:[%s8701_s1 + $0x998] sm:$0xf]  ;;  %v5583_v42 = vld [vmem:[%s8701_s1 + $0x9a0] sm:$0xf0] }
 0x1be   :  { %3535 = vmatpush.bf16.msrb.mxu3 %v4776_v20  ;;  %v8790_v20 = vld [vmem:[#allocation10_spill] sm:$0xff] }
 0x1bf   :  { %v8296_v58 = vadd.f32 %v8157_v40, %v3158_v53  ;;  %v5469_v40 = vld [vmem:[%s8701_s1 + $0x610] sm:$0xf0]  ;;  %3559 = vmatpush.bf16.msra.mxu0 %v4872_v28  ;;  %v5562_v28 = vld [vmem:[%s8701_s1 + $0x8f8] sm:$0xf0] }
 0x1c0   :  { %v3112_v60 = vpop.f32.mrf.mxu1  ;;  %v4656_v1 = vor.u32 %v5469_v40, %v4655_v43  ;;  %v5586_v43 = vld [vmem:[%s8701_s1 + $0x9b8] sm:$0xf0] }
 0x1c1   :  { %v3113_v0 = vadd.f32 %v3112_v60, %v8087_v17  ;;  %v3138_v30 = vpop.f32.mrf.mxu2  ;;  %v8311_v31 = vpop.f32.mrf.mxu0  ;;  %v4583_v17 = vld [vmem:[%s8701_s1 + $0x578] sm:$0xf] }
 0x1c2   :  { %v4584_v46 = vor.u32 %v5451_v8, %v4583_v17  ;;  %3536 = vmatpush.bf16.msrb.mxu3 %v4764_v19  ;;  %3513 = vmatpush.bf16.msra.mxu2 %v4656_v1  ;;  %v5123_v19 = vld [vmem:[%s8701_s1 + $0x9b0] sm:$0xf] }
 0x1c3   :  { %v3137_v27 = vadd.f32 %v3136_v56, %v3113_v0  ;;  %3394 = vmatmul.bf16.vlgmr.msrb.gmra.mxu1 %v8789_v21  ;;  %v5493_v56 = vld [vmem:[%s8701_s1 + $0x6d0] sm:$0xf0] }
 0x1c4   :  { %v4752_v13 = vor.u32 %v5493_v56, %v4751_v25  ;;  %3471 = vmatmul.bf16.gmra.mxu0 %v6345_v26  ;;  %3487 = vmatpush.bf16.msra.mxu1 %v4584_v46  ;;  %v5517_v0 = vld [vmem:[%s8701_s1 + $0x790] sm:$0xf0] }
 0x1c5   :  { %v3161_v7 = vadd.f32 %v8201_v14, %v3137_v27  ;;  %v4860_v14 = vor.u32 %v5520_v23, %v4859_v47  ;;  %v8350_v22 = vpop.f32.mrf.mxu3  ;;  %v8791_v27 = vld [vmem:[#allocation18_spill] sm:$0xff]  ;;  %v8793_v47 = vld [vmem:[#allocation13_spill] sm:$0xff] }
 0x1c6   :  { %3423 = vmatmul.bf16.gmra.mxu2 %v8790_v20  ;;  %3537 = vmatpush.bf16.msrb.mxu3 %v4752_v13  ;;  %v5207_v23 = vld [vmem:[%s8701_s1 + $0xa58] sm:$0xf] }
 0x1c7   :  { %v8347_v53 = vadd.f32 %v8211_v34, %v3161_v7  ;;  %3560 = vmatpush.bf16.msra.mxu0 %v4860_v14  ;;  %v5445_v34 = vld [vmem:[%s8701_s1 + $0x550] sm:$0xf0] }
 0x1c8   :  { %v3114_v49 = vpop.f32.mrf.mxu1  ;;  %3488 = vmatpush.bf16.msra.mxu1 %v4572_v59  ;;  %v4560_v51 = vor.u32 %v5445_v34, %v4559_v32  ;;  %v5112_v59 = vor.u32 %v5583_v42, %v5111_v2  ;;  %v5577_v2 = vld [vmem:[%s8701_s1 + $0x970] sm:$0xf0] }
 0x1c9   :  { %v3115_v26 = vadd.f32 %v3114_v49, %v8115_v33  ;;  %v3141_v12 = vpop.f32.mrf.mxu2  ;;  %v8352_v60 = vpop.f32.mrf.mxu0  ;;  %v4847_v33 = vld [vmem:[%s8701_s1 + $0x788] sm:$0xf]  ;;  %v5607_v49 = vld [vmem:[%s8701_s1 + $0xa60] sm:$0xf0] }
 0x1ca   :  { %v4848_v40 = vor.u32 %v5517_v0, %v4847_v33  ;;  %v5015_v33 = vld [vmem:[%s8701_s1 + $0x8d8] sm:$0xf] }
 0x1cb   :  { %v3139_v54 = vadd.f32 %v3138_v30, %v3115_v26  ;;  %v5124_v30 = vor.u32 %v5586_v43, %v5123_v19  ;;  %v5099_v19 = vld [vmem:[%s8701_s1 + $0x980] sm:$0xf]  ;;  %v5580_v43 = vld [vmem:[%s8701_s1 + $0x988] sm:$0xf0] }
 0x1cc   :  { %3452 = vmatmul.bf16.gmra.mxu3 %v8791_v27  ;;  %3489 = vmatpush.bf16.msra.mxu1 %v4560_v51  ;;  %v5003_v27 = vld [vmem:[%s8701_s1 + $0x8c0] sm:$0xf] }
 0x1cd   :  { %v3163_v1 = vadd.f32 %v8250_v55, %v3139_v54  ;;  %3561 = vmatpush.bf16.msra.mxu0 %v4848_v40  ;;  %3602 = vmatpush.bf16.msrb.mxu2 %v5124_v30  ;;  %v8378_v25 = vpop.f32.mrf.mxu3  ;;  %v5219_v55 = vld [vmem:[%s8701_s1 + $0xa70] sm:$0xf]  ;;  %v5195_v40 = vld [vmem:[%s8701_s1 + $0xa40] sm:$0xf]  ;;  %v5100_v30 = vor.u32 %v5580_v43, %v5099_v19 }
 0x1cf   :  { %v8375_v21 = vadd.f32 %v8258_v44, %v3163_v1  ;;  %v5610_v44 = vld [vmem:[%s8701_s1 + $0xa78] sm:$0xf0]  ;;  %v5604_v1 = vld [vmem:[%s8701_s1 + $0xa48] sm:$0xf0] }
 0x1d0   :  { %v3117_v17 = vpop.f32.mrf.mxu1  ;;  %v5220_v13 = vor.u32 %v5610_v44, %v5219_v55 }
 0x1d1   :  { %v3118_v8 = vadd.f32 %v3117_v17, %v8152_v29  ;;  %v3143_v46 = vpop.f32.mrf.mxu2  ;;  %v8381_v11 = vpop.f32.mrf.mxu0  ;;  %v5027_v29 = vld [vmem:[%s8701_s1 + $0x8f0] sm:$0xf]  ;;  %3603 = vmatpush.bf16.msrb.mxu2 %v5112_v59  ;;  %v5556_v17 = vld [vmem:[%s8701_s1 + $0x8c8] sm:$0xf0] }
 0x1d2   :  { %v5028_v7 = vor.u32 %v5562_v28, %v5027_v29  ;;  %3626 = vmatpush.bf16.msra.mxu3 %v5220_v13  ;;  %v5004_v55 = vor.u32 %v5556_v17, %v5003_v27  ;;  %v4979_v17 = vld [vmem:[%s8701_s1 + $0x890] sm:$0xf] }
 0x1d3   :  { %v3142_v56 = vadd.f32 %v3141_v12, %v3118_v8  ;;  %3399 = vmatmul.bf16.gmra.mxu1 %v8792_v9  ;;  %v5196_v9 = vor.u32 %v5604_v1, %v5195_v40  ;;  %v5571_v40 = vld [vmem:[%s8701_s1 + $0x940] sm:$0xf0] }
 0x1d4   :  { %3476 = vmatmul.bf16.gmra.mxu0 %v6441_v15  ;;  %3578 = vmatpush.bf16.msrb.mxu1 %v5028_v7  ;;  %v8795_v7 = vld [vmem:[#allocation8_spill] sm:$0xff] }
 0x1d5   :  { %v3166_v20 = vadd.f32 %v8302_v57, %v3142_v56  ;;  %v5208_v57 = vor.u32 %v5607_v49, %v5207_v23  ;;  %v8414_v12 = vpop.f32.mrf.mxu3  ;;  %3604 = vmatpush.bf16.msrb.mxu2 %v5100_v30  ;;  %v4991_v23 = vld [vmem:[%s8701_s1 + $0x8a8] sm:$0xf] }
 0x1d6   :  { %3428 = vmatmul.bf16.gmra.mxu2 %v8793_v47  ;;  %v5601_v47 = vld [vmem:[%s8701_s1 + $0xa30] sm:$0xf0] }
 0x1d7   :  { %v8411_v14 = vadd.f32 %v8311_v31, %v3166_v20  ;;  %3627 = vmatpush.bf16.msra.mxu3 %v5208_v57  ;;  %v5559_v31 = vld [vmem:[%s8701_s1 + $0x8e0] sm:$0xf0]  ;;  %v5183_v20 = vld [vmem:[%s8701_s1 + $0xa28] sm:$0xf] }
 0x1d8   :  { %v3119_v26 = vpop.f32.mrf.mxu1  ;;  %v5016_v51 = vor.u32 %v5559_v31, %v5015_v33  ;;  %v5184_v49 = vor.u32 %v5601_v47, %v5183_v20  ;;  %v8796_v31 = vld [vmem:[#allocation15_spill] sm:$0xff] }
 0x1d9   :  { %v3120_v15 = vadd.f32 %v3119_v26, %v8198_v5  ;;  %v8416_v54 = vpop.f32.mrf.mxu2  ;;  %v8418_v34 = vpop.f32.mrf.mxu0  ;;  %v512_v5 = vld [vmem:[%s8701_s1 + $0xa88] sm:$0xf]  ;;  %v5553_v26 = vld [vmem:[%s8701_s1 + $0x8b0] sm:$0xf0]  ;;  %v5592_v20 = vld [vmem:[%s8701_s1 + $0x9e8] sm:$0xf0] }
 0x1da   :  { %v1898_v0 = vunpack.c.l.b16 %v512_v5  ;;  %3579 = vmatpush.bf16.msrb.mxu1 %v5016_v51  ;;  %v4992_v57 = vor.u32 %v5553_v26, %v4991_v23  ;;  %v5171_v5 = vld [vmem:[%s8701_s1 + $0xa10] sm:$0xf]  ;;  %v5598_v51 = vld [vmem:[%s8701_s1 + $0xa18] sm:$0xf0]  ;;  %v5039_v26 = vld [vmem:[%s8701_s1 + $0x908] sm:$0xf] }
 0x1db   :  { %v3144_v32 = vadd.f32 %v3143_v46, %v3120_v15  ;;  %v8794_v46 = vld [vmem:[#allocation21_spill] sm:$0xff]  ;;  %3628 = vmatpush.bf16.msra.mxu3 %v5196_v9  ;;  %v5075_v15 = vld [vmem:[%s8701_s1 + $0x950] sm:$0xf]  ;;  %v5172_v19 = vor.u32 %v5598_v51, %v5171_v5  ;;  %v5595_v9 = vld [vmem:[%s8701_s1 + $0xa00] sm:$0xf0] }
 0x1dc   :  { %3538 = vmatmul.bf16.vlgmr.msrb.gmra.mxu3 %v8794_v46  ;;  %v2237_v56 = vpack.c.b16 %v1898_v0, %v1898_v0  ;;  %v5159_v46 = vld [vmem:[%s8701_s1 + $0x9f8] sm:$0xf]  ;;  %v5547_v51 = vld [vmem:[%s8701_s1 + $0x880] sm:$0xf0] }
 0x1dd   :  { %v3168_v8 = vadd.f32 %v8350_v22, %v3144_v32  ;;  %v8455_v28 = vpop.f32.mrf.mxu3  ;;  %v5087_v22 = vld [vmem:[%s8701_s1 + $0x968] sm:$0xf]  ;;  %v5574_v32 = vld [vmem:[%s8701_s1 + $0x958] sm:$0xf0]  ;;  %v4967_v5 = vld [vmem:[%s8701_s1 + $0x878] sm:$0xf] }
 0x1de   :  { %v2592_v13 = vsel %vm2584_vm0, %v2237_v56, 0  ;;  %3580 = vmatpush.bf16.msrb.mxu1 %v5004_v55  ;;  %v5076_v33 = vor.u32 %v5574_v32, %v5075_v15  ;;  %v5160_v55 = vor.u32 %v5595_v9, %v5159_v46  ;;  %v5544_v46 = vld [vmem:[%s8701_s1 + $0x868] sm:$0xf0] }
 0x1df   :  { %v8450_v44 = vadd.f32 %v8352_v60, %v3168_v8  ;;  %3657 = vmatpush.bf16.msrb.mxu0 %v2592_v13  ;;  %v5088_v60 = vor.u32 %v5577_v2, %v5087_v22  ;;  %3629 = vmatpush.bf16.msra.mxu3 %v5184_v49  ;;  %v5550_v8 = vld [vmem:[%s8701_s1 + $0x898] sm:$0xf0]  ;;  %v5051_v13 = vld [vmem:[%s8701_s1 + $0x920] sm:$0xf]  ;;  %v5568_v22 = vld [vmem:[%s8701_s1 + $0x928] sm:$0xf0] }
 0x1e0   :  { %v8452_v29 = vpop.f32.mrf.mxu1  ;;  %v4980_v56 = vor.u32 %v5550_v8, %v4979_v17  ;;  %v8797_v2 = vld [vmem:[#allocation25_spill] sm:$0xff]  ;;  %v4955_v8 = vld [vmem:[%s8701_s1 + $0x860] sm:$0xf] }
 0x1e1   :  { %v8463_v42 = vpop.f32.mrf.mxu2  ;;  %v8466_v59 = vpop.f32.mrf.mxu0  ;;  %3605 = vmatpush.bf16.msrb.mxu2 %v5088_v60  ;;  %v5052_v60 = vor.u32 %v5568_v22, %v5051_v13  ;;  %v8799_v17 = vld [vmem:[#allocation17_spill] sm:$0xff]  ;;  %v4956_v9 = vor.u32 %v5544_v46, %v4955_v8  ;;  %v4943_v22 = vld [vmem:[%s8701_s1 + $0x848] sm:$0xf] }
 0x1e2   :  { %3581 = vmatpush.bf16.msrb.mxu1 %v4992_v57  ;;  %v5565_v57 = vld [vmem:[%s8701_s1 + $0x910] sm:$0xf0] }
 0x1e3   :  { %3404 = vmatmul.bf16.gmra.mxu1 %v8795_v7  ;;  %3630 = vmatpush.bf16.msra.mxu3 %v5172_v19  ;;  %v5147_v7 = vld [vmem:[%s8701_s1 + $0x9e0] sm:$0xf]  ;;  %v5040_v32 = vor.u32 %v5565_v57, %v5039_v26  ;;  %v5135_v19 = vld [vmem:[%s8701_s1 + $0x9c8] sm:$0xf]  ;;  %v3204_v57 = vadd.f32 %v8452_v29, %v8247_v48 }
 0x1e4   :  { %3562 = vmatmul.bf16.vlgmr.msra.gmra.mxu0 %v6525_v4  ;;  %v5063_v4 = vld [vmem:[%s8701_s1 + $0x938] sm:$0xf]  ;;  %v5148_v23 = vor.u32 %v5592_v20, %v5147_v7 }
 0x1e5   :  { %3606 = vmatpush.bf16.msrb.mxu2 %v5076_v33  ;;  %v8496_v43 = vpop.f32.mrf.mxu3  ;;  %v5064_v1 = vor.u32 %v5571_v40, %v5063_v4  ;;  %v8798_v33 = vld [vmem:[#allocation11_spill] sm:$0xff]  ;;  %v4968_v4 = vor.u32 %v5547_v51, %v4967_v5  ;;  %v5589_v40 = vld [vmem:[%s8701_s1 + $0x9d0] sm:$0xf0]  ;;  %v3228_v5 = vadd.f32 %v8416_v54, %v3204_v57 }
 0x1e6   :  { %3514 = vmatmul.bf16.vlgmr.msra.gmra.mxu2 %v8796_v31  ;;  %3582 = vmatpush.bf16.msrb.mxu1 %v4980_v56  ;;  %v8802_v51 = vld [vmem:[#allocation19_spill] sm:$0xff] }
 0x1e7   :  { %3631 = vmatpush.bf16.msra.mxu3 %v5160_v55  ;;  %v3252_v46 = vadd.f32 %v8378_v25, %v3228_v5 }
 0x1e8   :  { %v8494_v0 = vpop.f32.mrf.mxu1 }
 0x1e9   :  { %v8504_v30 = vpop.f32.mrf.mxu2  ;;  %v8506_v27 = vpop.f32.mrf.mxu0  ;;  %3607 = vmatpush.bf16.msrb.mxu2 %v5064_v1  ;;  %v5136_v1 = vor.u32 %v5589_v40, %v5135_v19  ;;  %v3276_v54 = vadd.f32 %v8381_v11, %v3252_v46 }
 0x1ea   :  { %3583 = vmatpush.bf16.msrb.mxu1 %v4968_v4 }
 0x1eb   :  { %3632 = vmatpush.bf16.msra.mxu3 %v5148_v23 }
 0x1ec   :  { %3543 = vmatmul.bf16.gmra.mxu3 %v8797_v2  ;;  %v5541_v2 = vld [vmem:[%s8701_s1 + $0x850] sm:$0xf0] }
 0x1ed   :  { %3608 = vmatpush.bf16.msrb.mxu2 %v5052_v60  ;;  %v8800_v60 = vld [vmem:[#allocation28_spill] sm:$0xff]  ;;  %v4944_v7 = vor.u32 %v5541_v2, %v4943_v22 }
 0x1ee   :  { %3584 = vmatpush.bf16.msrb.mxu1 %v4956_v9 }
 0x1ef   :  { %v8533_v49 = vpop.f32.mrf.mxu3  ;;  %3633 = vmatpush.bf16.msra.mxu3 %v5136_v1  ;;  %v3206_v1 = vadd.f32 %v8494_v0, %v8296_v58  ;;  %v8804_v0 = vld [vmem:[#allocation16_spill] sm:$0xff] }
 0x1f0   :  { %v3208_v47 = vpop.f32.mrf.mxu1 }
 0x1f1   :  { %v8541_v15 = vpop.f32.mrf.mxu2  ;;  %v8544_v31 = vpop.f32.mrf.mxu0  ;;  %3609 = vmatpush.bf16.msrb.mxu2 %v5040_v32  ;;  %v8801_v32 = vld [vmem:[#allocation14_spill] sm:$0xff]  ;;  %v3209_v58 = vadd.f32 %v3208_v47, %v8347_v53 }
 0x1f2   :  { %3585 = vmatpush.bf16.msrb.mxu1 %v4944_v7  ;;  %v8805_v53 = vld [vmem:[#allocation22_spill] sm:$0xff] }
 0x1f3   :  { %3490 = vmatmul.bf16.vlgmr.msra.gmra.mxu1 %v8798_v33  ;;  %v3233_v11 = vadd.f32 %v8504_v30, %v3209_v58 }
 0x1f4   :  { %3567 = vmatmul.bf16.gmra.mxu0 %v8777_v6 }
 0x1f6   :  { %3519 = vmatmul.bf16.gmra.mxu2 %v8799_v17  ;;  %v8803_v17 = vld [vmem:[#allocation27_spill] sm:$0xff] }
 0x1f7   :  { %v8566_v55 = vpop.f32.mrf.mxu3 }
 0x1f8   :  { %v3210_v56 = vpop.f32.mrf.mxu1 }
 0x1f9   :  { %v8568_v13 = vpop.f32.mrf.mxu2  ;;  %v8570_v6 = vpop.f32.mrf.mxu0 }
 0x1fc   :  { %3548 = vmatmul.bf16.gmra.mxu3 %v8800_v60 }
 0x1ff   :  { %v3347_v23 = vpop.f32.mrf.mxu3 }
 0x200   :  { %v3213_v20 = vpop.f32.mrf.mxu1 }
 0x201   :  { %v8579_v26 = vpop.f32.mrf.mxu2  ;;  %v3371_v33 = vpop.f32.mrf.mxu0  ;;  %v3214_v46 = vadd.f32 %v3213_v20, %v8411_v14 }
 0x203   :  { %3495 = vmatmul.bf16.gmra.mxu1 %v8801_v32 }
 0x204   :  { %3572 = vmatmul.bf16.gmra.mxu0 %v8780_v37  ;;  %v3230_v37 = vadd.f32 %v8463_v42, %v3206_v1 }
 0x206   :  { %3524 = vmatmul.bf16.gmra.mxu2 %v8802_v51  ;;  %v3211_v51 = vadd.f32 %v3210_v56, %v8375_v21 }
 0x207   :  { %v3349_v4 = vpop.f32.mrf.mxu3 }
 0x208   :  { %v3215_v19 = vpop.f32.mrf.mxu1 }
 0x209   :  { %v3323_v40 = vpop.f32.mrf.mxu2  ;;  %v3373_v48 = vpop.f32.mrf.mxu0 }
 0x20a   :  { %v3324_v8 = vadd.f32 %v3323_v40, %v8803_v17 }
 0x20c   :  { %v3348_v29 = vadd.f32 %v3347_v23, %v3324_v8  ;;  %3634 = vmatmul.bf16.vlgmr.msra.gmra.mxu3 %v6995_v63  ;;  %v3254_v63 = vadd.f32 %v8414_v12, %v3230_v37  ;;  %v3257_v12 = vadd.f32 %v8455_v28, %v3233_v11 }
 0x20e   :  { %v8593_v9 = vadd.f32 %v3371_v33, %v3348_v29  ;;  %v3278_v47 = vadd.f32 %v8418_v34, %v3254_v63  ;;  %v3235_v34 = vadd.f32 %v8541_v15, %v3211_v51  ;;  %v3281_v1 = vadd.f32 %v8466_v59, %v3257_v12 }
 0x20f   :  { %v3352_v60 = vpop.f32.mrf.mxu3  ;;  %v3238_v59 = vadd.f32 %v8568_v13, %v3214_v46 }
 0x210   :  { %v3299_v22 = vpop.f32.mrf.mxu1 }
 0x211   :  { %v3300_v2 = vadd.f32 %v3299_v22, %v3276_v54  ;;  %v3325_v7 = vpop.f32.mrf.mxu2  ;;  %v3376_v42 = vpop.f32.mrf.mxu0 }
 0x212   :  { %v3326_v25 = vadd.f32 %v3325_v7, %v6915_v18 }
 0x213   :  { %3675 = vst [vmem:[%s8704_s3 + $0x8] sm:$0xff] %v3300_v2  ;;  %3500 = vmatmul.bf16.gmra.mxu1 %v8804_v0 }
 0x214   :  { %v3350_v23 = vadd.f32 %v3349_v4, %v3326_v25  ;;  %5227 = vmatmul.msk.bf16.vlgmr.msrb.gmra.mxu0 %vm2574_vm1, %v8783_v62 }
 0x216   :  { %v8606_v57 = vadd.f32 %v3373_v48, %v3350_v23  ;;  %3610 = vmatmul.bf16.vlgmr.msrb.gmra.mxu2 %v8805_v53 }
 0x217   :  { %v3354_v18 = vpop.f32.mrf.mxu3 }
 0x218   :  { %v3301_v32 = vpop.f32.mrf.mxu1 }
 0x219   :  { %v3302_v33 = vadd.f32 %v3301_v32, %v3278_v47  ;;  %v3328_v5 = vpop.f32.mrf.mxu2  ;;  %v3378_v30 = vpop.f32.mrf.mxu0 }
 0x21a   :  { %v3329_v62 = vadd.f32 %v3328_v5, %v6954_v39 }
 0x21b   :  { %3679 = vst [vmem:[%s8704_s3 + $0x20] sm:$0xff] %v3302_v33 }
 0x21c   :  { %v3353_v4 = vadd.f32 %v3352_v60, %v3329_v62  ;;  %3639 = vmatmul.bf16.gmra.mxu3 %v7100_v52  ;;  %v3259_v52 = vadd.f32 %v8496_v43, %v3235_v34  ;;  %v3262_v43 = vadd.f32 %v8533_v49, %v3238_v59 }
 0x21e   :  { %v8618_v40 = vadd.f32 %v3376_v42, %v3353_v4  ;;  %v3283_v14 = vadd.f32 %v8506_v27, %v3259_v52  ;;  %v3286_v22 = vadd.f32 %v8544_v31, %v3262_v43 }
 0x21f   :  { %v3357_v56 = vpop.f32.mrf.mxu3 }
 0x220   :  { %v3304_v17 = vpop.f32.mrf.mxu1 }
 0x221   :  { %v3305_v21 = vadd.f32 %v3304_v17, %v3281_v1  ;;  %v3330_v8 = vpop.f32.mrf.mxu2  ;;  %v3381_v28 = vpop.f32.mrf.mxu0 }
 0x222   :  { %v3331_v39 = vadd.f32 %v3330_v8, %v7038_v10 }
 0x223   :  { %3682 = vst [vmem:[%s8704_s3 + $0x38] sm:$0xff] %v3305_v21  ;;  %3586 = vmatmul.bf16.vlgmr.msrb.gmra.mxu1 %v6559_v36  ;;  %v3216_v36 = vadd.f32 %v3215_v19, %v8450_v44 }
 0x224   :  { %v3355_v15 = vadd.f32 %v3354_v18, %v3331_v39  ;;  %5228 = vmatmul.msk.bf16.gmra.mxu0 %vm2574_vm1, %v8786_v45 }
 0x226   :  { %v8631_v48 = vadd.f32 %v3378_v30, %v3355_v15  ;;  %3615 = vmatmul.bf16.gmra.mxu2 %v6796_v41  ;;  %v3240_v41 = vadd.f32 %v8579_v26, %v3216_v36 }
 0x227   :  { %v3359_v10 = vpop.f32.mrf.mxu3 }
 0x228   :  { %v3306_v20 = vpop.f32.mrf.mxu1  ;;  %v3264_v49 = vadd.f32 %v8566_v55, %v3240_v41 }
 0x229   :  { %v3307_v29 = vadd.f32 %v3306_v20, %v3283_v14  ;;  %v3333_v37 = vpop.f32.mrf.mxu2  ;;  %v3383_v13 = vpop.f32.mrf.mxu0 }
 0x22a   :  { %v3334_v45 = vadd.f32 %v3333_v37, %v7071_v16  ;;  %v3288_v26 = vadd.f32 %v8570_v6, %v3264_v49 }
 0x22b   :  { %3685 = vst [vmem:[%s8704_s3 + $0x50] sm:$0xff] %v3307_v29 }
 0x22c   :  { %v3358_v54 = vadd.f32 %v3357_v56, %v3334_v45  ;;  %3644 = vmatmul.bf16.gmra.mxu3 %v7195_v61 }
 0x22e   :  { %v3382_v27 = vadd.f32 %v3381_v28, %v3358_v54 }
 0x22f   :  { %v3443_v44 = vpop.f32.mrf.mxu3 }
 0x230   :  { %v3309_v2 = vpop.f32.mrf.mxu1 }
 0x231   :  { %v3310_v60 = vadd.f32 %v3309_v2, %v3286_v22  ;;  %v3335_v19 = vpop.f32.mrf.mxu2  ;;  %v3467_v61 = vpop.f32.mrf.mxu0 }
 0x232   :  { %v3336_v16 = vadd.f32 %v3335_v19, %v8775_v50 }
 0x233   :  { %3688 = vst [vmem:[%s8704_s3 + $0x68] sm:$0xff] %v3310_v60  ;;  %3591 = vmatmul.bf16.gmra.mxu1 %v6646_v35 }
 0x234   :  { %v3360_v7 = vadd.f32 %v3359_v10, %v3336_v16  ;;  %5229 = vmatmul.msk.bf16.gmra.mxu0 %vm2574_vm1, %v8788_v3 }
 0x236   :  { %v3384_v31 = vadd.f32 %v3383_v13, %v3360_v7  ;;  %3620 = vmatmul.bf16.gmra.mxu2 %v8776_v24 }
 0x237   :  { %v3445_v0 = vpop.f32.mrf.mxu3 }
 0x238   :  { %v3311_v58 = vpop.f32.mrf.mxu1 }
 0x239   :  { %v3312_v25 = vadd.f32 %v3311_v58, %v3288_v26  ;;  %v3419_v63 = vpop.f32.mrf.mxu2  ;;  %v3469_v35 = vpop.f32.mrf.mxu0 }
 0x23b   :  { %3691 = vst [vmem:[%s8704_s3 + $0x80] sm:$0xff] %v3312_v25 }
 0x23f   :  { %v3448_v42 = vpop.f32.mrf.mxu3 }
 0x240   :  { %v3395_v50 = vpop.f32.mrf.mxu1 }
 0x241   :  { %v3396_v55 = vadd.f32 %v3395_v50, %v8593_v9  ;;  %v3421_v23 = vpop.f32.mrf.mxu2  ;;  %v3472_v24 = vpop.f32.mrf.mxu0 }
 0x243   :  { %v3420_v3 = vadd.f32 %v3419_v63, %v3396_v55  ;;  %3596 = vmatmul.bf16.gmra.mxu1 %v8778_v38 }
 0x245   :  { %v3444_v11 = vadd.f32 %v3443_v44, %v3420_v3 }
 0x247   :  { %v3468_v6 = vadd.f32 %v3467_v61, %v3444_v11  ;;  %v3450_v32 = vpop.f32.mrf.mxu3 }
 0x248   :  { %v3397_v53 = vpop.f32.mrf.mxu1 }
 0x249   :  { %v3398_v47 = vadd.f32 %v3397_v53, %v8606_v57  ;;  %v3424_v33 = vpop.f32.mrf.mxu2  ;;  %v3474_v5 = vpop.f32.mrf.mxu0 }
 0x24b   :  { %v3422_v18 = vadd.f32 %v3421_v23, %v3398_v47 }
 0x24d   :  { %v3446_v51 = vadd.f32 %v3445_v0, %v3422_v18 }
 0x24f   :  { %v3470_v62 = vadd.f32 %v3469_v35, %v3446_v51  ;;  %v3453_v30 = vpop.f32.mrf.mxu3 }
 0x250   :  { %v3400_v12 = vpop.f32.mrf.mxu1 }
 0x251   :  { %v3401_v9 = vadd.f32 %v3400_v12, %v8618_v40  ;;  %v3426_v4 = vpop.f32.mrf.mxu2  ;;  %v3477_v1 = vpop.f32.mrf.mxu0 }
 0x253   :  { %v3425_v34 = vadd.f32 %v3424_v33, %v3401_v9 }
 0x255   :  { %v3449_v38 = vadd.f32 %v3448_v42, %v3425_v34 }
 0x257   :  { %v3473_v17 = vadd.f32 %v3472_v24, %v3449_v38  ;;  %v3455_v8 = vpop.f32.mrf.mxu3 }
 0x258   :  { %v3402_v21 = vpop.f32.mrf.mxu1 }
 0x259   :  { %v3403_v56 = vadd.f32 %v3402_v21, %v8631_v48  ;;  %v3429_v57 = vpop.f32.mrf.mxu2  ;;  %v3479_v39 = vpop.f32.mrf.mxu0 }
 0x25b   :  { %v3427_v46 = vadd.f32 %v3426_v4, %v3403_v56 }
 0x25d   :  { %v3451_v52 = vadd.f32 %v3450_v32, %v3427_v46 }
 0x25f   :  { %v3475_v28 = vadd.f32 %v3474_v5, %v3451_v52  ;;  %v3539_v14 = vpop.f32.mrf.mxu3 }
 0x260   :  { %v3405_v15 = vpop.f32.mrf.mxu1 }
 0x261   :  { %v3406_v59 = vadd.f32 %v3405_v15, %v3382_v27  ;;  %v3431_v20 = vpop.f32.mrf.mxu2  ;;  %v3563_v29 = vpop.f32.mrf.mxu0 }
 0x263   :  { %v3430_v40 = vadd.f32 %v3429_v57, %v3406_v59 }
 0x265   :  { %v3454_v10 = vadd.f32 %v3453_v30, %v3430_v40 }
 0x267   :  { %v8662_v37 = vadd.f32 %v3477_v1, %v3454_v10  ;;  %v3541_v43 = vpop.f32.mrf.mxu3 }
 0x268   :  { %v3407_v36 = vpop.f32.mrf.mxu1 }
 0x269   :  { %v3408_v45 = vadd.f32 %v3407_v36, %v3384_v31  ;;  %v3515_v13 = vpop.f32.mrf.mxu2  ;;  %v3565_v54 = vpop.f32.mrf.mxu0 }
 0x26b   :  { %v3432_v48 = vadd.f32 %v3431_v20, %v3408_v45 }
 0x26d   :  { %v3456_v41 = vadd.f32 %v3455_v8, %v3432_v48 }
 0x26f   :  { %v8664_v22 = vadd.f32 %v3479_v39, %v3456_v41  ;;  %v3544_v44 = vpop.f32.mrf.mxu3 }
 0x270   :  { %v3491_v2 = vpop.f32.mrf.mxu1 }
 0x271   :  { %v3517_v60 = vpop.f32.mrf.mxu2  ;;  %v3568_v27 = vpop.f32.mrf.mxu0  ;;  %v3492_v42 = vadd.f32 %v3491_v2, %v3468_v6 }
 0x273   :  { %v3516_v23 = vadd.f32 %v3515_v13, %v3492_v42 }
 0x275   :  { %v3540_v47 = vadd.f32 %v3539_v14, %v3516_v23 }
 0x277   :  { %v3546_v49 = vpop.f32.mrf.mxu3  ;;  %v3564_v18 = vadd.f32 %v3563_v29, %v3540_v47 }
 0x278   :  { %v3493_v19 = vpop.f32.mrf.mxu1 }
 0x279   :  { %v3520_v16 = vpop.f32.mrf.mxu2  ;;  %v3570_v61 = vpop.f32.mrf.mxu0  ;;  %v3494_v53 = vadd.f32 %v3493_v19, %v3470_v62 }
 0x27b   :  { %v3518_v33 = vadd.f32 %v3517_v60, %v3494_v53 }
 0x27d   :  { %v3542_v4 = vadd.f32 %v3541_v43, %v3518_v33 }
 0x27f   :  { %v3549_v58 = vpop.f32.mrf.mxu3  ;;  %v3566_v56 = vadd.f32 %v3565_v54, %v3542_v4 }
 0x280   :  { %v3496_v7 = vpop.f32.mrf.mxu1 }
 0x281   :  { %v3522_v26 = vpop.f32.mrf.mxu2  ;;  %v8666_v31 = vpop.f32.mrf.mxu0  ;;  %v3497_v9 = vadd.f32 %v3496_v7, %v3473_v17 }
 0x283   :  { %v3521_v6 = vadd.f32 %v3520_v16, %v3497_v9 }
 0x285   :  { %v3545_v39 = vadd.f32 %v3544_v44, %v3521_v6 }
 0x287   :  { %v8668_v35 = vpop.f32.mrf.mxu3  ;;  %v3569_v20 = vadd.f32 %v3568_v27, %v3545_v39 }
 0x288   :  { %v3498_v25 = vpop.f32.mrf.mxu1 }
 0x289   :  { %v3525_v0 = vpop.f32.mrf.mxu2  ;;  %v8670_v55 = vpop.f32.mrf.mxu0  ;;  %v3499_v57 = vadd.f32 %v3498_v25, %v3475_v28 }
 0x28b   :  { %v3523_v59 = vadd.f32 %v3522_v26, %v3499_v57 }
 0x28d   :  { %v3547_v28 = vadd.f32 %v3546_v49, %v3523_v59 }
 0x28f   :  { %v3635_v11 = vpop.f32.mrf.mxu3  ;;  %v3571_v41 = vadd.f32 %v3570_v61, %v3547_v28 }
 0x290   :  { %v3501_v63 = vpop.f32.mrf.mxu1 }
 0x291   :  { %v3527_v50 = vpop.f32.mrf.mxu2  ;;  %v3659_v32 = vpop.f32.mrf.mxu0  ;;  %v3502_v36 = vadd.f32 %v3501_v63, %v8662_v37 }
 0x293   :  { %v3526_v48 = vadd.f32 %v3525_v0, %v3502_v36 }
 0x295   :  { %v3550_v37 = vadd.f32 %v3549_v58, %v3526_v48 }
 0x297   :  { %v3637_v34 = vpop.f32.mrf.mxu3  ;;  %v3574_v25 = vadd.f32 %v8666_v31, %v3550_v37 }
 0x298   :  { %v3503_v3 = vpop.f32.mrf.mxu1 }
 0x299   :  { %v3611_v24 = vpop.f32.mrf.mxu2  ;;  %v3661_v38 = vpop.f32.mrf.mxu0  ;;  %v3504_v19 = vadd.f32 %v3503_v3, %v8664_v22 }
 0x29b   :  { %v3528_v49 = vadd.f32 %v3527_v50, %v3504_v19 }
 0x29f   :  { %v3640_v15 = vpop.f32.mrf.mxu3 }
 0x2a0   :  { %v3587_v5 = vpop.f32.mrf.mxu1 }
 0x2a1   :  { %v3588_v51 = vadd.f32 %v3587_v5, %v3564_v18  ;;  %v3613_v12 = vpop.f32.mrf.mxu2  ;;  %v3664_v40 = vpop.f32.mrf.mxu0 }
 0x2a3   :  { %v3612_v30 = vadd.f32 %v3611_v24, %v3588_v51  ;;  %v3552_v24 = vadd.f32 %v8668_v35, %v3528_v49 }
 0x2a5   :  { %v3636_v1 = vadd.f32 %v3635_v11, %v3612_v30  ;;  %v3576_v50 = vadd.f32 %v8670_v55, %v3552_v24 }
 0x2a7   :  { %v3660_v21 = vadd.f32 %v3659_v32, %v3636_v1  ;;  %v3642_v2 = vpop.f32.mrf.mxu3 }
 0x2a8   :  { %v3589_v8 = vpop.f32.mrf.mxu1 }
 0x2a9   :  { %3677 = vst.msk [vmem:[%s8704_s3 + $0x10] sm:$0xff] %vm3676_vm2, %v3660_v21  ;;  %v3590_v62 = vadd.f32 %v3589_v8, %v3566_v56  ;;  %v3616_v17 = vpop.f32.mrf.mxu2  ;;  %v3666_v27 = vpop.f32.mrf.mxu0 }
 0x2ab   :  { %v3614_v46 = vadd.f32 %v3613_v12, %v3590_v62 }
 0x2ad   :  { %v3638_v52 = vadd.f32 %v3637_v34, %v3614_v46 }
 0x2af   :  { %v3662_v14 = vadd.f32 %v3661_v38, %v3638_v52  ;;  %v3645_v42 = vpop.f32.mrf.mxu3 }
 0x2b0   :  { %v3592_v29 = vpop.f32.mrf.mxu1 }
 0x2b1   :  { %3680 = vst.msk [vmem:[%s8704_s3 + $0x28] sm:$0xff] %vm3676_vm2, %v3662_v14  ;;  %v3593_v10 = vadd.f32 %v3592_v29, %v3569_v20  ;;  %v3618_v13 = vpop.f32.mrf.mxu2  ;;  %v3669_v22 = vpop.f32.mrf.mxu0 }
 0x2b3   :  { %v3617_v45 = vadd.f32 %v3616_v17, %v3593_v10 }
 0x2b5   :  { %v3641_v43 = vadd.f32 %v3640_v15, %v3617_v45 }
 0x2b7   :  { %v3665_v54 = vadd.f32 %v3664_v40, %v3641_v43  ;;  %v3647_v32 = vpop.f32.mrf.mxu3 }
 0x2b8   :  { %v3594_v60 = vpop.f32.mrf.mxu1 }
 0x2b9   :  { %3683 = vst.msk [vmem:[%s8704_s3 + $0x40] sm:$0xff] %vm3676_vm2, %v3665_v54  ;;  %v3595_v44 = vadd.f32 %v3594_v60, %v3571_v41  ;;  %v3621_v0 = vpop.f32.mrf.mxu2  ;;  %v3671_v18 = vpop.f32.mrf.mxu0 }
 0x2bb   :  { %v3619_v16 = vadd.f32 %v3618_v13, %v3595_v44 }
 0x2bd   :  { %v3643_v7 = vadd.f32 %v3642_v2, %v3619_v16 }
 0x2bf   :  { %v3667_v26 = vadd.f32 %v3666_v27, %v3643_v7 }
 0x2c0   :  { %v3597_v61 = vpop.f32.mrf.mxu1 }
 0x2c1   :  { %3686 = vst.msk [vmem:[%s8704_s3 + $0x58] sm:$0xff] %vm3676_vm2, %v3667_v26  ;;  %v3598_v63 = vadd.f32 %v3597_v61, %v3574_v25  ;;  %v3623_v53 = vpop.f32.mrf.mxu2 }
 0x2c3   :  { %v3622_v23 = vadd.f32 %v3621_v0, %v3598_v63 }
 0x2c5   :  { %v3646_v3 = vadd.f32 %v3645_v42, %v3622_v23 }
 0x2c7   :  { %v3670_v58 = vadd.f32 %v3669_v22, %v3646_v3 }
 0x2c8   :  { %v3599_v11 = vpop.f32.mrf.mxu1 }
 0x2c9   :  { %3689 = vst.msk [vmem:[%s8704_s3 + $0x70] sm:$0xff] %vm3676_vm2, %v3670_v58  ;;  %v3600_v31 = vadd.f32 %v3599_v11, %v3576_v50 }
 0x2cb   :  { %v3624_v47 = vadd.f32 %v3623_v53, %v3600_v31 }
 0x2cd   :  { %v3648_v33 = vadd.f32 %v3647_v32, %v3624_v47 }
 0x2cf   :  { %v3672_v5 = vadd.f32 %v3671_v18, %v3648_v33 }
 0x2d1   :  { %3692 = vst.msk [vmem:[%s8704_s3 + $0x88] sm:$0xff] %vm3676_vm2, %v3672_v5 }

// kernel: _lambda_.24
= control target key start
LH: loop header
LB: loop body
LE: loop exit
PB: predicated region body
PF: predicated region fallthrough
CT: control target
= control target key end

     0   :  { %vm125_vm0 = vcmask 392192   ;;  %vm263_vm1 = vcmask 556032   ;;  %s679_s1 = inlined_call_operand.vmem [shape: bf16[48,324], index: 1, kind: input, shape index: {}]   ;;  %s680_s0 = inlined_call_operand.vmem [shape: bf16[96,48], index: 0, kind: input, shape index: {}]   ;;  %s681_s2 = inlined_call_operand.vmem [shape: f32[1,324], index: 2, kind: input, shape index: {}]   ;;  %s682_s3 = inlined_call_operand.vmem [shape: f32[96,324], index: 3, kind: output, shape index: {}]  }
   0x1   :  { %v352_v0 = vld [vmem:[%s679_s1 + $0x30] sm:$0xf]  ;;  %v393_v1 = vld [vmem:[%s679_s1 + $0x38] sm:$0xf0]  ;;  %v392_v2 = vld [vmem:[%s679_s1 + $0x34] sm:$0xf] }
   0x2   :  { %v353_v3 = vor.u32 %v393_v1, %v352_v0  ;;  %v354_v4 = vld [vmem:[%s679_s1 + $0x3c] sm:$0xf0]  ;;  %v360_v5 = vld [vmem:[%s679_s1 + $0x38] sm:$0xf]  ;;  %v394_v6 = vld [vmem:[%s679_s1 + $0x40] sm:$0xf0] }
   0x3   :  { %v357_v7 = vor.u32 %v392_v2, %v354_v4  ;;  %v361_v8 = vor.u32 %v394_v6, %v360_v5  ;;  %v340_v9 = vld [vmem:[%s679_s1 + $0x18] sm:$0xf]  ;;  %v390_v10 = vld [vmem:[%s679_s1 + $0x20] sm:$0xf0]  ;;  %v389_v11 = vld [vmem:[%s679_s1 + $0x1c] sm:$0xf] }
   0x4   :  { %395 = vmatpush.bf16.msra.mxu3 %v353_v3  ;;  %v341_v12 = vor.u32 %v390_v10, %v340_v9  ;;  %v342_v13 = vld [vmem:[%s679_s1 + $0x24] sm:$0xf0]  ;;  %v348_v14 = vld [vmem:[%s679_s1 + $0x20] sm:$0xf]  ;;  %v391_v15 = vld [vmem:[%s679_s1 + $0x28] sm:$0xf0]  ;;  %149 = vmatpush.bf16.msra.mxu0 %v353_v3 }
   0x5   :  { %398 = vmatpush.bf16.msra.mxu1 %v357_v7  ;;  %401 = vmatpush.bf16.msra.mxu2 %v361_v8  ;;  %v345_v16 = vor.u32 %v389_v11, %v342_v13  ;;  %v349_v17 = vor.u32 %v391_v15, %v348_v14  ;;  %v328_v18 = vld [vmem:[%s679_s1] sm:$0xf]  ;;  %v387_v19 = vld [vmem:[%s679_s1 + $0x8] sm:$0xf0]  ;;  %v386_v20 = vld [vmem:[%s679_s1 + $0x4] sm:$0xf] }
   0x6   :  { %v330_v21 = vld [vmem:[%s679_s1 + $0xc] sm:$0xf0]  ;;  %v336_v22 = vld [vmem:[%s679_s1 + $0x8] sm:$0xf]  ;;  %v388_v23 = vld [vmem:[%s679_s1 + $0x10] sm:$0xf0]  ;;  %v329_v24 = vor.u32 %v387_v19, %v328_v18 }
   0x7   :  { %v333_v25 = vor.u32 %v386_v20, %v330_v21  ;;  %v337_v26 = vor.u32 %v388_v23, %v336_v22  ;;  %v381_v27 = vld [vmem:[%s680_s0 + $0x8] sm:$0xff]  ;;  %v380_v28 = vld [vmem:[%s680_s0] sm:$0xff]  ;;  %v382_v29 = vld [vmem:[%s680_s0 + $0x10] sm:$0xff] }
   0x8   :  { %396 = vmatpush.bf16.msra.mxu3 %v341_v12  ;;  %150 = vmatpush.bf16.msra.mxu0 %v341_v12  ;;  %v383_v30 = vld [vmem:[%s680_s0 + $0x18] sm:$0xff]  ;;  %v384_v31 = vld [vmem:[%s680_s0 + $0x20] sm:$0xff]  ;;  %v385_v32 = vld [vmem:[%s680_s0 + $0x28] sm:$0xff] }
   0x9   :  { %399 = vmatpush.bf16.msra.mxu1 %v345_v16  ;;  %402 = vmatpush.bf16.msra.mxu2 %v349_v17  ;;  %v39_v33 = vld [vmem:[%s681_s2] sm:$0x7] }
   0xa   :  { %v517_v34 = vperm.slane %v39_v33, 1  ;;  %v519_v35 = vperm.slane %v39_v33, 0  ;;  %v529_v40 = vperm.slane %v39_v33, 2 }
   0xc   :  { %397 = vmatpush.bf16.msra.mxu3 %v329_v24  ;;  %151 = vmatpush.bf16.msra.mxu0 %v329_v24 }
   0xd   :  { %400 = vmatpush.bf16.msra.mxu1 %v333_v25  ;;  %403 = vmatpush.bf16.msra.mxu2 %v337_v26 }
   0xf   :  { %363 = vmatmul.msk.bf16.vlgmr.msra.gmra.mxu3 %vm125_vm0, %v381_v27  ;;  %362 = vmatmul.msk.bf16.vlgmr.msra.gmra.mxu0 %vm125_vm0, %v380_v28 }
  0x10   :  { %188 = vmatpush.bf16.msrb.mxu0 %v357_v7  ;;  %369 = vmatmul.msk.bf16.vlgmr.msra.gmra.mxu1 %vm125_vm0, %v381_v27 }
  0x11   :  { %375 = vmatmul.msk.bf16.vlgmr.msra.gmra.mxu2 %vm125_vm0, %v381_v27 }
  0x14   :  { %189 = vmatpush.bf16.msrb.mxu0 %v345_v16 }
  0x18   :  { %190 = vmatpush.bf16.msrb.mxu0 %v333_v25 }
  0x1c   :  { %227 = vmatpush.bf16.msra.mxu0 %v361_v8 }
  0x1f   :  { %364 = vmatmul.msk.bf16.gmra.mxu3 %vm125_vm0, %v382_v29  ;;  %368 = vmatmul.msk.bf16.vlgmr.msrb.gmra.mxu0 %vm125_vm0, %v380_v28 }
  0x20   :  { %228 = vmatpush.bf16.msra.mxu0 %v349_v17  ;;  %370 = vmatmul.msk.bf16.gmra.mxu1 %vm125_vm0, %v382_v29 }
  0x21   :  { %376 = vmatmul.msk.bf16.gmra.mxu2 %vm125_vm0, %v382_v29 }
  0x24   :  { %229 = vmatpush.bf16.msra.mxu0 %v337_v26 }
  0x2f   :  { %365 = vmatmul.msk.bf16.gmra.mxu3 %vm125_vm0, %v383_v30  ;;  %374 = vmatmul.msk.bf16.vlgmr.msra.gmra.mxu0 %vm125_vm0, %v380_v28 }
  0x30   :  { %371 = vmatmul.msk.bf16.gmra.mxu1 %vm125_vm0, %v383_v30 }
  0x31   :  { %377 = vmatmul.msk.bf16.gmra.mxu2 %vm125_vm0, %v383_v30 }
  0x3f   :  { %366 = vmatmul.msk.bf16.gmra.mxu3 %vm125_vm0, %v384_v31 }
  0x40   :  { %372 = vmatmul.msk.bf16.gmra.mxu1 %vm125_vm0, %v384_v31 }
  0x41   :  { %378 = vmatmul.msk.bf16.gmra.mxu2 %vm125_vm0, %v384_v31 }
  0x4f   :  { %367 = vmatmul.msk.bf16.gmra.mxu3 %vm125_vm0, %v385_v32 }
  0x50   :  { %373 = vmatmul.msk.bf16.gmra.mxu1 %vm125_vm0, %v385_v32 }
  0x51   :  { %379 = vmatmul.msk.bf16.gmra.mxu2 %vm125_vm0, %v385_v32 }
  0x8c   :  { %v153_v36 = vpop.f32.mrf.mxu0 }
  0x8d   :  { %v197_v37 = vpop.f32.mrf.mxu1  ;;  %v154_v38 = vadd.f32 %v153_v36, %v519_v35 }
  0x8e   :  { %v198_v39 = vadd.f32 %v197_v37, %v517_v34 }
  0x8f   :  { %261 = vst [vmem:[%s682_s3] sm:$0xff] %v154_v38 }
  0x90   :  { %269 = vst [vmem:[%s682_s3 + $0x38] sm:$0xff] %v198_v39 }
  0x92   :  { %v158_v41 = vpop.f32.mrf.mxu3 }
  0x93   :  { %v159_v42 = vadd.f32 %v158_v41, %v519_v35 }
  0x94   :  { %v236_v43 = vpop.f32.mrf.mxu2  ;;  %v155_v45 = vpop.f32.mrf.mxu0 }
  0x95   :  { %v237_v44 = vadd.f32 %v236_v43, %v529_v40  ;;  %268 = vst [vmem:[%s682_s3 + $0x30] sm:$0xff] %v159_v42  ;;  %v199_v46 = vpop.f32.mrf.mxu1  ;;  %v156_v47 = vadd.f32 %v155_v45, %v519_v35 }
  0x96   :  { %v200_v48 = vadd.f32 %v199_v46, %v517_v34 }
  0x97   :  { %270 = vst.msk [vmem:[%s682_s3 + $0x40] sm:$0xff] %vm263_vm1, %v237_v44 }
  0x98   :  { %265 = vst [vmem:[%s682_s3 + $0x18] sm:$0xff] %v156_v47 }
  0x99   :  { %272 = vst [vmem:[%s682_s3 + $0x50] sm:$0xff] %v200_v48 }
  0x9a   :  { %v160_v49 = vpop.f32.mrf.mxu3 }
  0x9b   :  { %v161_v50 = vadd.f32 %v160_v49, %v519_v35 }
  0x9c   :  { %v238_v51 = vpop.f32.mrf.mxu2  ;;  %v192_v53 = vpop.f32.mrf.mxu0 }
  0x9d   :  { %v239_v52 = vadd.f32 %v238_v51, %v529_v40  ;;  %271 = vst [vmem:[%s682_s3 + $0x48] sm:$0xff] %v161_v50  ;;  %v202_v54 = vpop.f32.mrf.mxu1  ;;  %v193_v55 = vadd.f32 %v192_v53, %v517_v34 }
  0x9e   :  { %v203_v56 = vadd.f32 %v202_v54, %v517_v34 }
  0x9f   :  { %273 = vst.msk [vmem:[%s682_s3 + $0x58] sm:$0xff] %vm263_vm1, %v239_v52 }
  0xa0   :  { %262 = vst [vmem:[%s682_s3 + $0x8] sm:$0xff] %v193_v55 }
  0xa1   :  { %275 = vst [vmem:[%s682_s3 + $0x68] sm:$0xff] %v203_v56 }
  0xa2   :  { %v163_v57 = vpop.f32.mrf.mxu3 }
  0xa3   :  { %v164_v58 = vadd.f32 %v163_v57, %v519_v35 }
  0xa4   :  { %v241_v59 = vpop.f32.mrf.mxu2  ;;  %v194_v61 = vpop.f32.mrf.mxu0 }
  0xa5   :  { %v242_v60 = vadd.f32 %v241_v59, %v529_v40  ;;  %274 = vst [vmem:[%s682_s3 + $0x60] sm:$0xff] %v164_v58  ;;  %v204_v62 = vpop.f32.mrf.mxu1  ;;  %v195_v63 = vadd.f32 %v194_v61, %v517_v34 }
  0xa6   :  { %v205_v0 = vadd.f32 %v204_v62, %v517_v34 }
  0xa7   :  { %276 = vst.msk [vmem:[%s682_s3 + $0x70] sm:$0xff] %vm263_vm1, %v242_v60 }
  0xa8   :  { %266 = vst [vmem:[%s682_s3 + $0x20] sm:$0xff] %v195_v63 }
  0xa9   :  { %278 = vst [vmem:[%s682_s3 + $0x80] sm:$0xff] %v205_v0 }
  0xaa   :  { %v165_v1 = vpop.f32.mrf.mxu3 }
  0xab   :  { %v166_v2 = vadd.f32 %v165_v1, %v519_v35 }
  0xac   :  { %v243_v3 = vpop.f32.mrf.mxu2  ;;  %v231_v5 = vpop.f32.mrf.mxu0 }
  0xad   :  { %v244_v4 = vadd.f32 %v243_v3, %v529_v40  ;;  %277 = vst [vmem:[%s682_s3 + $0x78] sm:$0xff] %v166_v2  ;;  %v207_v6 = vpop.f32.mrf.mxu1  ;;  %v232_v7 = vadd.f32 %v231_v5, %v529_v40 }
  0xae   :  { %v208_v8 = vadd.f32 %v207_v6, %v517_v34 }
  0xaf   :  { %279 = vst.msk [vmem:[%s682_s3 + $0x88] sm:$0xff] %vm263_vm1, %v244_v4 }
  0xb0   :  { %264 = vst.msk [vmem:[%s682_s3 + $0x10] sm:$0xff] %vm263_vm1, %v232_v7 }
  0xb1   :  { %281 = vst [vmem:[%s682_s3 + $0x98] sm:$0xff] %v208_v8 }
  0xb2   :  { %v168_v9 = vpop.f32.mrf.mxu3 }
  0xb3   :  { %v169_v10 = vadd.f32 %v168_v9, %v519_v35 }
  0xb4   :  { %v246_v11 = vpop.f32.mrf.mxu2  ;;  %v233_v13 = vpop.f32.mrf.mxu0 }
  0xb5   :  { %v247_v12 = vadd.f32 %v246_v11, %v529_v40  ;;  %280 = vst [vmem:[%s682_s3 + $0x90] sm:$0xff] %v169_v10  ;;  %v209_v14 = vpop.f32.mrf.mxu1  ;;  %v234_v15 = vadd.f32 %v233_v13, %v529_v40 }
  0xb6   :  { %v210_v16 = vadd.f32 %v209_v14, %v517_v34 }
  0xb7   :  { %282 = vst.msk [vmem:[%s682_s3 + $0xa0] sm:$0xff] %vm263_vm1, %v247_v12 }
  0xb8   :  { %267 = vst.msk [vmem:[%s682_s3 + $0x28] sm:$0xff] %vm263_vm1, %v234_v15 }
  0xb9   :  { %284 = vst [vmem:[%s682_s3 + $0xb0] sm:$0xff] %v210_v16 }
  0xba   :  { %v170_v17 = vpop.f32.mrf.mxu3 }
  0xbb   :  { %v171_v18 = vadd.f32 %v170_v17, %v519_v35 }
  0xbc   :  { %v248_v19 = vpop.f32.mrf.mxu2 }
  0xbd   :  { %v249_v20 = vadd.f32 %v248_v19, %v529_v40  ;;  %283 = vst [vmem:[%s682_s3 + $0xa8] sm:$0xff] %v171_v18  ;;  %v212_v21 = vpop.f32.mrf.mxu1 }
  0xbe   :  { %v213_v22 = vadd.f32 %v212_v21, %v517_v34 }
  0xbf   :  { %285 = vst.msk [vmem:[%s682_s3 + $0xb8] sm:$0xff] %vm263_vm1, %v249_v20 }
  0xc0   :  { %287 = vst [vmem:[%s682_s3 + $0xc8] sm:$0xff] %v213_v22 }
  0xc2   :  { %v173_v23 = vpop.f32.mrf.mxu3 }
  0xc3   :  { %v174_v24 = vadd.f32 %v173_v23, %v519_v35 }
  0xc4   :  { %v251_v25 = vpop.f32.mrf.mxu2 }
  0xc5   :  { %v252_v26 = vadd.f32 %v251_v25, %v529_v40  ;;  %286 = vst [vmem:[%s682_s3 + $0xc0] sm:$0xff] %v174_v24  ;;  %v214_v27 = vpop.f32.mrf.mxu1 }
  0xc6   :  { %v215_v28 = vadd.f32 %v214_v27, %v517_v34 }
  0xc7   :  { %288 = vst.msk [vmem:[%s682_s3 + $0xd0] sm:$0xff] %vm263_vm1, %v252_v26 }
  0xc8   :  { %290 = vst [vmem:[%s682_s3 + $0xe0] sm:$0xff] %v215_v28 }
  0xca   :  { %v175_v29 = vpop.f32.mrf.mxu3 }
  0xcb   :  { %v176_v30 = vadd.f32 %v175_v29, %v519_v35 }
  0xcc   :  { %v253_v31 = vpop.f32.mrf.mxu2 }
  0xcd   :  { %v254_v32 = vadd.f32 %v253_v31, %v529_v40  ;;  %289 = vst [vmem:[%s682_s3 + $0xd8] sm:$0xff] %v176_v30  ;;  %v217_v33 = vpop.f32.mrf.mxu1 }
  0xce   :  { %v218_v36 = vadd.f32 %v217_v33, %v517_v34 }
  0xcf   :  { %291 = vst.msk [vmem:[%s682_s3 + $0xe8] sm:$0xff] %vm263_vm1, %v254_v32 }
  0xd0   :  { %293 = vst [vmem:[%s682_s3 + $0xf8] sm:$0xff] %v218_v36 }
  0xd2   :  { %v178_v37 = vpop.f32.mrf.mxu3 }
  0xd3   :  { %v179_v38 = vadd.f32 %v178_v37, %v519_v35 }
  0xd4   :  { %v256_v39 = vpop.f32.mrf.mxu2 }
  0xd5   :  { %v257_v41 = vadd.f32 %v256_v39, %v529_v40  ;;  %292 = vst [vmem:[%s682_s3 + $0xf0] sm:$0xff] %v179_v38  ;;  %v219_v42 = vpop.f32.mrf.mxu1 }
  0xd6   :  { %v220_v43 = vadd.f32 %v219_v42, %v517_v34 }
  0xd7   :  { %294 = vst.msk [vmem:[%s682_s3 + $0x100] sm:$0xff] %vm263_vm1, %v257_v41 }
  0xd8   :  { %296 = vst [vmem:[%s682_s3 + $0x110] sm:$0xff] %v220_v43 }
  0xda   :  { %v180_v44 = vpop.f32.mrf.mxu3 }
  0xdb   :  { %v181_v45 = vadd.f32 %v180_v44, %v519_v35 }
  0xdc   :  { %v258_v46 = vpop.f32.mrf.mxu2 }
  0xdd   :  { %v259_v47 = vadd.f32 %v258_v46, %v529_v40  ;;  %295 = vst [vmem:[%s682_s3 + $0x108] sm:$0xff] %v181_v45 }
  0xdf   :  { %297 = vst.msk [vmem:[%s682_s3 + $0x118] sm:$0xff] %vm263_vm1, %v259_v47 }

// kernel: _lambda_.25
= control target key start
LH: loop header
LB: loop body
LE: loop exit
PB: predicated region body
PF: predicated region fallthrough
CT: control target
= control target key end

     0   :  { %vm752_vm0 = vcmask 785408   ;;  %s2427_s1 = inlined_call_operand.vmem [shape: bf16[864,256], index: 1, kind: input, shape index: {}]   ;;  %s2428_s0 = inlined_call_operand.vmem [shape: bf16[18,864], index: 0, kind: input, shape index: {}]   ;;  %s2429_s2 = inlined_call_operand.vmem [shape: f32[18,1], index: 2, kind: input, shape index: {}]   ;;  %s2430_s3 = inlined_call_operand.vmem [shape: f32[18,256], index: 3, kind: output, shape index: {}]  }
   0x1   :  { %v1107_v0 = vld [vmem:[%s2427_s1 + $0x70] sm:$0xf]  ;;  %v1507_v1 = vld [vmem:[%s2427_s1 + $0x74] sm:$0xf0]  ;;  %v1099_v11 = vld [vmem:[%s2427_s1 + $0x60] sm:$0xf] }
   0x2   :  { %v1171_v2 = vld [vmem:[%s2427_s1 + $0xf0] sm:$0xf]  ;;  %v1108_v3 = vor.u32 %v1507_v1, %v1107_v0  ;;  %v1523_v4 = vld [vmem:[%s2427_s1 + $0xf4] sm:$0xf0]  ;;  %v1505_v13 = vld [vmem:[%s2427_s1 + $0x64] sm:$0xf0] }
   0x3   :  { %v1235_v5 = vld [vmem:[%s2427_s1 + $0x170] sm:$0xf]  ;;  %v1539_v6 = vld [vmem:[%s2427_s1 + $0x174] sm:$0xf0]  ;;  %v1172_v7 = vor.u32 %v1523_v4, %v1171_v2  ;;  %v1163_v14 = vld [vmem:[%s2427_s1 + $0xe0] sm:$0xf]  ;;  %v1100_v16 = vor.u32 %v1505_v13, %v1099_v11 }
   0x4   :  { %v1236_v8 = vor.u32 %v1539_v6, %v1235_v5  ;;  %v1299_v9 = vld [vmem:[%s2427_s1 + $0x1f0] sm:$0xf]  ;;  %v1555_v10 = vld [vmem:[%s2427_s1 + $0x1f4] sm:$0xf0]  ;;  %759 = vmatpush.bf16.msra.mxu0 %v1108_v3  ;;  %v1521_v15 = vld [vmem:[%s2427_s1 + $0xe4] sm:$0xf0] }
   0x5   :  { %v1300_v12 = vor.u32 %v1555_v10, %v1299_v9  ;;  %777 = vmatpush.bf16.msra.mxu1 %v1172_v7  ;;  %v1164_v17 = vor.u32 %v1521_v15, %v1163_v14  ;;  %v1227_v18 = vld [vmem:[%s2427_s1 + $0x160] sm:$0xf]  ;;  %v1537_v19 = vld [vmem:[%s2427_s1 + $0x164] sm:$0xf0]  ;;  %v1091_v23 = vld [vmem:[%s2427_s1 + $0x50] sm:$0xf] }
   0x6   :  { %795 = vmatpush.bf16.msra.mxu2 %v1236_v8  ;;  %v1291_v20 = vld [vmem:[%s2427_s1 + $0x1e0] sm:$0xf]  ;;  %v1228_v21 = vor.u32 %v1537_v19, %v1227_v18  ;;  %v1553_v22 = vld [vmem:[%s2427_s1 + $0x1e4] sm:$0xf0]  ;;  %v1503_v24 = vld [vmem:[%s2427_s1 + $0x54] sm:$0xf0] }
   0x7   :  { %813 = vmatpush.bf16.msra.mxu3 %v1300_v12  ;;  %v1292_v25 = vor.u32 %v1553_v22, %v1291_v20  ;;  %v1155_v26 = vld [vmem:[%s2427_s1 + $0xd0] sm:$0xf]  ;;  %v1519_v27 = vld [vmem:[%s2427_s1 + $0xd4] sm:$0xf0]  ;;  %v1092_v29 = vor.u32 %v1503_v24, %v1091_v23  ;;  %v1083_v35 = vld [vmem:[%s2427_s1 + $0x40] sm:$0xf] }
   0x8   :  { %v1219_v28 = vld [vmem:[%s2427_s1 + $0x150] sm:$0xf]  ;;  %760 = vmatpush.bf16.msra.mxu0 %v1100_v16  ;;  %v1535_v30 = vld [vmem:[%s2427_s1 + $0x154] sm:$0xf0]  ;;  %v1156_v33 = vor.u32 %v1519_v27, %v1155_v26  ;;  %v1501_v36 = vld [vmem:[%s2427_s1 + $0x44] sm:$0xf0] }
   0x9   :  { %v1283_v31 = vld [vmem:[%s2427_s1 + $0x1d0] sm:$0xf]  ;;  %v1551_v32 = vld [vmem:[%s2427_s1 + $0x1d4] sm:$0xf0]  ;;  %778 = vmatpush.bf16.msra.mxu1 %v1164_v17  ;;  %v1220_v34 = vor.u32 %v1535_v30, %v1219_v28  ;;  %v1147_v37 = vld [vmem:[%s2427_s1 + $0xc0] sm:$0xf]  ;;  %v1084_v44 = vor.u32 %v1501_v36, %v1083_v35 }
   0xa   :  { %796 = vmatpush.bf16.msra.mxu2 %v1228_v21  ;;  %v1284_v38 = vor.u32 %v1551_v32, %v1283_v31  ;;  %v1517_v39 = vld [vmem:[%s2427_s1 + $0xc4] sm:$0xf0]  ;;  %v1211_v40 = vld [vmem:[%s2427_s1 + $0x140] sm:$0xf]  ;;  %v1075_v47 = vld [vmem:[%s2427_s1 + $0x30] sm:$0xf] }
   0xb   :  { %814 = vmatpush.bf16.msra.mxu3 %v1292_v25  ;;  %v1533_v41 = vld [vmem:[%s2427_s1 + $0x144] sm:$0xf0]  ;;  %v1275_v42 = vld [vmem:[%s2427_s1 + $0x1c0] sm:$0xf]  ;;  %v1148_v45 = vor.u32 %v1517_v39, %v1147_v37  ;;  %v1499_v48 = vld [vmem:[%s2427_s1 + $0x34] sm:$0xf0] }
   0xc   :  { %v1549_v43 = vld [vmem:[%s2427_s1 + $0x1c4] sm:$0xf0]  ;;  %761 = vmatpush.bf16.msra.mxu0 %v1092_v29  ;;  %v1212_v46 = vor.u32 %v1533_v41, %v1211_v40  ;;  %v1139_v49 = vld [vmem:[%s2427_s1 + $0xb0] sm:$0xf]  ;;  %v1515_v51 = vld [vmem:[%s2427_s1 + $0xb4] sm:$0xf0]  ;;  %v1076_v56 = vor.u32 %v1499_v48, %v1075_v47 }
   0xd   :  { %779 = vmatpush.bf16.msra.mxu1 %v1156_v33  ;;  %v1276_v50 = vor.u32 %v1549_v43, %v1275_v42  ;;  %v1203_v52 = vld [vmem:[%s2427_s1 + $0x130] sm:$0xf]  ;;  %v1531_v53 = vld [vmem:[%s2427_s1 + $0x134] sm:$0xf0]  ;;  %v1140_v57 = vor.u32 %v1515_v51, %v1139_v49  ;;  %v1067_v59 = vld [vmem:[%s2427_s1 + $0x20] sm:$0xf] }
   0xe   :  { %797 = vmatpush.bf16.msra.mxu2 %v1220_v34  ;;  %v1267_v54 = vld [vmem:[%s2427_s1 + $0x1b0] sm:$0xf]  ;;  %v1547_v55 = vld [vmem:[%s2427_s1 + $0x1b4] sm:$0xf0]  ;;  %v1204_v58 = vor.u32 %v1531_v53, %v1203_v52  ;;  %v1497_v60 = vld [vmem:[%s2427_s1 + $0x24] sm:$0xf0] }
   0xf   :  { %815 = vmatpush.bf16.msra.mxu3 %v1284_v38  ;;  %v1131_v61 = vld [vmem:[%s2427_s1 + $0xa0] sm:$0xf]  ;;  %v1268_v62 = vor.u32 %v1547_v55, %v1267_v54  ;;  %v1513_v63 = vld [vmem:[%s2427_s1 + $0xa4] sm:$0xf0]  ;;  %v1068_v4 = vor.u32 %v1497_v60, %v1067_v59  ;;  %v1059_v7 = vld [vmem:[%s2427_s1 + $0x10] sm:$0xf] }
  0x10   :  { %762 = vmatpush.bf16.msra.mxu0 %v1084_v44  ;;  %v1195_v0 = vld [vmem:[%s2427_s1 + $0x120] sm:$0xf]  ;;  %v1529_v1 = vld [vmem:[%s2427_s1 + $0x124] sm:$0xf0]  ;;  %v1132_v5 = vor.u32 %v1513_v63, %v1131_v61  ;;  %v1495_v8 = vld [vmem:[%s2427_s1 + $0x14] sm:$0xf0] }
  0x11   :  { %780 = vmatpush.bf16.msra.mxu1 %v1148_v45  ;;  %v1259_v2 = vld [vmem:[%s2427_s1 + $0x1a0] sm:$0xf]  ;;  %v1545_v3 = vld [vmem:[%s2427_s1 + $0x1a4] sm:$0xf0]  ;;  %v1196_v6 = vor.u32 %v1529_v1, %v1195_v0  ;;  %v1123_v9 = vld [vmem:[%s2427_s1 + $0x90] sm:$0xf]  ;;  %v1060_v17 = vor.u32 %v1495_v8, %v1059_v7 }
  0x12   :  { %798 = vmatpush.bf16.msra.mxu2 %v1212_v46  ;;  %v1260_v10 = vor.u32 %v1545_v3, %v1259_v2  ;;  %v1511_v11 = vld [vmem:[%s2427_s1 + $0x94] sm:$0xf0]  ;;  %v1187_v12 = vld [vmem:[%s2427_s1 + $0x110] sm:$0xf]  ;;  %v1051_v16 = vld [vmem:[%s2427_s1] sm:$0xf] }
  0x13   :  { %816 = vmatpush.bf16.msra.mxu3 %v1276_v50  ;;  %v1527_v13 = vld [vmem:[%s2427_s1 + $0x114] sm:$0xf0]  ;;  %v1251_v14 = vld [vmem:[%s2427_s1 + $0x190] sm:$0xf]  ;;  %v1493_v18 = vld [vmem:[%s2427_s1 + $0x4] sm:$0xf0]  ;;  %v1124_v21 = vor.u32 %v1511_v11, %v1123_v9 }
  0x14   :  { %763 = vmatpush.bf16.msra.mxu0 %v1076_v56  ;;  %v1543_v15 = vld [vmem:[%s2427_s1 + $0x194] sm:$0xf0]  ;;  %v1115_v19 = vld [vmem:[%s2427_s1 + $0x80] sm:$0xf]  ;;  %v1509_v20 = vld [vmem:[%s2427_s1 + $0x84] sm:$0xf0]  ;;  %v1188_v22 = vor.u32 %v1527_v13, %v1187_v12  ;;  %v1052_v34 = vor.u32 %v1493_v18, %v1051_v16 }
  0x15   :  { %781 = vmatpush.bf16.msra.mxu1 %v1140_v57  ;;  %v1179_v23 = vld [vmem:[%s2427_s1 + $0x100] sm:$0xf]  ;;  %v1525_v24 = vld [vmem:[%s2427_s1 + $0x104] sm:$0xf0]  ;;  %v1252_v26 = vor.u32 %v1543_v15, %v1251_v14  ;;  %v1488_v29 = vld [vmem:[%s2428_s0 + $0x18] sm:$0xf0]  ;;  %v1116_v38 = vor.u32 %v1509_v20, %v1115_v19 }
  0x16   :  { %799 = vmatpush.bf16.msra.mxu2 %v1204_v58  ;;  %v1243_v25 = vld [vmem:[%s2427_s1 + $0x180] sm:$0xf]  ;;  %v1541_v27 = vld [vmem:[%s2427_s1 + $0x184] sm:$0xf0]  ;;  %v1485_v30 = vld [vmem:[%s2428_s0 + $0x4] sm:$0xf]  ;;  %v1180_v39 = vor.u32 %v1525_v24, %v1179_v23 }
  0x17   :  { %817 = vmatpush.bf16.msra.mxu3 %v1268_v62  ;;  %v1023_v28 = vld [vmem:[%s2428_s0] sm:$0xf]  ;;  %v1475_v32 = vld [vmem:[%s2427_s1 + $0x350] sm:$0xf]  ;;  %v1599_v33 = vld [vmem:[%s2427_s1 + $0x354] sm:$0xf0]  ;;  %v1244_v43 = vor.u32 %v1541_v27, %v1243_v25 }
  0x18   :  { %764 = vmatpush.bf16.msra.mxu0 %v1068_v4  ;;  %v1025_v31 = vld [vmem:[%s2428_s0 + $0x1c] sm:$0xf0]  ;;  %v1031_v35 = vld [vmem:[%s2428_s0 + $0x8] sm:$0xf]  ;;  %v1506_v36 = vld [vmem:[%s2427_s1 + $0x74] sm:$0xf]  ;;  %v1476_v44 = vor.u32 %v1599_v33, %v1475_v32  ;;  %v1875_v48 = vor.u32 %v1488_v29, %v1023_v28 }
  0x19   :  { %782 = vmatpush.bf16.msra.mxu1 %v1132_v5  ;;  %v1109_v37 = vld [vmem:[%s2427_s1 + $0x78] sm:$0xf0]  ;;  %v1489_v40 = vld [vmem:[%s2428_s0 + $0x20] sm:$0xf0]  ;;  %v1486_v41 = vld [vmem:[%s2428_s0 + $0xc] sm:$0xf]  ;;  %v1886_v53 = vor.u32 %v1485_v30, %v1025_v31 }
  0x1a   :  { %800 = vmatpush.bf16.msra.mxu2 %v1196_v6  ;;  %v1033_v42 = vld [vmem:[%s2428_s0 + $0x24] sm:$0xf0]  ;;  %v1363_v45 = vld [vmem:[%s2427_s1 + $0x270] sm:$0xf]  ;;  %v1571_v46 = vld [vmem:[%s2427_s1 + $0x274] sm:$0xf0]  ;;  %v1112_v49 = vor.u32 %v1506_v36, %v1109_v37  ;;  %v1888_v54 = vor.u32 %v1489_v40, %v1031_v35 }
  0x1b   :  { %818 = vmatpush.bf16.msra.mxu3 %v1260_v10  ;;  %v1427_v47 = vld [vmem:[%s2427_s1 + $0x2f0] sm:$0xf]  ;;  %v1587_v50 = vld [vmem:[%s2427_s1 + $0x2f4] sm:$0xf0]  ;;  %v1467_v51 = vld [vmem:[%s2427_s1 + $0x340] sm:$0xf]  ;;  %v1896_v57 = vor.u32 %v1486_v41, %v1033_v42  ;;  %v1364_v58 = vor.u32 %v1571_v46, %v1363_v45 }
  0x1c   :  { %765 = vmatpush.bf16.msra.mxu0 %v1060_v17  ;;  %v1597_v52 = vld [vmem:[%s2427_s1 + $0x344] sm:$0xf0]  ;;  %v1504_v55 = vld [vmem:[%s2427_s1 + $0x64] sm:$0xf]  ;;  %v1101_v56 = vld [vmem:[%s2427_s1 + $0x68] sm:$0xf0]  ;;  %v1428_v59 = vor.u32 %v1587_v50, %v1427_v47 }
  0x1d   :  { %783 = vmatpush.bf16.msra.mxu1 %v1124_v21  ;;  %v1355_v60 = vld [vmem:[%s2427_s1 + $0x260] sm:$0xf]  ;;  %v1569_v61 = vld [vmem:[%s2427_s1 + $0x264] sm:$0xf0]  ;;  %v1468_v63 = vor.u32 %v1597_v52, %v1467_v51  ;;  %v1104_v0 = vor.u32 %v1504_v55, %v1101_v56  ;;  %v1459_v2 = vld [vmem:[%s2427_s1 + $0x330] sm:$0xf] }
  0x1e   :  { %801 = vmatpush.bf16.msra.mxu2 %v1188_v22  ;;  %v1419_v62 = vld [vmem:[%s2427_s1 + $0x2e0] sm:$0xf]  ;;  %v1585_v1 = vld [vmem:[%s2427_s1 + $0x2e4] sm:$0xf0]  ;;  %v1595_v3 = vld [vmem:[%s2427_s1 + $0x334] sm:$0xf0]  ;;  %v1356_v6 = vor.u32 %v1569_v61, %v1355_v60 }
  0x1f   :  { %819 = vmatpush.bf16.msra.mxu3 %v1252_v26  ;;  %v1502_v4 = vld [vmem:[%s2427_s1 + $0x54] sm:$0xf]  ;;  %v1093_v5 = vld [vmem:[%s2427_s1 + $0x58] sm:$0xf0]  ;;  %v135_v7 = vld [vmem:[%s2429_s2] sm:$0xff]  ;;  %v1420_v8 = vor.u32 %v1585_v1, %v1419_v62  ;;  %v1460_v12 = vor.u32 %v1595_v3, %v1459_v2  ;;  %v1617_v15 = vmov 0  }
  0x20   :  { %766 = vmatpush.bf16.msra.mxu0 %v1052_v34  ;;  %v1347_v9 = vld [vmem:[%s2427_s1 + $0x250] sm:$0xf]  ;;  %v1567_v10 = vld [vmem:[%s2427_s1 + $0x254] sm:$0xf0]  ;;  %v1096_v13 = vor.u32 %v1502_v4, %v1093_v5  ;;  %1615 = vset.pattern.permute.xlu0 %v1617_v15  ;;  %v1451_v16 = vld [vmem:[%s2427_s1 + $0x320] sm:$0xf] }
  0x21   :  { %784 = vmatpush.bf16.msra.mxu1 %v1116_v38  ;;  %v1411_v11 = vld [vmem:[%s2427_s1 + $0x2d0] sm:$0xf]  ;;  %v1583_v14 = vld [vmem:[%s2427_s1 + $0x2d4] sm:$0xf0]  ;;  %v1593_v17 = vld [vmem:[%s2427_s1 + $0x324] sm:$0xf0]  ;;  %140 = vperm.xlu0 %1615, %v135_v7   ;;  %v1348_v21 = vor.u32 %v1567_v10, %v1347_v9 }
  0x22   :  { %802 = vmatpush.bf16.msra.mxu2 %v1180_v39  ;;  %v1500_v18 = vld [vmem:[%s2427_s1 + $0x44] sm:$0xf]  ;;  %v1085_v19 = vld [vmem:[%s2427_s1 + $0x48] sm:$0xf0]  ;;  %v23_v20 = vld [vmem:[%s2428_s0 + $0x38] sm:$0x11]  ;;  %1616 = vset.pattern.permute.xlu1 %v1617_v15  ;;  %v1412_v23 = vor.u32 %v1583_v14, %v1411_v11  ;;  %v1452_v27 = vor.u32 %v1593_v17, %v1451_v16 }
  0x23   :  { %820 = vmatpush.bf16.msra.mxu3 %v1244_v43  ;;  %767 = vmatmul.bf16.vlgmr.msra.gmra.mxu0 %v1875_v48  ;;  %v24_v22 = vld [vmem:[%s2428_s0 + $0x40] sm:$0x11]  ;;  %v1565_v25 = vld [vmem:[%s2427_s1 + $0x244] sm:$0xf0]  ;;  %v1088_v28 = vor.u32 %v1500_v18, %v1085_v19  ;;  %v179_v30 = vunpack.c.l.b16 %v23_v20  ;;  %v1443_v31 = vld [vmem:[%s2427_s1 + $0x310] sm:$0xf]  ;;  %v180_v33 = vunpack.c.h.b16 %v23_v20 }
  0x24   :  { %785 = vmatmul.bf16.vlgmr.msra.gmra.mxu1 %v1886_v53  ;;  %831 = vmatpush.bf16.msrb.mxu0 %v1364_v58  ;;  %v1339_v24 = vld [vmem:[%s2427_s1 + $0x240] sm:$0xf]  ;;  %v1581_v29 = vld [vmem:[%s2427_s1 + $0x2c4] sm:$0xf0]  ;;  %v1591_v32 = vld [vmem:[%s2427_s1 + $0x314] sm:$0xf0]  ;;  %v181_v34 = vunpack.c.l.b16 %v24_v22  ;;  %v182_v39 = vunpack.c.h.b16 %v24_v22 }
  0x25   :  { %803 = vmatmul.bf16.vlgmr.msra.gmra.mxu2 %v1888_v54  ;;  %849 = vmatpush.bf16.msrb.mxu1 %v1428_v59  ;;  %v1403_v26 = vld [vmem:[%s2427_s1 + $0x2c0] sm:$0xf]  ;;  %v1498_v35 = vld [vmem:[%s2427_s1 + $0x34] sm:$0xf]  ;;  %v1077_v36 = vld [vmem:[%s2427_s1 + $0x38] sm:$0xf0]  ;;  %v1340_v38 = vor.u32 %v1565_v25, %v1339_v24  ;;  %v1444_v45 = vor.u32 %v1591_v32, %v1443_v31  ;;  %v1998_v46 = vpack.c.b16 %v179_v30, %v179_v30 }
  0x26   :  { %869 = vmatpush.bf16.msrb.mxu2 %v1476_v44  ;;  %821 = vmatmul.bf16.vlgmr.msra.gmra.mxu3 %v1896_v57  ;;  %v137_v37 = vld [vmem:[%s2429_s2 + $0x10] sm:$0x3]  ;;  %v136_v40 = vld [vmem:[%s2429_s2 + $0x8] sm:$0xff]  ;;  %v1404_v41 = vor.u32 %v1581_v29, %v1403_v26  ;;  %v1563_v43 = vld [vmem:[%s2427_s1 + $0x234] sm:$0xf0]  ;;  %v1080_v47 = vor.u32 %v1498_v35, %v1077_v36  ;;  %v2009_v52 = vpack.c.b16 %v180_v33, %v180_v33 }
  0x27   :  { %885 = vmatpush.bf16.msrb.mxu3 %v1112_v49  ;;  %150 = vperm.xlu1 %1616, %v137_v37   ;;  %v1331_v42 = vld [vmem:[%s2427_s1 + $0x230] sm:$0xf]  ;;  %v1579_v49 = vld [vmem:[%s2427_s1 + $0x2b4] sm:$0xf0]  ;;  %v1435_v50 = vld [vmem:[%s2427_s1 + $0x300] sm:$0xf]  ;;  %v2011_v55 = vpack.c.b16 %v181_v34, %v181_v34  ;;  %v2022_v60 = vpack.c.b16 %v182_v39, %v182_v39 }
  0x28   :  { %832 = vmatpush.bf16.msrb.mxu0 %v1356_v6  ;;  %v1395_v44 = vld [vmem:[%s2427_s1 + $0x2b0] sm:$0xf]  ;;  %v1589_v51 = vld [vmem:[%s2427_s1 + $0x304] sm:$0xf0]  ;;  %v1496_v56 = vld [vmem:[%s2427_s1 + $0x24] sm:$0xf]  ;;  %v1332_v61 = vor.u32 %v1563_v43, %v1331_v42 }
  0x29   :  { %850 = vmatpush.bf16.msrb.mxu1 %v1420_v8  ;;  %145 = vperm.xlu0 %1615, %v136_v40   ;;  %v1069_v58 = vld [vmem:[%s2427_s1 + $0x28] sm:$0xf0]  ;;  %v1554_v59 = vld [vmem:[%s2427_s1 + $0x1f4] sm:$0xf]  ;;  %v1301_v62 = vld [vmem:[%s2427_s1 + $0x1f8] sm:$0xf0]  ;;  %v1436_v2 = vor.u32 %v1589_v51, %v1435_v50 }
  0x2a   :  { %870 = vmatpush.bf16.msrb.mxu2 %v1468_v63  ;;  %v1396_v63 = vor.u32 %v1579_v49, %v1395_v44  ;;  %v1561_v1 = vld [vmem:[%s2427_s1 + $0x224] sm:$0xf0]  ;;  %v1072_v3 = vor.u32 %v1496_v56, %v1069_v58  ;;  %v1387_v4 = vld [vmem:[%s2427_s1 + $0x2a0] sm:$0xf]  ;;  %v1494_v6 = vld [vmem:[%s2427_s1 + $0x14] sm:$0xf]  ;;  %v1304_v7 = vor.u32 %v1554_v59, %v1301_v62 }
  0x2b   :  { %886 = vmatpush.bf16.msrb.mxu3 %v1104_v0  ;;  %v1323_v0 = vld [vmem:[%s2427_s1 + $0x220] sm:$0xf]  ;;  %v1577_v5 = vld [vmem:[%s2427_s1 + $0x2a4] sm:$0xf0]  ;;  %v1061_v8 = vld [vmem:[%s2427_s1 + $0x18] sm:$0xf0] }
  0x2c   :  { %833 = vmatpush.bf16.msrb.mxu0 %v1348_v21  ;;  %v1552_v9 = vld [vmem:[%s2427_s1 + $0x1e4] sm:$0xf]  ;;  %v1293_v10 = vld [vmem:[%s2427_s1 + $0x1e8] sm:$0xf0]  ;;  %v1324_v11 = vor.u32 %v1561_v1, %v1323_v0  ;;  %v1559_v14 = vld [vmem:[%s2427_s1 + $0x214] sm:$0xf0]  ;;  %v1064_v15 = vor.u32 %v1494_v6, %v1061_v8 }
  0x2d   :  { %851 = vmatpush.bf16.msrb.mxu1 %v1412_v23  ;;  %v1379_v16 = vld [vmem:[%s2427_s1 + $0x290] sm:$0xf]  ;;  %v1575_v17 = vld [vmem:[%s2427_s1 + $0x294] sm:$0xf0]  ;;  %v1492_v18 = vld [vmem:[%s2427_s1 + $0x4] sm:$0xf]  ;;  %v1296_v19 = vor.u32 %v1552_v9, %v1293_v10 }
  0x2e   :  { %871 = vmatpush.bf16.msrb.mxu2 %v1460_v12  ;;  %v1388_v12 = vor.u32 %v1577_v5, %v1387_v4  ;;  %v1053_v20 = vld [vmem:[%s2427_s1 + $0x8] sm:$0xf0]  ;;  %v1550_v21 = vld [vmem:[%s2427_s1 + $0x1d4] sm:$0xf]  ;;  %v1285_v22 = vld [vmem:[%s2427_s1 + $0x1d8] sm:$0xf0] }
  0x2f   :  { %887 = vmatpush.bf16.msrb.mxu3 %v1096_v13  ;;  %v1315_v13 = vld [vmem:[%s2427_s1 + $0x210] sm:$0xf]  ;;  %v1307_v24 = vld [vmem:[%s2427_s1 + $0x200] sm:$0xf]  ;;  %v1570_v25 = vld [vmem:[%s2427_s1 + $0x274] sm:$0xf]  ;;  %v1056_v31 = vor.u32 %v1492_v18, %v1053_v20  ;;  %v1288_v37 = vor.u32 %v1550_v21, %v1285_v22 }
  0x30   :  { %834 = vmatpush.bf16.msrb.mxu0 %v1340_v38  ;;  %v1316_v23 = vor.u32 %v1559_v14, %v1315_v13  ;;  %v1365_v26 = vld [vmem:[%s2427_s1 + $0x278] sm:$0xf0]  ;;  %v1371_v29 = vld [vmem:[%s2427_s1 + $0x280] sm:$0xf]  ;;  %v1573_v30 = vld [vmem:[%s2427_s1 + $0x284] sm:$0xf0] }
  0x31   :  { %852 = vmatpush.bf16.msrb.mxu1 %v1404_v41  ;;  %v1039_v32 = vld [vmem:[%s2428_s0 + $0x10] sm:$0xf]  ;;  %v1490_v33 = vld [vmem:[%s2428_s0 + $0x28] sm:$0xf0]  ;;  %v1522_v34 = vld [vmem:[%s2427_s1 + $0xf4] sm:$0xf]  ;;  %v1368_v38 = vor.u32 %v1570_v25, %v1365_v26 }
  0x32   :  { %872 = vmatpush.bf16.msrb.mxu2 %v1452_v27  ;;  %v1380_v27 = vor.u32 %v1575_v17, %v1379_v16  ;;  %v1173_v35 = vld [vmem:[%s2427_s1 + $0xf8] sm:$0xf0]  ;;  %v1538_v36 = vld [vmem:[%s2427_s1 + $0x174] sm:$0xf]  ;;  %v1548_v40 = vld [vmem:[%s2427_s1 + $0x1c4] sm:$0xf]  ;;  %v2148_v0 = vor.u32 %v1490_v33, %v1039_v32 }
  0x33   :  { %888 = vmatpush.bf16.msrb.mxu3 %v1088_v28  ;;  %772 = vmatmul.bf16.gmra.mxu0 %v1998_v46  ;;  %v1557_v28 = vld [vmem:[%s2427_s1 + $0x204] sm:$0xf0]  ;;  %v1237_v39 = vld [vmem:[%s2427_s1 + $0x178] sm:$0xf0]  ;;  %v1277_v41 = vld [vmem:[%s2427_s1 + $0x1c8] sm:$0xf0]  ;;  %v1176_v50 = vor.u32 %v1522_v34, %v1173_v35 }
  0x34   :  { %790 = vmatmul.bf16.gmra.mxu1 %v2009_v52  ;;  %835 = vmatpush.bf16.msrb.mxu0 %v1332_v61  ;;  %v1308_v42 = vor.u32 %v1557_v28, %v1307_v24  ;;  %v1487_v43 = vld [vmem:[%s2428_s0 + $0x14] sm:$0xf]  ;;  %v1047_v44 = vld [vmem:[%s2428_s0 + $0x18] sm:$0xf]  ;;  %v1041_v49 = vld [vmem:[%s2428_s0 + $0x2c] sm:$0xf0]  ;;  %v1240_v58 = vor.u32 %v1538_v36, %v1237_v39 }
  0x35   :  { %808 = vmatmul.bf16.gmra.mxu2 %v2011_v55  ;;  %853 = vmatpush.bf16.msrb.mxu1 %v1396_v63  ;;  %v1568_v51 = vld [vmem:[%s2427_s1 + $0x264] sm:$0xf]  ;;  %v1357_v56 = vld [vmem:[%s2427_s1 + $0x268] sm:$0xf0]  ;;  %v1280_v63 = vor.u32 %v1548_v40, %v1277_v41  ;;  %v1269_v4 = vld [vmem:[%s2427_s1 + $0x1b8] sm:$0xf0]  ;;  %v2161_v5 = vor.u32 %v1487_v43, %v1041_v49 }
  0x36   :  { %873 = vmatpush.bf16.msrb.mxu2 %v1444_v45  ;;  %826 = vmatmul.bf16.gmra.mxu3 %v2022_v60  ;;  %v1491_v45 = vld [vmem:[%s2428_s0 + $0x30] sm:$0xf0]  ;;  %v1520_v59 = vld [vmem:[%s2427_s1 + $0xe4] sm:$0xf]  ;;  %v1165_v61 = vld [vmem:[%s2427_s1 + $0xe8] sm:$0xf0]  ;;  %v1360_v6 = vor.u32 %v1568_v51, %v1357_v56 }
  0x37   :  { %889 = vmatpush.bf16.msrb.mxu3 %v1080_v47  ;;  %v1372_v47 = vor.u32 %v1573_v30, %v1371_v29  ;;  %v1536_v62 = vld [vmem:[%s2427_s1 + $0x164] sm:$0xf]  ;;  %v2150_v1 = vor.u32 %v1491_v45, %v1047_v44  ;;  %v1566_v8 = vld [vmem:[%s2427_s1 + $0x254] sm:$0xf]  ;;  %v1349_v9 = vld [vmem:[%s2427_s1 + $0x258] sm:$0xf0] }
  0x38   :  { %836 = vmatpush.bf16.msrb.mxu0 %v1324_v11  ;;  %v1518_v11 = vld [vmem:[%s2427_s1 + $0xd4] sm:$0xf]  ;;  %v1544_v16 = vld [vmem:[%s2427_s1 + $0x1a4] sm:$0xf]  ;;  %v1261_v17 = vld [vmem:[%s2427_s1 + $0x1a8] sm:$0xf0]  ;;  %v1352_v18 = vor.u32 %v1566_v8, %v1349_v9 }
  0x39   :  { %854 = vmatpush.bf16.msrb.mxu1 %v1388_v12  ;;  %v1157_v12 = vld [vmem:[%s2427_s1 + $0xd8] sm:$0xf0]  ;;  %v1534_v13 = vld [vmem:[%s2427_s1 + $0x154] sm:$0xf]  ;;  %v1564_v20 = vld [vmem:[%s2427_s1 + $0x244] sm:$0xf]  ;;  %v1264_v25 = vor.u32 %v1544_v16, %v1261_v17 }
  0x3a   :  { %874 = vmatpush.bf16.msrb.mxu2 %v1436_v2  ;;  %v1229_v2 = vld [vmem:[%s2427_s1 + $0x168] sm:$0xf0]  ;;  %v1532_v24 = vld [vmem:[%s2427_s1 + $0x144] sm:$0xf]  ;;  %v1253_v28 = vld [vmem:[%s2427_s1 + $0x198] sm:$0xf0] }
  0x3b   :  { %890 = vmatpush.bf16.msrb.mxu3 %v1072_v3  ;;  %v1546_v3 = vld [vmem:[%s2427_s1 + $0x1b4] sm:$0xf]  ;;  %v1232_v10 = vor.u32 %v1536_v62, %v1229_v2  ;;  %v1341_v21 = vld [vmem:[%s2427_s1 + $0x248] sm:$0xf0]  ;;  %v26_v30 = vld [vmem:[%s2428_s0 + $0x50] sm:$0x1] }
  0x3c   :  { %837 = vmatpush.bf16.msrb.mxu0 %v1316_v23  ;;  %v1272_v14 = vor.u32 %v1546_v3, %v1269_v4  ;;  %v1516_v23 = vld [vmem:[%s2427_s1 + $0xc4] sm:$0xf]  ;;  %v1213_v26 = vld [vmem:[%s2427_s1 + $0x148] sm:$0xf0]  ;;  %v1562_v33 = vld [vmem:[%s2427_s1 + $0x234] sm:$0xf]  ;;  %v185_v41 = vunpack.c.l.b16 %v26_v30 }
  0x3d   :  { %855 = vmatpush.bf16.msrb.mxu1 %v1380_v27  ;;  %v1542_v27 = vld [vmem:[%s2427_s1 + $0x194] sm:$0xf]  ;;  %v25_v29 = vld [vmem:[%s2428_s0 + $0x48] sm:$0x11]  ;;  %v1333_v34 = vld [vmem:[%s2427_s1 + $0x238] sm:$0xf0]  ;;  %v1216_v35 = vor.u32 %v1532_v24, %v1213_v26 }
  0x3e   :  { %939 = vmatpush.bf16.msra.mxu2 %v1304_v7  ;;  %v1168_v7 = vor.u32 %v1520_v59, %v1165_v61  ;;  %v1514_v36 = vld [vmem:[%s2427_s1 + $0xb4] sm:$0xf]  ;;  %v1256_v39 = vor.u32 %v1542_v27, %v1253_v28  ;;  %v183_v40 = vunpack.c.l.b16 %v25_v29  ;;  %v1540_v43 = vld [vmem:[%s2427_s1 + $0x184] sm:$0xf]  ;;  %v1245_v44 = vld [vmem:[%s2427_s1 + $0x188] sm:$0xf0]  ;;  %v184_v45 = vunpack.c.h.b16 %v25_v29 }
  0x3f   :  { %891 = vmatpush.bf16.msrb.mxu3 %v1064_v15  ;;  %v1221_v15 = vld [vmem:[%s2427_s1 + $0x158] sm:$0xf0]  ;;  %v1325_v51 = vld [vmem:[%s2427_s1 + $0x228] sm:$0xf0]  ;;  %v1528_v61 = vld [vmem:[%s2427_s1 + $0x124] sm:$0xf]  ;;  %v1248_v62 = vor.u32 %v1540_v43, %v1245_v44  ;;  %v2263_v2 = vpack.c.b16 %v185_v41, %v185_v41 }
  0x40   :  { %838 = vmatpush.bf16.msrb.mxu0 %v1308_v42  ;;  %v1224_v22 = vor.u32 %v1534_v13, %v1221_v15  ;;  %v1205_v42 = vld [vmem:[%s2427_s1 + $0x138] sm:$0xf0]  ;;  %v1133_v59 = vld [vmem:[%s2427_s1 + $0xa8] sm:$0xf0]  ;;  %v1586_v4 = vld [vmem:[%s2427_s1 + $0x2f4] sm:$0xf] }
  0x41   :  { %856 = vmatpush.bf16.msrb.mxu1 %v1372_v47  ;;  %v1336_v47 = vor.u32 %v1562_v33, %v1333_v34  ;;  %v1197_v3 = vld [vmem:[%s2427_s1 + $0x128] sm:$0xf0]  ;;  %v1510_v13 = vld [vmem:[%s2427_s1 + $0x94] sm:$0xf]  ;;  %v1189_v17 = vld [vmem:[%s2427_s1 + $0x118] sm:$0xf0] }
  0x42   :  { %940 = vmatpush.bf16.msra.mxu2 %v1296_v19  ;;  %v1160_v19 = vor.u32 %v1518_v11, %v1157_v12  ;;  %v1317_v11 = vld [vmem:[%s2427_s1 + $0x218] sm:$0xf0]  ;;  %v1200_v12 = vor.u32 %v1528_v61, %v1197_v3  ;;  %v1526_v15 = vld [vmem:[%s2427_s1 + $0x114] sm:$0xf]  ;;  %v1508_v24 = vld [vmem:[%s2427_s1 + $0x84] sm:$0xf] }
  0x43   :  { %892 = vmatpush.bf16.msrb.mxu3 %v1056_v31  ;;  %839 = vmatmul.bf16.vlgmr.msrb.gmra.mxu0 %v2148_v0  ;;  %v1344_v31 = vor.u32 %v1564_v20, %v1341_v21  ;;  %v1181_v27 = vld [vmem:[%s2427_s1 + $0x108] sm:$0xf0]  ;;  %v1598_v28 = vld [vmem:[%s2427_s1 + $0x354] sm:$0xf]  ;;  %v1477_v29 = vld [vmem:[%s2427_s1 + $0x358] sm:$0xf0] }
  0x44   :  { %903 = vmatpush.bf16.msra.mxu0 %v1176_v50  ;;  %857 = vmatmul.bf16.vlgmr.msrb.gmra.mxu1 %v2161_v5  ;;  %v1560_v50 = vld [vmem:[%s2427_s1 + $0x224] sm:$0xf]  ;;  %v1413_v33 = vld [vmem:[%s2427_s1 + $0x2d8] sm:$0xf0]  ;;  %v1405_v43 = vld [vmem:[%s2427_s1 + $0x2c8] sm:$0xf0] }
  0x45   :  { %921 = vmatpush.bf16.msra.mxu1 %v1240_v58  ;;  %1481 = vmatmul.msk.bf16.vlgmr.msrb.gmra.mxu2 %vm752_vm0, %v2150_v1  ;;  %v1512_v58 = vld [vmem:[%s2427_s1 + $0xa4] sm:$0xf]  ;;  %v1328_v8 = vor.u32 %v1560_v50, %v1325_v51  ;;  %v1461_v41 = vld [vmem:[%s2427_s1 + $0x338] sm:$0xf0]  ;;  %v1453_v51 = vld [vmem:[%s2427_s1 + $0x328] sm:$0xf0] }
  0x46   :  { %941 = vmatpush.bf16.msra.mxu2 %v1288_v37  ;;  %893 = vmatmul.bf16.vlgmr.msrb.gmra.mxu3 %v1875_v48  ;;  %v1149_v48 = vld [vmem:[%s2427_s1 + $0xc8] sm:$0xf0]  ;;  %v1141_v37 = vld [vmem:[%s2427_s1 + $0xb8] sm:$0xf0]  ;;  %v1136_v9 = vor.u32 %v1512_v58, %v1133_v59  ;;  %v1592_v50 = vld [vmem:[%s2427_s1 + $0x324] sm:$0xf] }
  0x47   :  { %957 = vmatpush.bf16.msra.mxu3 %v1368_v38  ;;  %v1152_v32 = vor.u32 %v1516_v23, %v1149_v48  ;;  %v1530_v38 = vld [vmem:[%s2427_s1 + $0x134] sm:$0xf]  ;;  %v1144_v49 = vor.u32 %v1514_v36, %v1141_v37  ;;  %v1309_v23 = vld [vmem:[%s2427_s1 + $0x208] sm:$0xf0]  ;;  %v1192_v48 = vor.u32 %v1526_v15, %v1189_v17  ;;  %v1596_v36 = vld [vmem:[%s2427_s1 + $0x344] sm:$0xf] }
  0x48   :  { %904 = vmatpush.bf16.msra.mxu0 %v1168_v7  ;;  %v1208_v56 = vor.u32 %v1530_v38, %v1205_v42  ;;  %v2274_v7 = vpack.c.b16 %v184_v45, %v184_v45  ;;  %v1469_v37 = vld [vmem:[%s2427_s1 + $0x348] sm:$0xf0]  ;;  %v1580_v42 = vld [vmem:[%s2427_s1 + $0x2c4] sm:$0xf]  ;;  %v1381_v3 = vld [vmem:[%s2427_s1 + $0x298] sm:$0xf0] }
  0x49   :  { %922 = vmatpush.bf16.msra.mxu1 %v1232_v10  ;;  %v1558_v10 = vld [vmem:[%s2427_s1 + $0x214] sm:$0xf]  ;;  %v1408_v45 = vor.u32 %v1580_v42, %v1405_v43  ;;  %v1389_v58 = vld [vmem:[%s2427_s1 + $0x2a8] sm:$0xf0] }
  0x4a   :  { %942 = vmatpush.bf16.msra.mxu2 %v1280_v63  ;;  %v2261_v63 = vpack.c.b16 %v183_v40, %v183_v40  ;;  %v1320_v20 = vor.u32 %v1558_v10, %v1317_v11  ;;  %v1594_v40 = vld [vmem:[%s2427_s1 + $0x334] sm:$0xf]  ;;  %v1572_v10 = vld [vmem:[%s2427_s1 + $0x284] sm:$0xf]  ;;  %v1373_v11 = vld [vmem:[%s2427_s1 + $0x288] sm:$0xf0] }
  0x4b   :  { %958 = vmatpush.bf16.msra.mxu3 %v1360_v6  ;;  %v1429_v6 = vld [vmem:[%s2427_s1 + $0x2f8] sm:$0xf0]  ;;  %v1464_v44 = vor.u32 %v1594_v40, %v1461_v41 }
  0x4c   :  { %905 = vmatpush.bf16.msra.mxu0 %v1160_v19  ;;  %v1432_v16 = vor.u32 %v1586_v4, %v1429_v6  ;;  %v1421_v19 = vld [vmem:[%s2427_s1 + $0x2e8] sm:$0xf0]  ;;  %v1588_v4 = vld [vmem:[%s2427_s1 + $0x304] sm:$0xf] }
  0x4d   :  { %923 = vmatpush.bf16.msra.mxu1 %v1224_v22  ;;  %v1556_v22 = vld [vmem:[%s2427_s1 + $0x204] sm:$0xf]  ;;  %v1437_v6 = vld [vmem:[%s2427_s1 + $0x308] sm:$0xf0] }
  0x4e   :  { %943 = vmatpush.bf16.msra.mxu2 %v1272_v14  ;;  %v1125_v14 = vld [vmem:[%s2427_s1 + $0x98] sm:$0xf0]  ;;  %v1312_v30 = vor.u32 %v1556_v22, %v1309_v23 }
  0x4f   :  { %959 = vmatpush.bf16.msra.mxu3 %v1352_v18  ;;  %v1584_v18 = vld [vmem:[%s2427_s1 + $0x2e4] sm:$0xf]  ;;  %v1128_v21 = vor.u32 %v1510_v13, %v1125_v14 }
  0x50   :  { %906 = vmatpush.bf16.msra.mxu0 %v1152_v32  ;;  %v1424_v26 = vor.u32 %v1584_v18, %v1421_v19  ;;  %v1582_v32 = vld [vmem:[%s2427_s1 + $0x2d4] sm:$0xf] }
  0x51   :  { %924 = vmatpush.bf16.msra.mxu1 %v1216_v35  ;;  %v1480_v35 = vor.u32 %v1598_v28, %v1477_v29  ;;  %v1416_v38 = vor.u32 %v1582_v32, %v1413_v33 }
  0x52   :  { %944 = vmatpush.bf16.msra.mxu2 %v1264_v25  ;;  %v1524_v25 = vld [vmem:[%s2427_s1 + $0x104] sm:$0xf] }
  0x53   :  { %960 = vmatpush.bf16.msra.mxu3 %v1344_v31  ;;  %844 = vmatmul.bf16.gmra.mxu0 %v2261_v63  ;;  %v1184_v34 = vor.u32 %v1524_v25, %v1181_v27 }
  0x54   :  { %907 = vmatpush.bf16.msra.mxu0 %v1144_v49  ;;  %862 = vmatmul.bf16.gmra.mxu1 %v2274_v7  ;;  %v1397_v49 = vld [vmem:[%s2427_s1 + $0x2b8] sm:$0xf0] }
  0x55   :  { %925 = vmatpush.bf16.msra.mxu1 %v1208_v56  ;;  %1482 = vmatmul.msk.bf16.gmra.mxu2 %vm752_vm0, %v2263_v2  ;;  %v1576_v56 = vld [vmem:[%s2427_s1 + $0x2a4] sm:$0xf] }
  0x56   :  { %945 = vmatpush.bf16.msra.mxu2 %v1256_v39  ;;  %898 = vmatmul.bf16.gmra.mxu3 %v1998_v46  ;;  %v1117_v46 = vld [vmem:[%s2427_s1 + $0x88] sm:$0xf0]  ;;  %v1472_v39 = vor.u32 %v1596_v36, %v1469_v37  ;;  %v1392_v59 = vor.u32 %v1576_v56, %v1389_v58 }
  0x57   :  { %961 = vmatpush.bf16.msra.mxu3 %v1336_v47  ;;  %v1120_v31 = vor.u32 %v1508_v24, %v1117_v46  ;;  %v1578_v47 = vld [vmem:[%s2427_s1 + $0x2b4] sm:$0xf] }
  0x58   :  { %908 = vmatpush.bf16.msra.mxu0 %v1136_v9  ;;  %v1440_v9 = vor.u32 %v1588_v4, %v1437_v6 }
  0x59   :  { %926 = vmatpush.bf16.msra.mxu1 %v1200_v12  ;;  %v1376_v12 = vor.u32 %v1572_v10, %v1373_v11 }
  0x5a   :  { %946 = vmatpush.bf16.msra.mxu2 %v1248_v62  ;;  %v1574_v62 = vld [vmem:[%s2427_s1 + $0x294] sm:$0xf] }
  0x5b   :  { %962 = vmatpush.bf16.msra.mxu3 %v1328_v8  ;;  %v1384_v8 = vor.u32 %v1574_v62, %v1381_v3 }
  0x5c   :  { %909 = vmatpush.bf16.msra.mxu0 %v1128_v21 }
  0x5d   :  { %927 = vmatpush.bf16.msra.mxu1 %v1192_v48 }
  0x5e   :  { %1600 = vmatpush.bf16.msrb.mxu2 %v1432_v16 }
  0x5f   :  { %963 = vmatpush.bf16.msra.mxu3 %v1320_v20 }
  0x60   :  { %910 = vmatpush.bf16.msra.mxu0 %v1120_v31 }
  0x61   :  { %928 = vmatpush.bf16.msra.mxu1 %v1184_v34 }
  0x62   :  { %1601 = vmatpush.bf16.msrb.mxu2 %v1424_v26 }
  0x63   :  { %964 = vmatpush.bf16.msra.mxu3 %v1312_v30  ;;  %911 = vmatmul.bf16.vlgmr.msra.gmra.mxu0 %v1886_v53  ;;  %v1400_v53 = vor.u32 %v1578_v47, %v1397_v49 }
  0x64   :  { %975 = vmatpush.bf16.msrb.mxu0 %v1432_v16  ;;  %929 = vmatmul.bf16.vlgmr.msra.gmra.mxu1 %v1888_v54  ;;  %v1590_v54 = vld [vmem:[%s2427_s1 + $0x314] sm:$0xf] }
  0x65   :  { %995 = vmatpush.bf16.msrb.mxu1 %v1480_v35  ;;  %947 = vmatmul.bf16.vlgmr.msra.gmra.mxu2 %v1896_v57  ;;  %v1456_v57 = vor.u32 %v1592_v50, %v1453_v51 }
  0x66   :  { %1602 = vmatpush.bf16.msrb.mxu2 %v1416_v38  ;;  %965 = vmatmul.bf16.vlgmr.msra.gmra.mxu3 %v2148_v0  ;;  %v1445_v0 = vld [vmem:[%s2427_s1 + $0x318] sm:$0xf0] }
  0x67   :  { %1608 = vmatpush.bf16.msrb.mxu3 %v1480_v35  ;;  %v1448_v61 = vor.u32 %v1590_v54, %v1445_v0 }
  0x68   :  { %976 = vmatpush.bf16.msrb.mxu0 %v1424_v26 }
  0x69   :  { %996 = vmatpush.bf16.msrb.mxu1 %v1472_v39 }
  0x6a   :  { %1603 = vmatpush.bf16.msrb.mxu2 %v1408_v45 }
  0x6b   :  { %1609 = vmatpush.bf16.msrb.mxu3 %v1472_v39 }
  0x6c   :  { %977 = vmatpush.bf16.msrb.mxu0 %v1416_v38 }
  0x6d   :  { %997 = vmatpush.bf16.msrb.mxu1 %v1464_v44 }
  0x6e   :  { %1604 = vmatpush.bf16.msrb.mxu2 %v1400_v53 }
  0x6f   :  { %1610 = vmatpush.bf16.msrb.mxu3 %v1464_v44 }
  0x70   :  { %978 = vmatpush.bf16.msrb.mxu0 %v1408_v45 }
  0x71   :  { %998 = vmatpush.bf16.msrb.mxu1 %v1456_v57 }
  0x72   :  { %1605 = vmatpush.bf16.msrb.mxu2 %v1392_v59 }
  0x73   :  { %1611 = vmatpush.bf16.msrb.mxu3 %v1456_v57  ;;  %916 = vmatmul.bf16.gmra.mxu0 %v2009_v52 }
  0x74   :  { %979 = vmatpush.bf16.msrb.mxu0 %v1400_v53  ;;  %934 = vmatmul.bf16.gmra.mxu1 %v2011_v55 }
  0x75   :  { %999 = vmatpush.bf16.msrb.mxu1 %v1448_v61  ;;  %952 = vmatmul.bf16.gmra.mxu2 %v2022_v60 }
  0x76   :  { %1606 = vmatpush.bf16.msrb.mxu2 %v1384_v8  ;;  %970 = vmatmul.bf16.gmra.mxu3 %v2261_v63 }
  0x77   :  { %1612 = vmatpush.bf16.msrb.mxu3 %v1448_v61 }
  0x78   :  { %980 = vmatpush.bf16.msrb.mxu0 %v1392_v59 }
  0x79   :  { %1000 = vmatpush.bf16.msrb.mxu1 %v1440_v9 }
  0x7a   :  { %1607 = vmatpush.bf16.msrb.mxu2 %v1376_v12 }
  0x7b   :  { %1613 = vmatpush.bf16.msrb.mxu3 %v1440_v9 }
  0x7c   :  { %981 = vmatpush.bf16.msrb.mxu0 %v1384_v8 }
  0x80   :  { %982 = vmatpush.bf16.msrb.mxu0 %v1376_v12 }
  0x83   :  { %983 = vmatmul.bf16.vlgmr.msrb.gmra.mxu0 %v2161_v5 }
  0x84   :  { %1483 = vmatmul.msk.bf16.vlgmr.msrb.gmra.mxu1 %vm752_vm0, %v2150_v1 }
  0x85   :  { %988 = vmatmul.bf16.vlgmr.msrb.gmra.mxu2 %v2274_v7 }
  0x86   :  { %1484 = vmatmul.msk.bf16.vlgmr.msrb.gmra.mxu3 %vm752_vm0, %v2263_v2 }
  0x93   :  { %v141_v18 = vpop.permute.xlu0 %140 }
  0x99   :  { %v151_v26 = vpop.permute.xlu1 %150 }
  0x9b   :  { %v146_v23 = vpop.permute.xlu0 %145 }
  0xa0   :  { %v768_v52 = vpop.f32.mrf.mxu0 }
  0xa1   :  { %v786_v60 = vpop.f32.mrf.mxu1  ;;  %v769_v5 = vadd.f32 %v768_v52, %v141_v18 }
  0xa3   :  { %v787_v7 = vadd.f32 %v786_v60, %v769_v5 }
  0xa8   :  { %v804_v55 = vpop.f32.mrf.mxu2  ;;  %v770_v63 = vpop.f32.mrf.mxu0 }
  0xa9   :  { %v822_v13 = vpop.f32.mrf.mxu3  ;;  %v788_v14 = vpop.f32.mrf.mxu1  ;;  %v805_v48 = vadd.f32 %v804_v55, %v787_v7  ;;  %v771_v2 = vadd.f32 %v770_v63, %v146_v23 }
  0xab   :  { %v823_v46 = vadd.f32 %v822_v13, %v805_v48  ;;  %v789_v28 = vadd.f32 %v788_v14, %v771_v2 }
  0xb0   :  { %v806_v15 = vpop.f32.mrf.mxu2  ;;  %v773_v17 = vpop.f32.mrf.mxu0 }
  0xb1   :  { %v824_v16 = vpop.f32.mrf.mxu3  ;;  %v791_v19 = vpop.f32.mrf.mxu1  ;;  %v807_v31 = vadd.f32 %v806_v15, %v789_v28  ;;  %v774_v32 = vadd.f32 %v773_v17, %v151_v26 }
  0xb3   :  { %v825_v35 = vadd.f32 %v824_v16, %v807_v31  ;;  %v792_v36 = vadd.f32 %v791_v19, %v774_v32 }
  0xb8   :  { %v809_v20 = vpop.f32.mrf.mxu2  ;;  %v775_v22 = vpop.f32.mrf.mxu0 }
  0xb9   :  { %v827_v21 = vpop.f32.mrf.mxu3  ;;  %v793_v1 = vpop.f32.mrf.mxu1  ;;  %v810_v42 = vadd.f32 %v809_v20, %v792_v36 }
  0xbb   :  { %v828_v45 = vadd.f32 %v827_v21, %v810_v42 }
  0xc0   :  { %v811_v24 = vpop.f32.mrf.mxu2  ;;  %v840_v27 = vpop.f32.mrf.mxu0 }
  0xc1   :  { %v829_v25 = vpop.f32.mrf.mxu3  ;;  %v841_v29 = vadd.f32 %v840_v27, %v823_v46  ;;  %v858_v30 = vpop.f32.mrf.mxu1 }
  0xc3   :  { %v859_v33 = vadd.f32 %v858_v30, %v841_v29 }
  0xc8   :  { %v876_v34 = vpop.f32.mrf.mxu2  ;;  %v842_v39 = vpop.f32.mrf.mxu0 }
  0xc9   :  { %v877_v37 = vadd.f32 %v876_v34, %v859_v33  ;;  %v894_v38 = vpop.f32.mrf.mxu3  ;;  %v843_v40 = vadd.f32 %v842_v39, %v825_v35  ;;  %v860_v41 = vpop.f32.mrf.mxu1 }
  0xca   :  { %v895_v55 = vadd.f32 %v894_v38, %v141_v18 }
  0xcb   :  { %1011 = vst [vmem:[%s2430_s3] sm:$0xff] %v877_v37  ;;  %v861_v43 = vadd.f32 %v860_v41, %v843_v40 }
  0xd0   :  { %v878_v44 = vpop.f32.mrf.mxu2  ;;  %v845_v50 = vpop.f32.mrf.mxu0 }
  0xd1   :  { %v879_v47 = vadd.f32 %v878_v44, %v861_v43  ;;  %v896_v49 = vpop.f32.mrf.mxu3  ;;  %v846_v51 = vadd.f32 %v845_v50, %v828_v45  ;;  %v863_v53 = vpop.f32.mrf.mxu1 }
  0xd2   :  { %v897_v5 = vadd.f32 %v896_v49, %v146_v23 }
  0xd3   :  { %1013 = vst [vmem:[%s2430_s3 + $0x10] sm:$0xff] %v879_v47  ;;  %v864_v57 = vadd.f32 %v863_v53, %v846_v51 }
  0xd8   :  { %v881_v56 = vpop.f32.mrf.mxu2  ;;  %v847_v0 = vpop.f32.mrf.mxu0 }
  0xd9   :  { %v882_v58 = vadd.f32 %v881_v56, %v864_v57  ;;  %v899_v54 = vpop.f32.mrf.mxu3  ;;  %v865_v59 = vpop.f32.mrf.mxu1 }
  0xda   :  { %v900_v16 = vadd.f32 %v899_v54, %v151_v26 }
  0xdb   :  { %1015 = vst [vmem:[%s2430_s3 + $0x20] sm:$0x3] %v882_v58 }
  0xe0   :  { %v883_v61 = vpop.f32.mrf.mxu2  ;;  %v912_v3 = vpop.f32.mrf.mxu0 }
  0xe1   :  { %v901_v62 = vpop.f32.mrf.mxu3  ;;  %v930_v4 = vpop.f32.mrf.mxu1  ;;  %v913_v13 = vadd.f32 %v912_v3, %v895_v55 }
  0xe3   :  { %v931_v17 = vadd.f32 %v930_v4, %v913_v13 }
  0xe8   :  { %v948_v6 = vpop.f32.mrf.mxu2  ;;  %v914_v9 = vpop.f32.mrf.mxu0 }
  0xe9   :  { %v966_v8 = vpop.f32.mrf.mxu3  ;;  %v932_v10 = vpop.f32.mrf.mxu1  ;;  %v949_v20 = vadd.f32 %v948_v6, %v931_v17  ;;  %v915_v21 = vadd.f32 %v914_v9, %v897_v5 }
  0xeb   :  { %v967_v1 = vadd.f32 %v966_v8, %v949_v20  ;;  %v933_v46 = vadd.f32 %v932_v10, %v915_v21 }
  0xf0   :  { %v950_v11 = vpop.f32.mrf.mxu2  ;;  %v917_v52 = vpop.f32.mrf.mxu0 }
  0xf1   :  { %v968_v12 = vpop.f32.mrf.mxu3  ;;  %v935_v60 = vpop.f32.mrf.mxu1  ;;  %v918_v7 = vadd.f32 %v917_v52, %v900_v16  ;;  %v951_v28 = vadd.f32 %v950_v11, %v933_v46 }
  0xf3   :  { %v936_v48 = vadd.f32 %v935_v60, %v918_v7  ;;  %v969_v26 = vadd.f32 %v968_v12, %v951_v28 }
  0xf8   :  { %v953_v63 = vpop.f32.mrf.mxu2  ;;  %v919_v15 = vpop.f32.mrf.mxu0 }
  0xf9   :  { %v971_v14 = vpop.f32.mrf.mxu3  ;;  %v937_v19 = vpop.f32.mrf.mxu1  ;;  %v954_v25 = vadd.f32 %v953_v63, %v936_v48 }
  0xfb   :  { %v972_v30 = vadd.f32 %v971_v14, %v954_v25 }
 0x100   :  { %v955_v22 = vpop.f32.mrf.mxu2  ;;  %v984_v24 = vpop.f32.mrf.mxu0 }
 0x101   :  { %v973_v2 = vpop.f32.mrf.mxu3  ;;  %v985_v27 = vadd.f32 %v984_v24, %v967_v1  ;;  %v1002_v18 = vpop.f32.mrf.mxu1 }
 0x103   :  { %v1003_v29 = vadd.f32 %v1002_v18, %v985_v27 }
 0x105   :  { %1012 = vst [vmem:[%s2430_s3 + $0x8] sm:$0xff] %v1003_v29 }
 0x108   :  { %v989_v23 = vpop.f32.mrf.mxu2  ;;  %v986_v33 = vpop.f32.mrf.mxu0 }
 0x109   :  { %v990_v31 = vadd.f32 %v989_v23, %v972_v30  ;;  %v1007_v32 = vpop.f32.mrf.mxu3  ;;  %v987_v35 = vadd.f32 %v986_v33, %v969_v26  ;;  %v1004_v36 = vpop.f32.mrf.mxu1 }
 0x10b   :  { %v1008_v34 = vadd.f32 %v1007_v32, %v990_v31  ;;  %v1005_v37 = vadd.f32 %v1004_v36, %v987_v35 }
 0x10d   :  { %1016 = vst [vmem:[%s2430_s3 + $0x28] sm:$0x3] %v1008_v34 }
 0x10e   :  { %1014 = vst [vmem:[%s2430_s3 + $0x18] sm:$0xff] %v1005_v37 }
 0x110   :  { %v991_v38 = vpop.f32.mrf.mxu2 }
 0x111   :  { %v1009_v39 = vpop.f32.mrf.mxu3 }

// kernel: _lambda_.26
= control target key start
LH: loop header
LB: loop body
LE: loop exit
PB: predicated region body
PF: predicated region fallthrough
CT: control target
= control target key end

     0   :  { %vm319_vm0 = vcmask 1041408   ;;  %vm300_vm1 = vcmask 556032   ;;  %vm464_vm2 = vcmask 392192   ;;  %s1005_s1 = inlined_call_operand.vmem [shape: bf16[324,48], index: 1, kind: input, shape index: {}]   ;;  %s1006_s0 = inlined_call_operand.vmem [shape: bf16[96,324], index: 0, kind: input, shape index: {}]   ;;  %s1007_s2 = inlined_call_operand.vmem [shape: f32[1,48], index: 2, kind: input, shape index: {}]   ;;  %s1008_s3 = inlined_call_operand.vmem [shape: f32[96,48], index: 3, kind: input, shape index: {}]   ;;  %s1009_s4 = inlined_call_operand.vmem [shape: f32[96,48], index: 4, kind: output, shape index: {}]  }
   0x1   :  { %v664_v0 = vld [vmem:[%s1005_s1 + $0x38] sm:$0xff]  ;;  %v82_v2 = vld [vmem:[%s1005_s1 + $0xa0] sm:$0x3]  ;;  %v663_v4 = vld [vmem:[%s1005_s1 + $0x30] sm:$0xff] }
   0x2   :  { %v725_v1 = vld [vmem:[%s1005_s1 + $0x78] sm:$0xff]  ;;  %v258_v3 = vunpack.c.l.b16 %v82_v2  ;;  %323 = vmatpush.bf16.msra.mxu0 %v664_v0  ;;  %677 = vmatpush.bf16.msra.mxu3 %v664_v0  ;;  %v737_v6 = vld [vmem:[%s1005_s1 + $0x70] sm:$0xff]  ;;  %v662_v9 = vld [vmem:[%s1005_s1 + $0x28] sm:$0xff] }
   0x3   :  { %685 = vmatpush.bf16.msra.mxu1 %v725_v1  ;;  %v676_v8 = vld [vmem:[%s1005_s1 + $0x98] sm:$0xff]  ;;  %v670_v10 = vld [vmem:[%s1005_s1 + $0x68] sm:$0xff]  ;;  %v675_v11 = vld [vmem:[%s1005_s1 + $0x90] sm:$0xff] }
   0x4   :  { %v279_v5 = vpack.c.b16 %v258_v3, %v258_v3  ;;  %v661_v12 = vld [vmem:[%s1005_s1 + $0x20] sm:$0xff]  ;;  %v674_v14 = vld [vmem:[%s1005_s1 + $0x88] sm:$0xff]  ;;  %v660_v15 = vld [vmem:[%s1005_s1 + $0x18] sm:$0xff] }
   0x5   :  { %v669_v13 = vld [vmem:[%s1005_s1 + $0x60] sm:$0xff]  ;;  %v668_v16 = vld [vmem:[%s1005_s1 + $0x58] sm:$0xff]  ;;  %v659_v18 = vld [vmem:[%s1005_s1 + $0x10] sm:$0xff] }
   0x6   :  { %v321_v7 = vsel %vm319_vm0, %v279_v5, 0  ;;  %324 = vmatpush.bf16.msra.mxu0 %v663_v4  ;;  %678 = vmatpush.bf16.msra.mxu3 %v663_v4  ;;  %v673_v17 = vld [vmem:[%s1005_s1 + $0x80] sm:$0xff]  ;;  %v491_v19 = vld [vmem:[%s1006_s0 + $0x8] sm:$0xf]  ;;  %v641_v20 = vld [vmem:[%s1006_s0 + $0x10] sm:$0xf0] }
   0x7   :  { %404 = vmatpush.bf16.msra.mxu2 %v321_v7  ;;  %686 = vmatpush.bf16.msra.mxu1 %v737_v6  ;;  %v667_v21 = vld [vmem:[%s1005_s1 + $0x50] sm:$0xff]  ;;  %v492_v22 = vor.u32 %v641_v20, %v491_v19  ;;  %v658_v23 = vld [vmem:[%s1005_s1 + $0x8] sm:$0xff]  ;;  %v657_v25 = vld [vmem:[%s1005_s1] sm:$0xff] }
   0x8   :  { %v666_v24 = vld [vmem:[%s1005_s1 + $0x48] sm:$0xff]  ;;  %v483_v26 = vld [vmem:[%s1006_s0] sm:$0xf]  ;;  %v495_v28 = vld [vmem:[%s1006_s0 + $0x18] sm:$0xf] }
   0x9   :  { %v640_v27 = vld [vmem:[%s1006_s0 + $0x8] sm:$0xf0]  ;;  %v643_v29 = vld [vmem:[%s1006_s0 + $0x20] sm:$0xf0]  ;;  %v642_v31 = vld [vmem:[%s1006_s0 + $0x1c] sm:$0xf] }
   0xa   :  { %325 = vmatpush.bf16.msra.mxu0 %v662_v9  ;;  %679 = vmatpush.bf16.msra.mxu3 %v662_v9  ;;  %v665_v30 = vld [vmem:[%s1005_s1 + $0x40] sm:$0xff]  ;;  %v497_v32 = vld [vmem:[%s1006_s0 + $0x24] sm:$0xf0]  ;;  %v484_v33 = vor.u32 %v640_v27, %v483_v26  ;;  %v496_v34 = vor.u32 %v643_v29, %v495_v28  ;;  %v644_v37 = vld [vmem:[%s1006_s0 + $0x28] sm:$0xf0] }
   0xb   :  { %405 = vmatpush.bf16.msra.mxu2 %v676_v8  ;;  %687 = vmatpush.bf16.msra.mxu1 %v670_v10  ;;  %v500_v35 = vor.u32 %v642_v31, %v497_v32  ;;  %v503_v36 = vld [vmem:[%s1006_s0 + $0x20] sm:$0xf]  ;;  %v507_v39 = vld [vmem:[%s1006_s0 + $0x30] sm:$0xf]  ;;  %v646_v40 = vld [vmem:[%s1006_s0 + $0x38] sm:$0xf0] }
   0xc   :  { %v504_v38 = vor.u32 %v644_v37, %v503_v36  ;;  %v645_v41 = vld [vmem:[%s1006_s0 + $0x34] sm:$0xf]  ;;  %v509_v42 = vld [vmem:[%s1006_s0 + $0x3c] sm:$0xf0]  ;;  %v508_v43 = vor.u32 %v646_v40, %v507_v39  ;;  %v515_v45 = vld [vmem:[%s1006_s0 + $0x38] sm:$0xf] }
   0xd   :  { %v512_v44 = vor.u32 %v645_v41, %v509_v42  ;;  %v647_v46 = vld [vmem:[%s1006_s0 + $0x40] sm:$0xf0]  ;;  %v485_v49 = vld [vmem:[%s1006_s0 + $0xc] sm:$0xf0]  ;;  %v519_v51 = vld [vmem:[%s1006_s0 + $0x48] sm:$0xf] }
   0xe   :  { %326 = vmatpush.bf16.msra.mxu0 %v661_v12  ;;  %680 = vmatpush.bf16.msra.mxu3 %v661_v12  ;;  %v516_v47 = vor.u32 %v647_v46, %v515_v45  ;;  %v639_v48 = vld [vmem:[%s1006_s0 + $0x4] sm:$0xf]  ;;  %v649_v52 = vld [vmem:[%s1006_s0 + $0x50] sm:$0xf0]  ;;  %v648_v53 = vld [vmem:[%s1006_s0 + $0x4c] sm:$0xf] }
   0xf   :  { %406 = vmatpush.bf16.msra.mxu2 %v675_v11  ;;  %688 = vmatpush.bf16.msra.mxu1 %v669_v13  ;;  %v488_v50 = vor.u32 %v639_v48, %v485_v49  ;;  %v521_v54 = vld [vmem:[%s1006_s0 + $0x54] sm:$0xf0]  ;;  %v520_v55 = vor.u32 %v649_v52, %v519_v51  ;;  %v527_v57 = vld [vmem:[%s1006_s0 + $0x50] sm:$0xf]  ;;  %v650_v58 = vld [vmem:[%s1006_s0 + $0x58] sm:$0xf0] }
  0x10   :  { %v524_v56 = vor.u32 %v648_v53, %v521_v54  ;;  %v528_v59 = vor.u32 %v650_v58, %v527_v57  ;;  %v531_v60 = vld [vmem:[%s1006_s0 + $0x60] sm:$0xf]  ;;  %v652_v61 = vld [vmem:[%s1006_s0 + $0x68] sm:$0xf0]  ;;  %v651_v62 = vld [vmem:[%s1006_s0 + $0x64] sm:$0xf] }
  0x11   :  { %v533_v63 = vld [vmem:[%s1006_s0 + $0x6c] sm:$0xf0]  ;;  %v532_v0 = vor.u32 %v652_v61, %v531_v60  ;;  %v539_v2 = vld [vmem:[%s1006_s0 + $0x68] sm:$0xf]  ;;  %v653_v3 = vld [vmem:[%s1006_s0 + $0x70] sm:$0xf0] }
  0x12   :  { %327 = vmatpush.bf16.msra.mxu0 %v660_v15  ;;  %681 = vmatpush.bf16.msra.mxu3 %v660_v15  ;;  %v540_v4 = vor.u32 %v653_v3, %v539_v2  ;;  %v543_v5 = vld [vmem:[%s1006_s0 + $0x78] sm:$0xf]  ;;  %v654_v7 = vld [vmem:[%s1006_s0 + $0x7c] sm:$0xf]  ;;  %v545_v8 = vld [vmem:[%s1006_s0 + $0x84] sm:$0xf0] }
  0x13   :  { %407 = vmatpush.bf16.msra.mxu2 %v674_v14  ;;  %689 = vmatpush.bf16.msra.mxu1 %v668_v16  ;;  %v551_v11 = vld [vmem:[%s1006_s0 + $0x80] sm:$0xf]  ;;  %v656_v12 = vld [vmem:[%s1006_s0 + $0x88] sm:$0xf0] }
  0x14   :  { %v440_v45 = vld [vmem:[%s1008_s3] sm:$0xff]  ;;  %v445_v58 = vld [vmem:[%s1008_s3 + $0x28] sm:$0xff] }
  0x16   :  { %328 = vmatpush.bf16.msra.mxu0 %v659_v18  ;;  %682 = vmatpush.bf16.msra.mxu3 %v659_v18 }
  0x17   :  { %408 = vmatpush.bf16.msra.mxu2 %v673_v17  ;;  %690 = vmatpush.bf16.msra.mxu1 %v667_v21 }
  0x1a   :  { %633 = vmatmul.msk.bf16.vlgmr.msra.gmra.mxu2 %vm300_vm1, %v492_v22  ;;  %329 = vmatpush.bf16.msra.mxu0 %v658_v23 }
  0x1b   :  { %683 = vmatpush.bf16.msra.mxu3 %v658_v23  ;;  %691 = vmatpush.bf16.msra.mxu1 %v666_v24 }
  0x1e   :  { %330 = vmatpush.bf16.msra.mxu0 %v657_v25 }
  0x1f   :  { %684 = vmatpush.bf16.msra.mxu3 %v657_v25  ;;  %692 = vmatpush.bf16.msra.mxu1 %v665_v30 }
  0x21   :  { %331 = vmatmul.bf16.vlgmr.msra.gmra.mxu0 %v484_v33  ;;  %v443_v33 = vld [vmem:[%s1008_s3 + $0x18] sm:$0xff] }
  0x22   :  { %362 = vmatpush.bf16.msrb.mxu0 %v725_v1  ;;  %336 = vmatmul.bf16.vlgmr.msra.gmra.mxu3 %v496_v34  ;;  %v536_v1 = vor.u32 %v651_v62, %v533_v63 }
  0x23   :  { %375 = vmatmul.bf16.vlgmr.msra.gmra.mxu1 %v500_v35 }
  0x26   :  { %363 = vmatpush.bf16.msrb.mxu0 %v737_v6  ;;  %v655_v6 = vld [vmem:[%s1006_s0 + $0x80] sm:$0xf0] }
  0x27   :  { %v544_v9 = vor.u32 %v655_v6, %v543_v5  ;;  %v446_v5 = vld [vmem:[%s1008_s3 + $0x30] sm:$0xff] }
  0x2a   :  { %364 = vmatpush.bf16.msrb.mxu0 %v670_v10  ;;  %634 = vmatmul.msk.bf16.gmra.mxu2 %vm300_vm1, %v504_v38  ;;  %v548_v10 = vor.u32 %v654_v7, %v545_v8 }
  0x2e   :  { %365 = vmatpush.bf16.msrb.mxu0 %v669_v13  ;;  %v552_v13 = vor.u32 %v656_v12, %v551_v11 }
  0x32   :  { %366 = vmatpush.bf16.msrb.mxu0 %v668_v16  ;;  %341 = vmatmul.bf16.gmra.mxu3 %v508_v43  ;;  %v907_v16 = vld [vmem:[%s1007_s2] ss:$0 sm:$0xff] }
  0x33   :  { %380 = vmatmul.bf16.gmra.mxu1 %v512_v44  ;;  %v444_v44 = vld [vmem:[%s1008_s3 + $0x20] sm:$0xff] }
  0x36   :  { %367 = vmatpush.bf16.msrb.mxu0 %v667_v21 }
  0x3a   :  { %368 = vmatpush.bf16.msrb.mxu0 %v666_v24  ;;  %635 = vmatmul.msk.bf16.gmra.mxu2 %vm300_vm1, %v516_v47  ;;  %v442_v24 = vld [vmem:[%s1008_s3 + $0x10] sm:$0xff] }
  0x3e   :  { %369 = vmatpush.bf16.msrb.mxu0 %v665_v30 }
  0x41   :  { %370 = vmatmul.bf16.vlgmr.msrb.gmra.mxu0 %v488_v50 }
  0x42   :  { %346 = vmatmul.bf16.gmra.mxu3 %v520_v55 }
  0x43   :  { %385 = vmatmul.bf16.gmra.mxu1 %v524_v56 }
  0x4a   :  { %636 = vmatmul.msk.bf16.gmra.mxu2 %vm300_vm1, %v528_v59  ;;  %v441_v59 = vld [vmem:[%s1008_s3 + $0x8] sm:$0xff] }
  0x52   :  { %351 = vmatmul.bf16.gmra.mxu3 %v532_v0 }
  0x53   :  { %390 = vmatmul.bf16.gmra.mxu1 %v536_v1 }
  0x5a   :  { %637 = vmatmul.msk.bf16.gmra.mxu2 %vm300_vm1, %v540_v4 }
  0x62   :  { %356 = vmatmul.bf16.gmra.mxu3 %v544_v9 }
  0x63   :  { %395 = vmatmul.bf16.gmra.mxu1 %v548_v10 }
  0x6a   :  { %638 = vmatmul.msk.bf16.gmra.mxu2 %vm300_vm1, %v552_v13  ;;  %v447_v13 = vld [vmem:[%s1008_s3 + $0x38] sm:$0xff] }
  0x9d   :  { %v410_v14 = vpop.f32.mrf.mxu2 }
  0x9e   :  { %v332_v20 = vpop.f32.mrf.mxu0 }
  0x9f   :  { %v333_v38 = vadd.f32 %v907_v16, %v332_v20 }
  0xa0   :  { %v376_v15 = vpop.f32.mrf.mxu1 }
  0xa5   :  { %v412_v17 = vpop.f32.mrf.mxu2  ;;  %v337_v18 = vpop.f32.mrf.mxu3 }
  0xa6   :  { %v338_v19 = vadd.f32 %v907_v16, %v337_v18  ;;  %v334_v30 = vpop.f32.mrf.mxu0 }
  0xa7   :  { %v335_v51 = vadd.f32 %v907_v16, %v334_v30 }
  0xa8   :  { %v378_v21 = vpop.f32.mrf.mxu1  ;;  %v377_v22 = vadd.f32 %v376_v15, %v338_v19 }
  0xad   :  { %v415_v23 = vpop.f32.mrf.mxu2  ;;  %v339_v26 = vpop.f32.mrf.mxu3 }
  0xae   :  { %v416_v25 = vadd.f32 %v415_v23, %v377_v22  ;;  %v340_v28 = vadd.f32 %v907_v16, %v339_v26 }
  0xb0   :  { %v454_v27 = vadd.f32 %v442_v24, %v416_v25  ;;  %v381_v29 = vpop.f32.mrf.mxu1  ;;  %v379_v31 = vadd.f32 %v378_v21, %v340_v28  ;;  %v448_v21 = vld [vmem:[%s1008_s3 + $0x40] sm:$0xff] }
  0xb2   :  { %467 = vst.msk [vmem:[%s1009_s4 + $0x10] sm:$0xff] %vm464_vm2, %v454_v27 }
  0xb5   :  { %v417_v32 = vpop.f32.mrf.mxu2  ;;  %v342_v35 = vpop.f32.mrf.mxu3 }
  0xb6   :  { %v418_v34 = vadd.f32 %v417_v32, %v379_v31  ;;  %v343_v36 = vadd.f32 %v907_v16, %v342_v35 }
  0xb8   :  { %v455_v37 = vadd.f32 %v443_v33, %v418_v34  ;;  %v383_v39 = vpop.f32.mrf.mxu1  ;;  %v382_v40 = vadd.f32 %v381_v29, %v343_v36  ;;  %v449_v29 = vld [vmem:[%s1008_s3 + $0x48] sm:$0xff] }
  0xba   :  { %468 = vst.msk [vmem:[%s1009_s4 + $0x18] sm:$0xff] %vm464_vm2, %v455_v37  ;;  %v450_v37 = vld [vmem:[%s1008_s3 + $0x50] sm:$0xff] }
  0xbd   :  { %v420_v43 = vpop.f32.mrf.mxu2  ;;  %v344_v47 = vpop.f32.mrf.mxu3 }
  0xbe   :  { %v371_v41 = vpop.f32.mrf.mxu0  ;;  %v421_v46 = vadd.f32 %v420_v43, %v382_v40  ;;  %v345_v50 = vadd.f32 %v907_v16, %v344_v47 }
  0xbf   :  { %v372_v42 = vadd.f32 %v371_v41, %v333_v38 }
  0xc0   :  { %v456_v49 = vadd.f32 %v444_v44, %v421_v46  ;;  %v386_v53 = vpop.f32.mrf.mxu1  ;;  %v384_v55 = vadd.f32 %v383_v39, %v345_v50 }
  0xc1   :  { %v411_v48 = vadd.f32 %v410_v14, %v372_v42 }
  0xc2   :  { %469 = vst.msk [vmem:[%s1009_s4 + $0x20] sm:$0xff] %vm464_vm2, %v456_v49 }
  0xc3   :  { %v452_v52 = vadd.f32 %v440_v45, %v411_v48  ;;  %v451_v45 = vld [vmem:[%s1008_s3 + $0x58] sm:$0xff] }
  0xc5   :  { %465 = vst.msk [vmem:[%s1009_s4] sm:$0xff] %vm464_vm2, %v452_v52  ;;  %v422_v57 = vpop.f32.mrf.mxu2  ;;  %v347_v61 = vpop.f32.mrf.mxu3 }
  0xc6   :  { %v373_v54 = vpop.f32.mrf.mxu0  ;;  %v423_v60 = vadd.f32 %v422_v57, %v384_v55  ;;  %v348_v63 = vadd.f32 %v907_v16, %v347_v61 }
  0xc7   :  { %v374_v56 = vadd.f32 %v373_v54, %v335_v51 }
  0xc8   :  { %v457_v0 = vadd.f32 %v445_v58, %v423_v60  ;;  %v387_v2 = vadd.f32 %v386_v53, %v348_v63  ;;  %v388_v3 = vpop.f32.mrf.mxu1 }
  0xc9   :  { %v413_v62 = vadd.f32 %v412_v17, %v374_v56 }
  0xca   :  { %470 = vst.msk [vmem:[%s1009_s4 + $0x28] sm:$0xff] %vm464_vm2, %v457_v0 }
  0xcb   :  { %v453_v1 = vadd.f32 %v441_v59, %v413_v62 }
  0xcd   :  { %466 = vst.msk [vmem:[%s1009_s4 + $0x8] sm:$0xff] %vm464_vm2, %v453_v1  ;;  %v425_v4 = vpop.f32.mrf.mxu2  ;;  %v349_v7 = vpop.f32.mrf.mxu3 }
  0xce   :  { %v426_v6 = vadd.f32 %v425_v4, %v387_v2  ;;  %v350_v9 = vadd.f32 %v907_v16, %v349_v7 }
  0xd0   :  { %v458_v8 = vadd.f32 %v446_v5, %v426_v6  ;;  %v389_v10 = vadd.f32 %v388_v3, %v350_v9  ;;  %v391_v11 = vpop.f32.mrf.mxu1 }
  0xd2   :  { %471 = vst.msk [vmem:[%s1009_s4 + $0x30] sm:$0xff] %vm464_vm2, %v458_v8 }
  0xd5   :  { %v427_v12 = vpop.f32.mrf.mxu2  ;;  %v352_v15 = vpop.f32.mrf.mxu3 }
  0xd6   :  { %v428_v14 = vadd.f32 %v427_v12, %v389_v10  ;;  %v353_v17 = vadd.f32 %v907_v16, %v352_v15 }
  0xd8   :  { %v459_v18 = vadd.f32 %v447_v13, %v428_v14  ;;  %v392_v19 = vadd.f32 %v391_v11, %v353_v17  ;;  %v393_v24 = vpop.f32.mrf.mxu1 }
  0xda   :  { %472 = vst.msk [vmem:[%s1009_s4 + $0x38] sm:$0xff] %vm464_vm2, %v459_v18 }
  0xdd   :  { %v430_v20 = vpop.f32.mrf.mxu2  ;;  %v354_v23 = vpop.f32.mrf.mxu3 }
  0xde   :  { %v431_v22 = vadd.f32 %v430_v20, %v392_v19  ;;  %v355_v26 = vadd.f32 %v907_v16, %v354_v23 }
  0xe0   :  { %v460_v25 = vadd.f32 %v448_v21, %v431_v22  ;;  %v394_v27 = vadd.f32 %v393_v24, %v355_v26  ;;  %v396_v34 = vpop.f32.mrf.mxu1 }
  0xe2   :  { %473 = vst.msk [vmem:[%s1009_s4 + $0x40] sm:$0xff] %vm464_vm2, %v460_v25 }
  0xe5   :  { %v432_v28 = vpop.f32.mrf.mxu2  ;;  %v357_v31 = vpop.f32.mrf.mxu3 }
  0xe6   :  { %v433_v30 = vadd.f32 %v432_v28, %v394_v27  ;;  %v358_v32 = vadd.f32 %v907_v16, %v357_v31 }
  0xe8   :  { %v461_v33 = vadd.f32 %v449_v29, %v433_v30  ;;  %v397_v35 = vadd.f32 %v396_v34, %v358_v32  ;;  %v398_v42 = vpop.f32.mrf.mxu1 }
  0xea   :  { %474 = vst.msk [vmem:[%s1009_s4 + $0x48] sm:$0xff] %vm464_vm2, %v461_v33 }
  0xed   :  { %v435_v36 = vpop.f32.mrf.mxu2  ;;  %v359_v39 = vpop.f32.mrf.mxu3 }
  0xee   :  { %v436_v38 = vadd.f32 %v435_v36, %v397_v35  ;;  %v360_v41 = vadd.f32 %v907_v16, %v359_v39 }
  0xf0   :  { %v462_v40 = vadd.f32 %v450_v37, %v436_v38  ;;  %v399_v43 = vadd.f32 %v398_v42, %v360_v41 }
  0xf2   :  { %475 = vst.msk [vmem:[%s1009_s4 + $0x50] sm:$0xff] %vm464_vm2, %v462_v40 }
  0xf5   :  { %v437_v44 = vpop.f32.mrf.mxu2 }
  0xf6   :  { %v438_v46 = vadd.f32 %v437_v44, %v399_v43 }
  0xf8   :  { %v463_v47 = vadd.f32 %v451_v45, %v438_v46 }
  0xfa   :  { %476 = vst.msk [vmem:[%s1009_s4 + $0x58] sm:$0xff] %vm464_vm2, %v463_v47 }

// kernel: _lambda_.27
= control target key start
LH: loop header
LB: loop body
LE: loop exit
PB: predicated region body
PF: predicated region fallthrough
CT: control target
= control target key end

     0   :  { %vm85_vm0 = vcmask 392192   ;;  %vm143_vm1 = vcmask 80896   ;;  %s319_s1 = inlined_call_operand.vmem [shape: bf16[48,10], index: 1, kind: input, shape index: {}]   ;;  %s320_s2 = inlined_call_operand.vmem [shape: f32[1,10], index: 2, kind: input, shape index: {}]   ;;  %s321_s0 = inlined_call_operand.vmem [shape: bf16[96,48], index: 0, kind: input, shape index: {}]   ;;  %s322_s3 = inlined_call_operand.vmem [shape: f32[96,10], index: 3, kind: output, shape index: {}]  }
   0x1   :  { %v210_v0 = vld [vmem:[%s319_s1 + $0x10] sm:$0xff]  ;;  %v209_v1 = vld [vmem:[%s319_s1 + $0x8] sm:$0xff]  ;;  %v208_v2 = vld [vmem:[%s319_s1] sm:$0xff] }
   0x2   :  { %211 = vmatpush.bf16.msra.mxu1 %v210_v0  ;;  %212 = vmatpush.bf16.msra.mxu2 %v210_v0  ;;  %v203_v3 = vld [vmem:[%s321_s0 + $0x8] sm:$0xff]  ;;  %v205_v4 = vld [vmem:[%s321_s0 + $0x18] sm:$0xff]  ;;  %v202_v6 = vld [vmem:[%s321_s0] sm:$0xff] }
   0x3   :  { %213 = vmatpush.bf16.msra.mxu3 %v210_v0  ;;  %109 = vmatpush.bf16.msra.mxu0 %v210_v0  ;;  %v207_v5 = vld [vmem:[%s321_s0 + $0x28] sm:$0xff]  ;;  %v204_v7 = vld [vmem:[%s321_s0 + $0x10] sm:$0xff]  ;;  %v206_v8 = vld [vmem:[%s321_s0 + $0x20] sm:$0xff] }
   0x4   :  { %v220_v9 = vld [vmem:[%s320_s2] ss:$0 sm:$0xff] }
   0x6   :  { %214 = vmatpush.bf16.msra.mxu1 %v209_v1  ;;  %215 = vmatpush.bf16.msra.mxu2 %v209_v1 }
   0x7   :  { %216 = vmatpush.bf16.msra.mxu3 %v209_v1  ;;  %110 = vmatpush.bf16.msra.mxu0 %v209_v1 }
   0xa   :  { %217 = vmatpush.bf16.msra.mxu1 %v208_v2  ;;  %218 = vmatpush.bf16.msra.mxu2 %v208_v2 }
   0xb   :  { %219 = vmatpush.bf16.msra.mxu3 %v208_v2  ;;  %111 = vmatpush.bf16.msra.mxu0 %v208_v2 }
   0xd   :  { %197 = vmatmul.msk.bf16.vlgmr.msra.gmra.mxu1 %vm85_vm0, %v203_v3  ;;  %199 = vmatmul.msk.bf16.vlgmr.msra.gmra.mxu2 %vm85_vm0, %v205_v4 }
   0xe   :  { %201 = vmatmul.msk.bf16.vlgmr.msra.gmra.mxu3 %vm85_vm0, %v207_v5  ;;  %196 = vmatmul.msk.bf16.vlgmr.msra.gmra.mxu0 %vm85_vm0, %v202_v6 }
  0x1d   :  { %198 = vmatmul.msk.bf16.gmra.mxu1 %vm85_vm0, %v204_v7  ;;  %200 = vmatmul.msk.bf16.gmra.mxu2 %vm85_vm0, %v206_v8 }
  0x8a   :  { %v118_v10 = vpop.f32.mrf.mxu1 }
  0x8b   :  { %v119_v11 = vadd.f32 %v220_v9, %v118_v10  ;;  %v113_v12 = vpop.f32.mrf.mxu0 }
  0x8c   :  { %v114_v13 = vadd.f32 %v220_v9, %v113_v12 }
  0x8d   :  { %146 = vst.msk [vmem:[%s322_s3 + $0x10] sm:$0xff] %vm143_vm1, %v119_v11 }
  0x8e   :  { %144 = vst.msk [vmem:[%s322_s3] sm:$0xff] %vm143_vm1, %v114_v13 }
  0x90   :  { %v128_v14 = vpop.f32.mrf.mxu2 }
  0x91   :  { %v129_v15 = vadd.f32 %v220_v9, %v128_v14  ;;  %v138_v16 = vpop.f32.mrf.mxu3 }
  0x92   :  { %v120_v17 = vpop.f32.mrf.mxu1  ;;  %v139_v18 = vadd.f32 %v220_v9, %v138_v16 }
  0x93   :  { %150 = vst.msk [vmem:[%s322_s3 + $0x30] sm:$0xff] %vm143_vm1, %v129_v15  ;;  %v121_v19 = vadd.f32 %v220_v9, %v120_v17  ;;  %v115_v20 = vpop.f32.mrf.mxu0 }
  0x94   :  { %154 = vst.msk [vmem:[%s322_s3 + $0x50] sm:$0xff] %vm143_vm1, %v139_v18  ;;  %v116_v21 = vadd.f32 %v220_v9, %v115_v20 }
  0x95   :  { %147 = vst.msk [vmem:[%s322_s3 + $0x18] sm:$0xff] %vm143_vm1, %v121_v19 }
  0x96   :  { %145 = vst.msk [vmem:[%s322_s3 + $0x8] sm:$0xff] %vm143_vm1, %v116_v21 }
  0x98   :  { %v130_v22 = vpop.f32.mrf.mxu2 }
  0x99   :  { %v131_v23 = vadd.f32 %v220_v9, %v130_v22  ;;  %v140_v24 = vpop.f32.mrf.mxu3 }
  0x9a   :  { %v123_v25 = vpop.f32.mrf.mxu1  ;;  %v141_v26 = vadd.f32 %v220_v9, %v140_v24 }
  0x9b   :  { %151 = vst.msk [vmem:[%s322_s3 + $0x38] sm:$0xff] %vm143_vm1, %v131_v23  ;;  %v124_v27 = vadd.f32 %v220_v9, %v123_v25 }
  0x9c   :  { %155 = vst.msk [vmem:[%s322_s3 + $0x58] sm:$0xff] %vm143_vm1, %v141_v26 }
  0x9d   :  { %148 = vst.msk [vmem:[%s322_s3 + $0x20] sm:$0xff] %vm143_vm1, %v124_v27 }
  0xa0   :  { %v133_v28 = vpop.f32.mrf.mxu2 }
  0xa1   :  { %v134_v29 = vadd.f32 %v220_v9, %v133_v28 }
  0xa2   :  { %v125_v30 = vpop.f32.mrf.mxu1 }
  0xa3   :  { %152 = vst.msk [vmem:[%s322_s3 + $0x40] sm:$0xff] %vm143_vm1, %v134_v29  ;;  %v126_v31 = vadd.f32 %v220_v9, %v125_v30 }
  0xa5   :  { %149 = vst.msk [vmem:[%s322_s3 + $0x28] sm:$0xff] %vm143_vm1, %v126_v31 }
  0xa8   :  { %v135_v32 = vpop.f32.mrf.mxu2 }
  0xa9   :  { %v136_v33 = vadd.f32 %v220_v9, %v135_v32 }
  0xab   :  { %153 = vst.msk [vmem:[%s322_s3 + $0x48] sm:$0xff] %vm143_vm1, %v136_v33 }

</bundles_post_ra>
